<compile_context>
chip_gen: v7x
topology: tpu7x:2x2x1
jax: 0.10.0
libtpu: 0.0.40
codegen_flags: <defaults>
</compile_context>

<pallas_src>
import functools
import math

import jax
import jax.numpy as jnp
from jax.experimental import pallas as pl

CFG = dict(
    enc_in=4, dec_in=4, c_out=4,
    seq_len=8, label_len=4, pred_len=4,
    d_model=32, n_heads=4, d_ff=64,
    e_layers=2, d_layers=1,
    factor=5, dropout=0.0,              # dropout=0 -> identity (eval semantics)
    embed="timeF", freq="h",            # TimeFeatureEmbedding with 4 features
    activation="relu", distil=False,
    output_attention=False, add_revin=False,
)
MARK_DIM = 4        # freq 'h' -> 4 time-feature channels
LN_EPS = 1e-5       # torch.nn.LayerNorm default
NEG_BIG = -1e30     # finite mask value (avoids inf-inf NaN on masked rows)


def _round_up(x, m):
    return (x + m - 1) // m * m


# ----------------------------------------------------------------------------
# Parameter slab layout (shared by wrapper-side packing and in-kernel slicing)
# ----------------------------------------------------------------------------
def _build_layout(cfg):
    D, F, c_out = cfg["d_model"], cfg["d_ff"], cfg["c_out"]
    m32, m64, vec = {}, {}, {}
    st = {"o32": 0, "o64": 0, "nv": 0}

    def a32(name, w):                       # (D, w) matrix, 128-lane-aligned slot
        m32[name] = (st["o32"], w)
        st["o32"] += _round_up(w, 128)

    def a64(name, w):                       # (F, w) matrix
        m64[name] = (st["o64"], w)
        st["o64"] += _round_up(w, 128)

    def av(name, w):                        # 1-D vector, one 128-lane row
        assert w <= 128
        vec[name] = (st["nv"], w)
        st["nv"] += 1

    for l in range(cfg["e_layers"]):
        a32(f"enc{l}_wqkv", 3 * D); a32(f"enc{l}_wo", D); a32(f"enc{l}_w1", F)
        a64(f"enc{l}_w2", D)
        av(f"enc{l}_bqkv", 3 * D); av(f"enc{l}_bo", D)
        av(f"enc{l}_b1", F); av(f"enc{l}_b2", D)
        for n in ("ln1_g", "ln1_b", "ln2_g", "ln2_b"):
            av(f"enc{l}_{n}", D)
    for l in range(cfg["d_layers"]):
        a32(f"dec{l}_swqkv", 3 * D); a32(f"dec{l}_swo", D)
        a32(f"dec{l}_cwq", D); a32(f"dec{l}_cwkv", 2 * D); a32(f"dec{l}_cwo", D)
        a32(f"dec{l}_w1", F)
        a64(f"dec{l}_w2", D)
        av(f"dec{l}_sbqkv", 3 * D); av(f"dec{l}_sbo", D)
        av(f"dec{l}_cbq", D); av(f"dec{l}_cbkv", 2 * D); av(f"dec{l}_cbo", D)
        av(f"dec{l}_b1", F); av(f"dec{l}_b2", D)
        for n in ("ln1_g", "ln1_b", "ln2_g", "ln2_b", "ln3_g", "ln3_b"):
            av(f"dec{l}_{n}", D)
    a32("proj_w", c_out)
    for n in ("enc_norm_g", "enc_norm_b", "dec_norm_g", "dec_norm_b"):
        av(n, D)
    av("proj_b", c_out)
    return dict(m32=m32, m64=m64, vec=vec,
                n32=st["o32"], n64=st["o64"], nvec=_round_up(st["nv"], 8))


# ----------------------------------------------------------------------------
# In-kernel helpers
# ----------------------------------------------------------------------------
def _ln(x, g, b, eps):
    x = x.astype(jnp.float32)
    mu = jnp.mean(x, axis=-1, keepdims=True)
    var = jnp.mean(jnp.square(x - mu), axis=-1, keepdims=True)
    return (x - mu) * jax.lax.rsqrt(var + eps) * g + b


def _act(y, act):
    if act == "relu":
        return jnp.maximum(y, 0.0)
    if act == "gelu":
        return jax.nn.gelu(y, approximate=False)
    return y


# ----------------------------------------------------------------------------
# The single fused kernel
# ----------------------------------------------------------------------------
def _informer_kernel(xe_ref, me_ref, xd_ref, md_ref, pos_ref,
                     embw_ref, m32_ref, m64_ref, vec_ref,
                     o_ref, *, cfg, lay):
    D, H = cfg["d_model"], cfg["n_heads"]
    act, eps = cfg["activation"], LN_EPS
    B, Le, _ = xe_ref.shape
    Ld = xd_ref.shape[1]
    dh = D // H
    scale = 1.0 / math.sqrt(dh)

    # ---- packed-parameter getters (static-offset ref window loads) ----
    def g32(name):
        o, w = lay["m32"][name]
        return m32_ref[:, o:o + w]

    def g64(name):
        o, w = lay["m64"][name]
        return m64_ref[:, o:o + w]

    def gv(name):
        r, w = lay["vec"][name]
        return vec_ref[r][:w].reshape(1, w)

    # ---- DataEmbedding: circular Conv1d(k=3) + timeF Linear + positional ----
    def embed(xb, markb, base, L):
        # circular shifts built as tiny permutation matmuls (iota/compare/dot):
        # MXU-friendly and avoids unaligned sublane shuffles for the wrap rows.
        r = jax.lax.broadcasted_iota(jnp.int32, (L, L), 0)
        c = jax.lax.broadcasted_iota(jnp.int32, (L, L), 1)
        p_prev = ((r + L - 1) % L == c).astype(jnp.float32)   # row t <- x[t-1 mod L]
        p_next = ((r + 1) % L == c).astype(jnp.float32)       # row t <- x[t+1 mod L]
        xb = xb.astype(jnp.float32)
        prev = jnp.dot(p_prev, xb, preferred_element_type=jnp.float32)
        nxt = jnp.dot(p_next, xb, preferred_element_type=jnp.float32)
        taps = (prev, xb, nxt, markb.astype(jnp.float32))
        y = pos_ref[0:L, :].astype(jnp.float32)
        for k, t in enumerate(taps):
            w = embw_ref[:, (base + k) * 128:(base + k) * 128 + D]
            y = y + jnp.dot(t, w, preferred_element_type=jnp.float32)
        return y

    # ---- multi-head attention; heads = static lane slices, WO folded per-head
    def mha(q_all, k_all, v_all, wo, mask=None):
        lq = q_all.shape[0]
        out = jnp.zeros((lq, D), jnp.float32)
        for h in range(H):
            sl = slice(h * dh, (h + 1) * dh)
            q, k, v = q_all[:, sl], k_all[:, sl], v_all[:, sl]
            s = jax.lax.dot_general(q, k, (((1,), (1,)), ((), ())),
                                    preferred_element_type=jnp.float32) * scale
            if mask is not None:
                s = jnp.where(mask, s, NEG_BIG)
            s = s - jnp.max(s, axis=-1, keepdims=True)
            p = jnp.exp(s)
            oh = jnp.dot(p, v, preferred_element_type=jnp.float32)
            oh = oh / jnp.sum(p, axis=-1, keepdims=True)        # exact softmax denom
            out = out + jnp.dot(oh, wo[sl, :], preferred_element_type=jnp.float32)
        return out

    def enc_layer(x, l):
        pre = f"enc{l}_"
        qkv = jnp.dot(x, g32(pre + "wqkv"),
                      preferred_element_type=jnp.float32) + gv(pre + "bqkv")
        attn = mha(qkv[:, :D], qkv[:, D:2 * D], qkv[:, 2 * D:],
                   g32(pre + "wo")) + gv(pre + "bo")
        x = _ln(x + attn, gv(pre + "ln1_g"), gv(pre + "ln1_b"), eps)
        y = _act(jnp.dot(x, g32(pre + "w1"),
                         preferred_element_type=jnp.float32) + gv(pre + "b1"), act)
        y = jnp.dot(y, g64(pre + "w2"),
                    preferred_element_type=jnp.float32) + gv(pre + "b2")
        return _ln(x + y, gv(pre + "ln2_g"), gv(pre + "ln2_b"), eps)

    def dec_layer(x, cx, l):
        pre = f"dec{l}_"
        # causal self-attention (ProbMask == causal mask: all queries selected)
        qkv = jnp.dot(x, g32(pre + "swqkv"),
                      preferred_element_type=jnp.float32) + gv(pre + "sbqkv")
        row = jax.lax.broadcasted_iota(jnp.int32, (Ld, Ld), 0)
        col = jax.lax.broadcasted_iota(jnp.int32, (Ld, Ld), 1)
        self_out = mha(qkv[:, :D], qkv[:, D:2 * D], qkv[:, 2 * D:],
                       g32(pre + "swo"), mask=(col <= row)) + gv(pre + "sbo")
        x = _ln(x + self_out, gv(pre + "ln1_g"), gv(pre + "ln1_b"), eps)
        # cross attention (no mask)
        q = jnp.dot(x, g32(pre + "cwq"),
                    preferred_element_type=jnp.float32) + gv(pre + "cbq")
        kv = jnp.dot(cx, g32(pre + "cwkv"),
                     preferred_element_type=jnp.float32) + gv(pre + "cbkv")
        cross = mha(q, kv[:, :D], kv[:, D:], g32(pre + "cwo")) + gv(pre + "cbo")
        x = _ln(x + cross, gv(pre + "ln2_g"), gv(pre + "ln2_b"), eps)
        # feed-forward
        y = _act(jnp.dot(x, g32(pre + "w1"),
                         preferred_element_type=jnp.float32) + gv(pre + "b1"), act)
        y = jnp.dot(y, g64(pre + "w2"),
                    preferred_element_type=jnp.float32) + gv(pre + "b2")
        return _ln(x + y, gv(pre + "ln3_g"), gv(pre + "ln3_b"), eps)

    # ---- full forward, batch unrolled statically (B is tiny) ----
    for b in range(B):
        enc = embed(xe_ref[b], me_ref[b], 0, Le)
        for l in range(cfg["e_layers"]):
            enc = enc_layer(enc, l)
        enc = _ln(enc, gv("enc_norm_g"), gv("enc_norm_b"), eps)

        dec = embed(xd_ref[b], md_ref[b], 4, Ld)
        for l in range(cfg["d_layers"]):
            dec = dec_layer(dec, enc, l)
        dec = _ln(dec, gv("dec_norm_g"), gv("dec_norm_b"), eps)
        out = jnp.dot(dec, g32("proj_w"),
                      preferred_element_type=jnp.float32) + gv("proj_b")
        o_ref[b] = out.astype(o_ref.dtype)


# ----------------------------------------------------------------------------
# Wrapper: one pallas_call, everything VMEM resident, no grid
# ----------------------------------------------------------------------------
def _assert_probsparse_exact(l_q, factor):
    u = factor * int(math.ceil(math.log(l_q)))
    if u < l_q:
        raise NotImplementedError(
            "ProbSparse top-u subsampling (u < L_Q) not implemented; "
            f"got u={u} < L_Q={l_q}. Increase factor or shorten sequence.")


def informer_forward(packed, x_enc, x_mark_enc, x_dec, x_mark_dec, *, cfg, lay):
    _assert_probsparse_exact(cfg["seq_len"], cfg["factor"])
    _assert_probsparse_exact(cfg["label_len"] + cfg["pred_len"], cfg["factor"])
    B = x_enc.shape[0]
    Ld = x_dec.shape[1]
    out = pl.pallas_call(
        functools.partial(_informer_kernel, cfg=cfg, lay=lay),
        out_shape=jax.ShapeDtypeStruct((B, Ld, cfg["c_out"]), jnp.float32),
    )(x_enc, x_mark_enc, x_dec, x_mark_dec,
      packed["pos"], packed["emb_w"], packed["mat32"], packed["mat64"],
      packed["vecs"])
    # row-wise LN/projection already applied; slice to the prediction window.
    return out[:, -cfg["pred_len"]:, :]


# ----------------------------------------------------------------------------
# Parameter construction / packing (outside jit; runs once)
# ----------------------------------------------------------------------------
def positional_embedding(length, d_model):
    pos = jnp.arange(length, dtype=jnp.float32)[:, None]
    div = jnp.exp(jnp.arange(0, d_model, 2, dtype=jnp.float32)
                  * (-math.log(10000.0) / d_model))
    pe = jnp.zeros((length, d_model), jnp.float32)
    pe = pe.at[:, 0::2].set(jnp.sin(pos * div))
    pe = pe.at[:, 1::2].set(jnp.cos(pos * div))
    return pe


def pack_params(params, cfg, lay):
    D, F, c_in = cfg["d_model"], cfg["d_ff"], cfg["enc_in"]
    assert c_in == cfg["dec_in"] == MARK_DIM
    mat32 = jnp.zeros((D, lay["n32"]), jnp.float32)
    mat64 = jnp.zeros((F, lay["n64"]), jnp.float32)
    vecs = jnp.zeros((lay["nvec"], 128), jnp.float32)
    embw = jnp.zeros((c_in, 8 * 128), jnp.float32)

    def p32(name, w):
        nonlocal mat32
        o, width = lay["m32"][name]
        assert w.shape == (D, width), (name, w.shape)
        mat32 = mat32.at[:, o:o + width].set(w)

    def p64(name, w):
        nonlocal mat64
        o, width = lay["m64"][name]
        assert w.shape == (F, width), (name, w.shape)
        mat64 = mat64.at[:, o:o + width].set(w)

    def pv(name, v):
        nonlocal vecs
        r, width = lay["vec"][name]
        assert v.shape == (width,), (name, v.shape)
        vecs = vecs.at[r, :width].set(v)

    def pemb(slot, w):                      # slot 0..7, w: (c_in, D)
        nonlocal embw
        embw = embw.at[:, slot * 128:slot * 128 + D].set(w)

    for l, lp in enumerate(params["enc_layers"]):
        a = lp["attn"]
        p32(f"enc{l}_wqkv", a["wqkv"]); p32(f"enc{l}_wo", a["wo"])
        p32(f"enc{l}_w1", lp["w1"]); p64(f"enc{l}_w2", lp["w2"])
        pv(f"enc{l}_bqkv", a["bqkv"]); pv(f"enc{l}_bo", a["bo"])
        pv(f"enc{l}_b1", lp["b1"]); pv(f"enc{l}_b2", lp["b2"])
        pv(f"enc{l}_ln1_g", lp["ln1_g"]); pv(f"enc{l}_ln1_b", lp["ln1_b"])
        pv(f"enc{l}_ln2_g", lp["ln2_g"]); pv(f"enc{l}_ln2_b", lp["ln2_b"])
    for l, lp in enumerate(params["dec_layers"]):
        sa, ca = lp["self_attn"], lp["cross_attn"]
        p32(f"dec{l}_swqkv", sa["wqkv"]); p32(f"dec{l}_swo", sa["wo"])
        p32(f"dec{l}_cwq", ca["wq"]); p32(f"dec{l}_cwkv", ca["wkv"])
        p32(f"dec{l}_cwo", ca["wo"]); p32(f"dec{l}_w1", lp["w1"])
        p64(f"dec{l}_w2", lp["w2"])
        pv(f"dec{l}_sbqkv", sa["bqkv"]); pv(f"dec{l}_sbo", sa["bo"])
        pv(f"dec{l}_cbq", ca["bq"]); pv(f"dec{l}_cbkv", ca["bkv"])
        pv(f"dec{l}_cbo", ca["bo"])
        pv(f"dec{l}_b1", lp["b1"]); pv(f"dec{l}_b2", lp["b2"])
        pv(f"dec{l}_ln1_g", lp["ln1_g"]); pv(f"dec{l}_ln1_b", lp["ln1_b"])
        pv(f"dec{l}_ln2_g", lp["ln2_g"]); pv(f"dec{l}_ln2_b", lp["ln2_b"])
        pv(f"dec{l}_ln3_g", lp["ln3_g"]); pv(f"dec{l}_ln3_b", lp["ln3_b"])
    p32("proj_w", params["proj_w"])
    pv("enc_norm_g", params["enc_norm_g"]); pv("enc_norm_b", params["enc_norm_b"])
    pv("dec_norm_g", params["dec_norm_g"]); pv("dec_norm_b", params["dec_norm_b"])
    pv("proj_b", params["proj_b"])

    # Embedding weights: circular Conv1d(k=3) taps [t-1 | t | t+1] + timeF Linear.
    # TODO(synk): real torch Conv1d weights are (d_model, c_in, 3); permute to the
    # tap-major (3*c_in, d_model) layout used here before reusing this packing.
    for s, p in enumerate((params["enc_emb"], params["dec_emb"])):
        conv = p["conv_w"]                                   # (3*c_in, D) tap-major
        for k in range(3):
            pemb(4 * s + k, conv[k * c_in:(k + 1) * c_in])
        pemb(4 * s + 3, p["temp_w"])

    l_max = max(cfg["seq_len"], cfg["label_len"] + cfg["pred_len"])
    pos = positional_embedding(l_max, D)
    return dict(mat32=mat32, mat64=mat64, vecs=vecs, emb_w=embw, pos=pos)


def init_params(key, cfg):
    d_model, d_ff, c_out = cfg["d_model"], cfg["d_ff"], cfg["c_out"]
    keys = iter(jax.random.split(key, 256))

    def W(din, dout):
        return jax.random.normal(next(keys), (din, dout), jnp.float32) * 0.05

    def b0(d):
        return jnp.zeros((d,), jnp.float32)

    def ones(d):
        return jnp.ones((d,), jnp.float32)

    def self_attn_p():
        return dict(wqkv=W(d_model, 3 * d_model), bqkv=b0(3 * d_model),
                    wo=W(d_model, d_model), bo=b0(d_model))

    def cross_attn_p():
        return dict(wq=W(d_model, d_model), bq=b0(d_model),
                    wkv=W(d_model, 2 * d_model), bkv=b0(2 * d_model),
                    wo=W(d_model, d_model), bo=b0(d_model))

    def emb_p(c_in):
        return dict(conv_w=W(3 * c_in, d_model),      # Conv1d k=3, bias=False
                    temp_w=W(MARK_DIM, d_model))      # timeF Linear, bias=False

    def enc_layer_p():
        return dict(attn=self_attn_p(),
                    w1=W(d_model, d_ff), b1=b0(d_ff),
                    w2=W(d_ff, d_model), b2=b0(d_model),
                    ln1_g=ones(d_model), ln1_b=b0(d_model),
                    ln2_g=ones(d_model), ln2_b=b0(d_model))

    def dec_layer_p():
        return dict(self_attn=self_attn_p(), cross_attn=cross_attn_p(),
                    w1=W(d_model, d_ff), b1=b0(d_ff),
                    w2=W(d_ff, d_model), b2=b0(d_model),
                    ln1_g=ones(d_model), ln1_b=b0(d_model),
                    ln2_g=ones(d_model), ln2_b=b0(d_model),
                    ln3_g=ones(d_model), ln3_b=b0(d_model))

    return dict(
        enc_emb=emb_p(cfg["enc_in"]),
        dec_emb=emb_p(cfg["dec_in"]),
        enc_layers=[enc_layer_p() for _ in range(cfg["e_layers"])],
        dec_layers=[dec_layer_p() for _ in range(cfg["d_layers"])],
        enc_norm_g=ones(d_model), enc_norm_b=b0(d_model),
        dec_norm_g=ones(d_model), dec_norm_b=b0(d_model),
        proj_w=W(d_model, c_out), proj_b=b0(c_out),
    )


if __name__ == "__main__":
    key = jax.random.PRNGKey(0)
    kp, k1, k2, k3, k4 = jax.random.split(key, 5)
    params = init_params(kp, CFG)
    lay = _build_layout(CFG)
    packed = pack_params(params, CFG, lay)          # one-time packing, outside jit

    B = 2
    dec_len = CFG["label_len"] + CFG["pred_len"]
    x_enc = jax.random.normal(k1, (B, CFG["seq_len"], CFG["enc_in"]), jnp.float32)
    x_mark_enc = jax.random.normal(k2, (B, CFG["seq_len"], MARK_DIM), jnp.float32)
    x_dec = jax.random.normal(k3, (B, dec_len, CFG["dec_in"]), jnp.float32)
    x_mark_dec = jax.random.normal(k4, (B, dec_len, MARK_DIM), jnp.float32)

    fwd = jax.jit(functools.partial(informer_forward, cfg=CFG, lay=lay))
    out = jax.block_until_ready(fwd(packed, x_enc, x_mark_enc, x_dec, x_mark_dec))

    assert out.shape == (B, CFG["pred_len"], CFG["c_out"]), out.shape
    assert bool(jnp.all(jnp.isfinite(out)))
    print("KERNEL_OK")
</pallas_src>

<mosaic_0001>
module attributes {stable_mosaic.version = 11 : i64} {
  func.func @_informer_kernel(%arg0: memref<2x8x4xf32, #tpu.memory_space<vmem>>, %arg1: memref<2x8x4xf32, #tpu.memory_space<vmem>>, %arg2: memref<2x8x4xf32, #tpu.memory_space<vmem>>, %arg3: memref<2x8x4xf32, #tpu.memory_space<vmem>>, %arg4: memref<8x32xf32, #tpu.memory_space<vmem>>, %arg5: memref<4x1024xf32, #tpu.memory_space<vmem>>, %arg6: memref<32x1664xf32, #tpu.memory_space<vmem>>, %arg7: memref<64x384xf32, #tpu.memory_space<vmem>>, %arg8: memref<40x128xf32, #tpu.memory_space<vmem>>, %arg9: memref<2x8x4xf32, #tpu.memory_space<vmem>>) attributes {dimension_semantics = [], scalar_prefetch = 0 : i64, scratch_operands = 0 : i64, tpu.core_type = #tpu.core_type<tc>} {
    %c0 = arith.constant 0 : index
    %c0_0 = arith.constant 0 : index
    %c0_1 = arith.constant 0 : index
    %0 = vector.load %arg0[%c0, %c0_0, %c0_1] : memref<2x8x4xf32, #tpu.memory_space<vmem>>, vector<1x8x4xf32>
    %1 = vector.shape_cast %0 : vector<1x8x4xf32> to vector<8x4xf32>
    %c0_2 = arith.constant 0 : index
    %c0_3 = arith.constant 0 : index
    %c0_4 = arith.constant 0 : index
    %2 = vector.load %arg1[%c0_2, %c0_3, %c0_4] : memref<2x8x4xf32, #tpu.memory_space<vmem>>, vector<1x8x4xf32>
    %3 = vector.shape_cast %2 : vector<1x8x4xf32> to vector<8x4xf32>
    %4 = tpu.iota {dimensions = array<i32: 0>} : vector<8x8xi32>
    %5 = tpu.iota {dimensions = array<i32: 1>} : vector<8x8xi32>
    %c8_i32 = arith.constant 8 : i32
    %6 = vector.broadcast %c8_i32 : i32 to vector<8x8xi32>
    %7 = arith.addi %4, %6 : vector<8x8xi32>
    %c1_i32 = arith.constant 1 : i32
    %8 = vector.broadcast %c1_i32 : i32 to vector<8x8xi32>
    %9 = arith.subi %7, %8 : vector<8x8xi32>
    %c8_i32_5 = arith.constant 8 : i32
    %c0_i32 = arith.constant 0 : i32
    %10 = arith.cmpi eq, %c8_i32_5, %c0_i32 : i32
    %c1_i32_6 = arith.constant 1 : i32
    %11 = arith.select %10, %c1_i32_6, %c8_i32_5 : i32
    %12 = vector.broadcast %11 : i32 to vector<8x8xi32>
    %13 = arith.remsi %9, %12 : vector<8x8xi32>
    %c0_i32_7 = arith.constant 0 : i32
    %14 = vector.broadcast %c0_i32_7 : i32 to vector<8x8xi32>
    %15 = arith.cmpi ne, %13, %14 : vector<8x8xi32>
    %c0_i32_8 = arith.constant 0 : i32
    %16 = vector.broadcast %c0_i32_8 : i32 to vector<8x8xi32>
    %17 = arith.cmpi slt, %13, %16 : vector<8x8xi32>
    %c0_i32_9 = arith.constant 0 : i32
    %18 = arith.cmpi slt, %11, %c0_i32_9 : i32
    %19 = vector.broadcast %18 : i1 to vector<8x8xi1>
    %20 = vector.broadcast %19 : vector<8x8xi1> to vector<8x8xi1>
    %21 = arith.xori %17, %20 : vector<8x8xi1>
    %22 = arith.andi %21, %15 : vector<8x8xi1>
    %23 = vector.broadcast %11 : i32 to vector<8x8xi32>
    %24 = arith.addi %13, %23 : vector<8x8xi32>
    %25 = arith.select %22, %24, %13 : vector<8x8xi1>, vector<8x8xi32>
    %26 = arith.cmpi eq, %25, %5 : vector<8x8xi32>
    %27 = arith.extui %26 : vector<8x8xi1> to vector<8x8xi32>
    %28 = arith.sitofp %27 : vector<8x8xi32> to vector<8x8xf32>
    %c1_i32_10 = arith.constant 1 : i32
    %29 = vector.broadcast %c1_i32_10 : i32 to vector<8x8xi32>
    %30 = arith.addi %4, %29 : vector<8x8xi32>
    %c8_i32_11 = arith.constant 8 : i32
    %c0_i32_12 = arith.constant 0 : i32
    %31 = arith.cmpi eq, %c8_i32_11, %c0_i32_12 : i32
    %c1_i32_13 = arith.constant 1 : i32
    %32 = arith.select %31, %c1_i32_13, %c8_i32_11 : i32
    %33 = vector.broadcast %32 : i32 to vector<8x8xi32>
    %34 = arith.remsi %30, %33 : vector<8x8xi32>
    %c0_i32_14 = arith.constant 0 : i32
    %35 = vector.broadcast %c0_i32_14 : i32 to vector<8x8xi32>
    %36 = arith.cmpi ne, %34, %35 : vector<8x8xi32>
    %c0_i32_15 = arith.constant 0 : i32
    %37 = vector.broadcast %c0_i32_15 : i32 to vector<8x8xi32>
    %38 = arith.cmpi slt, %34, %37 : vector<8x8xi32>
    %c0_i32_16 = arith.constant 0 : i32
    %39 = arith.cmpi slt, %32, %c0_i32_16 : i32
    %40 = vector.broadcast %39 : i1 to vector<8x8xi1>
    %41 = vector.broadcast %40 : vector<8x8xi1> to vector<8x8xi1>
    %42 = arith.xori %38, %41 : vector<8x8xi1>
    %43 = arith.andi %42, %36 : vector<8x8xi1>
    %44 = vector.broadcast %32 : i32 to vector<8x8xi32>
    %45 = arith.addi %34, %44 : vector<8x8xi32>
    %46 = arith.select %43, %45, %34 : vector<8x8xi1>, vector<8x8xi32>
    %47 = arith.cmpi eq, %46, %5 : vector<8x8xi32>
    %48 = arith.extui %47 : vector<8x8xi1> to vector<8x8xi32>
    %49 = arith.sitofp %48 : vector<8x8xi32> to vector<8x8xf32>
    %cst = arith.constant dense<0.000000e+00> : vector<8x4xf32>
    %50 = tpu.matmul %28, %1, %cst {dimension_numbers = #tpu.dot_dimension_numbers<[1], [0], [0], [1], [0, 0, 1, 1], [], []>} : vector<8x8xf32>, vector<8x4xf32>, vector<8x4xf32> -> vector<8x4xf32>
    %cst_17 = arith.constant dense<0.000000e+00> : vector<8x4xf32>
    %51 = tpu.matmul %49, %1, %cst_17 {dimension_numbers = #tpu.dot_dimension_numbers<[1], [0], [0], [1], [0, 0, 1, 1], [], []>} : vector<8x8xf32>, vector<8x4xf32>, vector<8x4xf32> -> vector<8x4xf32>
    %c0_18 = arith.constant 0 : index
    %c0_19 = arith.constant 0 : index
    %52 = vector.load %arg4[%c0_18, %c0_19] : memref<8x32xf32, #tpu.memory_space<vmem>>, vector<8x32xf32>
    %c0_20 = arith.constant 0 : index
    %c0_21 = arith.constant 0 : index
    %53 = vector.load %arg5[%c0_20, %c0_21] : memref<4x1024xf32, #tpu.memory_space<vmem>>, vector<4x32xf32>
    %cst_22 = arith.constant dense<0.000000e+00> : vector<8x32xf32>
    %54 = tpu.matmul %50, %53, %cst_22 {dimension_numbers = #tpu.dot_dimension_numbers<[1], [0], [0], [1], [0, 0, 1, 1], [], []>} : vector<8x4xf32>, vector<4x32xf32>, vector<8x32xf32> -> vector<8x32xf32>
    %55 = arith.addf %52, %54 : vector<8x32xf32>
    %c0_23 = arith.constant 0 : index
    %c128 = arith.constant 128 : index
    %56 = vector.load %arg5[%c0_23, %c128] : memref<4x1024xf32, #tpu.memory_space<vmem>>, vector<4x32xf32>
    %cst_24 = arith.constant dense<0.000000e+00> : vector<8x32xf32>
    %57 = tpu.matmul %1, %56, %cst_24 {dimension_numbers = #tpu.dot_dimension_numbers<[1], [0], [0], [1], [0, 0, 1, 1], [], []>} : vector<8x4xf32>, vector<4x32xf32>, vector<8x32xf32> -> vector<8x32xf32>
    %58 = arith.addf %55, %57 : vector<8x32xf32>
    %c0_25 = arith.constant 0 : index
    %c256 = arith.constant 256 : index
    %59 = vector.load %arg5[%c0_25, %c256] : memref<4x1024xf32, #tpu.memory_space<vmem>>, vector<4x32xf32>
    %cst_26 = arith.constant dense<0.000000e+00> : vector<8x32xf32>
    %60 = tpu.matmul %51, %59, %cst_26 {dimension_numbers = #tpu.dot_dimension_numbers<[1], [0], [0], [1], [0, 0, 1, 1], [], []>} : vector<8x4xf32>, vector<4x32xf32>, vector<8x32xf32> -> vector<8x32xf32>
    %61 = arith.addf %58, %60 : vector<8x32xf32>
    %c0_27 = arith.constant 0 : index
    %c384 = arith.constant 384 : index
    %62 = vector.load %arg5[%c0_27, %c384] : memref<4x1024xf32, #tpu.memory_space<vmem>>, vector<4x32xf32>
    %cst_28 = arith.constant dense<0.000000e+00> : vector<8x32xf32>
    %63 = tpu.matmul %3, %62, %cst_28 {dimension_numbers = #tpu.dot_dimension_numbers<[1], [0], [0], [1], [0, 0, 1, 1], [], []>} : vector<8x4xf32>, vector<4x32xf32>, vector<8x32xf32> -> vector<8x32xf32>
    %64 = arith.addf %61, %63 : vector<8x32xf32>
    %c0_29 = arith.constant 0 : index
    %c0_30 = arith.constant 0 : index
    %65 = vector.load %arg6[%c0_29, %c0_30] : memref<32x1664xf32, #tpu.memory_space<vmem>>, vector<32x96xf32>
    %cst_31 = arith.constant dense<0.000000e+00> : vector<8x96xf32>
    %66 = tpu.matmul %64, %65, %cst_31 {dimension_numbers = #tpu.dot_dimension_numbers<[1], [0], [0], [1], [0, 0, 1, 1], [], []>} : vector<8x32xf32>, vector<32x96xf32>, vector<8x96xf32> -> vector<8x96xf32>
    %c0_32 = arith.constant 0 : index
    %c0_33 = arith.constant 0 : index
    %67 = vector.load %arg8[%c0_32, %c0_33] : memref<40x128xf32, #tpu.memory_space<vmem>>, vector<1x128xf32>
    %68 = vector.shape_cast %67 : vector<1x128xf32> to vector<128xf32>
    %69 = vector.extract_strided_slice %68 {offsets = [0], sizes = [96], strides = [1]} : vector<128xf32> to vector<96xf32>
    %70 = vector.shape_cast %69 : vector<96xf32> to vector<1x96xf32>
    %71 = vector.broadcast %70 : vector<1x96xf32> to vector<8x96xf32>
    %72 = arith.addf %66, %71 : vector<8x96xf32>
    %73 = vector.extract_strided_slice %72 {offsets = [0, 0], sizes = [8, 32], strides = [1, 1]} : vector<8x96xf32> to vector<8x32xf32>
    %74 = vector.extract_strided_slice %72 {offsets = [0, 32], sizes = [8, 32], strides = [1, 1]} : vector<8x96xf32> to vector<8x32xf32>
    %75 = vector.extract_strided_slice %72 {offsets = [0, 64], sizes = [8, 32], strides = [1, 1]} : vector<8x96xf32> to vector<8x32xf32>
    %c0_34 = arith.constant 0 : index
    %c128_35 = arith.constant 128 : index
    %76 = vector.load %arg6[%c0_34, %c128_35] : memref<32x1664xf32, #tpu.memory_space<vmem>>, vector<32x32xf32>
    %cst_36 = arith.constant 0.000000e+00 : f32
    %77 = vector.broadcast %cst_36 : f32 to vector<8x32xf32>
    %78 = vector.extract_strided_slice %73 {offsets = [0, 0], sizes = [8, 8], strides = [1, 1]} : vector<8x32xf32> to vector<8x8xf32>
    %79 = vector.extract_strided_slice %74 {offsets = [0, 0], sizes = [8, 8], strides = [1, 1]} : vector<8x32xf32> to vector<8x8xf32>
    %80 = vector.extract_strided_slice %75 {offsets = [0, 0], sizes = [8, 8], strides = [1, 1]} : vector<8x32xf32> to vector<8x8xf32>
    %cst_37 = arith.constant dense<0.000000e+00> : vector<8x8xf32>
    %81 = tpu.matmul %78, %79, %cst_37 {dimension_numbers = #tpu.dot_dimension_numbers<[1], [1], [0], [0], [0, 0, 1, 0], [], []>} : vector<8x8xf32>, vector<8x8xf32>, vector<8x8xf32> -> vector<8x8xf32>
    %cst_38 = arith.constant 0.353553385 : f32
    %82 = vector.broadcast %cst_38 : f32 to vector<8x8xf32>
    %83 = arith.mulf %81, %82 : vector<8x8xf32>
    %cst_39 = arith.constant dense<0xFF800000> : vector<8xf32>
    %84 = vector.multi_reduction <maximumf>, %83, %cst_39 [1] : vector<8x8xf32> to vector<8xf32>
    %85 = vector.shape_cast %84 : vector<8xf32> to vector<8x1xf32>
    %86 = vector.broadcast %85 : vector<8x1xf32> to vector<8x8xf32>
    %87 = arith.subf %83, %86 : vector<8x8xf32>
    %88 = math.exp %87 : vector<8x8xf32>
    %cst_40 = arith.constant dense<0.000000e+00> : vector<8x8xf32>
    %89 = tpu.matmul %88, %80, %cst_40 {dimension_numbers = #tpu.dot_dimension_numbers<[1], [0], [0], [1], [0, 0, 1, 1], [], []>} : vector<8x8xf32>, vector<8x8xf32>, vector<8x8xf32> -> vector<8x8xf32>
    %cst_41 = arith.constant dense<0.000000e+00> : vector<8xf32>
    %90 = vector.multi_reduction <add>, %88, %cst_41 [1] : vector<8x8xf32> to vector<8xf32>
    %91 = vector.shape_cast %90 : vector<8xf32> to vector<8x1xf32>
    %92 = vector.broadcast %91 : vector<8x1xf32> to vector<8x8xf32>
    %93 = arith.divf %89, %92 : vector<8x8xf32>
    %94 = vector.extract_strided_slice %76 {offsets = [0, 0], sizes = [8, 32], strides = [1, 1]} : vector<32x32xf32> to vector<8x32xf32>
    %cst_42 = arith.constant dense<0.000000e+00> : vector<8x32xf32>
    %95 = tpu.matmul %93, %94, %cst_42 {dimension_numbers = #tpu.dot_dimension_numbers<[1], [0], [0], [1], [0, 0, 1, 1], [], []>} : vector<8x8xf32>, vector<8x32xf32>, vector<8x32xf32> -> vector<8x32xf32>
    %96 = arith.addf %77, %95 : vector<8x32xf32>
    %97 = vector.extract_strided_slice %73 {offsets = [0, 8], sizes = [8, 8], strides = [1, 1]} : vector<8x32xf32> to vector<8x8xf32>
    %98 = vector.extract_strided_slice %74 {offsets = [0, 8], sizes = [8, 8], strides = [1, 1]} : vector<8x32xf32> to vector<8x8xf32>
    %99 = vector.extract_strided_slice %75 {offsets = [0, 8], sizes = [8, 8], strides = [1, 1]} : vector<8x32xf32> to vector<8x8xf32>
    %cst_43 = arith.constant dense<0.000000e+00> : vector<8x8xf32>
    %100 = tpu.matmul %97, %98, %cst_43 {dimension_numbers = #tpu.dot_dimension_numbers<[1], [1], [0], [0], [0, 0, 1, 0], [], []>} : vector<8x8xf32>, vector<8x8xf32>, vector<8x8xf32> -> vector<8x8xf32>
    %cst_44 = arith.constant 0.353553385 : f32
    %101 = vector.broadcast %cst_44 : f32 to vector<8x8xf32>
    %102 = arith.mulf %100, %101 : vector<8x8xf32>
    %cst_45 = arith.constant dense<0xFF800000> : vector<8xf32>
    %103 = vector.multi_reduction <maximumf>, %102, %cst_45 [1] : vector<8x8xf32> to vector<8xf32>
    %104 = vector.shape_cast %103 : vector<8xf32> to vector<8x1xf32>
    %105 = vector.broadcast %104 : vector<8x1xf32> to vector<8x8xf32>
    %106 = arith.subf %102, %105 : vector<8x8xf32>
    %107 = math.exp %106 : vector<8x8xf32>
    %cst_46 = arith.constant dense<0.000000e+00> : vector<8x8xf32>
    %108 = tpu.matmul %107, %99, %cst_46 {dimension_numbers = #tpu.dot_dimension_numbers<[1], [0], [0], [1], [0, 0, 1, 1], [], []>} : vector<8x8xf32>, vector<8x8xf32>, vector<8x8xf32> -> vector<8x8xf32>
    %cst_47 = arith.constant dense<0.000000e+00> : vector<8xf32>
    %109 = vector.multi_reduction <add>, %107, %cst_47 [1] : vector<8x8xf32> to vector<8xf32>
    %110 = vector.shape_cast %109 : vector<8xf32> to vector<8x1xf32>
    %111 = vector.broadcast %110 : vector<8x1xf32> to vector<8x8xf32>
    %112 = arith.divf %108, %111 : vector<8x8xf32>
    %113 = vector.extract_strided_slice %76 {offsets = [8, 0], sizes = [8, 32], strides = [1, 1]} : vector<32x32xf32> to vector<8x32xf32>
    %cst_48 = arith.constant dense<0.000000e+00> : vector<8x32xf32>
    %114 = tpu.matmul %112, %113, %cst_48 {dimension_numbers = #tpu.dot_dimension_numbers<[1], [0], [0], [1], [0, 0, 1, 1], [], []>} : vector<8x8xf32>, vector<8x32xf32>, vector<8x32xf32> -> vector<8x32xf32>
    %115 = arith.addf %96, %114 : vector<8x32xf32>
    %116 = vector.extract_strided_slice %73 {offsets = [0, 16], sizes = [8, 8], strides = [1, 1]} : vector<8x32xf32> to vector<8x8xf32>
    %117 = vector.extract_strided_slice %74 {offsets = [0, 16], sizes = [8, 8], strides = [1, 1]} : vector<8x32xf32> to vector<8x8xf32>
    %118 = vector.extract_strided_slice %75 {offsets = [0, 16], sizes = [8, 8], strides = [1, 1]} : vector<8x32xf32> to vector<8x8xf32>
    %cst_49 = arith.constant dense<0.000000e+00> : vector<8x8xf32>
    %119 = tpu.matmul %116, %117, %cst_49 {dimension_numbers = #tpu.dot_dimension_numbers<[1], [1], [0], [0], [0, 0, 1, 0], [], []>} : vector<8x8xf32>, vector<8x8xf32>, vector<8x8xf32> -> vector<8x8xf32>
    %cst_50 = arith.constant 0.353553385 : f32
    %120 = vector.broadcast %cst_50 : f32 to vector<8x8xf32>
    %121 = arith.mulf %119, %120 : vector<8x8xf32>
    %cst_51 = arith.constant dense<0xFF800000> : vector<8xf32>
    %122 = vector.multi_reduction <maximumf>, %121, %cst_51 [1] : vector<8x8xf32> to vector<8xf32>
    %123 = vector.shape_cast %122 : vector<8xf32> to vector<8x1xf32>
    %124 = vector.broadcast %123 : vector<8x1xf32> to vector<8x8xf32>
    %125 = arith.subf %121, %124 : vector<8x8xf32>
    %126 = math.exp %125 : vector<8x8xf32>
    %cst_52 = arith.constant dense<0.000000e+00> : vector<8x8xf32>
    %127 = tpu.matmul %126, %118, %cst_52 {dimension_numbers = #tpu.dot_dimension_numbers<[1], [0], [0], [1], [0, 0, 1, 1], [], []>} : vector<8x8xf32>, vector<8x8xf32>, vector<8x8xf32> -> vector<8x8xf32>
    %cst_53 = arith.constant dense<0.000000e+00> : vector<8xf32>
    %128 = vector.multi_reduction <add>, %126, %cst_53 [1] : vector<8x8xf32> to vector<8xf32>
    %129 = vector.shape_cast %128 : vector<8xf32> to vector<8x1xf32>
    %130 = vector.broadcast %129 : vector<8x1xf32> to vector<8x8xf32>
    %131 = arith.divf %127, %130 : vector<8x8xf32>
    %132 = vector.extract_strided_slice %76 {offsets = [16, 0], sizes = [8, 32], strides = [1, 1]} : vector<32x32xf32> to vector<8x32xf32>
    %cst_54 = arith.constant dense<0.000000e+00> : vector<8x32xf32>
    %133 = tpu.matmul %131, %132, %cst_54 {dimension_numbers = #tpu.dot_dimension_numbers<[1], [0], [0], [1], [0, 0, 1, 1], [], []>} : vector<8x8xf32>, vector<8x32xf32>, vector<8x32xf32> -> vector<8x32xf32>
    %134 = arith.addf %115, %133 : vector<8x32xf32>
    %135 = vector.extract_strided_slice %73 {offsets = [0, 24], sizes = [8, 8], strides = [1, 1]} : vector<8x32xf32> to vector<8x8xf32>
    %136 = vector.extract_strided_slice %74 {offsets = [0, 24], sizes = [8, 8], strides = [1, 1]} : vector<8x32xf32> to vector<8x8xf32>
    %137 = vector.extract_strided_slice %75 {offsets = [0, 24], sizes = [8, 8], strides = [1, 1]} : vector<8x32xf32> to vector<8x8xf32>
    %cst_55 = arith.constant dense<0.000000e+00> : vector<8x8xf32>
    %138 = tpu.matmul %135, %136, %cst_55 {dimension_numbers = #tpu.dot_dimension_numbers<[1], [1], [0], [0], [0, 0, 1, 0], [], []>} : vector<8x8xf32>, vector<8x8xf32>, vector<8x8xf32> -> vector<8x8xf32>
    %cst_56 = arith.constant 0.353553385 : f32
    %139 = vector.broadcast %cst_56 : f32 to vector<8x8xf32>
    %140 = arith.mulf %138, %139 : vector<8x8xf32>
    %cst_57 = arith.constant dense<0xFF800000> : vector<8xf32>
    %141 = vector.multi_reduction <maximumf>, %140, %cst_57 [1] : vector<8x8xf32> to vector<8xf32>
    %142 = vector.shape_cast %141 : vector<8xf32> to vector<8x1xf32>
    %143 = vector.broadcast %142 : vector<8x1xf32> to vector<8x8xf32>
    %144 = arith.subf %140, %143 : vector<8x8xf32>
    %145 = math.exp %144 : vector<8x8xf32>
    %cst_58 = arith.constant dense<0.000000e+00> : vector<8x8xf32>
    %146 = tpu.matmul %145, %137, %cst_58 {dimension_numbers = #tpu.dot_dimension_numbers<[1], [0], [0], [1], [0, 0, 1, 1], [], []>} : vector<8x8xf32>, vector<8x8xf32>, vector<8x8xf32> -> vector<8x8xf32>
    %cst_59 = arith.constant dense<0.000000e+00> : vector<8xf32>
    %147 = vector.multi_reduction <add>, %145, %cst_59 [1] : vector<8x8xf32> to vector<8xf32>
    %148 = vector.shape_cast %147 : vector<8xf32> to vector<8x1xf32>
    %149 = vector.broadcast %148 : vector<8x1xf32> to vector<8x8xf32>
    %150 = arith.divf %146, %149 : vector<8x8xf32>
    %151 = vector.extract_strided_slice %76 {offsets = [24, 0], sizes = [8, 32], strides = [1, 1]} : vector<32x32xf32> to vector<8x32xf32>
    %cst_60 = arith.constant dense<0.000000e+00> : vector<8x32xf32>
    %152 = tpu.matmul %150, %151, %cst_60 {dimension_numbers = #tpu.dot_dimension_numbers<[1], [0], [0], [1], [0, 0, 1, 1], [], []>} : vector<8x8xf32>, vector<8x32xf32>, vector<8x32xf32> -> vector<8x32xf32>
    %153 = arith.addf %134, %152 : vector<8x32xf32>
    %c1 = arith.constant 1 : index
    %c0_61 = arith.constant 0 : index
    %154 = vector.load %arg8[%c1, %c0_61] : memref<40x128xf32, #tpu.memory_space<vmem>>, vector<1x128xf32>
    %155 = vector.shape_cast %154 : vector<1x128xf32> to vector<128xf32>
    %156 = vector.extract_strided_slice %155 {offsets = [0], sizes = [32], strides = [1]} : vector<128xf32> to vector<32xf32>
    %157 = vector.shape_cast %156 : vector<32xf32> to vector<1x32xf32>
    %158 = vector.broadcast %157 : vector<1x32xf32> to vector<8x32xf32>
    %159 = arith.addf %153, %158 : vector<8x32xf32>
    %160 = arith.addf %64, %159 : vector<8x32xf32>
    %c4 = arith.constant 4 : index
    %c0_62 = arith.constant 0 : index
    %161 = vector.load %arg8[%c4, %c0_62] : memref<40x128xf32, #tpu.memory_space<vmem>>, vector<1x128xf32>
    %162 = vector.shape_cast %161 : vector<1x128xf32> to vector<128xf32>
    %163 = vector.extract_strided_slice %162 {offsets = [0], sizes = [32], strides = [1]} : vector<128xf32> to vector<32xf32>
    %164 = vector.shape_cast %163 : vector<32xf32> to vector<1x32xf32>
    %c5 = arith.constant 5 : index
    %c0_63 = arith.constant 0 : index
    %165 = vector.load %arg8[%c5, %c0_63] : memref<40x128xf32, #tpu.memory_space<vmem>>, vector<1x128xf32>
    %166 = vector.shape_cast %165 : vector<1x128xf32> to vector<128xf32>
    %167 = vector.extract_strided_slice %166 {offsets = [0], sizes = [32], strides = [1]} : vector<128xf32> to vector<32xf32>
    %168 = vector.shape_cast %167 : vector<32xf32> to vector<1x32xf32>
    %cst_64 = arith.constant dense<0.000000e+00> : vector<8xf32>
    %169 = vector.multi_reduction <add>, %160, %cst_64 [1] : vector<8x32xf32> to vector<8xf32>
    %170 = vector.shape_cast %169 : vector<8xf32> to vector<8x1xf32>
    %cst_65 = arith.constant 3.200000e+01 : f32
    %171 = vector.broadcast %cst_65 : f32 to vector<8x1xf32>
    %172 = arith.divf %170, %171 : vector<8x1xf32>
    %173 = vector.broadcast %172 : vector<8x1xf32> to vector<8x32xf32>
    %174 = arith.subf %160, %173 : vector<8x32xf32>
    %175 = arith.mulf %174, %174 : vector<8x32xf32>
    %cst_66 = arith.constant dense<0.000000e+00> : vector<8xf32>
    %176 = vector.multi_reduction <add>, %175, %cst_66 [1] : vector<8x32xf32> to vector<8xf32>
    %177 = vector.shape_cast %176 : vector<8xf32> to vector<8x1xf32>
    %cst_67 = arith.constant 3.200000e+01 : f32
    %178 = vector.broadcast %cst_67 : f32 to vector<8x1xf32>
    %179 = arith.divf %177, %178 : vector<8x1xf32>
    %180 = vector.broadcast %172 : vector<8x1xf32> to vector<8x32xf32>
    %181 = arith.subf %160, %180 : vector<8x32xf32>
    %cst_68 = arith.constant 9.99999974E-6 : f32
    %182 = vector.broadcast %cst_68 : f32 to vector<8x1xf32>
    %183 = arith.addf %179, %182 : vector<8x1xf32>
    %184 = math.rsqrt %183 : vector<8x1xf32>
    %185 = vector.broadcast %184 : vector<8x1xf32> to vector<8x32xf32>
    %186 = arith.mulf %181, %185 : vector<8x32xf32>
    %187 = vector.broadcast %164 : vector<1x32xf32> to vector<8x32xf32>
    %188 = arith.mulf %186, %187 : vector<8x32xf32>
    %189 = vector.broadcast %168 : vector<1x32xf32> to vector<8x32xf32>
    %190 = arith.addf %188, %189 : vector<8x32xf32>
    %c0_69 = arith.constant 0 : index
    %c256_70 = arith.constant 256 : index
    %191 = vector.load %arg6[%c0_69, %c256_70] : memref<32x1664xf32, #tpu.memory_space<vmem>>, vector<32x64xf32>
    %cst_71 = arith.constant dense<0.000000e+00> : vector<8x64xf32>
    %192 = tpu.matmul %190, %191, %cst_71 {dimension_numbers = #tpu.dot_dimension_numbers<[1], [0], [0], [1], [0, 0, 1, 1], [], []>} : vector<8x32xf32>, vector<32x64xf32>, vector<8x64xf32> -> vector<8x64xf32>
    %c2 = arith.constant 2 : index
    %c0_72 = arith.constant 0 : index
    %193 = vector.load %arg8[%c2, %c0_72] : memref<40x128xf32, #tpu.memory_space<vmem>>, vector<1x128xf32>
    %194 = vector.shape_cast %193 : vector<1x128xf32> to vector<128xf32>
    %195 = vector.extract_strided_slice %194 {offsets = [0], sizes = [64], strides = [1]} : vector<128xf32> to vector<64xf32>
    %196 = vector.shape_cast %195 : vector<64xf32> to vector<1x64xf32>
    %197 = vector.broadcast %196 : vector<1x64xf32> to vector<8x64xf32>
    %198 = arith.addf %192, %197 : vector<8x64xf32>
    %cst_73 = arith.constant 0.000000e+00 : f32
    %199 = vector.broadcast %cst_73 : f32 to vector<8x64xf32>
    %200 = arith.maximumf %198, %199 : vector<8x64xf32>
    %c0_74 = arith.constant 0 : index
    %c0_75 = arith.constant 0 : index
    %201 = vector.load %arg7[%c0_74, %c0_75] : memref<64x384xf32, #tpu.memory_space<vmem>>, vector<64x32xf32>
    %cst_76 = arith.constant dense<0.000000e+00> : vector<8x32xf32>
    %202 = tpu.matmul %200, %201, %cst_76 {dimension_numbers = #tpu.dot_dimension_numbers<[1], [0], [0], [1], [0, 0, 1, 1], [], []>} : vector<8x64xf32>, vector<64x32xf32>, vector<8x32xf32> -> vector<8x32xf32>
    %c3 = arith.constant 3 : index
    %c0_77 = arith.constant 0 : index
    %203 = vector.load %arg8[%c3, %c0_77] : memref<40x128xf32, #tpu.memory_space<vmem>>, vector<1x128xf32>
    %204 = vector.shape_cast %203 : vector<1x128xf32> to vector<128xf32>
    %205 = vector.extract_strided_slice %204 {offsets = [0], sizes = [32], strides = [1]} : vector<128xf32> to vector<32xf32>
    %206 = vector.shape_cast %205 : vector<32xf32> to vector<1x32xf32>
    %207 = vector.broadcast %206 : vector<1x32xf32> to vector<8x32xf32>
    %208 = arith.addf %202, %207 : vector<8x32xf32>
    %209 = arith.addf %190, %208 : vector<8x32xf32>
    %c6 = arith.constant 6 : index
    %c0_78 = arith.constant 0 : index
    %210 = vector.load %arg8[%c6, %c0_78] : memref<40x128xf32, #tpu.memory_space<vmem>>, vector<1x128xf32>
    %211 = vector.shape_cast %210 : vector<1x128xf32> to vector<128xf32>
    %212 = vector.extract_strided_slice %211 {offsets = [0], sizes = [32], strides = [1]} : vector<128xf32> to vector<32xf32>
    %213 = vector.shape_cast %212 : vector<32xf32> to vector<1x32xf32>
    %c7 = arith.constant 7 : index
    %c0_79 = arith.constant 0 : index
    %214 = vector.load %arg8[%c7, %c0_79] : memref<40x128xf32, #tpu.memory_space<vmem>>, vector<1x128xf32>
    %215 = vector.shape_cast %214 : vector<1x128xf32> to vector<128xf32>
    %216 = vector.extract_strided_slice %215 {offsets = [0], sizes = [32], strides = [1]} : vector<128xf32> to vector<32xf32>
    %217 = vector.shape_cast %216 : vector<32xf32> to vector<1x32xf32>
    %cst_80 = arith.constant dense<0.000000e+00> : vector<8xf32>
    %218 = vector.multi_reduction <add>, %209, %cst_80 [1] : vector<8x32xf32> to vector<8xf32>
    %219 = vector.shape_cast %218 : vector<8xf32> to vector<8x1xf32>
    %cst_81 = arith.constant 3.200000e+01 : f32
    %220 = vector.broadcast %cst_81 : f32 to vector<8x1xf32>
    %221 = arith.divf %219, %220 : vector<8x1xf32>
    %222 = vector.broadcast %221 : vector<8x1xf32> to vector<8x32xf32>
    %223 = arith.subf %209, %222 : vector<8x32xf32>
    %224 = arith.mulf %223, %223 : vector<8x32xf32>
    %cst_82 = arith.constant dense<0.000000e+00> : vector<8xf32>
    %225 = vector.multi_reduction <add>, %224, %cst_82 [1] : vector<8x32xf32> to vector<8xf32>
    %226 = vector.shape_cast %225 : vector<8xf32> to vector<8x1xf32>
    %cst_83 = arith.constant 3.200000e+01 : f32
    %227 = vector.broadcast %cst_83 : f32 to vector<8x1xf32>
    %228 = arith.divf %226, %227 : vector<8x1xf32>
    %229 = vector.broadcast %221 : vector<8x1xf32> to vector<8x32xf32>
    %230 = arith.subf %209, %229 : vector<8x32xf32>
    %cst_84 = arith.constant 9.99999974E-6 : f32
    %231 = vector.broadcast %cst_84 : f32 to vector<8x1xf32>
    %232 = arith.addf %228, %231 : vector<8x1xf32>
    %233 = math.rsqrt %232 : vector<8x1xf32>
    %234 = vector.broadcast %233 : vector<8x1xf32> to vector<8x32xf32>
    %235 = arith.mulf %230, %234 : vector<8x32xf32>
    %236 = vector.broadcast %213 : vector<1x32xf32> to vector<8x32xf32>
    %237 = arith.mulf %235, %236 : vector<8x32xf32>
    %238 = vector.broadcast %217 : vector<1x32xf32> to vector<8x32xf32>
    %239 = arith.addf %237, %238 : vector<8x32xf32>
    %c0_85 = arith.constant 0 : index
    %c384_86 = arith.constant 384 : index
    %240 = vector.load %arg6[%c0_85, %c384_86] : memref<32x1664xf32, #tpu.memory_space<vmem>>, vector<32x96xf32>
    %cst_87 = arith.constant dense<0.000000e+00> : vector<8x96xf32>
    %241 = tpu.matmul %239, %240, %cst_87 {dimension_numbers = #tpu.dot_dimension_numbers<[1], [0], [0], [1], [0, 0, 1, 1], [], []>} : vector<8x32xf32>, vector<32x96xf32>, vector<8x96xf32> -> vector<8x96xf32>
    %c8 = arith.constant 8 : index
    %c0_88 = arith.constant 0 : index
    %242 = vector.load %arg8[%c8, %c0_88] : memref<40x128xf32, #tpu.memory_space<vmem>>, vector<1x128xf32>
    %243 = vector.shape_cast %242 : vector<1x128xf32> to vector<128xf32>
    %244 = vector.extract_strided_slice %243 {offsets = [0], sizes = [96], strides = [1]} : vector<128xf32> to vector<96xf32>
    %245 = vector.shape_cast %244 : vector<96xf32> to vector<1x96xf32>
    %246 = vector.broadcast %245 : vector<1x96xf32> to vector<8x96xf32>
    %247 = arith.addf %241, %246 : vector<8x96xf32>
    %248 = vector.extract_strided_slice %247 {offsets = [0, 0], sizes = [8, 32], strides = [1, 1]} : vector<8x96xf32> to vector<8x32xf32>
    %249 = vector.extract_strided_slice %247 {offsets = [0, 32], sizes = [8, 32], strides = [1, 1]} : vector<8x96xf32> to vector<8x32xf32>
    %250 = vector.extract_strided_slice %247 {offsets = [0, 64], sizes = [8, 32], strides = [1, 1]} : vector<8x96xf32> to vector<8x32xf32>
    %c0_89 = arith.constant 0 : index
    %c512 = arith.constant 512 : index
    %251 = vector.load %arg6[%c0_89, %c512] : memref<32x1664xf32, #tpu.memory_space<vmem>>, vector<32x32xf32>
    %cst_90 = arith.constant 0.000000e+00 : f32
    %252 = vector.broadcast %cst_90 : f32 to vector<8x32xf32>
    %253 = vector.extract_strided_slice %248 {offsets = [0, 0], sizes = [8, 8], strides = [1, 1]} : vector<8x32xf32> to vector<8x8xf32>
    %254 = vector.extract_strided_slice %249 {offsets = [0, 0], sizes = [8, 8], strides = [1, 1]} : vector<8x32xf32> to vector<8x8xf32>
    %255 = vector.extract_strided_slice %250 {offsets = [0, 0], sizes = [8, 8], strides = [1, 1]} : vector<8x32xf32> to vector<8x8xf32>
    %cst_91 = arith.constant dense<0.000000e+00> : vector<8x8xf32>
    %256 = tpu.matmul %253, %254, %cst_91 {dimension_numbers = #tpu.dot_dimension_numbers<[1], [1], [0], [0], [0, 0, 1, 0], [], []>} : vector<8x8xf32>, vector<8x8xf32>, vector<8x8xf32> -> vector<8x8xf32>
    %cst_92 = arith.constant 0.353553385 : f32
    %257 = vector.broadcast %cst_92 : f32 to vector<8x8xf32>
    %258 = arith.mulf %256, %257 : vector<8x8xf32>
    %cst_93 = arith.constant dense<0xFF800000> : vector<8xf32>
    %259 = vector.multi_reduction <maximumf>, %258, %cst_93 [1] : vector<8x8xf32> to vector<8xf32>
    %260 = vector.shape_cast %259 : vector<8xf32> to vector<8x1xf32>
    %261 = vector.broadcast %260 : vector<8x1xf32> to vector<8x8xf32>
    %262 = arith.subf %258, %261 : vector<8x8xf32>
    %263 = math.exp %262 : vector<8x8xf32>
    %cst_94 = arith.constant dense<0.000000e+00> : vector<8x8xf32>
    %264 = tpu.matmul %263, %255, %cst_94 {dimension_numbers = #tpu.dot_dimension_numbers<[1], [0], [0], [1], [0, 0, 1, 1], [], []>} : vector<8x8xf32>, vector<8x8xf32>, vector<8x8xf32> -> vector<8x8xf32>
    %cst_95 = arith.constant dense<0.000000e+00> : vector<8xf32>
    %265 = vector.multi_reduction <add>, %263, %cst_95 [1] : vector<8x8xf32> to vector<8xf32>
    %266 = vector.shape_cast %265 : vector<8xf32> to vector<8x1xf32>
    %267 = vector.broadcast %266 : vector<8x1xf32> to vector<8x8xf32>
    %268 = arith.divf %264, %267 : vector<8x8xf32>
    %269 = vector.extract_strided_slice %251 {offsets = [0, 0], sizes = [8, 32], strides = [1, 1]} : vector<32x32xf32> to vector<8x32xf32>
    %cst_96 = arith.constant dense<0.000000e+00> : vector<8x32xf32>
    %270 = tpu.matmul %268, %269, %cst_96 {dimension_numbers = #tpu.dot_dimension_numbers<[1], [0], [0], [1], [0, 0, 1, 1], [], []>} : vector<8x8xf32>, vector<8x32xf32>, vector<8x32xf32> -> vector<8x32xf32>
    %271 = arith.addf %252, %270 : vector<8x32xf32>
    %272 = vector.extract_strided_slice %248 {offsets = [0, 8], sizes = [8, 8], strides = [1, 1]} : vector<8x32xf32> to vector<8x8xf32>
    %273 = vector.extract_strided_slice %249 {offsets = [0, 8], sizes = [8, 8], strides = [1, 1]} : vector<8x32xf32> to vector<8x8xf32>
    %274 = vector.extract_strided_slice %250 {offsets = [0, 8], sizes = [8, 8], strides = [1, 1]} : vector<8x32xf32> to vector<8x8xf32>
    %cst_97 = arith.constant dense<0.000000e+00> : vector<8x8xf32>
    %275 = tpu.matmul %272, %273, %cst_97 {dimension_numbers = #tpu.dot_dimension_numbers<[1], [1], [0], [0], [0, 0, 1, 0], [], []>} : vector<8x8xf32>, vector<8x8xf32>, vector<8x8xf32> -> vector<8x8xf32>
    %cst_98 = arith.constant 0.353553385 : f32
    %276 = vector.broadcast %cst_98 : f32 to vector<8x8xf32>
    %277 = arith.mulf %275, %276 : vector<8x8xf32>
    %cst_99 = arith.constant dense<0xFF800000> : vector<8xf32>
    %278 = vector.multi_reduction <maximumf>, %277, %cst_99 [1] : vector<8x8xf32> to vector<8xf32>
    %279 = vector.shape_cast %278 : vector<8xf32> to vector<8x1xf32>
    %280 = vector.broadcast %279 : vector<8x1xf32> to vector<8x8xf32>
    %281 = arith.subf %277, %280 : vector<8x8xf32>
    %282 = math.exp %281 : vector<8x8xf32>
    %cst_100 = arith.constant dense<0.000000e+00> : vector<8x8xf32>
    %283 = tpu.matmul %282, %274, %cst_100 {dimension_numbers = #tpu.dot_dimension_numbers<[1], [0], [0], [1], [0, 0, 1, 1], [], []>} : vector<8x8xf32>, vector<8x8xf32>, vector<8x8xf32> -> vector<8x8xf32>
    %cst_101 = arith.constant dense<0.000000e+00> : vector<8xf32>
    %284 = vector.multi_reduction <add>, %282, %cst_101 [1] : vector<8x8xf32> to vector<8xf32>
    %285 = vector.shape_cast %284 : vector<8xf32> to vector<8x1xf32>
    %286 = vector.broadcast %285 : vector<8x1xf32> to vector<8x8xf32>
    %287 = arith.divf %283, %286 : vector<8x8xf32>
    %288 = vector.extract_strided_slice %251 {offsets = [8, 0], sizes = [8, 32], strides = [1, 1]} : vector<32x32xf32> to vector<8x32xf32>
    %cst_102 = arith.constant dense<0.000000e+00> : vector<8x32xf32>
    %289 = tpu.matmul %287, %288, %cst_102 {dimension_numbers = #tpu.dot_dimension_numbers<[1], [0], [0], [1], [0, 0, 1, 1], [], []>} : vector<8x8xf32>, vector<8x32xf32>, vector<8x32xf32> -> vector<8x32xf32>
    %290 = arith.addf %271, %289 : vector<8x32xf32>
    %291 = vector.extract_strided_slice %248 {offsets = [0, 16], sizes = [8, 8], strides = [1, 1]} : vector<8x32xf32> to vector<8x8xf32>
    %292 = vector.extract_strided_slice %249 {offsets = [0, 16], sizes = [8, 8], strides = [1, 1]} : vector<8x32xf32> to vector<8x8xf32>
    %293 = vector.extract_strided_slice %250 {offsets = [0, 16], sizes = [8, 8], strides = [1, 1]} : vector<8x32xf32> to vector<8x8xf32>
    %cst_103 = arith.constant dense<0.000000e+00> : vector<8x8xf32>
    %294 = tpu.matmul %291, %292, %cst_103 {dimension_numbers = #tpu.dot_dimension_numbers<[1], [1], [0], [0], [0, 0, 1, 0], [], []>} : vector<8x8xf32>, vector<8x8xf32>, vector<8x8xf32> -> vector<8x8xf32>
    %cst_104 = arith.constant 0.353553385 : f32
    %295 = vector.broadcast %cst_104 : f32 to vector<8x8xf32>
    %296 = arith.mulf %294, %295 : vector<8x8xf32>
    %cst_105 = arith.constant dense<0xFF800000> : vector<8xf32>
    %297 = vector.multi_reduction <maximumf>, %296, %cst_105 [1] : vector<8x8xf32> to vector<8xf32>
    %298 = vector.shape_cast %297 : vector<8xf32> to vector<8x1xf32>
    %299 = vector.broadcast %298 : vector<8x1xf32> to vector<8x8xf32>
    %300 = arith.subf %296, %299 : vector<8x8xf32>
    %301 = math.exp %300 : vector<8x8xf32>
    %cst_106 = arith.constant dense<0.000000e+00> : vector<8x8xf32>
    %302 = tpu.matmul %301, %293, %cst_106 {dimension_numbers = #tpu.dot_dimension_numbers<[1], [0], [0], [1], [0, 0, 1, 1], [], []>} : vector<8x8xf32>, vector<8x8xf32>, vector<8x8xf32> -> vector<8x8xf32>
    %cst_107 = arith.constant dense<0.000000e+00> : vector<8xf32>
    %303 = vector.multi_reduction <add>, %301, %cst_107 [1] : vector<8x8xf32> to vector<8xf32>
    %304 = vector.shape_cast %303 : vector<8xf32> to vector<8x1xf32>
    %305 = vector.broadcast %304 : vector<8x1xf32> to vector<8x8xf32>
    %306 = arith.divf %302, %305 : vector<8x8xf32>
    %307 = vector.extract_strided_slice %251 {offsets = [16, 0], sizes = [8, 32], strides = [1, 1]} : vector<32x32xf32> to vector<8x32xf32>
    %cst_108 = arith.constant dense<0.000000e+00> : vector<8x32xf32>
    %308 = tpu.matmul %306, %307, %cst_108 {dimension_numbers = #tpu.dot_dimension_numbers<[1], [0], [0], [1], [0, 0, 1, 1], [], []>} : vector<8x8xf32>, vector<8x32xf32>, vector<8x32xf32> -> vector<8x32xf32>
    %309 = arith.addf %290, %308 : vector<8x32xf32>
    %310 = vector.extract_strided_slice %248 {offsets = [0, 24], sizes = [8, 8], strides = [1, 1]} : vector<8x32xf32> to vector<8x8xf32>
    %311 = vector.extract_strided_slice %249 {offsets = [0, 24], sizes = [8, 8], strides = [1, 1]} : vector<8x32xf32> to vector<8x8xf32>
    %312 = vector.extract_strided_slice %250 {offsets = [0, 24], sizes = [8, 8], strides = [1, 1]} : vector<8x32xf32> to vector<8x8xf32>
    %cst_109 = arith.constant dense<0.000000e+00> : vector<8x8xf32>
    %313 = tpu.matmul %310, %311, %cst_109 {dimension_numbers = #tpu.dot_dimension_numbers<[1], [1], [0], [0], [0, 0, 1, 0], [], []>} : vector<8x8xf32>, vector<8x8xf32>, vector<8x8xf32> -> vector<8x8xf32>
    %cst_110 = arith.constant 0.353553385 : f32
    %314 = vector.broadcast %cst_110 : f32 to vector<8x8xf32>
    %315 = arith.mulf %313, %314 : vector<8x8xf32>
    %cst_111 = arith.constant dense<0xFF800000> : vector<8xf32>
    %316 = vector.multi_reduction <maximumf>, %315, %cst_111 [1] : vector<8x8xf32> to vector<8xf32>
    %317 = vector.shape_cast %316 : vector<8xf32> to vector<8x1xf32>
    %318 = vector.broadcast %317 : vector<8x1xf32> to vector<8x8xf32>
    %319 = arith.subf %315, %318 : vector<8x8xf32>
    %320 = math.exp %319 : vector<8x8xf32>
    %cst_112 = arith.constant dense<0.000000e+00> : vector<8x8xf32>
    %321 = tpu.matmul %320, %312, %cst_112 {dimension_numbers = #tpu.dot_dimension_numbers<[1], [0], [0], [1], [0, 0, 1, 1], [], []>} : vector<8x8xf32>, vector<8x8xf32>, vector<8x8xf32> -> vector<8x8xf32>
    %cst_113 = arith.constant dense<0.000000e+00> : vector<8xf32>
    %322 = vector.multi_reduction <add>, %320, %cst_113 [1] : vector<8x8xf32> to vector<8xf32>
    %323 = vector.shape_cast %322 : vector<8xf32> to vector<8x1xf32>
    %324 = vector.broadcast %323 : vector<8x1xf32> to vector<8x8xf32>
    %325 = arith.divf %321, %324 : vector<8x8xf32>
    %326 = vector.extract_strided_slice %251 {offsets = [24, 0], sizes = [8, 32], strides = [1, 1]} : vector<32x32xf32> to vector<8x32xf32>
    %cst_114 = arith.constant dense<0.000000e+00> : vector<8x32xf32>
    %327 = tpu.matmul %325, %326, %cst_114 {dimension_numbers = #tpu.dot_dimension_numbers<[1], [0], [0], [1], [0, 0, 1, 1], [], []>} : vector<8x8xf32>, vector<8x32xf32>, vector<8x32xf32> -> vector<8x32xf32>
    %328 = arith.addf %309, %327 : vector<8x32xf32>
    %c9 = arith.constant 9 : index
    %c0_115 = arith.constant 0 : index
    %329 = vector.load %arg8[%c9, %c0_115] : memref<40x128xf32, #tpu.memory_space<vmem>>, vector<1x128xf32>
    %330 = vector.shape_cast %329 : vector<1x128xf32> to vector<128xf32>
    %331 = vector.extract_strided_slice %330 {offsets = [0], sizes = [32], strides = [1]} : vector<128xf32> to vector<32xf32>
    %332 = vector.shape_cast %331 : vector<32xf32> to vector<1x32xf32>
    %333 = vector.broadcast %332 : vector<1x32xf32> to vector<8x32xf32>
    %334 = arith.addf %328, %333 : vector<8x32xf32>
    %335 = arith.addf %239, %334 : vector<8x32xf32>
    %c12 = arith.constant 12 : index
    %c0_116 = arith.constant 0 : index
    %336 = vector.load %arg8[%c12, %c0_116] : memref<40x128xf32, #tpu.memory_space<vmem>>, vector<1x128xf32>
    %337 = vector.shape_cast %336 : vector<1x128xf32> to vector<128xf32>
    %338 = vector.extract_strided_slice %337 {offsets = [0], sizes = [32], strides = [1]} : vector<128xf32> to vector<32xf32>
    %339 = vector.shape_cast %338 : vector<32xf32> to vector<1x32xf32>
    %c13 = arith.constant 13 : index
    %c0_117 = arith.constant 0 : index
    %340 = vector.load %arg8[%c13, %c0_117] : memref<40x128xf32, #tpu.memory_space<vmem>>, vector<1x128xf32>
    %341 = vector.shape_cast %340 : vector<1x128xf32> to vector<128xf32>
    %342 = vector.extract_strided_slice %341 {offsets = [0], sizes = [32], strides = [1]} : vector<128xf32> to vector<32xf32>
    %343 = vector.shape_cast %342 : vector<32xf32> to vector<1x32xf32>
    %cst_118 = arith.constant dense<0.000000e+00> : vector<8xf32>
    %344 = vector.multi_reduction <add>, %335, %cst_118 [1] : vector<8x32xf32> to vector<8xf32>
    %345 = vector.shape_cast %344 : vector<8xf32> to vector<8x1xf32>
    %cst_119 = arith.constant 3.200000e+01 : f32
    %346 = vector.broadcast %cst_119 : f32 to vector<8x1xf32>
    %347 = arith.divf %345, %346 : vector<8x1xf32>
    %348 = vector.broadcast %347 : vector<8x1xf32> to vector<8x32xf32>
    %349 = arith.subf %335, %348 : vector<8x32xf32>
    %350 = arith.mulf %349, %349 : vector<8x32xf32>
    %cst_120 = arith.constant dense<0.000000e+00> : vector<8xf32>
    %351 = vector.multi_reduction <add>, %350, %cst_120 [1] : vector<8x32xf32> to vector<8xf32>
    %352 = vector.shape_cast %351 : vector<8xf32> to vector<8x1xf32>
    %cst_121 = arith.constant 3.200000e+01 : f32
    %353 = vector.broadcast %cst_121 : f32 to vector<8x1xf32>
    %354 = arith.divf %352, %353 : vector<8x1xf32>
    %355 = vector.broadcast %347 : vector<8x1xf32> to vector<8x32xf32>
    %356 = arith.subf %335, %355 : vector<8x32xf32>
    %cst_122 = arith.constant 9.99999974E-6 : f32
    %357 = vector.broadcast %cst_122 : f32 to vector<8x1xf32>
    %358 = arith.addf %354, %357 : vector<8x1xf32>
    %359 = math.rsqrt %358 : vector<8x1xf32>
    %360 = vector.broadcast %359 : vector<8x1xf32> to vector<8x32xf32>
    %361 = arith.mulf %356, %360 : vector<8x32xf32>
    %362 = vector.broadcast %339 : vector<1x32xf32> to vector<8x32xf32>
    %363 = arith.mulf %361, %362 : vector<8x32xf32>
    %364 = vector.broadcast %343 : vector<1x32xf32> to vector<8x32xf32>
    %365 = arith.addf %363, %364 : vector<8x32xf32>
    %c0_123 = arith.constant 0 : index
    %c640 = arith.constant 640 : index
    %366 = vector.load %arg6[%c0_123, %c640] : memref<32x1664xf32, #tpu.memory_space<vmem>>, vector<32x64xf32>
    %cst_124 = arith.constant dense<0.000000e+00> : vector<8x64xf32>
    %367 = tpu.matmul %365, %366, %cst_124 {dimension_numbers = #tpu.dot_dimension_numbers<[1], [0], [0], [1], [0, 0, 1, 1], [], []>} : vector<8x32xf32>, vector<32x64xf32>, vector<8x64xf32> -> vector<8x64xf32>
    %c10 = arith.constant 10 : index
    %c0_125 = arith.constant 0 : index
    %368 = vector.load %arg8[%c10, %c0_125] : memref<40x128xf32, #tpu.memory_space<vmem>>, vector<1x128xf32>
    %369 = vector.shape_cast %368 : vector<1x128xf32> to vector<128xf32>
    %370 = vector.extract_strided_slice %369 {offsets = [0], sizes = [64], strides = [1]} : vector<128xf32> to vector<64xf32>
    %371 = vector.shape_cast %370 : vector<64xf32> to vector<1x64xf32>
    %372 = vector.broadcast %371 : vector<1x64xf32> to vector<8x64xf32>
    %373 = arith.addf %367, %372 : vector<8x64xf32>
    %cst_126 = arith.constant 0.000000e+00 : f32
    %374 = vector.broadcast %cst_126 : f32 to vector<8x64xf32>
    %375 = arith.maximumf %373, %374 : vector<8x64xf32>
    %c0_127 = arith.constant 0 : index
    %c128_128 = arith.constant 128 : index
    %376 = vector.load %arg7[%c0_127, %c128_128] : memref<64x384xf32, #tpu.memory_space<vmem>>, vector<64x32xf32>
    %cst_129 = arith.constant dense<0.000000e+00> : vector<8x32xf32>
    %377 = tpu.matmul %375, %376, %cst_129 {dimension_numbers = #tpu.dot_dimension_numbers<[1], [0], [0], [1], [0, 0, 1, 1], [], []>} : vector<8x64xf32>, vector<64x32xf32>, vector<8x32xf32> -> vector<8x32xf32>
    %c11 = arith.constant 11 : index
    %c0_130 = arith.constant 0 : index
    %378 = vector.load %arg8[%c11, %c0_130] : memref<40x128xf32, #tpu.memory_space<vmem>>, vector<1x128xf32>
    %379 = vector.shape_cast %378 : vector<1x128xf32> to vector<128xf32>
    %380 = vector.extract_strided_slice %379 {offsets = [0], sizes = [32], strides = [1]} : vector<128xf32> to vector<32xf32>
    %381 = vector.shape_cast %380 : vector<32xf32> to vector<1x32xf32>
    %382 = vector.broadcast %381 : vector<1x32xf32> to vector<8x32xf32>
    %383 = arith.addf %377, %382 : vector<8x32xf32>
    %384 = arith.addf %365, %383 : vector<8x32xf32>
    %c14 = arith.constant 14 : index
    %c0_131 = arith.constant 0 : index
    %385 = vector.load %arg8[%c14, %c0_131] : memref<40x128xf32, #tpu.memory_space<vmem>>, vector<1x128xf32>
    %386 = vector.shape_cast %385 : vector<1x128xf32> to vector<128xf32>
    %387 = vector.extract_strided_slice %386 {offsets = [0], sizes = [32], strides = [1]} : vector<128xf32> to vector<32xf32>
    %388 = vector.shape_cast %387 : vector<32xf32> to vector<1x32xf32>
    %c15 = arith.constant 15 : index
    %c0_132 = arith.constant 0 : index
    %389 = vector.load %arg8[%c15, %c0_132] : memref<40x128xf32, #tpu.memory_space<vmem>>, vector<1x128xf32>
    %390 = vector.shape_cast %389 : vector<1x128xf32> to vector<128xf32>
    %391 = vector.extract_strided_slice %390 {offsets = [0], sizes = [32], strides = [1]} : vector<128xf32> to vector<32xf32>
    %392 = vector.shape_cast %391 : vector<32xf32> to vector<1x32xf32>
    %cst_133 = arith.constant dense<0.000000e+00> : vector<8xf32>
    %393 = vector.multi_reduction <add>, %384, %cst_133 [1] : vector<8x32xf32> to vector<8xf32>
    %394 = vector.shape_cast %393 : vector<8xf32> to vector<8x1xf32>
    %cst_134 = arith.constant 3.200000e+01 : f32
    %395 = vector.broadcast %cst_134 : f32 to vector<8x1xf32>
    %396 = arith.divf %394, %395 : vector<8x1xf32>
    %397 = vector.broadcast %396 : vector<8x1xf32> to vector<8x32xf32>
    %398 = arith.subf %384, %397 : vector<8x32xf32>
    %399 = arith.mulf %398, %398 : vector<8x32xf32>
    %cst_135 = arith.constant dense<0.000000e+00> : vector<8xf32>
    %400 = vector.multi_reduction <add>, %399, %cst_135 [1] : vector<8x32xf32> to vector<8xf32>
    %401 = vector.shape_cast %400 : vector<8xf32> to vector<8x1xf32>
    %cst_136 = arith.constant 3.200000e+01 : f32
    %402 = vector.broadcast %cst_136 : f32 to vector<8x1xf32>
    %403 = arith.divf %401, %402 : vector<8x1xf32>
    %404 = vector.broadcast %396 : vector<8x1xf32> to vector<8x32xf32>
    %405 = arith.subf %384, %404 : vector<8x32xf32>
    %cst_137 = arith.constant 9.99999974E-6 : f32
    %406 = vector.broadcast %cst_137 : f32 to vector<8x1xf32>
    %407 = arith.addf %403, %406 : vector<8x1xf32>
    %408 = math.rsqrt %407 : vector<8x1xf32>
    %409 = vector.broadcast %408 : vector<8x1xf32> to vector<8x32xf32>
    %410 = arith.mulf %405, %409 : vector<8x32xf32>
    %411 = vector.broadcast %388 : vector<1x32xf32> to vector<8x32xf32>
    %412 = arith.mulf %410, %411 : vector<8x32xf32>
    %413 = vector.broadcast %392 : vector<1x32xf32> to vector<8x32xf32>
    %414 = arith.addf %412, %413 : vector<8x32xf32>
    %c29 = arith.constant 29 : index
    %c0_138 = arith.constant 0 : index
    %415 = vector.load %arg8[%c29, %c0_138] : memref<40x128xf32, #tpu.memory_space<vmem>>, vector<1x128xf32>
    %416 = vector.shape_cast %415 : vector<1x128xf32> to vector<128xf32>
    %417 = vector.extract_strided_slice %416 {offsets = [0], sizes = [32], strides = [1]} : vector<128xf32> to vector<32xf32>
    %418 = vector.shape_cast %417 : vector<32xf32> to vector<1x32xf32>
    %c30 = arith.constant 30 : index
    %c0_139 = arith.constant 0 : index
    %419 = vector.load %arg8[%c30, %c0_139] : memref<40x128xf32, #tpu.memory_space<vmem>>, vector<1x128xf32>
    %420 = vector.shape_cast %419 : vector<1x128xf32> to vector<128xf32>
    %421 = vector.extract_strided_slice %420 {offsets = [0], sizes = [32], strides = [1]} : vector<128xf32> to vector<32xf32>
    %422 = vector.shape_cast %421 : vector<32xf32> to vector<1x32xf32>
    %cst_140 = arith.constant dense<0.000000e+00> : vector<8xf32>
    %423 = vector.multi_reduction <add>, %414, %cst_140 [1] : vector<8x32xf32> to vector<8xf32>
    %424 = vector.shape_cast %423 : vector<8xf32> to vector<8x1xf32>
    %cst_141 = arith.constant 3.200000e+01 : f32
    %425 = vector.broadcast %cst_141 : f32 to vector<8x1xf32>
    %426 = arith.divf %424, %425 : vector<8x1xf32>
    %427 = vector.broadcast %426 : vector<8x1xf32> to vector<8x32xf32>
    %428 = arith.subf %414, %427 : vector<8x32xf32>
    %429 = arith.mulf %428, %428 : vector<8x32xf32>
    %cst_142 = arith.constant dense<0.000000e+00> : vector<8xf32>
    %430 = vector.multi_reduction <add>, %429, %cst_142 [1] : vector<8x32xf32> to vector<8xf32>
    %431 = vector.shape_cast %430 : vector<8xf32> to vector<8x1xf32>
    %cst_143 = arith.constant 3.200000e+01 : f32
    %432 = vector.broadcast %cst_143 : f32 to vector<8x1xf32>
    %433 = arith.divf %431, %432 : vector<8x1xf32>
    %434 = vector.broadcast %426 : vector<8x1xf32> to vector<8x32xf32>
    %435 = arith.subf %414, %434 : vector<8x32xf32>
    %cst_144 = arith.constant 9.99999974E-6 : f32
    %436 = vector.broadcast %cst_144 : f32 to vector<8x1xf32>
    %437 = arith.addf %433, %436 : vector<8x1xf32>
    %438 = math.rsqrt %437 : vector<8x1xf32>
    %439 = vector.broadcast %438 : vector<8x1xf32> to vector<8x32xf32>
    %440 = arith.mulf %435, %439 : vector<8x32xf32>
    %441 = vector.broadcast %418 : vector<1x32xf32> to vector<8x32xf32>
    %442 = arith.mulf %440, %441 : vector<8x32xf32>
    %443 = vector.broadcast %422 : vector<1x32xf32> to vector<8x32xf32>
    %444 = arith.addf %442, %443 : vector<8x32xf32>
    %c0_145 = arith.constant 0 : index
    %c0_146 = arith.constant 0 : index
    %c0_147 = arith.constant 0 : index
    %445 = vector.load %arg2[%c0_145, %c0_146, %c0_147] : memref<2x8x4xf32, #tpu.memory_space<vmem>>, vector<1x8x4xf32>
    %446 = vector.shape_cast %445 : vector<1x8x4xf32> to vector<8x4xf32>
    %c0_148 = arith.constant 0 : index
    %c0_149 = arith.constant 0 : index
    %c0_150 = arith.constant 0 : index
    %447 = vector.load %arg3[%c0_148, %c0_149, %c0_150] : memref<2x8x4xf32, #tpu.memory_space<vmem>>, vector<1x8x4xf32>
    %448 = vector.shape_cast %447 : vector<1x8x4xf32> to vector<8x4xf32>
    %449 = tpu.iota {dimensions = array<i32: 0>} : vector<8x8xi32>
    %450 = tpu.iota {dimensions = array<i32: 1>} : vector<8x8xi32>
    %c8_i32_151 = arith.constant 8 : i32
    %451 = vector.broadcast %c8_i32_151 : i32 to vector<8x8xi32>
    %452 = arith.addi %449, %451 : vector<8x8xi32>
    %c1_i32_152 = arith.constant 1 : i32
    %453 = vector.broadcast %c1_i32_152 : i32 to vector<8x8xi32>
    %454 = arith.subi %452, %453 : vector<8x8xi32>
    %c8_i32_153 = arith.constant 8 : i32
    %c0_i32_154 = arith.constant 0 : i32
    %455 = arith.cmpi eq, %c8_i32_153, %c0_i32_154 : i32
    %c1_i32_155 = arith.constant 1 : i32
    %456 = arith.select %455, %c1_i32_155, %c8_i32_153 : i32
    %457 = vector.broadcast %456 : i32 to vector<8x8xi32>
    %458 = arith.remsi %454, %457 : vector<8x8xi32>
    %c0_i32_156 = arith.constant 0 : i32
    %459 = vector.broadcast %c0_i32_156 : i32 to vector<8x8xi32>
    %460 = arith.cmpi ne, %458, %459 : vector<8x8xi32>
    %c0_i32_157 = arith.constant 0 : i32
    %461 = vector.broadcast %c0_i32_157 : i32 to vector<8x8xi32>
    %462 = arith.cmpi slt, %458, %461 : vector<8x8xi32>
    %c0_i32_158 = arith.constant 0 : i32
    %463 = arith.cmpi slt, %456, %c0_i32_158 : i32
    %464 = vector.broadcast %463 : i1 to vector<8x8xi1>
    %465 = vector.broadcast %464 : vector<8x8xi1> to vector<8x8xi1>
    %466 = arith.xori %462, %465 : vector<8x8xi1>
    %467 = arith.andi %466, %460 : vector<8x8xi1>
    %468 = vector.broadcast %456 : i32 to vector<8x8xi32>
    %469 = arith.addi %458, %468 : vector<8x8xi32>
    %470 = arith.select %467, %469, %458 : vector<8x8xi1>, vector<8x8xi32>
    %471 = arith.cmpi eq, %470, %450 : vector<8x8xi32>
    %472 = arith.extui %471 : vector<8x8xi1> to vector<8x8xi32>
    %473 = arith.sitofp %472 : vector<8x8xi32> to vector<8x8xf32>
    %c1_i32_159 = arith.constant 1 : i32
    %474 = vector.broadcast %c1_i32_159 : i32 to vector<8x8xi32>
    %475 = arith.addi %449, %474 : vector<8x8xi32>
    %c8_i32_160 = arith.constant 8 : i32
    %c0_i32_161 = arith.constant 0 : i32
    %476 = arith.cmpi eq, %c8_i32_160, %c0_i32_161 : i32
    %c1_i32_162 = arith.constant 1 : i32
    %477 = arith.select %476, %c1_i32_162, %c8_i32_160 : i32
    %478 = vector.broadcast %477 : i32 to vector<8x8xi32>
    %479 = arith.remsi %475, %478 : vector<8x8xi32>
    %c0_i32_163 = arith.constant 0 : i32
    %480 = vector.broadcast %c0_i32_163 : i32 to vector<8x8xi32>
    %481 = arith.cmpi ne, %479, %480 : vector<8x8xi32>
    %c0_i32_164 = arith.constant 0 : i32
    %482 = vector.broadcast %c0_i32_164 : i32 to vector<8x8xi32>
    %483 = arith.cmpi slt, %479, %482 : vector<8x8xi32>
    %c0_i32_165 = arith.constant 0 : i32
    %484 = arith.cmpi slt, %477, %c0_i32_165 : i32
    %485 = vector.broadcast %484 : i1 to vector<8x8xi1>
    %486 = vector.broadcast %485 : vector<8x8xi1> to vector<8x8xi1>
    %487 = arith.xori %483, %486 : vector<8x8xi1>
    %488 = arith.andi %487, %481 : vector<8x8xi1>
    %489 = vector.broadcast %477 : i32 to vector<8x8xi32>
    %490 = arith.addi %479, %489 : vector<8x8xi32>
    %491 = arith.select %488, %490, %479 : vector<8x8xi1>, vector<8x8xi32>
    %492 = arith.cmpi eq, %491, %450 : vector<8x8xi32>
    %493 = arith.extui %492 : vector<8x8xi1> to vector<8x8xi32>
    %494 = arith.sitofp %493 : vector<8x8xi32> to vector<8x8xf32>
    %cst_166 = arith.constant dense<0.000000e+00> : vector<8x4xf32>
    %495 = tpu.matmul %473, %446, %cst_166 {dimension_numbers = #tpu.dot_dimension_numbers<[1], [0], [0], [1], [0, 0, 1, 1], [], []>} : vector<8x8xf32>, vector<8x4xf32>, vector<8x4xf32> -> vector<8x4xf32>
    %cst_167 = arith.constant dense<0.000000e+00> : vector<8x4xf32>
    %496 = tpu.matmul %494, %446, %cst_167 {dimension_numbers = #tpu.dot_dimension_numbers<[1], [0], [0], [1], [0, 0, 1, 1], [], []>} : vector<8x8xf32>, vector<8x4xf32>, vector<8x4xf32> -> vector<8x4xf32>
    %c0_168 = arith.constant 0 : index
    %c0_169 = arith.constant 0 : index
    %497 = vector.load %arg4[%c0_168, %c0_169] : memref<8x32xf32, #tpu.memory_space<vmem>>, vector<8x32xf32>
    %c0_170 = arith.constant 0 : index
    %c512_171 = arith.constant 512 : index
    %498 = vector.load %arg5[%c0_170, %c512_171] : memref<4x1024xf32, #tpu.memory_space<vmem>>, vector<4x32xf32>
    %cst_172 = arith.constant dense<0.000000e+00> : vector<8x32xf32>
    %499 = tpu.matmul %495, %498, %cst_172 {dimension_numbers = #tpu.dot_dimension_numbers<[1], [0], [0], [1], [0, 0, 1, 1], [], []>} : vector<8x4xf32>, vector<4x32xf32>, vector<8x32xf32> -> vector<8x32xf32>
    %500 = arith.addf %497, %499 : vector<8x32xf32>
    %c0_173 = arith.constant 0 : index
    %c640_174 = arith.constant 640 : index
    %501 = vector.load %arg5[%c0_173, %c640_174] : memref<4x1024xf32, #tpu.memory_space<vmem>>, vector<4x32xf32>
    %cst_175 = arith.constant dense<0.000000e+00> : vector<8x32xf32>
    %502 = tpu.matmul %446, %501, %cst_175 {dimension_numbers = #tpu.dot_dimension_numbers<[1], [0], [0], [1], [0, 0, 1, 1], [], []>} : vector<8x4xf32>, vector<4x32xf32>, vector<8x32xf32> -> vector<8x32xf32>
    %503 = arith.addf %500, %502 : vector<8x32xf32>
    %c0_176 = arith.constant 0 : index
    %c768 = arith.constant 768 : index
    %504 = vector.load %arg5[%c0_176, %c768] : memref<4x1024xf32, #tpu.memory_space<vmem>>, vector<4x32xf32>
    %cst_177 = arith.constant dense<0.000000e+00> : vector<8x32xf32>
    %505 = tpu.matmul %496, %504, %cst_177 {dimension_numbers = #tpu.dot_dimension_numbers<[1], [0], [0], [1], [0, 0, 1, 1], [], []>} : vector<8x4xf32>, vector<4x32xf32>, vector<8x32xf32> -> vector<8x32xf32>
    %506 = arith.addf %503, %505 : vector<8x32xf32>
    %c0_178 = arith.constant 0 : index
    %c896 = arith.constant 896 : index
    %507 = vector.load %arg5[%c0_178, %c896] : memref<4x1024xf32, #tpu.memory_space<vmem>>, vector<4x32xf32>
    %cst_179 = arith.constant dense<0.000000e+00> : vector<8x32xf32>
    %508 = tpu.matmul %448, %507, %cst_179 {dimension_numbers = #tpu.dot_dimension_numbers<[1], [0], [0], [1], [0, 0, 1, 1], [], []>} : vector<8x4xf32>, vector<4x32xf32>, vector<8x32xf32> -> vector<8x32xf32>
    %509 = arith.addf %506, %508 : vector<8x32xf32>
    %c0_180 = arith.constant 0 : index
    %c768_181 = arith.constant 768 : index
    %510 = vector.load %arg6[%c0_180, %c768_181] : memref<32x1664xf32, #tpu.memory_space<vmem>>, vector<32x96xf32>
    %cst_182 = arith.constant dense<0.000000e+00> : vector<8x96xf32>
    %511 = tpu.matmul %509, %510, %cst_182 {dimension_numbers = #tpu.dot_dimension_numbers<[1], [0], [0], [1], [0, 0, 1, 1], [], []>} : vector<8x32xf32>, vector<32x96xf32>, vector<8x96xf32> -> vector<8x96xf32>
    %c16 = arith.constant 16 : index
    %c0_183 = arith.constant 0 : index
    %512 = vector.load %arg8[%c16, %c0_183] : memref<40x128xf32, #tpu.memory_space<vmem>>, vector<1x128xf32>
    %513 = vector.shape_cast %512 : vector<1x128xf32> to vector<128xf32>
    %514 = vector.extract_strided_slice %513 {offsets = [0], sizes = [96], strides = [1]} : vector<128xf32> to vector<96xf32>
    %515 = vector.shape_cast %514 : vector<96xf32> to vector<1x96xf32>
    %516 = vector.broadcast %515 : vector<1x96xf32> to vector<8x96xf32>
    %517 = arith.addf %511, %516 : vector<8x96xf32>
    %518 = tpu.iota {dimensions = array<i32: 0>} : vector<8x8xi32>
    %519 = tpu.iota {dimensions = array<i32: 1>} : vector<8x8xi32>
    %520 = vector.extract_strided_slice %517 {offsets = [0, 0], sizes = [8, 32], strides = [1, 1]} : vector<8x96xf32> to vector<8x32xf32>
    %521 = vector.extract_strided_slice %517 {offsets = [0, 32], sizes = [8, 32], strides = [1, 1]} : vector<8x96xf32> to vector<8x32xf32>
    %522 = vector.extract_strided_slice %517 {offsets = [0, 64], sizes = [8, 32], strides = [1, 1]} : vector<8x96xf32> to vector<8x32xf32>
    %c0_184 = arith.constant 0 : index
    %c896_185 = arith.constant 896 : index
    %523 = vector.load %arg6[%c0_184, %c896_185] : memref<32x1664xf32, #tpu.memory_space<vmem>>, vector<32x32xf32>
    %524 = arith.cmpi sle, %519, %518 : vector<8x8xi32>
    %cst_186 = arith.constant 0.000000e+00 : f32
    %525 = vector.broadcast %cst_186 : f32 to vector<8x32xf32>
    %526 = vector.extract_strided_slice %520 {offsets = [0, 0], sizes = [8, 8], strides = [1, 1]} : vector<8x32xf32> to vector<8x8xf32>
    %527 = vector.extract_strided_slice %521 {offsets = [0, 0], sizes = [8, 8], strides = [1, 1]} : vector<8x32xf32> to vector<8x8xf32>
    %528 = vector.extract_strided_slice %522 {offsets = [0, 0], sizes = [8, 8], strides = [1, 1]} : vector<8x32xf32> to vector<8x8xf32>
    %cst_187 = arith.constant dense<0.000000e+00> : vector<8x8xf32>
    %529 = tpu.matmul %526, %527, %cst_187 {dimension_numbers = #tpu.dot_dimension_numbers<[1], [1], [0], [0], [0, 0, 1, 0], [], []>} : vector<8x8xf32>, vector<8x8xf32>, vector<8x8xf32> -> vector<8x8xf32>
    %cst_188 = arith.constant 0.353553385 : f32
    %530 = vector.broadcast %cst_188 : f32 to vector<8x8xf32>
    %531 = arith.mulf %529, %530 : vector<8x8xf32>
    %cst_189 = arith.constant -1.000000e+30 : f32
    %532 = vector.broadcast %cst_189 : f32 to vector<8x8xf32>
    %533 = arith.select %524, %531, %532 : vector<8x8xi1>, vector<8x8xf32>
    %cst_190 = arith.constant dense<0xFF800000> : vector<8xf32>
    %534 = vector.multi_reduction <maximumf>, %533, %cst_190 [1] : vector<8x8xf32> to vector<8xf32>
    %535 = vector.shape_cast %534 : vector<8xf32> to vector<8x1xf32>
    %536 = vector.broadcast %535 : vector<8x1xf32> to vector<8x8xf32>
    %537 = arith.subf %533, %536 : vector<8x8xf32>
    %538 = math.exp %537 : vector<8x8xf32>
    %cst_191 = arith.constant dense<0.000000e+00> : vector<8x8xf32>
    %539 = tpu.matmul %538, %528, %cst_191 {dimension_numbers = #tpu.dot_dimension_numbers<[1], [0], [0], [1], [0, 0, 1, 1], [], []>} : vector<8x8xf32>, vector<8x8xf32>, vector<8x8xf32> -> vector<8x8xf32>
    %cst_192 = arith.constant dense<0.000000e+00> : vector<8xf32>
    %540 = vector.multi_reduction <add>, %538, %cst_192 [1] : vector<8x8xf32> to vector<8xf32>
    %541 = vector.shape_cast %540 : vector<8xf32> to vector<8x1xf32>
    %542 = vector.broadcast %541 : vector<8x1xf32> to vector<8x8xf32>
    %543 = arith.divf %539, %542 : vector<8x8xf32>
    %544 = vector.extract_strided_slice %523 {offsets = [0, 0], sizes = [8, 32], strides = [1, 1]} : vector<32x32xf32> to vector<8x32xf32>
    %cst_193 = arith.constant dense<0.000000e+00> : vector<8x32xf32>
    %545 = tpu.matmul %543, %544, %cst_193 {dimension_numbers = #tpu.dot_dimension_numbers<[1], [0], [0], [1], [0, 0, 1, 1], [], []>} : vector<8x8xf32>, vector<8x32xf32>, vector<8x32xf32> -> vector<8x32xf32>
    %546 = arith.addf %525, %545 : vector<8x32xf32>
    %547 = vector.extract_strided_slice %520 {offsets = [0, 8], sizes = [8, 8], strides = [1, 1]} : vector<8x32xf32> to vector<8x8xf32>
    %548 = vector.extract_strided_slice %521 {offsets = [0, 8], sizes = [8, 8], strides = [1, 1]} : vector<8x32xf32> to vector<8x8xf32>
    %549 = vector.extract_strided_slice %522 {offsets = [0, 8], sizes = [8, 8], strides = [1, 1]} : vector<8x32xf32> to vector<8x8xf32>
    %cst_194 = arith.constant dense<0.000000e+00> : vector<8x8xf32>
    %550 = tpu.matmul %547, %548, %cst_194 {dimension_numbers = #tpu.dot_dimension_numbers<[1], [1], [0], [0], [0, 0, 1, 0], [], []>} : vector<8x8xf32>, vector<8x8xf32>, vector<8x8xf32> -> vector<8x8xf32>
    %cst_195 = arith.constant 0.353553385 : f32
    %551 = vector.broadcast %cst_195 : f32 to vector<8x8xf32>
    %552 = arith.mulf %550, %551 : vector<8x8xf32>
    %cst_196 = arith.constant -1.000000e+30 : f32
    %553 = vector.broadcast %cst_196 : f32 to vector<8x8xf32>
    %554 = arith.select %524, %552, %553 : vector<8x8xi1>, vector<8x8xf32>
    %cst_197 = arith.constant dense<0xFF800000> : vector<8xf32>
    %555 = vector.multi_reduction <maximumf>, %554, %cst_197 [1] : vector<8x8xf32> to vector<8xf32>
    %556 = vector.shape_cast %555 : vector<8xf32> to vector<8x1xf32>
    %557 = vector.broadcast %556 : vector<8x1xf32> to vector<8x8xf32>
    %558 = arith.subf %554, %557 : vector<8x8xf32>
    %559 = math.exp %558 : vector<8x8xf32>
    %cst_198 = arith.constant dense<0.000000e+00> : vector<8x8xf32>
    %560 = tpu.matmul %559, %549, %cst_198 {dimension_numbers = #tpu.dot_dimension_numbers<[1], [0], [0], [1], [0, 0, 1, 1], [], []>} : vector<8x8xf32>, vector<8x8xf32>, vector<8x8xf32> -> vector<8x8xf32>
    %cst_199 = arith.constant dense<0.000000e+00> : vector<8xf32>
    %561 = vector.multi_reduction <add>, %559, %cst_199 [1] : vector<8x8xf32> to vector<8xf32>
    %562 = vector.shape_cast %561 : vector<8xf32> to vector<8x1xf32>
    %563 = vector.broadcast %562 : vector<8x1xf32> to vector<8x8xf32>
    %564 = arith.divf %560, %563 : vector<8x8xf32>
    %565 = vector.extract_strided_slice %523 {offsets = [8, 0], sizes = [8, 32], strides = [1, 1]} : vector<32x32xf32> to vector<8x32xf32>
    %cst_200 = arith.constant dense<0.000000e+00> : vector<8x32xf32>
    %566 = tpu.matmul %564, %565, %cst_200 {dimension_numbers = #tpu.dot_dimension_numbers<[1], [0], [0], [1], [0, 0, 1, 1], [], []>} : vector<8x8xf32>, vector<8x32xf32>, vector<8x32xf32> -> vector<8x32xf32>
    %567 = arith.addf %546, %566 : vector<8x32xf32>
    %568 = vector.extract_strided_slice %520 {offsets = [0, 16], sizes = [8, 8], strides = [1, 1]} : vector<8x32xf32> to vector<8x8xf32>
    %569 = vector.extract_strided_slice %521 {offsets = [0, 16], sizes = [8, 8], strides = [1, 1]} : vector<8x32xf32> to vector<8x8xf32>
    %570 = vector.extract_strided_slice %522 {offsets = [0, 16], sizes = [8, 8], strides = [1, 1]} : vector<8x32xf32> to vector<8x8xf32>
    %cst_201 = arith.constant dense<0.000000e+00> : vector<8x8xf32>
    %571 = tpu.matmul %568, %569, %cst_201 {dimension_numbers = #tpu.dot_dimension_numbers<[1], [1], [0], [0], [0, 0, 1, 0], [], []>} : vector<8x8xf32>, vector<8x8xf32>, vector<8x8xf32> -> vector<8x8xf32>
    %cst_202 = arith.constant 0.353553385 : f32
    %572 = vector.broadcast %cst_202 : f32 to vector<8x8xf32>
    %573 = arith.mulf %571, %572 : vector<8x8xf32>
    %cst_203 = arith.constant -1.000000e+30 : f32
    %574 = vector.broadcast %cst_203 : f32 to vector<8x8xf32>
    %575 = arith.select %524, %573, %574 : vector<8x8xi1>, vector<8x8xf32>
    %cst_204 = arith.constant dense<0xFF800000> : vector<8xf32>
    %576 = vector.multi_reduction <maximumf>, %575, %cst_204 [1] : vector<8x8xf32> to vector<8xf32>
    %577 = vector.shape_cast %576 : vector<8xf32> to vector<8x1xf32>
    %578 = vector.broadcast %577 : vector<8x1xf32> to vector<8x8xf32>
    %579 = arith.subf %575, %578 : vector<8x8xf32>
    %580 = math.exp %579 : vector<8x8xf32>
    %cst_205 = arith.constant dense<0.000000e+00> : vector<8x8xf32>
    %581 = tpu.matmul %580, %570, %cst_205 {dimension_numbers = #tpu.dot_dimension_numbers<[1], [0], [0], [1], [0, 0, 1, 1], [], []>} : vector<8x8xf32>, vector<8x8xf32>, vector<8x8xf32> -> vector<8x8xf32>
    %cst_206 = arith.constant dense<0.000000e+00> : vector<8xf32>
    %582 = vector.multi_reduction <add>, %580, %cst_206 [1] : vector<8x8xf32> to vector<8xf32>
    %583 = vector.shape_cast %582 : vector<8xf32> to vector<8x1xf32>
    %584 = vector.broadcast %583 : vector<8x1xf32> to vector<8x8xf32>
    %585 = arith.divf %581, %584 : vector<8x8xf32>
    %586 = vector.extract_strided_slice %523 {offsets = [16, 0], sizes = [8, 32], strides = [1, 1]} : vector<32x32xf32> to vector<8x32xf32>
    %cst_207 = arith.constant dense<0.000000e+00> : vector<8x32xf32>
    %587 = tpu.matmul %585, %586, %cst_207 {dimension_numbers = #tpu.dot_dimension_numbers<[1], [0], [0], [1], [0, 0, 1, 1], [], []>} : vector<8x8xf32>, vector<8x32xf32>, vector<8x32xf32> -> vector<8x32xf32>
    %588 = arith.addf %567, %587 : vector<8x32xf32>
    %589 = vector.extract_strided_slice %520 {offsets = [0, 24], sizes = [8, 8], strides = [1, 1]} : vector<8x32xf32> to vector<8x8xf32>
    %590 = vector.extract_strided_slice %521 {offsets = [0, 24], sizes = [8, 8], strides = [1, 1]} : vector<8x32xf32> to vector<8x8xf32>
    %591 = vector.extract_strided_slice %522 {offsets = [0, 24], sizes = [8, 8], strides = [1, 1]} : vector<8x32xf32> to vector<8x8xf32>
    %cst_208 = arith.constant dense<0.000000e+00> : vector<8x8xf32>
    %592 = tpu.matmul %589, %590, %cst_208 {dimension_numbers = #tpu.dot_dimension_numbers<[1], [1], [0], [0], [0, 0, 1, 0], [], []>} : vector<8x8xf32>, vector<8x8xf32>, vector<8x8xf32> -> vector<8x8xf32>
    %cst_209 = arith.constant 0.353553385 : f32
    %593 = vector.broadcast %cst_209 : f32 to vector<8x8xf32>
    %594 = arith.mulf %592, %593 : vector<8x8xf32>
    %cst_210 = arith.constant -1.000000e+30 : f32
    %595 = vector.broadcast %cst_210 : f32 to vector<8x8xf32>
    %596 = arith.select %524, %594, %595 : vector<8x8xi1>, vector<8x8xf32>
    %cst_211 = arith.constant dense<0xFF800000> : vector<8xf32>
    %597 = vector.multi_reduction <maximumf>, %596, %cst_211 [1] : vector<8x8xf32> to vector<8xf32>
    %598 = vector.shape_cast %597 : vector<8xf32> to vector<8x1xf32>
    %599 = vector.broadcast %598 : vector<8x1xf32> to vector<8x8xf32>
    %600 = arith.subf %596, %599 : vector<8x8xf32>
    %601 = math.exp %600 : vector<8x8xf32>
    %cst_212 = arith.constant dense<0.000000e+00> : vector<8x8xf32>
    %602 = tpu.matmul %601, %591, %cst_212 {dimension_numbers = #tpu.dot_dimension_numbers<[1], [0], [0], [1], [0, 0, 1, 1], [], []>} : vector<8x8xf32>, vector<8x8xf32>, vector<8x8xf32> -> vector<8x8xf32>
    %cst_213 = arith.constant dense<0.000000e+00> : vector<8xf32>
    %603 = vector.multi_reduction <add>, %601, %cst_213 [1] : vector<8x8xf32> to vector<8xf32>
    %604 = vector.shape_cast %603 : vector<8xf32> to vector<8x1xf32>
    %605 = vector.broadcast %604 : vector<8x1xf32> to vector<8x8xf32>
    %606 = arith.divf %602, %605 : vector<8x8xf32>
    %607 = vector.extract_strided_slice %523 {offsets = [24, 0], sizes = [8, 32], strides = [1, 1]} : vector<32x32xf32> to vector<8x32xf32>
    %cst_214 = arith.constant dense<0.000000e+00> : vector<8x32xf32>
    %608 = tpu.matmul %606, %607, %cst_214 {dimension_numbers = #tpu.dot_dimension_numbers<[1], [0], [0], [1], [0, 0, 1, 1], [], []>} : vector<8x8xf32>, vector<8x32xf32>, vector<8x32xf32> -> vector<8x32xf32>
    %609 = arith.addf %588, %608 : vector<8x32xf32>
    %c17 = arith.constant 17 : index
    %c0_215 = arith.constant 0 : index
    %610 = vector.load %arg8[%c17, %c0_215] : memref<40x128xf32, #tpu.memory_space<vmem>>, vector<1x128xf32>
    %611 = vector.shape_cast %610 : vector<1x128xf32> to vector<128xf32>
    %612 = vector.extract_strided_slice %611 {offsets = [0], sizes = [32], strides = [1]} : vector<128xf32> to vector<32xf32>
    %613 = vector.shape_cast %612 : vector<32xf32> to vector<1x32xf32>
    %614 = vector.broadcast %613 : vector<1x32xf32> to vector<8x32xf32>
    %615 = arith.addf %609, %614 : vector<8x32xf32>
    %616 = arith.addf %509, %615 : vector<8x32xf32>
    %c23 = arith.constant 23 : index
    %c0_216 = arith.constant 0 : index
    %617 = vector.load %arg8[%c23, %c0_216] : memref<40x128xf32, #tpu.memory_space<vmem>>, vector<1x128xf32>
    %618 = vector.shape_cast %617 : vector<1x128xf32> to vector<128xf32>
    %619 = vector.extract_strided_slice %618 {offsets = [0], sizes = [32], strides = [1]} : vector<128xf32> to vector<32xf32>
    %620 = vector.shape_cast %619 : vector<32xf32> to vector<1x32xf32>
    %c24 = arith.constant 24 : index
    %c0_217 = arith.constant 0 : index
    %621 = vector.load %arg8[%c24, %c0_217] : memref<40x128xf32, #tpu.memory_space<vmem>>, vector<1x128xf32>
    %622 = vector.shape_cast %621 : vector<1x128xf32> to vector<128xf32>
    %623 = vector.extract_strided_slice %622 {offsets = [0], sizes = [32], strides = [1]} : vector<128xf32> to vector<32xf32>
    %624 = vector.shape_cast %623 : vector<32xf32> to vector<1x32xf32>
    %cst_218 = arith.constant dense<0.000000e+00> : vector<8xf32>
    %625 = vector.multi_reduction <add>, %616, %cst_218 [1] : vector<8x32xf32> to vector<8xf32>
    %626 = vector.shape_cast %625 : vector<8xf32> to vector<8x1xf32>
    %cst_219 = arith.constant 3.200000e+01 : f32
    %627 = vector.broadcast %cst_219 : f32 to vector<8x1xf32>
    %628 = arith.divf %626, %627 : vector<8x1xf32>
    %629 = vector.broadcast %628 : vector<8x1xf32> to vector<8x32xf32>
    %630 = arith.subf %616, %629 : vector<8x32xf32>
    %631 = arith.mulf %630, %630 : vector<8x32xf32>
    %cst_220 = arith.constant dense<0.000000e+00> : vector<8xf32>
    %632 = vector.multi_reduction <add>, %631, %cst_220 [1] : vector<8x32xf32> to vector<8xf32>
    %633 = vector.shape_cast %632 : vector<8xf32> to vector<8x1xf32>
    %cst_221 = arith.constant 3.200000e+01 : f32
    %634 = vector.broadcast %cst_221 : f32 to vector<8x1xf32>
    %635 = arith.divf %633, %634 : vector<8x1xf32>
    %636 = vector.broadcast %628 : vector<8x1xf32> to vector<8x32xf32>
    %637 = arith.subf %616, %636 : vector<8x32xf32>
    %cst_222 = arith.constant 9.99999974E-6 : f32
    %638 = vector.broadcast %cst_222 : f32 to vector<8x1xf32>
    %639 = arith.addf %635, %638 : vector<8x1xf32>
    %640 = math.rsqrt %639 : vector<8x1xf32>
    %641 = vector.broadcast %640 : vector<8x1xf32> to vector<8x32xf32>
    %642 = arith.mulf %637, %641 : vector<8x32xf32>
    %643 = vector.broadcast %620 : vector<1x32xf32> to vector<8x32xf32>
    %644 = arith.mulf %642, %643 : vector<8x32xf32>
    %645 = vector.broadcast %624 : vector<1x32xf32> to vector<8x32xf32>
    %646 = arith.addf %644, %645 : vector<8x32xf32>
    %c0_223 = arith.constant 0 : index
    %c1024 = arith.constant 1024 : index
    %647 = vector.load %arg6[%c0_223, %c1024] : memref<32x1664xf32, #tpu.memory_space<vmem>>, vector<32x32xf32>
    %cst_224 = arith.constant dense<0.000000e+00> : vector<8x32xf32>
    %648 = tpu.matmul %646, %647, %cst_224 {dimension_numbers = #tpu.dot_dimension_numbers<[1], [0], [0], [1], [0, 0, 1, 1], [], []>} : vector<8x32xf32>, vector<32x32xf32>, vector<8x32xf32> -> vector<8x32xf32>
    %c18 = arith.constant 18 : index
    %c0_225 = arith.constant 0 : index
    %649 = vector.load %arg8[%c18, %c0_225] : memref<40x128xf32, #tpu.memory_space<vmem>>, vector<1x128xf32>
    %650 = vector.shape_cast %649 : vector<1x128xf32> to vector<128xf32>
    %651 = vector.extract_strided_slice %650 {offsets = [0], sizes = [32], strides = [1]} : vector<128xf32> to vector<32xf32>
    %652 = vector.shape_cast %651 : vector<32xf32> to vector<1x32xf32>
    %653 = vector.broadcast %652 : vector<1x32xf32> to vector<8x32xf32>
    %654 = arith.addf %648, %653 : vector<8x32xf32>
    %c0_226 = arith.constant 0 : index
    %c1152 = arith.constant 1152 : index
    %655 = vector.load %arg6[%c0_226, %c1152] : memref<32x1664xf32, #tpu.memory_space<vmem>>, vector<32x64xf32>
    %cst_227 = arith.constant dense<0.000000e+00> : vector<8x64xf32>
    %656 = tpu.matmul %444, %655, %cst_227 {dimension_numbers = #tpu.dot_dimension_numbers<[1], [0], [0], [1], [0, 0, 1, 1], [], []>} : vector<8x32xf32>, vector<32x64xf32>, vector<8x64xf32> -> vector<8x64xf32>
    %c19 = arith.constant 19 : index
    %c0_228 = arith.constant 0 : index
    %657 = vector.load %arg8[%c19, %c0_228] : memref<40x128xf32, #tpu.memory_space<vmem>>, vector<1x128xf32>
    %658 = vector.shape_cast %657 : vector<1x128xf32> to vector<128xf32>
    %659 = vector.extract_strided_slice %658 {offsets = [0], sizes = [64], strides = [1]} : vector<128xf32> to vector<64xf32>
    %660 = vector.shape_cast %659 : vector<64xf32> to vector<1x64xf32>
    %661 = vector.broadcast %660 : vector<1x64xf32> to vector<8x64xf32>
    %662 = arith.addf %656, %661 : vector<8x64xf32>
    %663 = vector.extract_strided_slice %662 {offsets = [0, 0], sizes = [8, 32], strides = [1, 1]} : vector<8x64xf32> to vector<8x32xf32>
    %664 = vector.extract_strided_slice %662 {offsets = [0, 32], sizes = [8, 32], strides = [1, 1]} : vector<8x64xf32> to vector<8x32xf32>
    %c0_229 = arith.constant 0 : index
    %c1280 = arith.constant 1280 : index
    %665 = vector.load %arg6[%c0_229, %c1280] : memref<32x1664xf32, #tpu.memory_space<vmem>>, vector<32x32xf32>
    %cst_230 = arith.constant 0.000000e+00 : f32
    %666 = vector.broadcast %cst_230 : f32 to vector<8x32xf32>
    %667 = vector.extract_strided_slice %654 {offsets = [0, 0], sizes = [8, 8], strides = [1, 1]} : vector<8x32xf32> to vector<8x8xf32>
    %668 = vector.extract_strided_slice %663 {offsets = [0, 0], sizes = [8, 8], strides = [1, 1]} : vector<8x32xf32> to vector<8x8xf32>
    %669 = vector.extract_strided_slice %664 {offsets = [0, 0], sizes = [8, 8], strides = [1, 1]} : vector<8x32xf32> to vector<8x8xf32>
    %cst_231 = arith.constant dense<0.000000e+00> : vector<8x8xf32>
    %670 = tpu.matmul %667, %668, %cst_231 {dimension_numbers = #tpu.dot_dimension_numbers<[1], [1], [0], [0], [0, 0, 1, 0], [], []>} : vector<8x8xf32>, vector<8x8xf32>, vector<8x8xf32> -> vector<8x8xf32>
    %cst_232 = arith.constant 0.353553385 : f32
    %671 = vector.broadcast %cst_232 : f32 to vector<8x8xf32>
    %672 = arith.mulf %670, %671 : vector<8x8xf32>
    %cst_233 = arith.constant dense<0xFF800000> : vector<8xf32>
    %673 = vector.multi_reduction <maximumf>, %672, %cst_233 [1] : vector<8x8xf32> to vector<8xf32>
    %674 = vector.shape_cast %673 : vector<8xf32> to vector<8x1xf32>
    %675 = vector.broadcast %674 : vector<8x1xf32> to vector<8x8xf32>
    %676 = arith.subf %672, %675 : vector<8x8xf32>
    %677 = math.exp %676 : vector<8x8xf32>
    %cst_234 = arith.constant dense<0.000000e+00> : vector<8x8xf32>
    %678 = tpu.matmul %677, %669, %cst_234 {dimension_numbers = #tpu.dot_dimension_numbers<[1], [0], [0], [1], [0, 0, 1, 1], [], []>} : vector<8x8xf32>, vector<8x8xf32>, vector<8x8xf32> -> vector<8x8xf32>
    %cst_235 = arith.constant dense<0.000000e+00> : vector<8xf32>
    %679 = vector.multi_reduction <add>, %677, %cst_235 [1] : vector<8x8xf32> to vector<8xf32>
    %680 = vector.shape_cast %679 : vector<8xf32> to vector<8x1xf32>
    %681 = vector.broadcast %680 : vector<8x1xf32> to vector<8x8xf32>
    %682 = arith.divf %678, %681 : vector<8x8xf32>
    %683 = vector.extract_strided_slice %665 {offsets = [0, 0], sizes = [8, 32], strides = [1, 1]} : vector<32x32xf32> to vector<8x32xf32>
    %cst_236 = arith.constant dense<0.000000e+00> : vector<8x32xf32>
    %684 = tpu.matmul %682, %683, %cst_236 {dimension_numbers = #tpu.dot_dimension_numbers<[1], [0], [0], [1], [0, 0, 1, 1], [], []>} : vector<8x8xf32>, vector<8x32xf32>, vector<8x32xf32> -> vector<8x32xf32>
    %685 = arith.addf %666, %684 : vector<8x32xf32>
    %686 = vector.extract_strided_slice %654 {offsets = [0, 8], sizes = [8, 8], strides = [1, 1]} : vector<8x32xf32> to vector<8x8xf32>
    %687 = vector.extract_strided_slice %663 {offsets = [0, 8], sizes = [8, 8], strides = [1, 1]} : vector<8x32xf32> to vector<8x8xf32>
    %688 = vector.extract_strided_slice %664 {offsets = [0, 8], sizes = [8, 8], strides = [1, 1]} : vector<8x32xf32> to vector<8x8xf32>
    %cst_237 = arith.constant dense<0.000000e+00> : vector<8x8xf32>
    %689 = tpu.matmul %686, %687, %cst_237 {dimension_numbers = #tpu.dot_dimension_numbers<[1], [1], [0], [0], [0, 0, 1, 0], [], []>} : vector<8x8xf32>, vector<8x8xf32>, vector<8x8xf32> -> vector<8x8xf32>
    %cst_238 = arith.constant 0.353553385 : f32
    %690 = vector.broadcast %cst_238 : f32 to vector<8x8xf32>
    %691 = arith.mulf %689, %690 : vector<8x8xf32>
    %cst_239 = arith.constant dense<0xFF800000> : vector<8xf32>
    %692 = vector.multi_reduction <maximumf>, %691, %cst_239 [1] : vector<8x8xf32> to vector<8xf32>
    %693 = vector.shape_cast %692 : vector<8xf32> to vector<8x1xf32>
    %694 = vector.broadcast %693 : vector<8x1xf32> to vector<8x8xf32>
    %695 = arith.subf %691, %694 : vector<8x8xf32>
    %696 = math.exp %695 : vector<8x8xf32>
    %cst_240 = arith.constant dense<0.000000e+00> : vector<8x8xf32>
    %697 = tpu.matmul %696, %688, %cst_240 {dimension_numbers = #tpu.dot_dimension_numbers<[1], [0], [0], [1], [0, 0, 1, 1], [], []>} : vector<8x8xf32>, vector<8x8xf32>, vector<8x8xf32> -> vector<8x8xf32>
    %cst_241 = arith.constant dense<0.000000e+00> : vector<8xf32>
    %698 = vector.multi_reduction <add>, %696, %cst_241 [1] : vector<8x8xf32> to vector<8xf32>
    %699 = vector.shape_cast %698 : vector<8xf32> to vector<8x1xf32>
    %700 = vector.broadcast %699 : vector<8x1xf32> to vector<8x8xf32>
    %701 = arith.divf %697, %700 : vector<8x8xf32>
    %702 = vector.extract_strided_slice %665 {offsets = [8, 0], sizes = [8, 32], strides = [1, 1]} : vector<32x32xf32> to vector<8x32xf32>
    %cst_242 = arith.constant dense<0.000000e+00> : vector<8x32xf32>
    %703 = tpu.matmul %701, %702, %cst_242 {dimension_numbers = #tpu.dot_dimension_numbers<[1], [0], [0], [1], [0, 0, 1, 1], [], []>} : vector<8x8xf32>, vector<8x32xf32>, vector<8x32xf32> -> vector<8x32xf32>
    %704 = arith.addf %685, %703 : vector<8x32xf32>
    %705 = vector.extract_strided_slice %654 {offsets = [0, 16], sizes = [8, 8], strides = [1, 1]} : vector<8x32xf32> to vector<8x8xf32>
    %706 = vector.extract_strided_slice %663 {offsets = [0, 16], sizes = [8, 8], strides = [1, 1]} : vector<8x32xf32> to vector<8x8xf32>
    %707 = vector.extract_strided_slice %664 {offsets = [0, 16], sizes = [8, 8], strides = [1, 1]} : vector<8x32xf32> to vector<8x8xf32>
    %cst_243 = arith.constant dense<0.000000e+00> : vector<8x8xf32>
    %708 = tpu.matmul %705, %706, %cst_243 {dimension_numbers = #tpu.dot_dimension_numbers<[1], [1], [0], [0], [0, 0, 1, 0], [], []>} : vector<8x8xf32>, vector<8x8xf32>, vector<8x8xf32> -> vector<8x8xf32>
    %cst_244 = arith.constant 0.353553385 : f32
    %709 = vector.broadcast %cst_244 : f32 to vector<8x8xf32>
    %710 = arith.mulf %708, %709 : vector<8x8xf32>
    %cst_245 = arith.constant dense<0xFF800000> : vector<8xf32>
    %711 = vector.multi_reduction <maximumf>, %710, %cst_245 [1] : vector<8x8xf32> to vector<8xf32>
    %712 = vector.shape_cast %711 : vector<8xf32> to vector<8x1xf32>
    %713 = vector.broadcast %712 : vector<8x1xf32> to vector<8x8xf32>
    %714 = arith.subf %710, %713 : vector<8x8xf32>
    %715 = math.exp %714 : vector<8x8xf32>
    %cst_246 = arith.constant dense<0.000000e+00> : vector<8x8xf32>
    %716 = tpu.matmul %715, %707, %cst_246 {dimension_numbers = #tpu.dot_dimension_numbers<[1], [0], [0], [1], [0, 0, 1, 1], [], []>} : vector<8x8xf32>, vector<8x8xf32>, vector<8x8xf32> -> vector<8x8xf32>
    %cst_247 = arith.constant dense<0.000000e+00> : vector<8xf32>
    %717 = vector.multi_reduction <add>, %715, %cst_247 [1] : vector<8x8xf32> to vector<8xf32>
    %718 = vector.shape_cast %717 : vector<8xf32> to vector<8x1xf32>
    %719 = vector.broadcast %718 : vector<8x1xf32> to vector<8x8xf32>
    %720 = arith.divf %716, %719 : vector<8x8xf32>
    %721 = vector.extract_strided_slice %665 {offsets = [16, 0], sizes = [8, 32], strides = [1, 1]} : vector<32x32xf32> to vector<8x32xf32>
    %cst_248 = arith.constant dense<0.000000e+00> : vector<8x32xf32>
    %722 = tpu.matmul %720, %721, %cst_248 {dimension_numbers = #tpu.dot_dimension_numbers<[1], [0], [0], [1], [0, 0, 1, 1], [], []>} : vector<8x8xf32>, vector<8x32xf32>, vector<8x32xf32> -> vector<8x32xf32>
    %723 = arith.addf %704, %722 : vector<8x32xf32>
    %724 = vector.extract_strided_slice %654 {offsets = [0, 24], sizes = [8, 8], strides = [1, 1]} : vector<8x32xf32> to vector<8x8xf32>
    %725 = vector.extract_strided_slice %663 {offsets = [0, 24], sizes = [8, 8], strides = [1, 1]} : vector<8x32xf32> to vector<8x8xf32>
    %726 = vector.extract_strided_slice %664 {offsets = [0, 24], sizes = [8, 8], strides = [1, 1]} : vector<8x32xf32> to vector<8x8xf32>
    %cst_249 = arith.constant dense<0.000000e+00> : vector<8x8xf32>
    %727 = tpu.matmul %724, %725, %cst_249 {dimension_numbers = #tpu.dot_dimension_numbers<[1], [1], [0], [0], [0, 0, 1, 0], [], []>} : vector<8x8xf32>, vector<8x8xf32>, vector<8x8xf32> -> vector<8x8xf32>
    %cst_250 = arith.constant 0.353553385 : f32
    %728 = vector.broadcast %cst_250 : f32 to vector<8x8xf32>
    %729 = arith.mulf %727, %728 : vector<8x8xf32>
    %cst_251 = arith.constant dense<0xFF800000> : vector<8xf32>
    %730 = vector.multi_reduction <maximumf>, %729, %cst_251 [1] : vector<8x8xf32> to vector<8xf32>
    %731 = vector.shape_cast %730 : vector<8xf32> to vector<8x1xf32>
    %732 = vector.broadcast %731 : vector<8x1xf32> to vector<8x8xf32>
    %733 = arith.subf %729, %732 : vector<8x8xf32>
    %734 = math.exp %733 : vector<8x8xf32>
    %cst_252 = arith.constant dense<0.000000e+00> : vector<8x8xf32>
    %735 = tpu.matmul %734, %726, %cst_252 {dimension_numbers = #tpu.dot_dimension_numbers<[1], [0], [0], [1], [0, 0, 1, 1], [], []>} : vector<8x8xf32>, vector<8x8xf32>, vector<8x8xf32> -> vector<8x8xf32>
    %cst_253 = arith.constant dense<0.000000e+00> : vector<8xf32>
    %736 = vector.multi_reduction <add>, %734, %cst_253 [1] : vector<8x8xf32> to vector<8xf32>
    %737 = vector.shape_cast %736 : vector<8xf32> to vector<8x1xf32>
    %738 = vector.broadcast %737 : vector<8x1xf32> to vector<8x8xf32>
    %739 = arith.divf %735, %738 : vector<8x8xf32>
    %740 = vector.extract_strided_slice %665 {offsets = [24, 0], sizes = [8, 32], strides = [1, 1]} : vector<32x32xf32> to vector<8x32xf32>
    %cst_254 = arith.constant dense<0.000000e+00> : vector<8x32xf32>
    %741 = tpu.matmul %739, %740, %cst_254 {dimension_numbers = #tpu.dot_dimension_numbers<[1], [0], [0], [1], [0, 0, 1, 1], [], []>} : vector<8x8xf32>, vector<8x32xf32>, vector<8x32xf32> -> vector<8x32xf32>
    %742 = arith.addf %723, %741 : vector<8x32xf32>
    %c20 = arith.constant 20 : index
    %c0_255 = arith.constant 0 : index
    %743 = vector.load %arg8[%c20, %c0_255] : memref<40x128xf32, #tpu.memory_space<vmem>>, vector<1x128xf32>
    %744 = vector.shape_cast %743 : vector<1x128xf32> to vector<128xf32>
    %745 = vector.extract_strided_slice %744 {offsets = [0], sizes = [32], strides = [1]} : vector<128xf32> to vector<32xf32>
    %746 = vector.shape_cast %745 : vector<32xf32> to vector<1x32xf32>
    %747 = vector.broadcast %746 : vector<1x32xf32> to vector<8x32xf32>
    %748 = arith.addf %742, %747 : vector<8x32xf32>
    %749 = arith.addf %646, %748 : vector<8x32xf32>
    %c25 = arith.constant 25 : index
    %c0_256 = arith.constant 0 : index
    %750 = vector.load %arg8[%c25, %c0_256] : memref<40x128xf32, #tpu.memory_space<vmem>>, vector<1x128xf32>
    %751 = vector.shape_cast %750 : vector<1x128xf32> to vector<128xf32>
    %752 = vector.extract_strided_slice %751 {offsets = [0], sizes = [32], strides = [1]} : vector<128xf32> to vector<32xf32>
    %753 = vector.shape_cast %752 : vector<32xf32> to vector<1x32xf32>
    %c26 = arith.constant 26 : index
    %c0_257 = arith.constant 0 : index
    %754 = vector.load %arg8[%c26, %c0_257] : memref<40x128xf32, #tpu.memory_space<vmem>>, vector<1x128xf32>
    %755 = vector.shape_cast %754 : vector<1x128xf32> to vector<128xf32>
    %756 = vector.extract_strided_slice %755 {offsets = [0], sizes = [32], strides = [1]} : vector<128xf32> to vector<32xf32>
    %757 = vector.shape_cast %756 : vector<32xf32> to vector<1x32xf32>
    %cst_258 = arith.constant dense<0.000000e+00> : vector<8xf32>
    %758 = vector.multi_reduction <add>, %749, %cst_258 [1] : vector<8x32xf32> to vector<8xf32>
    %759 = vector.shape_cast %758 : vector<8xf32> to vector<8x1xf32>
    %cst_259 = arith.constant 3.200000e+01 : f32
    %760 = vector.broadcast %cst_259 : f32 to vector<8x1xf32>
    %761 = arith.divf %759, %760 : vector<8x1xf32>
    %762 = vector.broadcast %761 : vector<8x1xf32> to vector<8x32xf32>
    %763 = arith.subf %749, %762 : vector<8x32xf32>
    %764 = arith.mulf %763, %763 : vector<8x32xf32>
    %cst_260 = arith.constant dense<0.000000e+00> : vector<8xf32>
    %765 = vector.multi_reduction <add>, %764, %cst_260 [1] : vector<8x32xf32> to vector<8xf32>
    %766 = vector.shape_cast %765 : vector<8xf32> to vector<8x1xf32>
    %cst_261 = arith.constant 3.200000e+01 : f32
    %767 = vector.broadcast %cst_261 : f32 to vector<8x1xf32>
    %768 = arith.divf %766, %767 : vector<8x1xf32>
    %769 = vector.broadcast %761 : vector<8x1xf32> to vector<8x32xf32>
    %770 = arith.subf %749, %769 : vector<8x32xf32>
    %cst_262 = arith.constant 9.99999974E-6 : f32
    %771 = vector.broadcast %cst_262 : f32 to vector<8x1xf32>
    %772 = arith.addf %768, %771 : vector<8x1xf32>
    %773 = math.rsqrt %772 : vector<8x1xf32>
    %774 = vector.broadcast %773 : vector<8x1xf32> to vector<8x32xf32>
    %775 = arith.mulf %770, %774 : vector<8x32xf32>
    %776 = vector.broadcast %753 : vector<1x32xf32> to vector<8x32xf32>
    %777 = arith.mulf %775, %776 : vector<8x32xf32>
    %778 = vector.broadcast %757 : vector<1x32xf32> to vector<8x32xf32>
    %779 = arith.addf %777, %778 : vector<8x32xf32>
    %c0_263 = arith.constant 0 : index
    %c1408 = arith.constant 1408 : index
    %780 = vector.load %arg6[%c0_263, %c1408] : memref<32x1664xf32, #tpu.memory_space<vmem>>, vector<32x64xf32>
    %cst_264 = arith.constant dense<0.000000e+00> : vector<8x64xf32>
    %781 = tpu.matmul %779, %780, %cst_264 {dimension_numbers = #tpu.dot_dimension_numbers<[1], [0], [0], [1], [0, 0, 1, 1], [], []>} : vector<8x32xf32>, vector<32x64xf32>, vector<8x64xf32> -> vector<8x64xf32>
    %c21 = arith.constant 21 : index
    %c0_265 = arith.constant 0 : index
    %782 = vector.load %arg8[%c21, %c0_265] : memref<40x128xf32, #tpu.memory_space<vmem>>, vector<1x128xf32>
    %783 = vector.shape_cast %782 : vector<1x128xf32> to vector<128xf32>
    %784 = vector.extract_strided_slice %783 {offsets = [0], sizes = [64], strides = [1]} : vector<128xf32> to vector<64xf32>
    %785 = vector.shape_cast %784 : vector<64xf32> to vector<1x64xf32>
    %786 = vector.broadcast %785 : vector<1x64xf32> to vector<8x64xf32>
    %787 = arith.addf %781, %786 : vector<8x64xf32>
    %cst_266 = arith.constant 0.000000e+00 : f32
    %788 = vector.broadcast %cst_266 : f32 to vector<8x64xf32>
    %789 = arith.maximumf %787, %788 : vector<8x64xf32>
    %c0_267 = arith.constant 0 : index
    %c256_268 = arith.constant 256 : index
    %790 = vector.load %arg7[%c0_267, %c256_268] : memref<64x384xf32, #tpu.memory_space<vmem>>, vector<64x32xf32>
    %cst_269 = arith.constant dense<0.000000e+00> : vector<8x32xf32>
    %791 = tpu.matmul %789, %790, %cst_269 {dimension_numbers = #tpu.dot_dimension_numbers<[1], [0], [0], [1], [0, 0, 1, 1], [], []>} : vector<8x64xf32>, vector<64x32xf32>, vector<8x32xf32> -> vector<8x32xf32>
    %c22 = arith.constant 22 : index
    %c0_270 = arith.constant 0 : index
    %792 = vector.load %arg8[%c22, %c0_270] : memref<40x128xf32, #tpu.memory_space<vmem>>, vector<1x128xf32>
    %793 = vector.shape_cast %792 : vector<1x128xf32> to vector<128xf32>
    %794 = vector.extract_strided_slice %793 {offsets = [0], sizes = [32], strides = [1]} : vector<128xf32> to vector<32xf32>
    %795 = vector.shape_cast %794 : vector<32xf32> to vector<1x32xf32>
    %796 = vector.broadcast %795 : vector<1x32xf32> to vector<8x32xf32>
    %797 = arith.addf %791, %796 : vector<8x32xf32>
    %798 = arith.addf %779, %797 : vector<8x32xf32>
    %c27 = arith.constant 27 : index
    %c0_271 = arith.constant 0 : index
    %799 = vector.load %arg8[%c27, %c0_271] : memref<40x128xf32, #tpu.memory_space<vmem>>, vector<1x128xf32>
    %800 = vector.shape_cast %799 : vector<1x128xf32> to vector<128xf32>
    %801 = vector.extract_strided_slice %800 {offsets = [0], sizes = [32], strides = [1]} : vector<128xf32> to vector<32xf32>
    %802 = vector.shape_cast %801 : vector<32xf32> to vector<1x32xf32>
    %c28 = arith.constant 28 : index
    %c0_272 = arith.constant 0 : index
    %803 = vector.load %arg8[%c28, %c0_272] : memref<40x128xf32, #tpu.memory_space<vmem>>, vector<1x128xf32>
    %804 = vector.shape_cast %803 : vector<1x128xf32> to vector<128xf32>
    %805 = vector.extract_strided_slice %804 {offsets = [0], sizes = [32], strides = [1]} : vector<128xf32> to vector<32xf32>
    %806 = vector.shape_cast %805 : vector<32xf32> to vector<1x32xf32>
    %cst_273 = arith.constant dense<0.000000e+00> : vector<8xf32>
    %807 = vector.multi_reduction <add>, %798, %cst_273 [1] : vector<8x32xf32> to vector<8xf32>
    %808 = vector.shape_cast %807 : vector<8xf32> to vector<8x1xf32>
    %cst_274 = arith.constant 3.200000e+01 : f32
    %809 = vector.broadcast %cst_274 : f32 to vector<8x1xf32>
    %810 = arith.divf %808, %809 : vector<8x1xf32>
    %811 = vector.broadcast %810 : vector<8x1xf32> to vector<8x32xf32>
    %812 = arith.subf %798, %811 : vector<8x32xf32>
    %813 = arith.mulf %812, %812 : vector<8x32xf32>
    %cst_275 = arith.constant dense<0.000000e+00> : vector<8xf32>
    %814 = vector.multi_reduction <add>, %813, %cst_275 [1] : vector<8x32xf32> to vector<8xf32>
    %815 = vector.shape_cast %814 : vector<8xf32> to vector<8x1xf32>
    %cst_276 = arith.constant 3.200000e+01 : f32
    %816 = vector.broadcast %cst_276 : f32 to vector<8x1xf32>
    %817 = arith.divf %815, %816 : vector<8x1xf32>
    %818 = vector.broadcast %810 : vector<8x1xf32> to vector<8x32xf32>
    %819 = arith.subf %798, %818 : vector<8x32xf32>
    %cst_277 = arith.constant 9.99999974E-6 : f32
    %820 = vector.broadcast %cst_277 : f32 to vector<8x1xf32>
    %821 = arith.addf %817, %820 : vector<8x1xf32>
    %822 = math.rsqrt %821 : vector<8x1xf32>
    %823 = vector.broadcast %822 : vector<8x1xf32> to vector<8x32xf32>
    %824 = arith.mulf %819, %823 : vector<8x32xf32>
    %825 = vector.broadcast %802 : vector<1x32xf32> to vector<8x32xf32>
    %826 = arith.mulf %824, %825 : vector<8x32xf32>
    %827 = vector.broadcast %806 : vector<1x32xf32> to vector<8x32xf32>
    %828 = arith.addf %826, %827 : vector<8x32xf32>
    %c31 = arith.constant 31 : index
    %c0_278 = arith.constant 0 : index
    %829 = vector.load %arg8[%c31, %c0_278] : memref<40x128xf32, #tpu.memory_space<vmem>>, vector<1x128xf32>
    %830 = vector.shape_cast %829 : vector<1x128xf32> to vector<128xf32>
    %831 = vector.extract_strided_slice %830 {offsets = [0], sizes = [32], strides = [1]} : vector<128xf32> to vector<32xf32>
    %832 = vector.shape_cast %831 : vector<32xf32> to vector<1x32xf32>
    %c32 = arith.constant 32 : index
    %c0_279 = arith.constant 0 : index
    %833 = vector.load %arg8[%c32, %c0_279] : memref<40x128xf32, #tpu.memory_space<vmem>>, vector<1x128xf32>
    %834 = vector.shape_cast %833 : vector<1x128xf32> to vector<128xf32>
    %835 = vector.extract_strided_slice %834 {offsets = [0], sizes = [32], strides = [1]} : vector<128xf32> to vector<32xf32>
    %836 = vector.shape_cast %835 : vector<32xf32> to vector<1x32xf32>
    %cst_280 = arith.constant dense<0.000000e+00> : vector<8xf32>
    %837 = vector.multi_reduction <add>, %828, %cst_280 [1] : vector<8x32xf32> to vector<8xf32>
    %838 = vector.shape_cast %837 : vector<8xf32> to vector<8x1xf32>
    %cst_281 = arith.constant 3.200000e+01 : f32
    %839 = vector.broadcast %cst_281 : f32 to vector<8x1xf32>
    %840 = arith.divf %838, %839 : vector<8x1xf32>
    %841 = vector.broadcast %840 : vector<8x1xf32> to vector<8x32xf32>
    %842 = arith.subf %828, %841 : vector<8x32xf32>
    %843 = arith.mulf %842, %842 : vector<8x32xf32>
    %cst_282 = arith.constant dense<0.000000e+00> : vector<8xf32>
    %844 = vector.multi_reduction <add>, %843, %cst_282 [1] : vector<8x32xf32> to vector<8xf32>
    %845 = vector.shape_cast %844 : vector<8xf32> to vector<8x1xf32>
    %cst_283 = arith.constant 3.200000e+01 : f32
    %846 = vector.broadcast %cst_283 : f32 to vector<8x1xf32>
    %847 = arith.divf %845, %846 : vector<8x1xf32>
    %848 = vector.broadcast %840 : vector<8x1xf32> to vector<8x32xf32>
    %849 = arith.subf %828, %848 : vector<8x32xf32>
    %cst_284 = arith.constant 9.99999974E-6 : f32
    %850 = vector.broadcast %cst_284 : f32 to vector<8x1xf32>
    %851 = arith.addf %847, %850 : vector<8x1xf32>
    %852 = math.rsqrt %851 : vector<8x1xf32>
    %853 = vector.broadcast %852 : vector<8x1xf32> to vector<8x32xf32>
    %854 = arith.mulf %849, %853 : vector<8x32xf32>
    %855 = vector.broadcast %832 : vector<1x32xf32> to vector<8x32xf32>
    %856 = arith.mulf %854, %855 : vector<8x32xf32>
    %857 = vector.broadcast %836 : vector<1x32xf32> to vector<8x32xf32>
    %858 = arith.addf %856, %857 : vector<8x32xf32>
    %c0_285 = arith.constant 0 : index
    %c1536 = arith.constant 1536 : index
    %859 = vector.load %arg6[%c0_285, %c1536] : memref<32x1664xf32, #tpu.memory_space<vmem>>, vector<32x4xf32>
    %cst_286 = arith.constant dense<0.000000e+00> : vector<8x4xf32>
    %860 = tpu.matmul %858, %859, %cst_286 {dimension_numbers = #tpu.dot_dimension_numbers<[1], [0], [0], [1], [0, 0, 1, 1], [], []>} : vector<8x32xf32>, vector<32x4xf32>, vector<8x4xf32> -> vector<8x4xf32>
    %c33 = arith.constant 33 : index
    %c0_287 = arith.constant 0 : index
    %861 = vector.load %arg8[%c33, %c0_287] : memref<40x128xf32, #tpu.memory_space<vmem>>, vector<1x128xf32>
    %862 = vector.shape_cast %861 : vector<1x128xf32> to vector<128xf32>
    %863 = vector.extract_strided_slice %862 {offsets = [0], sizes = [4], strides = [1]} : vector<128xf32> to vector<4xf32>
    %864 = vector.shape_cast %863 : vector<4xf32> to vector<1x4xf32>
    %865 = vector.broadcast %864 : vector<1x4xf32> to vector<8x4xf32>
    %866 = arith.addf %860, %865 : vector<8x4xf32>
    %c0_288 = arith.constant 0 : index
    %c0_289 = arith.constant 0 : index
    %c0_290 = arith.constant 0 : index
    %867 = vector.load %arg9[%c0_288, %c0_289, %c0_290] : memref<2x8x4xf32, #tpu.memory_space<vmem>>, vector<1x8x4xf32>
    %868 = vector.shape_cast %867 : vector<1x8x4xf32> to vector<8x4xf32>
    %869 = vector.shape_cast %866 : vector<8x4xf32> to vector<1x8x4xf32>
    tpu.vector_store %arg9[%c0_288, %c0_289, %c0_290], %869 {strides = array<i32>} : memref<2x8x4xf32, #tpu.memory_space<vmem>>, vector<1x8x4xf32>,
    %c1_291 = arith.constant 1 : index
    %c0_292 = arith.constant 0 : index
    %c0_293 = arith.constant 0 : index
    %870 = vector.load %arg0[%c1_291, %c0_292, %c0_293] : memref<2x8x4xf32, #tpu.memory_space<vmem>>, vector<1x8x4xf32>
    %871 = vector.shape_cast %870 : vector<1x8x4xf32> to vector<8x4xf32>
    %c1_294 = arith.constant 1 : index
    %c0_295 = arith.constant 0 : index
    %c0_296 = arith.constant 0 : index
    %872 = vector.load %arg1[%c1_294, %c0_295, %c0_296] : memref<2x8x4xf32, #tpu.memory_space<vmem>>, vector<1x8x4xf32>
    %873 = vector.shape_cast %872 : vector<1x8x4xf32> to vector<8x4xf32>
    %874 = tpu.iota {dimensions = array<i32: 0>} : vector<8x8xi32>
    %875 = tpu.iota {dimensions = array<i32: 1>} : vector<8x8xi32>
    %c8_i32_297 = arith.constant 8 : i32
    %876 = vector.broadcast %c8_i32_297 : i32 to vector<8x8xi32>
    %877 = arith.addi %874, %876 : vector<8x8xi32>
    %c1_i32_298 = arith.constant 1 : i32
    %878 = vector.broadcast %c1_i32_298 : i32 to vector<8x8xi32>
    %879 = arith.subi %877, %878 : vector<8x8xi32>
    %c8_i32_299 = arith.constant 8 : i32
    %c0_i32_300 = arith.constant 0 : i32
    %880 = arith.cmpi eq, %c8_i32_299, %c0_i32_300 : i32
    %c1_i32_301 = arith.constant 1 : i32
    %881 = arith.select %880, %c1_i32_301, %c8_i32_299 : i32
    %882 = vector.broadcast %881 : i32 to vector<8x8xi32>
    %883 = arith.remsi %879, %882 : vector<8x8xi32>
    %c0_i32_302 = arith.constant 0 : i32
    %884 = vector.broadcast %c0_i32_302 : i32 to vector<8x8xi32>
    %885 = arith.cmpi ne, %883, %884 : vector<8x8xi32>
    %c0_i32_303 = arith.constant 0 : i32
    %886 = vector.broadcast %c0_i32_303 : i32 to vector<8x8xi32>
    %887 = arith.cmpi slt, %883, %886 : vector<8x8xi32>
    %c0_i32_304 = arith.constant 0 : i32
    %888 = arith.cmpi slt, %881, %c0_i32_304 : i32
    %889 = vector.broadcast %888 : i1 to vector<8x8xi1>
    %890 = vector.broadcast %889 : vector<8x8xi1> to vector<8x8xi1>
    %891 = arith.xori %887, %890 : vector<8x8xi1>
    %892 = arith.andi %891, %885 : vector<8x8xi1>
    %893 = vector.broadcast %881 : i32 to vector<8x8xi32>
    %894 = arith.addi %883, %893 : vector<8x8xi32>
    %895 = arith.select %892, %894, %883 : vector<8x8xi1>, vector<8x8xi32>
    %896 = arith.cmpi eq, %895, %875 : vector<8x8xi32>
    %897 = arith.extui %896 : vector<8x8xi1> to vector<8x8xi32>
    %898 = arith.sitofp %897 : vector<8x8xi32> to vector<8x8xf32>
    %c1_i32_305 = arith.constant 1 : i32
    %899 = vector.broadcast %c1_i32_305 : i32 to vector<8x8xi32>
    %900 = arith.addi %874, %899 : vector<8x8xi32>
    %c8_i32_306 = arith.constant 8 : i32
    %c0_i32_307 = arith.constant 0 : i32
    %901 = arith.cmpi eq, %c8_i32_306, %c0_i32_307 : i32
    %c1_i32_308 = arith.constant 1 : i32
    %902 = arith.select %901, %c1_i32_308, %c8_i32_306 : i32
    %903 = vector.broadcast %902 : i32 to vector<8x8xi32>
    %904 = arith.remsi %900, %903 : vector<8x8xi32>
    %c0_i32_309 = arith.constant 0 : i32
    %905 = vector.broadcast %c0_i32_309 : i32 to vector<8x8xi32>
    %906 = arith.cmpi ne, %904, %905 : vector<8x8xi32>
    %c0_i32_310 = arith.constant 0 : i32
    %907 = vector.broadcast %c0_i32_310 : i32 to vector<8x8xi32>
    %908 = arith.cmpi slt, %904, %907 : vector<8x8xi32>
    %c0_i32_311 = arith.constant 0 : i32
    %909 = arith.cmpi slt, %902, %c0_i32_311 : i32
    %910 = vector.broadcast %909 : i1 to vector<8x8xi1>
    %911 = vector.broadcast %910 : vector<8x8xi1> to vector<8x8xi1>
    %912 = arith.xori %908, %911 : vector<8x8xi1>
    %913 = arith.andi %912, %906 : vector<8x8xi1>
    %914 = vector.broadcast %902 : i32 to vector<8x8xi32>
    %915 = arith.addi %904, %914 : vector<8x8xi32>
    %916 = arith.select %913, %915, %904 : vector<8x8xi1>, vector<8x8xi32>
    %917 = arith.cmpi eq, %916, %875 : vector<8x8xi32>
    %918 = arith.extui %917 : vector<8x8xi1> to vector<8x8xi32>
    %919 = arith.sitofp %918 : vector<8x8xi32> to vector<8x8xf32>
    %cst_312 = arith.constant dense<0.000000e+00> : vector<8x4xf32>
    %920 = tpu.matmul %898, %871, %cst_312 {dimension_numbers = #tpu.dot_dimension_numbers<[1], [0], [0], [1], [0, 0, 1, 1], [], []>} : vector<8x8xf32>, vector<8x4xf32>, vector<8x4xf32> -> vector<8x4xf32>
    %cst_313 = arith.constant dense<0.000000e+00> : vector<8x4xf32>
    %921 = tpu.matmul %919, %871, %cst_313 {dimension_numbers = #tpu.dot_dimension_numbers<[1], [0], [0], [1], [0, 0, 1, 1], [], []>} : vector<8x8xf32>, vector<8x4xf32>, vector<8x4xf32> -> vector<8x4xf32>
    %c0_314 = arith.constant 0 : index
    %c0_315 = arith.constant 0 : index
    %922 = vector.load %arg4[%c0_314, %c0_315] : memref<8x32xf32, #tpu.memory_space<vmem>>, vector<8x32xf32>
    %c0_316 = arith.constant 0 : index
    %c0_317 = arith.constant 0 : index
    %923 = vector.load %arg5[%c0_316, %c0_317] : memref<4x1024xf32, #tpu.memory_space<vmem>>, vector<4x32xf32>
    %cst_318 = arith.constant dense<0.000000e+00> : vector<8x32xf32>
    %924 = tpu.matmul %920, %923, %cst_318 {dimension_numbers = #tpu.dot_dimension_numbers<[1], [0], [0], [1], [0, 0, 1, 1], [], []>} : vector<8x4xf32>, vector<4x32xf32>, vector<8x32xf32> -> vector<8x32xf32>
    %925 = arith.addf %922, %924 : vector<8x32xf32>
    %c0_319 = arith.constant 0 : index
    %c128_320 = arith.constant 128 : index
    %926 = vector.load %arg5[%c0_319, %c128_320] : memref<4x1024xf32, #tpu.memory_space<vmem>>, vector<4x32xf32>
    %cst_321 = arith.constant dense<0.000000e+00> : vector<8x32xf32>
    %927 = tpu.matmul %871, %926, %cst_321 {dimension_numbers = #tpu.dot_dimension_numbers<[1], [0], [0], [1], [0, 0, 1, 1], [], []>} : vector<8x4xf32>, vector<4x32xf32>, vector<8x32xf32> -> vector<8x32xf32>
    %928 = arith.addf %925, %927 : vector<8x32xf32>
    %c0_322 = arith.constant 0 : index
    %c256_323 = arith.constant 256 : index
    %929 = vector.load %arg5[%c0_322, %c256_323] : memref<4x1024xf32, #tpu.memory_space<vmem>>, vector<4x32xf32>
    %cst_324 = arith.constant dense<0.000000e+00> : vector<8x32xf32>
    %930 = tpu.matmul %921, %929, %cst_324 {dimension_numbers = #tpu.dot_dimension_numbers<[1], [0], [0], [1], [0, 0, 1, 1], [], []>} : vector<8x4xf32>, vector<4x32xf32>, vector<8x32xf32> -> vector<8x32xf32>
    %931 = arith.addf %928, %930 : vector<8x32xf32>
    %c0_325 = arith.constant 0 : index
    %c384_326 = arith.constant 384 : index
    %932 = vector.load %arg5[%c0_325, %c384_326] : memref<4x1024xf32, #tpu.memory_space<vmem>>, vector<4x32xf32>
    %cst_327 = arith.constant dense<0.000000e+00> : vector<8x32xf32>
    %933 = tpu.matmul %873, %932, %cst_327 {dimension_numbers = #tpu.dot_dimension_numbers<[1], [0], [0], [1], [0, 0, 1, 1], [], []>} : vector<8x4xf32>, vector<4x32xf32>, vector<8x32xf32> -> vector<8x32xf32>
    %934 = arith.addf %931, %933 : vector<8x32xf32>
    %c0_328 = arith.constant 0 : index
    %c0_329 = arith.constant 0 : index
    %935 = vector.load %arg6[%c0_328, %c0_329] : memref<32x1664xf32, #tpu.memory_space<vmem>>, vector<32x96xf32>
    %cst_330 = arith.constant dense<0.000000e+00> : vector<8x96xf32>
    %936 = tpu.matmul %934, %935, %cst_330 {dimension_numbers = #tpu.dot_dimension_numbers<[1], [0], [0], [1], [0, 0, 1, 1], [], []>} : vector<8x32xf32>, vector<32x96xf32>, vector<8x96xf32> -> vector<8x96xf32>
    %c0_331 = arith.constant 0 : index
    %c0_332 = arith.constant 0 : index
    %937 = vector.load %arg8[%c0_331, %c0_332] : memref<40x128xf32, #tpu.memory_space<vmem>>, vector<1x128xf32>
    %938 = vector.shape_cast %937 : vector<1x128xf32> to vector<128xf32>
    %939 = vector.extract_strided_slice %938 {offsets = [0], sizes = [96], strides = [1]} : vector<128xf32> to vector<96xf32>
    %940 = vector.shape_cast %939 : vector<96xf32> to vector<1x96xf32>
    %941 = vector.broadcast %940 : vector<1x96xf32> to vector<8x96xf32>
    %942 = arith.addf %936, %941 : vector<8x96xf32>
    %943 = vector.extract_strided_slice %942 {offsets = [0, 0], sizes = [8, 32], strides = [1, 1]} : vector<8x96xf32> to vector<8x32xf32>
    %944 = vector.extract_strided_slice %942 {offsets = [0, 32], sizes = [8, 32], strides = [1, 1]} : vector<8x96xf32> to vector<8x32xf32>
    %945 = vector.extract_strided_slice %942 {offsets = [0, 64], sizes = [8, 32], strides = [1, 1]} : vector<8x96xf32> to vector<8x32xf32>
    %c0_333 = arith.constant 0 : index
    %c128_334 = arith.constant 128 : index
    %946 = vector.load %arg6[%c0_333, %c128_334] : memref<32x1664xf32, #tpu.memory_space<vmem>>, vector<32x32xf32>
    %cst_335 = arith.constant 0.000000e+00 : f32
    %947 = vector.broadcast %cst_335 : f32 to vector<8x32xf32>
    %948 = vector.extract_strided_slice %943 {offsets = [0, 0], sizes = [8, 8], strides = [1, 1]} : vector<8x32xf32> to vector<8x8xf32>
    %949 = vector.extract_strided_slice %944 {offsets = [0, 0], sizes = [8, 8], strides = [1, 1]} : vector<8x32xf32> to vector<8x8xf32>
    %950 = vector.extract_strided_slice %945 {offsets = [0, 0], sizes = [8, 8], strides = [1, 1]} : vector<8x32xf32> to vector<8x8xf32>
    %cst_336 = arith.constant dense<0.000000e+00> : vector<8x8xf32>
    %951 = tpu.matmul %948, %949, %cst_336 {dimension_numbers = #tpu.dot_dimension_numbers<[1], [1], [0], [0], [0, 0, 1, 0], [], []>} : vector<8x8xf32>, vector<8x8xf32>, vector<8x8xf32> -> vector<8x8xf32>
    %cst_337 = arith.constant 0.353553385 : f32
    %952 = vector.broadcast %cst_337 : f32 to vector<8x8xf32>
    %953 = arith.mulf %951, %952 : vector<8x8xf32>
    %cst_338 = arith.constant dense<0xFF800000> : vector<8xf32>
    %954 = vector.multi_reduction <maximumf>, %953, %cst_338 [1] : vector<8x8xf32> to vector<8xf32>
    %955 = vector.shape_cast %954 : vector<8xf32> to vector<8x1xf32>
    %956 = vector.broadcast %955 : vector<8x1xf32> to vector<8x8xf32>
    %957 = arith.subf %953, %956 : vector<8x8xf32>
    %958 = math.exp %957 : vector<8x8xf32>
    %cst_339 = arith.constant dense<0.000000e+00> : vector<8x8xf32>
    %959 = tpu.matmul %958, %950, %cst_339 {dimension_numbers = #tpu.dot_dimension_numbers<[1], [0], [0], [1], [0, 0, 1, 1], [], []>} : vector<8x8xf32>, vector<8x8xf32>, vector<8x8xf32> -> vector<8x8xf32>
    %cst_340 = arith.constant dense<0.000000e+00> : vector<8xf32>
    %960 = vector.multi_reduction <add>, %958, %cst_340 [1] : vector<8x8xf32> to vector<8xf32>
    %961 = vector.shape_cast %960 : vector<8xf32> to vector<8x1xf32>
    %962 = vector.broadcast %961 : vector<8x1xf32> to vector<8x8xf32>
    %963 = arith.divf %959, %962 : vector<8x8xf32>
    %964 = vector.extract_strided_slice %946 {offsets = [0, 0], sizes = [8, 32], strides = [1, 1]} : vector<32x32xf32> to vector<8x32xf32>
    %cst_341 = arith.constant dense<0.000000e+00> : vector<8x32xf32>
    %965 = tpu.matmul %963, %964, %cst_341 {dimension_numbers = #tpu.dot_dimension_numbers<[1], [0], [0], [1], [0, 0, 1, 1], [], []>} : vector<8x8xf32>, vector<8x32xf32>, vector<8x32xf32> -> vector<8x32xf32>
    %966 = arith.addf %947, %965 : vector<8x32xf32>
    %967 = vector.extract_strided_slice %943 {offsets = [0, 8], sizes = [8, 8], strides = [1, 1]} : vector<8x32xf32> to vector<8x8xf32>
    %968 = vector.extract_strided_slice %944 {offsets = [0, 8], sizes = [8, 8], strides = [1, 1]} : vector<8x32xf32> to vector<8x8xf32>
    %969 = vector.extract_strided_slice %945 {offsets = [0, 8], sizes = [8, 8], strides = [1, 1]} : vector<8x32xf32> to vector<8x8xf32>
    %cst_342 = arith.constant dense<0.000000e+00> : vector<8x8xf32>
    %970 = tpu.matmul %967, %968, %cst_342 {dimension_numbers = #tpu.dot_dimension_numbers<[1], [1], [0], [0], [0, 0, 1, 0], [], []>} : vector<8x8xf32>, vector<8x8xf32>, vector<8x8xf32> -> vector<8x8xf32>
    %cst_343 = arith.constant 0.353553385 : f32
    %971 = vector.broadcast %cst_343 : f32 to vector<8x8xf32>
    %972 = arith.mulf %970, %971 : vector<8x8xf32>
    %cst_344 = arith.constant dense<0xFF800000> : vector<8xf32>
    %973 = vector.multi_reduction <maximumf>, %972, %cst_344 [1] : vector<8x8xf32> to vector<8xf32>
    %974 = vector.shape_cast %973 : vector<8xf32> to vector<8x1xf32>
    %975 = vector.broadcast %974 : vector<8x1xf32> to vector<8x8xf32>
    %976 = arith.subf %972, %975 : vector<8x8xf32>
    %977 = math.exp %976 : vector<8x8xf32>
    %cst_345 = arith.constant dense<0.000000e+00> : vector<8x8xf32>
    %978 = tpu.matmul %977, %969, %cst_345 {dimension_numbers = #tpu.dot_dimension_numbers<[1], [0], [0], [1], [0, 0, 1, 1], [], []>} : vector<8x8xf32>, vector<8x8xf32>, vector<8x8xf32> -> vector<8x8xf32>
    %cst_346 = arith.constant dense<0.000000e+00> : vector<8xf32>
    %979 = vector.multi_reduction <add>, %977, %cst_346 [1] : vector<8x8xf32> to vector<8xf32>
    %980 = vector.shape_cast %979 : vector<8xf32> to vector<8x1xf32>
    %981 = vector.broadcast %980 : vector<8x1xf32> to vector<8x8xf32>
    %982 = arith.divf %978, %981 : vector<8x8xf32>
    %983 = vector.extract_strided_slice %946 {offsets = [8, 0], sizes = [8, 32], strides = [1, 1]} : vector<32x32xf32> to vector<8x32xf32>
    %cst_347 = arith.constant dense<0.000000e+00> : vector<8x32xf32>
    %984 = tpu.matmul %982, %983, %cst_347 {dimension_numbers = #tpu.dot_dimension_numbers<[1], [0], [0], [1], [0, 0, 1, 1], [], []>} : vector<8x8xf32>, vector<8x32xf32>, vector<8x32xf32> -> vector<8x32xf32>
    %985 = arith.addf %966, %984 : vector<8x32xf32>
    %986 = vector.extract_strided_slice %943 {offsets = [0, 16], sizes = [8, 8], strides = [1, 1]} : vector<8x32xf32> to vector<8x8xf32>
    %987 = vector.extract_strided_slice %944 {offsets = [0, 16], sizes = [8, 8], strides = [1, 1]} : vector<8x32xf32> to vector<8x8xf32>
    %988 = vector.extract_strided_slice %945 {offsets = [0, 16], sizes = [8, 8], strides = [1, 1]} : vector<8x32xf32> to vector<8x8xf32>
    %cst_348 = arith.constant dense<0.000000e+00> : vector<8x8xf32>
    %989 = tpu.matmul %986, %987, %cst_348 {dimension_numbers = #tpu.dot_dimension_numbers<[1], [1], [0], [0], [0, 0, 1, 0], [], []>} : vector<8x8xf32>, vector<8x8xf32>, vector<8x8xf32> -> vector<8x8xf32>
    %cst_349 = arith.constant 0.353553385 : f32
    %990 = vector.broadcast %cst_349 : f32 to vector<8x8xf32>
    %991 = arith.mulf %989, %990 : vector<8x8xf32>
    %cst_350 = arith.constant dense<0xFF800000> : vector<8xf32>
    %992 = vector.multi_reduction <maximumf>, %991, %cst_350 [1] : vector<8x8xf32> to vector<8xf32>
    %993 = vector.shape_cast %992 : vector<8xf32> to vector<8x1xf32>
    %994 = vector.broadcast %993 : vector<8x1xf32> to vector<8x8xf32>
    %995 = arith.subf %991, %994 : vector<8x8xf32>
    %996 = math.exp %995 : vector<8x8xf32>
    %cst_351 = arith.constant dense<0.000000e+00> : vector<8x8xf32>
    %997 = tpu.matmul %996, %988, %cst_351 {dimension_numbers = #tpu.dot_dimension_numbers<[1], [0], [0], [1], [0, 0, 1, 1], [], []>} : vector<8x8xf32>, vector<8x8xf32>, vector<8x8xf32> -> vector<8x8xf32>
    %cst_352 = arith.constant dense<0.000000e+00> : vector<8xf32>
    %998 = vector.multi_reduction <add>, %996, %cst_352 [1] : vector<8x8xf32> to vector<8xf32>
    %999 = vector.shape_cast %998 : vector<8xf32> to vector<8x1xf32>
    %1000 = vector.broadcast %999 : vector<8x1xf32> to vector<8x8xf32>
    %1001 = arith.divf %997, %1000 : vector<8x8xf32>
    %1002 = vector.extract_strided_slice %946 {offsets = [16, 0], sizes = [8, 32], strides = [1, 1]} : vector<32x32xf32> to vector<8x32xf32>
    %cst_353 = arith.constant dense<0.000000e+00> : vector<8x32xf32>
    %1003 = tpu.matmul %1001, %1002, %cst_353 {dimension_numbers = #tpu.dot_dimension_numbers<[1], [0], [0], [1], [0, 0, 1, 1], [], []>} : vector<8x8xf32>, vector<8x32xf32>, vector<8x32xf32> -> vector<8x32xf32>
    %1004 = arith.addf %985, %1003 : vector<8x32xf32>
    %1005 = vector.extract_strided_slice %943 {offsets = [0, 24], sizes = [8, 8], strides = [1, 1]} : vector<8x32xf32> to vector<8x8xf32>
    %1006 = vector.extract_strided_slice %944 {offsets = [0, 24], sizes = [8, 8], strides = [1, 1]} : vector<8x32xf32> to vector<8x8xf32>
    %1007 = vector.extract_strided_slice %945 {offsets = [0, 24], sizes = [8, 8], strides = [1, 1]} : vector<8x32xf32> to vector<8x8xf32>
    %cst_354 = arith.constant dense<0.000000e+00> : vector<8x8xf32>
    %1008 = tpu.matmul %1005, %1006, %cst_354 {dimension_numbers = #tpu.dot_dimension_numbers<[1], [1], [0], [0], [0, 0, 1, 0], [], []>} : vector<8x8xf32>, vector<8x8xf32>, vector<8x8xf32> -> vector<8x8xf32>
    %cst_355 = arith.constant 0.353553385 : f32
    %1009 = vector.broadcast %cst_355 : f32 to vector<8x8xf32>
    %1010 = arith.mulf %1008, %1009 : vector<8x8xf32>
    %cst_356 = arith.constant dense<0xFF800000> : vector<8xf32>
    %1011 = vector.multi_reduction <maximumf>, %1010, %cst_356 [1] : vector<8x8xf32> to vector<8xf32>
    %1012 = vector.shape_cast %1011 : vector<8xf32> to vector<8x1xf32>
    %1013 = vector.broadcast %1012 : vector<8x1xf32> to vector<8x8xf32>
    %1014 = arith.subf %1010, %1013 : vector<8x8xf32>
    %1015 = math.exp %1014 : vector<8x8xf32>
    %cst_357 = arith.constant dense<0.000000e+00> : vector<8x8xf32>
    %1016 = tpu.matmul %1015, %1007, %cst_357 {dimension_numbers = #tpu.dot_dimension_numbers<[1], [0], [0], [1], [0, 0, 1, 1], [], []>} : vector<8x8xf32>, vector<8x8xf32>, vector<8x8xf32> -> vector<8x8xf32>
    %cst_358 = arith.constant dense<0.000000e+00> : vector<8xf32>
    %1017 = vector.multi_reduction <add>, %1015, %cst_358 [1] : vector<8x8xf32> to vector<8xf32>
    %1018 = vector.shape_cast %1017 : vector<8xf32> to vector<8x1xf32>
    %1019 = vector.broadcast %1018 : vector<8x1xf32> to vector<8x8xf32>
    %1020 = arith.divf %1016, %1019 : vector<8x8xf32>
    %1021 = vector.extract_strided_slice %946 {offsets = [24, 0], sizes = [8, 32], strides = [1, 1]} : vector<32x32xf32> to vector<8x32xf32>
    %cst_359 = arith.constant dense<0.000000e+00> : vector<8x32xf32>
    %1022 = tpu.matmul %1020, %1021, %cst_359 {dimension_numbers = #tpu.dot_dimension_numbers<[1], [0], [0], [1], [0, 0, 1, 1], [], []>} : vector<8x8xf32>, vector<8x32xf32>, vector<8x32xf32> -> vector<8x32xf32>
    %1023 = arith.addf %1004, %1022 : vector<8x32xf32>
    %c1_360 = arith.constant 1 : index
    %c0_361 = arith.constant 0 : index
    %1024 = vector.load %arg8[%c1_360, %c0_361] : memref<40x128xf32, #tpu.memory_space<vmem>>, vector<1x128xf32>
    %1025 = vector.shape_cast %1024 : vector<1x128xf32> to vector<128xf32>
    %1026 = vector.extract_strided_slice %1025 {offsets = [0], sizes = [32], strides = [1]} : vector<128xf32> to vector<32xf32>
    %1027 = vector.shape_cast %1026 : vector<32xf32> to vector<1x32xf32>
    %1028 = vector.broadcast %1027 : vector<1x32xf32> to vector<8x32xf32>
    %1029 = arith.addf %1023, %1028 : vector<8x32xf32>
    %1030 = arith.addf %934, %1029 : vector<8x32xf32>
    %c4_362 = arith.constant 4 : index
    %c0_363 = arith.constant 0 : index
    %1031 = vector.load %arg8[%c4_362, %c0_363] : memref<40x128xf32, #tpu.memory_space<vmem>>, vector<1x128xf32>
    %1032 = vector.shape_cast %1031 : vector<1x128xf32> to vector<128xf32>
    %1033 = vector.extract_strided_slice %1032 {offsets = [0], sizes = [32], strides = [1]} : vector<128xf32> to vector<32xf32>
    %1034 = vector.shape_cast %1033 : vector<32xf32> to vector<1x32xf32>
    %c5_364 = arith.constant 5 : index
    %c0_365 = arith.constant 0 : index
    %1035 = vector.load %arg8[%c5_364, %c0_365] : memref<40x128xf32, #tpu.memory_space<vmem>>, vector<1x128xf32>
    %1036 = vector.shape_cast %1035 : vector<1x128xf32> to vector<128xf32>
    %1037 = vector.extract_strided_slice %1036 {offsets = [0], sizes = [32], strides = [1]} : vector<128xf32> to vector<32xf32>
    %1038 = vector.shape_cast %1037 : vector<32xf32> to vector<1x32xf32>
    %cst_366 = arith.constant dense<0.000000e+00> : vector<8xf32>
    %1039 = vector.multi_reduction <add>, %1030, %cst_366 [1] : vector<8x32xf32> to vector<8xf32>
    %1040 = vector.shape_cast %1039 : vector<8xf32> to vector<8x1xf32>
    %cst_367 = arith.constant 3.200000e+01 : f32
    %1041 = vector.broadcast %cst_367 : f32 to vector<8x1xf32>
    %1042 = arith.divf %1040, %1041 : vector<8x1xf32>
    %1043 = vector.broadcast %1042 : vector<8x1xf32> to vector<8x32xf32>
    %1044 = arith.subf %1030, %1043 : vector<8x32xf32>
    %1045 = arith.mulf %1044, %1044 : vector<8x32xf32>
    %cst_368 = arith.constant dense<0.000000e+00> : vector<8xf32>
    %1046 = vector.multi_reduction <add>, %1045, %cst_368 [1] : vector<8x32xf32> to vector<8xf32>
    %1047 = vector.shape_cast %1046 : vector<8xf32> to vector<8x1xf32>
    %cst_369 = arith.constant 3.200000e+01 : f32
    %1048 = vector.broadcast %cst_369 : f32 to vector<8x1xf32>
    %1049 = arith.divf %1047, %1048 : vector<8x1xf32>
    %1050 = vector.broadcast %1042 : vector<8x1xf32> to vector<8x32xf32>
    %1051 = arith.subf %1030, %1050 : vector<8x32xf32>
    %cst_370 = arith.constant 9.99999974E-6 : f32
    %1052 = vector.broadcast %cst_370 : f32 to vector<8x1xf32>
    %1053 = arith.addf %1049, %1052 : vector<8x1xf32>
    %1054 = math.rsqrt %1053 : vector<8x1xf32>
    %1055 = vector.broadcast %1054 : vector<8x1xf32> to vector<8x32xf32>
    %1056 = arith.mulf %1051, %1055 : vector<8x32xf32>
    %1057 = vector.broadcast %1034 : vector<1x32xf32> to vector<8x32xf32>
    %1058 = arith.mulf %1056, %1057 : vector<8x32xf32>
    %1059 = vector.broadcast %1038 : vector<1x32xf32> to vector<8x32xf32>
    %1060 = arith.addf %1058, %1059 : vector<8x32xf32>
    %c0_371 = arith.constant 0 : index
    %c256_372 = arith.constant 256 : index
    %1061 = vector.load %arg6[%c0_371, %c256_372] : memref<32x1664xf32, #tpu.memory_space<vmem>>, vector<32x64xf32>
    %cst_373 = arith.constant dense<0.000000e+00> : vector<8x64xf32>
    %1062 = tpu.matmul %1060, %1061, %cst_373 {dimension_numbers = #tpu.dot_dimension_numbers<[1], [0], [0], [1], [0, 0, 1, 1], [], []>} : vector<8x32xf32>, vector<32x64xf32>, vector<8x64xf32> -> vector<8x64xf32>
    %c2_374 = arith.constant 2 : index
    %c0_375 = arith.constant 0 : index
    %1063 = vector.load %arg8[%c2_374, %c0_375] : memref<40x128xf32, #tpu.memory_space<vmem>>, vector<1x128xf32>
    %1064 = vector.shape_cast %1063 : vector<1x128xf32> to vector<128xf32>
    %1065 = vector.extract_strided_slice %1064 {offsets = [0], sizes = [64], strides = [1]} : vector<128xf32> to vector<64xf32>
    %1066 = vector.shape_cast %1065 : vector<64xf32> to vector<1x64xf32>
    %1067 = vector.broadcast %1066 : vector<1x64xf32> to vector<8x64xf32>
    %1068 = arith.addf %1062, %1067 : vector<8x64xf32>
    %cst_376 = arith.constant 0.000000e+00 : f32
    %1069 = vector.broadcast %cst_376 : f32 to vector<8x64xf32>
    %1070 = arith.maximumf %1068, %1069 : vector<8x64xf32>
    %c0_377 = arith.constant 0 : index
    %c0_378 = arith.constant 0 : index
    %1071 = vector.load %arg7[%c0_377, %c0_378] : memref<64x384xf32, #tpu.memory_space<vmem>>, vector<64x32xf32>
    %cst_379 = arith.constant dense<0.000000e+00> : vector<8x32xf32>
    %1072 = tpu.matmul %1070, %1071, %cst_379 {dimension_numbers = #tpu.dot_dimension_numbers<[1], [0], [0], [1], [0, 0, 1, 1], [], []>} : vector<8x64xf32>, vector<64x32xf32>, vector<8x32xf32> -> vector<8x32xf32>
    %c3_380 = arith.constant 3 : index
    %c0_381 = arith.constant 0 : index
    %1073 = vector.load %arg8[%c3_380, %c0_381] : memref<40x128xf32, #tpu.memory_space<vmem>>, vector<1x128xf32>
    %1074 = vector.shape_cast %1073 : vector<1x128xf32> to vector<128xf32>
    %1075 = vector.extract_strided_slice %1074 {offsets = [0], sizes = [32], strides = [1]} : vector<128xf32> to vector<32xf32>
    %1076 = vector.shape_cast %1075 : vector<32xf32> to vector<1x32xf32>
    %1077 = vector.broadcast %1076 : vector<1x32xf32> to vector<8x32xf32>
    %1078 = arith.addf %1072, %1077 : vector<8x32xf32>
    %1079 = arith.addf %1060, %1078 : vector<8x32xf32>
    %c6_382 = arith.constant 6 : index
    %c0_383 = arith.constant 0 : index
    %1080 = vector.load %arg8[%c6_382, %c0_383] : memref<40x128xf32, #tpu.memory_space<vmem>>, vector<1x128xf32>
    %1081 = vector.shape_cast %1080 : vector<1x128xf32> to vector<128xf32>
    %1082 = vector.extract_strided_slice %1081 {offsets = [0], sizes = [32], strides = [1]} : vector<128xf32> to vector<32xf32>
    %1083 = vector.shape_cast %1082 : vector<32xf32> to vector<1x32xf32>
    %c7_384 = arith.constant 7 : index
    %c0_385 = arith.constant 0 : index
    %1084 = vector.load %arg8[%c7_384, %c0_385] : memref<40x128xf32, #tpu.memory_space<vmem>>, vector<1x128xf32>
    %1085 = vector.shape_cast %1084 : vector<1x128xf32> to vector<128xf32>
    %1086 = vector.extract_strided_slice %1085 {offsets = [0], sizes = [32], strides = [1]} : vector<128xf32> to vector<32xf32>
    %1087 = vector.shape_cast %1086 : vector<32xf32> to vector<1x32xf32>
    %cst_386 = arith.constant dense<0.000000e+00> : vector<8xf32>
    %1088 = vector.multi_reduction <add>, %1079, %cst_386 [1] : vector<8x32xf32> to vector<8xf32>
    %1089 = vector.shape_cast %1088 : vector<8xf32> to vector<8x1xf32>
    %cst_387 = arith.constant 3.200000e+01 : f32
    %1090 = vector.broadcast %cst_387 : f32 to vector<8x1xf32>
    %1091 = arith.divf %1089, %1090 : vector<8x1xf32>
    %1092 = vector.broadcast %1091 : vector<8x1xf32> to vector<8x32xf32>
    %1093 = arith.subf %1079, %1092 : vector<8x32xf32>
    %1094 = arith.mulf %1093, %1093 : vector<8x32xf32>
    %cst_388 = arith.constant dense<0.000000e+00> : vector<8xf32>
    %1095 = vector.multi_reduction <add>, %1094, %cst_388 [1] : vector<8x32xf32> to vector<8xf32>
    %1096 = vector.shape_cast %1095 : vector<8xf32> to vector<8x1xf32>
    %cst_389 = arith.constant 3.200000e+01 : f32
    %1097 = vector.broadcast %cst_389 : f32 to vector<8x1xf32>
    %1098 = arith.divf %1096, %1097 : vector<8x1xf32>
    %1099 = vector.broadcast %1091 : vector<8x1xf32> to vector<8x32xf32>
    %1100 = arith.subf %1079, %1099 : vector<8x32xf32>
    %cst_390 = arith.constant 9.99999974E-6 : f32
    %1101 = vector.broadcast %cst_390 : f32 to vector<8x1xf32>
    %1102 = arith.addf %1098, %1101 : vector<8x1xf32>
    %1103 = math.rsqrt %1102 : vector<8x1xf32>
    %1104 = vector.broadcast %1103 : vector<8x1xf32> to vector<8x32xf32>
    %1105 = arith.mulf %1100, %1104 : vector<8x32xf32>
    %1106 = vector.broadcast %1083 : vector<1x32xf32> to vector<8x32xf32>
    %1107 = arith.mulf %1105, %1106 : vector<8x32xf32>
    %1108 = vector.broadcast %1087 : vector<1x32xf32> to vector<8x32xf32>
    %1109 = arith.addf %1107, %1108 : vector<8x32xf32>
    %c0_391 = arith.constant 0 : index
    %c384_392 = arith.constant 384 : index
    %1110 = vector.load %arg6[%c0_391, %c384_392] : memref<32x1664xf32, #tpu.memory_space<vmem>>, vector<32x96xf32>
    %cst_393 = arith.constant dense<0.000000e+00> : vector<8x96xf32>
    %1111 = tpu.matmul %1109, %1110, %cst_393 {dimension_numbers = #tpu.dot_dimension_numbers<[1], [0], [0], [1], [0, 0, 1, 1], [], []>} : vector<8x32xf32>, vector<32x96xf32>, vector<8x96xf32> -> vector<8x96xf32>
    %c8_394 = arith.constant 8 : index
    %c0_395 = arith.constant 0 : index
    %1112 = vector.load %arg8[%c8_394, %c0_395] : memref<40x128xf32, #tpu.memory_space<vmem>>, vector<1x128xf32>
    %1113 = vector.shape_cast %1112 : vector<1x128xf32> to vector<128xf32>
    %1114 = vector.extract_strided_slice %1113 {offsets = [0], sizes = [96], strides = [1]} : vector<128xf32> to vector<96xf32>
    %1115 = vector.shape_cast %1114 : vector<96xf32> to vector<1x96xf32>
    %1116 = vector.broadcast %1115 : vector<1x96xf32> to vector<8x96xf32>
    %1117 = arith.addf %1111, %1116 : vector<8x96xf32>
    %1118 = vector.extract_strided_slice %1117 {offsets = [0, 0], sizes = [8, 32], strides = [1, 1]} : vector<8x96xf32> to vector<8x32xf32>
    %1119 = vector.extract_strided_slice %1117 {offsets = [0, 32], sizes = [8, 32], strides = [1, 1]} : vector<8x96xf32> to vector<8x32xf32>
    %1120 = vector.extract_strided_slice %1117 {offsets = [0, 64], sizes = [8, 32], strides = [1, 1]} : vector<8x96xf32> to vector<8x32xf32>
    %c0_396 = arith.constant 0 : index
    %c512_397 = arith.constant 512 : index
    %1121 = vector.load %arg6[%c0_396, %c512_397] : memref<32x1664xf32, #tpu.memory_space<vmem>>, vector<32x32xf32>
    %cst_398 = arith.constant 0.000000e+00 : f32
    %1122 = vector.broadcast %cst_398 : f32 to vector<8x32xf32>
    %1123 = vector.extract_strided_slice %1118 {offsets = [0, 0], sizes = [8, 8], strides = [1, 1]} : vector<8x32xf32> to vector<8x8xf32>
    %1124 = vector.extract_strided_slice %1119 {offsets = [0, 0], sizes = [8, 8], strides = [1, 1]} : vector<8x32xf32> to vector<8x8xf32>
    %1125 = vector.extract_strided_slice %1120 {offsets = [0, 0], sizes = [8, 8], strides = [1, 1]} : vector<8x32xf32> to vector<8x8xf32>
    %cst_399 = arith.constant dense<0.000000e+00> : vector<8x8xf32>
    %1126 = tpu.matmul %1123, %1124, %cst_399 {dimension_numbers = #tpu.dot_dimension_numbers<[1], [1], [0], [0], [0, 0, 1, 0], [], []>} : vector<8x8xf32>, vector<8x8xf32>, vector<8x8xf32> -> vector<8x8xf32>
    %cst_400 = arith.constant 0.353553385 : f32
    %1127 = vector.broadcast %cst_400 : f32 to vector<8x8xf32>
    %1128 = arith.mulf %1126, %1127 : vector<8x8xf32>
    %cst_401 = arith.constant dense<0xFF800000> : vector<8xf32>
    %1129 = vector.multi_reduction <maximumf>, %1128, %cst_401 [1] : vector<8x8xf32> to vector<8xf32>
    %1130 = vector.shape_cast %1129 : vector<8xf32> to vector<8x1xf32>
    %1131 = vector.broadcast %1130 : vector<8x1xf32> to vector<8x8xf32>
    %1132 = arith.subf %1128, %1131 : vector<8x8xf32>
    %1133 = math.exp %1132 : vector<8x8xf32>
    %cst_402 = arith.constant dense<0.000000e+00> : vector<8x8xf32>
    %1134 = tpu.matmul %1133, %1125, %cst_402 {dimension_numbers = #tpu.dot_dimension_numbers<[1], [0], [0], [1], [0, 0, 1, 1], [], []>} : vector<8x8xf32>, vector<8x8xf32>, vector<8x8xf32> -> vector<8x8xf32>
    %cst_403 = arith.constant dense<0.000000e+00> : vector<8xf32>
    %1135 = vector.multi_reduction <add>, %1133, %cst_403 [1] : vector<8x8xf32> to vector<8xf32>
    %1136 = vector.shape_cast %1135 : vector<8xf32> to vector<8x1xf32>
    %1137 = vector.broadcast %1136 : vector<8x1xf32> to vector<8x8xf32>
    %1138 = arith.divf %1134, %1137 : vector<8x8xf32>
    %1139 = vector.extract_strided_slice %1121 {offsets = [0, 0], sizes = [8, 32], strides = [1, 1]} : vector<32x32xf32> to vector<8x32xf32>
    %cst_404 = arith.constant dense<0.000000e+00> : vector<8x32xf32>
    %1140 = tpu.matmul %1138, %1139, %cst_404 {dimension_numbers = #tpu.dot_dimension_numbers<[1], [0], [0], [1], [0, 0, 1, 1], [], []>} : vector<8x8xf32>, vector<8x32xf32>, vector<8x32xf32> -> vector<8x32xf32>
    %1141 = arith.addf %1122, %1140 : vector<8x32xf32>
    %1142 = vector.extract_strided_slice %1118 {offsets = [0, 8], sizes = [8, 8], strides = [1, 1]} : vector<8x32xf32> to vector<8x8xf32>
    %1143 = vector.extract_strided_slice %1119 {offsets = [0, 8], sizes = [8, 8], strides = [1, 1]} : vector<8x32xf32> to vector<8x8xf32>
    %1144 = vector.extract_strided_slice %1120 {offsets = [0, 8], sizes = [8, 8], strides = [1, 1]} : vector<8x32xf32> to vector<8x8xf32>
    %cst_405 = arith.constant dense<0.000000e+00> : vector<8x8xf32>
    %1145 = tpu.matmul %1142, %1143, %cst_405 {dimension_numbers = #tpu.dot_dimension_numbers<[1], [1], [0], [0], [0, 0, 1, 0], [], []>} : vector<8x8xf32>, vector<8x8xf32>, vector<8x8xf32> -> vector<8x8xf32>
    %cst_406 = arith.constant 0.353553385 : f32
    %1146 = vector.broadcast %cst_406 : f32 to vector<8x8xf32>
    %1147 = arith.mulf %1145, %1146 : vector<8x8xf32>
    %cst_407 = arith.constant dense<0xFF800000> : vector<8xf32>
    %1148 = vector.multi_reduction <maximumf>, %1147, %cst_407 [1] : vector<8x8xf32> to vector<8xf32>
    %1149 = vector.shape_cast %1148 : vector<8xf32> to vector<8x1xf32>
    %1150 = vector.broadcast %1149 : vector<8x1xf32> to vector<8x8xf32>
    %1151 = arith.subf %1147, %1150 : vector<8x8xf32>
    %1152 = math.exp %1151 : vector<8x8xf32>
    %cst_408 = arith.constant dense<0.000000e+00> : vector<8x8xf32>
    %1153 = tpu.matmul %1152, %1144, %cst_408 {dimension_numbers = #tpu.dot_dimension_numbers<[1], [0], [0], [1], [0, 0, 1, 1], [], []>} : vector<8x8xf32>, vector<8x8xf32>, vector<8x8xf32> -> vector<8x8xf32>
    %cst_409 = arith.constant dense<0.000000e+00> : vector<8xf32>
    %1154 = vector.multi_reduction <add>, %1152, %cst_409 [1] : vector<8x8xf32> to vector<8xf32>
    %1155 = vector.shape_cast %1154 : vector<8xf32> to vector<8x1xf32>
    %1156 = vector.broadcast %1155 : vector<8x1xf32> to vector<8x8xf32>
    %1157 = arith.divf %1153, %1156 : vector<8x8xf32>
    %1158 = vector.extract_strided_slice %1121 {offsets = [8, 0], sizes = [8, 32], strides = [1, 1]} : vector<32x32xf32> to vector<8x32xf32>
    %cst_410 = arith.constant dense<0.000000e+00> : vector<8x32xf32>
    %1159 = tpu.matmul %1157, %1158, %cst_410 {dimension_numbers = #tpu.dot_dimension_numbers<[1], [0], [0], [1], [0, 0, 1, 1], [], []>} : vector<8x8xf32>, vector<8x32xf32>, vector<8x32xf32> -> vector<8x32xf32>
    %1160 = arith.addf %1141, %1159 : vector<8x32xf32>
    %1161 = vector.extract_strided_slice %1118 {offsets = [0, 16], sizes = [8, 8], strides = [1, 1]} : vector<8x32xf32> to vector<8x8xf32>
    %1162 = vector.extract_strided_slice %1119 {offsets = [0, 16], sizes = [8, 8], strides = [1, 1]} : vector<8x32xf32> to vector<8x8xf32>
    %1163 = vector.extract_strided_slice %1120 {offsets = [0, 16], sizes = [8, 8], strides = [1, 1]} : vector<8x32xf32> to vector<8x8xf32>
    %cst_411 = arith.constant dense<0.000000e+00> : vector<8x8xf32>
    %1164 = tpu.matmul %1161, %1162, %cst_411 {dimension_numbers = #tpu.dot_dimension_numbers<[1], [1], [0], [0], [0, 0, 1, 0], [], []>} : vector<8x8xf32>, vector<8x8xf32>, vector<8x8xf32> -> vector<8x8xf32>
    %cst_412 = arith.constant 0.353553385 : f32
    %1165 = vector.broadcast %cst_412 : f32 to vector<8x8xf32>
    %1166 = arith.mulf %1164, %1165 : vector<8x8xf32>
    %cst_413 = arith.constant dense<0xFF800000> : vector<8xf32>
    %1167 = vector.multi_reduction <maximumf>, %1166, %cst_413 [1] : vector<8x8xf32> to vector<8xf32>
    %1168 = vector.shape_cast %1167 : vector<8xf32> to vector<8x1xf32>
    %1169 = vector.broadcast %1168 : vector<8x1xf32> to vector<8x8xf32>
    %1170 = arith.subf %1166, %1169 : vector<8x8xf32>
    %1171 = math.exp %1170 : vector<8x8xf32>
    %cst_414 = arith.constant dense<0.000000e+00> : vector<8x8xf32>
    %1172 = tpu.matmul %1171, %1163, %cst_414 {dimension_numbers = #tpu.dot_dimension_numbers<[1], [0], [0], [1], [0, 0, 1, 1], [], []>} : vector<8x8xf32>, vector<8x8xf32>, vector<8x8xf32> -> vector<8x8xf32>
    %cst_415 = arith.constant dense<0.000000e+00> : vector<8xf32>
    %1173 = vector.multi_reduction <add>, %1171, %cst_415 [1] : vector<8x8xf32> to vector<8xf32>
    %1174 = vector.shape_cast %1173 : vector<8xf32> to vector<8x1xf32>
    %1175 = vector.broadcast %1174 : vector<8x1xf32> to vector<8x8xf32>
    %1176 = arith.divf %1172, %1175 : vector<8x8xf32>
    %1177 = vector.extract_strided_slice %1121 {offsets = [16, 0], sizes = [8, 32], strides = [1, 1]} : vector<32x32xf32> to vector<8x32xf32>
    %cst_416 = arith.constant dense<0.000000e+00> : vector<8x32xf32>
    %1178 = tpu.matmul %1176, %1177, %cst_416 {dimension_numbers = #tpu.dot_dimension_numbers<[1], [0], [0], [1], [0, 0, 1, 1], [], []>} : vector<8x8xf32>, vector<8x32xf32>, vector<8x32xf32> -> vector<8x32xf32>
    %1179 = arith.addf %1160, %1178 : vector<8x32xf32>
    %1180 = vector.extract_strided_slice %1118 {offsets = [0, 24], sizes = [8, 8], strides = [1, 1]} : vector<8x32xf32> to vector<8x8xf32>
    %1181 = vector.extract_strided_slice %1119 {offsets = [0, 24], sizes = [8, 8], strides = [1, 1]} : vector<8x32xf32> to vector<8x8xf32>
    %1182 = vector.extract_strided_slice %1120 {offsets = [0, 24], sizes = [8, 8], strides = [1, 1]} : vector<8x32xf32> to vector<8x8xf32>
    %cst_417 = arith.constant dense<0.000000e+00> : vector<8x8xf32>
    %1183 = tpu.matmul %1180, %1181, %cst_417 {dimension_numbers = #tpu.dot_dimension_numbers<[1], [1], [0], [0], [0, 0, 1, 0], [], []>} : vector<8x8xf32>, vector<8x8xf32>, vector<8x8xf32> -> vector<8x8xf32>
    %cst_418 = arith.constant 0.353553385 : f32
    %1184 = vector.broadcast %cst_418 : f32 to vector<8x8xf32>
    %1185 = arith.mulf %1183, %1184 : vector<8x8xf32>
    %cst_419 = arith.constant dense<0xFF800000> : vector<8xf32>
    %1186 = vector.multi_reduction <maximumf>, %1185, %cst_419 [1] : vector<8x8xf32> to vector<8xf32>
    %1187 = vector.shape_cast %1186 : vector<8xf32> to vector<8x1xf32>
    %1188 = vector.broadcast %1187 : vector<8x1xf32> to vector<8x8xf32>
    %1189 = arith.subf %1185, %1188 : vector<8x8xf32>
    %1190 = math.exp %1189 : vector<8x8xf32>
    %cst_420 = arith.constant dense<0.000000e+00> : vector<8x8xf32>
    %1191 = tpu.matmul %1190, %1182, %cst_420 {dimension_numbers = #tpu.dot_dimension_numbers<[1], [0], [0], [1], [0, 0, 1, 1], [], []>} : vector<8x8xf32>, vector<8x8xf32>, vector<8x8xf32> -> vector<8x8xf32>
    %cst_421 = arith.constant dense<0.000000e+00> : vector<8xf32>
    %1192 = vector.multi_reduction <add>, %1190, %cst_421 [1] : vector<8x8xf32> to vector<8xf32>
    %1193 = vector.shape_cast %1192 : vector<8xf32> to vector<8x1xf32>
    %1194 = vector.broadcast %1193 : vector<8x1xf32> to vector<8x8xf32>
    %1195 = arith.divf %1191, %1194 : vector<8x8xf32>
    %1196 = vector.extract_strided_slice %1121 {offsets = [24, 0], sizes = [8, 32], strides = [1, 1]} : vector<32x32xf32> to vector<8x32xf32>
    %cst_422 = arith.constant dense<0.000000e+00> : vector<8x32xf32>
    %1197 = tpu.matmul %1195, %1196, %cst_422 {dimension_numbers = #tpu.dot_dimension_numbers<[1], [0], [0], [1], [0, 0, 1, 1], [], []>} : vector<8x8xf32>, vector<8x32xf32>, vector<8x32xf32> -> vector<8x32xf32>
    %1198 = arith.addf %1179, %1197 : vector<8x32xf32>
    %c9_423 = arith.constant 9 : index
    %c0_424 = arith.constant 0 : index
    %1199 = vector.load %arg8[%c9_423, %c0_424] : memref<40x128xf32, #tpu.memory_space<vmem>>, vector<1x128xf32>
    %1200 = vector.shape_cast %1199 : vector<1x128xf32> to vector<128xf32>
    %1201 = vector.extract_strided_slice %1200 {offsets = [0], sizes = [32], strides = [1]} : vector<128xf32> to vector<32xf32>
    %1202 = vector.shape_cast %1201 : vector<32xf32> to vector<1x32xf32>
    %1203 = vector.broadcast %1202 : vector<1x32xf32> to vector<8x32xf32>
    %1204 = arith.addf %1198, %1203 : vector<8x32xf32>
    %1205 = arith.addf %1109, %1204 : vector<8x32xf32>
    %c12_425 = arith.constant 12 : index
    %c0_426 = arith.constant 0 : index
    %1206 = vector.load %arg8[%c12_425, %c0_426] : memref<40x128xf32, #tpu.memory_space<vmem>>, vector<1x128xf32>
    %1207 = vector.shape_cast %1206 : vector<1x128xf32> to vector<128xf32>
    %1208 = vector.extract_strided_slice %1207 {offsets = [0], sizes = [32], strides = [1]} : vector<128xf32> to vector<32xf32>
    %1209 = vector.shape_cast %1208 : vector<32xf32> to vector<1x32xf32>
    %c13_427 = arith.constant 13 : index
    %c0_428 = arith.constant 0 : index
    %1210 = vector.load %arg8[%c13_427, %c0_428] : memref<40x128xf32, #tpu.memory_space<vmem>>, vector<1x128xf32>
    %1211 = vector.shape_cast %1210 : vector<1x128xf32> to vector<128xf32>
    %1212 = vector.extract_strided_slice %1211 {offsets = [0], sizes = [32], strides = [1]} : vector<128xf32> to vector<32xf32>
    %1213 = vector.shape_cast %1212 : vector<32xf32> to vector<1x32xf32>
    %cst_429 = arith.constant dense<0.000000e+00> : vector<8xf32>
    %1214 = vector.multi_reduction <add>, %1205, %cst_429 [1] : vector<8x32xf32> to vector<8xf32>
    %1215 = vector.shape_cast %1214 : vector<8xf32> to vector<8x1xf32>
    %cst_430 = arith.constant 3.200000e+01 : f32
    %1216 = vector.broadcast %cst_430 : f32 to vector<8x1xf32>
    %1217 = arith.divf %1215, %1216 : vector<8x1xf32>
    %1218 = vector.broadcast %1217 : vector<8x1xf32> to vector<8x32xf32>
    %1219 = arith.subf %1205, %1218 : vector<8x32xf32>
    %1220 = arith.mulf %1219, %1219 : vector<8x32xf32>
    %cst_431 = arith.constant dense<0.000000e+00> : vector<8xf32>
    %1221 = vector.multi_reduction <add>, %1220, %cst_431 [1] : vector<8x32xf32> to vector<8xf32>
    %1222 = vector.shape_cast %1221 : vector<8xf32> to vector<8x1xf32>
    %cst_432 = arith.constant 3.200000e+01 : f32
    %1223 = vector.broadcast %cst_432 : f32 to vector<8x1xf32>
    %1224 = arith.divf %1222, %1223 : vector<8x1xf32>
    %1225 = vector.broadcast %1217 : vector<8x1xf32> to vector<8x32xf32>
    %1226 = arith.subf %1205, %1225 : vector<8x32xf32>
    %cst_433 = arith.constant 9.99999974E-6 : f32
    %1227 = vector.broadcast %cst_433 : f32 to vector<8x1xf32>
    %1228 = arith.addf %1224, %1227 : vector<8x1xf32>
    %1229 = math.rsqrt %1228 : vector<8x1xf32>
    %1230 = vector.broadcast %1229 : vector<8x1xf32> to vector<8x32xf32>
    %1231 = arith.mulf %1226, %1230 : vector<8x32xf32>
    %1232 = vector.broadcast %1209 : vector<1x32xf32> to vector<8x32xf32>
    %1233 = arith.mulf %1231, %1232 : vector<8x32xf32>
    %1234 = vector.broadcast %1213 : vector<1x32xf32> to vector<8x32xf32>
    %1235 = arith.addf %1233, %1234 : vector<8x32xf32>
    %c0_434 = arith.constant 0 : index
    %c640_435 = arith.constant 640 : index
    %1236 = vector.load %arg6[%c0_434, %c640_435] : memref<32x1664xf32, #tpu.memory_space<vmem>>, vector<32x64xf32>
    %cst_436 = arith.constant dense<0.000000e+00> : vector<8x64xf32>
    %1237 = tpu.matmul %1235, %1236, %cst_436 {dimension_numbers = #tpu.dot_dimension_numbers<[1], [0], [0], [1], [0, 0, 1, 1], [], []>} : vector<8x32xf32>, vector<32x64xf32>, vector<8x64xf32> -> vector<8x64xf32>
    %c10_437 = arith.constant 10 : index
    %c0_438 = arith.constant 0 : index
    %1238 = vector.load %arg8[%c10_437, %c0_438] : memref<40x128xf32, #tpu.memory_space<vmem>>, vector<1x128xf32>
    %1239 = vector.shape_cast %1238 : vector<1x128xf32> to vector<128xf32>
    %1240 = vector.extract_strided_slice %1239 {offsets = [0], sizes = [64], strides = [1]} : vector<128xf32> to vector<64xf32>
    %1241 = vector.shape_cast %1240 : vector<64xf32> to vector<1x64xf32>
    %1242 = vector.broadcast %1241 : vector<1x64xf32> to vector<8x64xf32>
    %1243 = arith.addf %1237, %1242 : vector<8x64xf32>
    %cst_439 = arith.constant 0.000000e+00 : f32
    %1244 = vector.broadcast %cst_439 : f32 to vector<8x64xf32>
    %1245 = arith.maximumf %1243, %1244 : vector<8x64xf32>
    %c0_440 = arith.constant 0 : index
    %c128_441 = arith.constant 128 : index
    %1246 = vector.load %arg7[%c0_440, %c128_441] : memref<64x384xf32, #tpu.memory_space<vmem>>, vector<64x32xf32>
    %cst_442 = arith.constant dense<0.000000e+00> : vector<8x32xf32>
    %1247 = tpu.matmul %1245, %1246, %cst_442 {dimension_numbers = #tpu.dot_dimension_numbers<[1], [0], [0], [1], [0, 0, 1, 1], [], []>} : vector<8x64xf32>, vector<64x32xf32>, vector<8x32xf32> -> vector<8x32xf32>
    %c11_443 = arith.constant 11 : index
    %c0_444 = arith.constant 0 : index
    %1248 = vector.load %arg8[%c11_443, %c0_444] : memref<40x128xf32, #tpu.memory_space<vmem>>, vector<1x128xf32>
    %1249 = vector.shape_cast %1248 : vector<1x128xf32> to vector<128xf32>
    %1250 = vector.extract_strided_slice %1249 {offsets = [0], sizes = [32], strides = [1]} : vector<128xf32> to vector<32xf32>
    %1251 = vector.shape_cast %1250 : vector<32xf32> to vector<1x32xf32>
    %1252 = vector.broadcast %1251 : vector<1x32xf32> to vector<8x32xf32>
    %1253 = arith.addf %1247, %1252 : vector<8x32xf32>
    %1254 = arith.addf %1235, %1253 : vector<8x32xf32>
    %c14_445 = arith.constant 14 : index
    %c0_446 = arith.constant 0 : index
    %1255 = vector.load %arg8[%c14_445, %c0_446] : memref<40x128xf32, #tpu.memory_space<vmem>>, vector<1x128xf32>
    %1256 = vector.shape_cast %1255 : vector<1x128xf32> to vector<128xf32>
    %1257 = vector.extract_strided_slice %1256 {offsets = [0], sizes = [32], strides = [1]} : vector<128xf32> to vector<32xf32>
    %1258 = vector.shape_cast %1257 : vector<32xf32> to vector<1x32xf32>
    %c15_447 = arith.constant 15 : index
    %c0_448 = arith.constant 0 : index
    %1259 = vector.load %arg8[%c15_447, %c0_448] : memref<40x128xf32, #tpu.memory_space<vmem>>, vector<1x128xf32>
    %1260 = vector.shape_cast %1259 : vector<1x128xf32> to vector<128xf32>
    %1261 = vector.extract_strided_slice %1260 {offsets = [0], sizes = [32], strides = [1]} : vector<128xf32> to vector<32xf32>
    %1262 = vector.shape_cast %1261 : vector<32xf32> to vector<1x32xf32>
    %cst_449 = arith.constant dense<0.000000e+00> : vector<8xf32>
    %1263 = vector.multi_reduction <add>, %1254, %cst_449 [1] : vector<8x32xf32> to vector<8xf32>
    %1264 = vector.shape_cast %1263 : vector<8xf32> to vector<8x1xf32>
    %cst_450 = arith.constant 3.200000e+01 : f32
    %1265 = vector.broadcast %cst_450 : f32 to vector<8x1xf32>
    %1266 = arith.divf %1264, %1265 : vector<8x1xf32>
    %1267 = vector.broadcast %1266 : vector<8x1xf32> to vector<8x32xf32>
    %1268 = arith.subf %1254, %1267 : vector<8x32xf32>
    %1269 = arith.mulf %1268, %1268 : vector<8x32xf32>
    %cst_451 = arith.constant dense<0.000000e+00> : vector<8xf32>
    %1270 = vector.multi_reduction <add>, %1269, %cst_451 [1] : vector<8x32xf32> to vector<8xf32>
    %1271 = vector.shape_cast %1270 : vector<8xf32> to vector<8x1xf32>
    %cst_452 = arith.constant 3.200000e+01 : f32
    %1272 = vector.broadcast %cst_452 : f32 to vector<8x1xf32>
    %1273 = arith.divf %1271, %1272 : vector<8x1xf32>
    %1274 = vector.broadcast %1266 : vector<8x1xf32> to vector<8x32xf32>
    %1275 = arith.subf %1254, %1274 : vector<8x32xf32>
    %cst_453 = arith.constant 9.99999974E-6 : f32
    %1276 = vector.broadcast %cst_453 : f32 to vector<8x1xf32>
    %1277 = arith.addf %1273, %1276 : vector<8x1xf32>
    %1278 = math.rsqrt %1277 : vector<8x1xf32>
    %1279 = vector.broadcast %1278 : vector<8x1xf32> to vector<8x32xf32>
    %1280 = arith.mulf %1275, %1279 : vector<8x32xf32>
    %1281 = vector.broadcast %1258 : vector<1x32xf32> to vector<8x32xf32>
    %1282 = arith.mulf %1280, %1281 : vector<8x32xf32>
    %1283 = vector.broadcast %1262 : vector<1x32xf32> to vector<8x32xf32>
    %1284 = arith.addf %1282, %1283 : vector<8x32xf32>
    %c29_454 = arith.constant 29 : index
    %c0_455 = arith.constant 0 : index
    %1285 = vector.load %arg8[%c29_454, %c0_455] : memref<40x128xf32, #tpu.memory_space<vmem>>, vector<1x128xf32>
    %1286 = vector.shape_cast %1285 : vector<1x128xf32> to vector<128xf32>
    %1287 = vector.extract_strided_slice %1286 {offsets = [0], sizes = [32], strides = [1]} : vector<128xf32> to vector<32xf32>
    %1288 = vector.shape_cast %1287 : vector<32xf32> to vector<1x32xf32>
    %c30_456 = arith.constant 30 : index
    %c0_457 = arith.constant 0 : index
    %1289 = vector.load %arg8[%c30_456, %c0_457] : memref<40x128xf32, #tpu.memory_space<vmem>>, vector<1x128xf32>
    %1290 = vector.shape_cast %1289 : vector<1x128xf32> to vector<128xf32>
    %1291 = vector.extract_strided_slice %1290 {offsets = [0], sizes = [32], strides = [1]} : vector<128xf32> to vector<32xf32>
    %1292 = vector.shape_cast %1291 : vector<32xf32> to vector<1x32xf32>
    %cst_458 = arith.constant dense<0.000000e+00> : vector<8xf32>
    %1293 = vector.multi_reduction <add>, %1284, %cst_458 [1] : vector<8x32xf32> to vector<8xf32>
    %1294 = vector.shape_cast %1293 : vector<8xf32> to vector<8x1xf32>
    %cst_459 = arith.constant 3.200000e+01 : f32
    %1295 = vector.broadcast %cst_459 : f32 to vector<8x1xf32>
    %1296 = arith.divf %1294, %1295 : vector<8x1xf32>
    %1297 = vector.broadcast %1296 : vector<8x1xf32> to vector<8x32xf32>
    %1298 = arith.subf %1284, %1297 : vector<8x32xf32>
    %1299 = arith.mulf %1298, %1298 : vector<8x32xf32>
    %cst_460 = arith.constant dense<0.000000e+00> : vector<8xf32>
    %1300 = vector.multi_reduction <add>, %1299, %cst_460 [1] : vector<8x32xf32> to vector<8xf32>
    %1301 = vector.shape_cast %1300 : vector<8xf32> to vector<8x1xf32>
    %cst_461 = arith.constant 3.200000e+01 : f32
    %1302 = vector.broadcast %cst_461 : f32 to vector<8x1xf32>
    %1303 = arith.divf %1301, %1302 : vector<8x1xf32>
    %1304 = vector.broadcast %1296 : vector<8x1xf32> to vector<8x32xf32>
    %1305 = arith.subf %1284, %1304 : vector<8x32xf32>
    %cst_462 = arith.constant 9.99999974E-6 : f32
    %1306 = vector.broadcast %cst_462 : f32 to vector<8x1xf32>
    %1307 = arith.addf %1303, %1306 : vector<8x1xf32>
    %1308 = math.rsqrt %1307 : vector<8x1xf32>
    %1309 = vector.broadcast %1308 : vector<8x1xf32> to vector<8x32xf32>
    %1310 = arith.mulf %1305, %1309 : vector<8x32xf32>
    %1311 = vector.broadcast %1288 : vector<1x32xf32> to vector<8x32xf32>
    %1312 = arith.mulf %1310, %1311 : vector<8x32xf32>
    %1313 = vector.broadcast %1292 : vector<1x32xf32> to vector<8x32xf32>
    %1314 = arith.addf %1312, %1313 : vector<8x32xf32>
    %c1_463 = arith.constant 1 : index
    %c0_464 = arith.constant 0 : index
    %c0_465 = arith.constant 0 : index
    %1315 = vector.load %arg2[%c1_463, %c0_464, %c0_465] : memref<2x8x4xf32, #tpu.memory_space<vmem>>, vector<1x8x4xf32>
    %1316 = vector.shape_cast %1315 : vector<1x8x4xf32> to vector<8x4xf32>
    %c1_466 = arith.constant 1 : index
    %c0_467 = arith.constant 0 : index
    %c0_468 = arith.constant 0 : index
    %1317 = vector.load %arg3[%c1_466, %c0_467, %c0_468] : memref<2x8x4xf32, #tpu.memory_space<vmem>>, vector<1x8x4xf32>
    %1318 = vector.shape_cast %1317 : vector<1x8x4xf32> to vector<8x4xf32>
    %1319 = tpu.iota {dimensions = array<i32: 0>} : vector<8x8xi32>
    %1320 = tpu.iota {dimensions = array<i32: 1>} : vector<8x8xi32>
    %c8_i32_469 = arith.constant 8 : i32
    %1321 = vector.broadcast %c8_i32_469 : i32 to vector<8x8xi32>
    %1322 = arith.addi %1319, %1321 : vector<8x8xi32>
    %c1_i32_470 = arith.constant 1 : i32
    %1323 = vector.broadcast %c1_i32_470 : i32 to vector<8x8xi32>
    %1324 = arith.subi %1322, %1323 : vector<8x8xi32>
    %c8_i32_471 = arith.constant 8 : i32
    %c0_i32_472 = arith.constant 0 : i32
    %1325 = arith.cmpi eq, %c8_i32_471, %c0_i32_472 : i32
    %c1_i32_473 = arith.constant 1 : i32
    %1326 = arith.select %1325, %c1_i32_473, %c8_i32_471 : i32
    %1327 = vector.broadcast %1326 : i32 to vector<8x8xi32>
    %1328 = arith.remsi %1324, %1327 : vector<8x8xi32>
    %c0_i32_474 = arith.constant 0 : i32
    %1329 = vector.broadcast %c0_i32_474 : i32 to vector<8x8xi32>
    %1330 = arith.cmpi ne, %1328, %1329 : vector<8x8xi32>
    %c0_i32_475 = arith.constant 0 : i32
    %1331 = vector.broadcast %c0_i32_475 : i32 to vector<8x8xi32>
    %1332 = arith.cmpi slt, %1328, %1331 : vector<8x8xi32>
    %c0_i32_476 = arith.constant 0 : i32
    %1333 = arith.cmpi slt, %1326, %c0_i32_476 : i32
    %1334 = vector.broadcast %1333 : i1 to vector<8x8xi1>
    %1335 = vector.broadcast %1334 : vector<8x8xi1> to vector<8x8xi1>
    %1336 = arith.xori %1332, %1335 : vector<8x8xi1>
    %1337 = arith.andi %1336, %1330 : vector<8x8xi1>
    %1338 = vector.broadcast %1326 : i32 to vector<8x8xi32>
    %1339 = arith.addi %1328, %1338 : vector<8x8xi32>
    %1340 = arith.select %1337, %1339, %1328 : vector<8x8xi1>, vector<8x8xi32>
    %1341 = arith.cmpi eq, %1340, %1320 : vector<8x8xi32>
    %1342 = arith.extui %1341 : vector<8x8xi1> to vector<8x8xi32>
    %1343 = arith.sitofp %1342 : vector<8x8xi32> to vector<8x8xf32>
    %c1_i32_477 = arith.constant 1 : i32
    %1344 = vector.broadcast %c1_i32_477 : i32 to vector<8x8xi32>
    %1345 = arith.addi %1319, %1344 : vector<8x8xi32>
    %c8_i32_478 = arith.constant 8 : i32
    %c0_i32_479 = arith.constant 0 : i32
    %1346 = arith.cmpi eq, %c8_i32_478, %c0_i32_479 : i32
    %c1_i32_480 = arith.constant 1 : i32
    %1347 = arith.select %1346, %c1_i32_480, %c8_i32_478 : i32
    %1348 = vector.broadcast %1347 : i32 to vector<8x8xi32>
    %1349 = arith.remsi %1345, %1348 : vector<8x8xi32>
    %c0_i32_481 = arith.constant 0 : i32
    %1350 = vector.broadcast %c0_i32_481 : i32 to vector<8x8xi32>
    %1351 = arith.cmpi ne, %1349, %1350 : vector<8x8xi32>
    %c0_i32_482 = arith.constant 0 : i32
    %1352 = vector.broadcast %c0_i32_482 : i32 to vector<8x8xi32>
    %1353 = arith.cmpi slt, %1349, %1352 : vector<8x8xi32>
    %c0_i32_483 = arith.constant 0 : i32
    %1354 = arith.cmpi slt, %1347, %c0_i32_483 : i32
    %1355 = vector.broadcast %1354 : i1 to vector<8x8xi1>
    %1356 = vector.broadcast %1355 : vector<8x8xi1> to vector<8x8xi1>
    %1357 = arith.xori %1353, %1356 : vector<8x8xi1>
    %1358 = arith.andi %1357, %1351 : vector<8x8xi1>
    %1359 = vector.broadcast %1347 : i32 to vector<8x8xi32>
    %1360 = arith.addi %1349, %1359 : vector<8x8xi32>
    %1361 = arith.select %1358, %1360, %1349 : vector<8x8xi1>, vector<8x8xi32>
    %1362 = arith.cmpi eq, %1361, %1320 : vector<8x8xi32>
    %1363 = arith.extui %1362 : vector<8x8xi1> to vector<8x8xi32>
    %1364 = arith.sitofp %1363 : vector<8x8xi32> to vector<8x8xf32>
    %cst_484 = arith.constant dense<0.000000e+00> : vector<8x4xf32>
    %1365 = tpu.matmul %1343, %1316, %cst_484 {dimension_numbers = #tpu.dot_dimension_numbers<[1], [0], [0], [1], [0, 0, 1, 1], [], []>} : vector<8x8xf32>, vector<8x4xf32>, vector<8x4xf32> -> vector<8x4xf32>
    %cst_485 = arith.constant dense<0.000000e+00> : vector<8x4xf32>
    %1366 = tpu.matmul %1364, %1316, %cst_485 {dimension_numbers = #tpu.dot_dimension_numbers<[1], [0], [0], [1], [0, 0, 1, 1], [], []>} : vector<8x8xf32>, vector<8x4xf32>, vector<8x4xf32> -> vector<8x4xf32>
    %c0_486 = arith.constant 0 : index
    %c0_487 = arith.constant 0 : index
    %1367 = vector.load %arg4[%c0_486, %c0_487] : memref<8x32xf32, #tpu.memory_space<vmem>>, vector<8x32xf32>
    %c0_488 = arith.constant 0 : index
    %c512_489 = arith.constant 512 : index
    %1368 = vector.load %arg5[%c0_488, %c512_489] : memref<4x1024xf32, #tpu.memory_space<vmem>>, vector<4x32xf32>
    %cst_490 = arith.constant dense<0.000000e+00> : vector<8x32xf32>
    %1369 = tpu.matmul %1365, %1368, %cst_490 {dimension_numbers = #tpu.dot_dimension_numbers<[1], [0], [0], [1], [0, 0, 1, 1], [], []>} : vector<8x4xf32>, vector<4x32xf32>, vector<8x32xf32> -> vector<8x32xf32>
    %1370 = arith.addf %1367, %1369 : vector<8x32xf32>
    %c0_491 = arith.constant 0 : index
    %c640_492 = arith.constant 640 : index
    %1371 = vector.load %arg5[%c0_491, %c640_492] : memref<4x1024xf32, #tpu.memory_space<vmem>>, vector<4x32xf32>
    %cst_493 = arith.constant dense<0.000000e+00> : vector<8x32xf32>
    %1372 = tpu.matmul %1316, %1371, %cst_493 {dimension_numbers = #tpu.dot_dimension_numbers<[1], [0], [0], [1], [0, 0, 1, 1], [], []>} : vector<8x4xf32>, vector<4x32xf32>, vector<8x32xf32> -> vector<8x32xf32>
    %1373 = arith.addf %1370, %1372 : vector<8x32xf32>
    %c0_494 = arith.constant 0 : index
    %c768_495 = arith.constant 768 : index
    %1374 = vector.load %arg5[%c0_494, %c768_495] : memref<4x1024xf32, #tpu.memory_space<vmem>>, vector<4x32xf32>
    %cst_496 = arith.constant dense<0.000000e+00> : vector<8x32xf32>
    %1375 = tpu.matmul %1366, %1374, %cst_496 {dimension_numbers = #tpu.dot_dimension_numbers<[1], [0], [0], [1], [0, 0, 1, 1], [], []>} : vector<8x4xf32>, vector<4x32xf32>, vector<8x32xf32> -> vector<8x32xf32>
    %1376 = arith.addf %1373, %1375 : vector<8x32xf32>
    %c0_497 = arith.constant 0 : index
    %c896_498 = arith.constant 896 : index
    %1377 = vector.load %arg5[%c0_497, %c896_498] : memref<4x1024xf32, #tpu.memory_space<vmem>>, vector<4x32xf32>
    %cst_499 = arith.constant dense<0.000000e+00> : vector<8x32xf32>
    %1378 = tpu.matmul %1318, %1377, %cst_499 {dimension_numbers = #tpu.dot_dimension_numbers<[1], [0], [0], [1], [0, 0, 1, 1], [], []>} : vector<8x4xf32>, vector<4x32xf32>, vector<8x32xf32> -> vector<8x32xf32>
    %1379 = arith.addf %1376, %1378 : vector<8x32xf32>
    %c0_500 = arith.constant 0 : index
    %c768_501 = arith.constant 768 : index
    %1380 = vector.load %arg6[%c0_500, %c768_501] : memref<32x1664xf32, #tpu.memory_space<vmem>>, vector<32x96xf32>
    %cst_502 = arith.constant dense<0.000000e+00> : vector<8x96xf32>
    %1381 = tpu.matmul %1379, %1380, %cst_502 {dimension_numbers = #tpu.dot_dimension_numbers<[1], [0], [0], [1], [0, 0, 1, 1], [], []>} : vector<8x32xf32>, vector<32x96xf32>, vector<8x96xf32> -> vector<8x96xf32>
    %c16_503 = arith.constant 16 : index
    %c0_504 = arith.constant 0 : index
    %1382 = vector.load %arg8[%c16_503, %c0_504] : memref<40x128xf32, #tpu.memory_space<vmem>>, vector<1x128xf32>
    %1383 = vector.shape_cast %1382 : vector<1x128xf32> to vector<128xf32>
    %1384 = vector.extract_strided_slice %1383 {offsets = [0], sizes = [96], strides = [1]} : vector<128xf32> to vector<96xf32>
    %1385 = vector.shape_cast %1384 : vector<96xf32> to vector<1x96xf32>
    %1386 = vector.broadcast %1385 : vector<1x96xf32> to vector<8x96xf32>
    %1387 = arith.addf %1381, %1386 : vector<8x96xf32>
    %1388 = tpu.iota {dimensions = array<i32: 0>} : vector<8x8xi32>
    %1389 = tpu.iota {dimensions = array<i32: 1>} : vector<8x8xi32>
    %1390 = vector.extract_strided_slice %1387 {offsets = [0, 0], sizes = [8, 32], strides = [1, 1]} : vector<8x96xf32> to vector<8x32xf32>
    %1391 = vector.extract_strided_slice %1387 {offsets = [0, 32], sizes = [8, 32], strides = [1, 1]} : vector<8x96xf32> to vector<8x32xf32>
    %1392 = vector.extract_strided_slice %1387 {offsets = [0, 64], sizes = [8, 32], strides = [1, 1]} : vector<8x96xf32> to vector<8x32xf32>
    %c0_505 = arith.constant 0 : index
    %c896_506 = arith.constant 896 : index
    %1393 = vector.load %arg6[%c0_505, %c896_506] : memref<32x1664xf32, #tpu.memory_space<vmem>>, vector<32x32xf32>
    %1394 = arith.cmpi sle, %1389, %1388 : vector<8x8xi32>
    %cst_507 = arith.constant 0.000000e+00 : f32
    %1395 = vector.broadcast %cst_507 : f32 to vector<8x32xf32>
    %1396 = vector.extract_strided_slice %1390 {offsets = [0, 0], sizes = [8, 8], strides = [1, 1]} : vector<8x32xf32> to vector<8x8xf32>
    %1397 = vector.extract_strided_slice %1391 {offsets = [0, 0], sizes = [8, 8], strides = [1, 1]} : vector<8x32xf32> to vector<8x8xf32>
    %1398 = vector.extract_strided_slice %1392 {offsets = [0, 0], sizes = [8, 8], strides = [1, 1]} : vector<8x32xf32> to vector<8x8xf32>
    %cst_508 = arith.constant dense<0.000000e+00> : vector<8x8xf32>
    %1399 = tpu.matmul %1396, %1397, %cst_508 {dimension_numbers = #tpu.dot_dimension_numbers<[1], [1], [0], [0], [0, 0, 1, 0], [], []>} : vector<8x8xf32>, vector<8x8xf32>, vector<8x8xf32> -> vector<8x8xf32>
    %cst_509 = arith.constant 0.353553385 : f32
    %1400 = vector.broadcast %cst_509 : f32 to vector<8x8xf32>
    %1401 = arith.mulf %1399, %1400 : vector<8x8xf32>
    %cst_510 = arith.constant -1.000000e+30 : f32
    %1402 = vector.broadcast %cst_510 : f32 to vector<8x8xf32>
    %1403 = arith.select %1394, %1401, %1402 : vector<8x8xi1>, vector<8x8xf32>
    %cst_511 = arith.constant dense<0xFF800000> : vector<8xf32>
    %1404 = vector.multi_reduction <maximumf>, %1403, %cst_511 [1] : vector<8x8xf32> to vector<8xf32>
    %1405 = vector.shape_cast %1404 : vector<8xf32> to vector<8x1xf32>
    %1406 = vector.broadcast %1405 : vector<8x1xf32> to vector<8x8xf32>
    %1407 = arith.subf %1403, %1406 : vector<8x8xf32>
    %1408 = math.exp %1407 : vector<8x8xf32>
    %cst_512 = arith.constant dense<0.000000e+00> : vector<8x8xf32>
    %1409 = tpu.matmul %1408, %1398, %cst_512 {dimension_numbers = #tpu.dot_dimension_numbers<[1], [0], [0], [1], [0, 0, 1, 1], [], []>} : vector<8x8xf32>, vector<8x8xf32>, vector<8x8xf32> -> vector<8x8xf32>
    %cst_513 = arith.constant dense<0.000000e+00> : vector<8xf32>
    %1410 = vector.multi_reduction <add>, %1408, %cst_513 [1] : vector<8x8xf32> to vector<8xf32>
    %1411 = vector.shape_cast %1410 : vector<8xf32> to vector<8x1xf32>
    %1412 = vector.broadcast %1411 : vector<8x1xf32> to vector<8x8xf32>
    %1413 = arith.divf %1409, %1412 : vector<8x8xf32>
    %1414 = vector.extract_strided_slice %1393 {offsets = [0, 0], sizes = [8, 32], strides = [1, 1]} : vector<32x32xf32> to vector<8x32xf32>
    %cst_514 = arith.constant dense<0.000000e+00> : vector<8x32xf32>
    %1415 = tpu.matmul %1413, %1414, %cst_514 {dimension_numbers = #tpu.dot_dimension_numbers<[1], [0], [0], [1], [0, 0, 1, 1], [], []>} : vector<8x8xf32>, vector<8x32xf32>, vector<8x32xf32> -> vector<8x32xf32>
    %1416 = arith.addf %1395, %1415 : vector<8x32xf32>
    %1417 = vector.extract_strided_slice %1390 {offsets = [0, 8], sizes = [8, 8], strides = [1, 1]} : vector<8x32xf32> to vector<8x8xf32>
    %1418 = vector.extract_strided_slice %1391 {offsets = [0, 8], sizes = [8, 8], strides = [1, 1]} : vector<8x32xf32> to vector<8x8xf32>
    %1419 = vector.extract_strided_slice %1392 {offsets = [0, 8], sizes = [8, 8], strides = [1, 1]} : vector<8x32xf32> to vector<8x8xf32>
    %cst_515 = arith.constant dense<0.000000e+00> : vector<8x8xf32>
    %1420 = tpu.matmul %1417, %1418, %cst_515 {dimension_numbers = #tpu.dot_dimension_numbers<[1], [1], [0], [0], [0, 0, 1, 0], [], []>} : vector<8x8xf32>, vector<8x8xf32>, vector<8x8xf32> -> vector<8x8xf32>
    %cst_516 = arith.constant 0.353553385 : f32
    %1421 = vector.broadcast %cst_516 : f32 to vector<8x8xf32>
    %1422 = arith.mulf %1420, %1421 : vector<8x8xf32>
    %cst_517 = arith.constant -1.000000e+30 : f32
    %1423 = vector.broadcast %cst_517 : f32 to vector<8x8xf32>
    %1424 = arith.select %1394, %1422, %1423 : vector<8x8xi1>, vector<8x8xf32>
    %cst_518 = arith.constant dense<0xFF800000> : vector<8xf32>
    %1425 = vector.multi_reduction <maximumf>, %1424, %cst_518 [1] : vector<8x8xf32> to vector<8xf32>
    %1426 = vector.shape_cast %1425 : vector<8xf32> to vector<8x1xf32>
    %1427 = vector.broadcast %1426 : vector<8x1xf32> to vector<8x8xf32>
    %1428 = arith.subf %1424, %1427 : vector<8x8xf32>
    %1429 = math.exp %1428 : vector<8x8xf32>
    %cst_519 = arith.constant dense<0.000000e+00> : vector<8x8xf32>
    %1430 = tpu.matmul %1429, %1419, %cst_519 {dimension_numbers = #tpu.dot_dimension_numbers<[1], [0], [0], [1], [0, 0, 1, 1], [], []>} : vector<8x8xf32>, vector<8x8xf32>, vector<8x8xf32> -> vector<8x8xf32>
    %cst_520 = arith.constant dense<0.000000e+00> : vector<8xf32>
    %1431 = vector.multi_reduction <add>, %1429, %cst_520 [1] : vector<8x8xf32> to vector<8xf32>
    %1432 = vector.shape_cast %1431 : vector<8xf32> to vector<8x1xf32>
    %1433 = vector.broadcast %1432 : vector<8x1xf32> to vector<8x8xf32>
    %1434 = arith.divf %1430, %1433 : vector<8x8xf32>
    %1435 = vector.extract_strided_slice %1393 {offsets = [8, 0], sizes = [8, 32], strides = [1, 1]} : vector<32x32xf32> to vector<8x32xf32>
    %cst_521 = arith.constant dense<0.000000e+00> : vector<8x32xf32>
    %1436 = tpu.matmul %1434, %1435, %cst_521 {dimension_numbers = #tpu.dot_dimension_numbers<[1], [0], [0], [1], [0, 0, 1, 1], [], []>} : vector<8x8xf32>, vector<8x32xf32>, vector<8x32xf32> -> vector<8x32xf32>
    %1437 = arith.addf %1416, %1436 : vector<8x32xf32>
    %1438 = vector.extract_strided_slice %1390 {offsets = [0, 16], sizes = [8, 8], strides = [1, 1]} : vector<8x32xf32> to vector<8x8xf32>
    %1439 = vector.extract_strided_slice %1391 {offsets = [0, 16], sizes = [8, 8], strides = [1, 1]} : vector<8x32xf32> to vector<8x8xf32>
    %1440 = vector.extract_strided_slice %1392 {offsets = [0, 16], sizes = [8, 8], strides = [1, 1]} : vector<8x32xf32> to vector<8x8xf32>
    %cst_522 = arith.constant dense<0.000000e+00> : vector<8x8xf32>
    %1441 = tpu.matmul %1438, %1439, %cst_522 {dimension_numbers = #tpu.dot_dimension_numbers<[1], [1], [0], [0], [0, 0, 1, 0], [], []>} : vector<8x8xf32>, vector<8x8xf32>, vector<8x8xf32> -> vector<8x8xf32>
    %cst_523 = arith.constant 0.353553385 : f32
    %1442 = vector.broadcast %cst_523 : f32 to vector<8x8xf32>
    %1443 = arith.mulf %1441, %1442 : vector<8x8xf32>
    %cst_524 = arith.constant -1.000000e+30 : f32
    %1444 = vector.broadcast %cst_524 : f32 to vector<8x8xf32>
    %1445 = arith.select %1394, %1443, %1444 : vector<8x8xi1>, vector<8x8xf32>
    %cst_525 = arith.constant dense<0xFF800000> : vector<8xf32>
    %1446 = vector.multi_reduction <maximumf>, %1445, %cst_525 [1] : vector<8x8xf32> to vector<8xf32>
    %1447 = vector.shape_cast %1446 : vector<8xf32> to vector<8x1xf32>
    %1448 = vector.broadcast %1447 : vector<8x1xf32> to vector<8x8xf32>
    %1449 = arith.subf %1445, %1448 : vector<8x8xf32>
    %1450 = math.exp %1449 : vector<8x8xf32>
    %cst_526 = arith.constant dense<0.000000e+00> : vector<8x8xf32>
    %1451 = tpu.matmul %1450, %1440, %cst_526 {dimension_numbers = #tpu.dot_dimension_numbers<[1], [0], [0], [1], [0, 0, 1, 1], [], []>} : vector<8x8xf32>, vector<8x8xf32>, vector<8x8xf32> -> vector<8x8xf32>
    %cst_527 = arith.constant dense<0.000000e+00> : vector<8xf32>
    %1452 = vector.multi_reduction <add>, %1450, %cst_527 [1] : vector<8x8xf32> to vector<8xf32>
    %1453 = vector.shape_cast %1452 : vector<8xf32> to vector<8x1xf32>
    %1454 = vector.broadcast %1453 : vector<8x1xf32> to vector<8x8xf32>
    %1455 = arith.divf %1451, %1454 : vector<8x8xf32>
    %1456 = vector.extract_strided_slice %1393 {offsets = [16, 0], sizes = [8, 32], strides = [1, 1]} : vector<32x32xf32> to vector<8x32xf32>
    %cst_528 = arith.constant dense<0.000000e+00> : vector<8x32xf32>
    %1457 = tpu.matmul %1455, %1456, %cst_528 {dimension_numbers = #tpu.dot_dimension_numbers<[1], [0], [0], [1], [0, 0, 1, 1], [], []>} : vector<8x8xf32>, vector<8x32xf32>, vector<8x32xf32> -> vector<8x32xf32>
    %1458 = arith.addf %1437, %1457 : vector<8x32xf32>
    %1459 = vector.extract_strided_slice %1390 {offsets = [0, 24], sizes = [8, 8], strides = [1, 1]} : vector<8x32xf32> to vector<8x8xf32>
    %1460 = vector.extract_strided_slice %1391 {offsets = [0, 24], sizes = [8, 8], strides = [1, 1]} : vector<8x32xf32> to vector<8x8xf32>
    %1461 = vector.extract_strided_slice %1392 {offsets = [0, 24], sizes = [8, 8], strides = [1, 1]} : vector<8x32xf32> to vector<8x8xf32>
    %cst_529 = arith.constant dense<0.000000e+00> : vector<8x8xf32>
    %1462 = tpu.matmul %1459, %1460, %cst_529 {dimension_numbers = #tpu.dot_dimension_numbers<[1], [1], [0], [0], [0, 0, 1, 0], [], []>} : vector<8x8xf32>, vector<8x8xf32>, vector<8x8xf32> -> vector<8x8xf32>
    %cst_530 = arith.constant 0.353553385 : f32
    %1463 = vector.broadcast %cst_530 : f32 to vector<8x8xf32>
    %1464 = arith.mulf %1462, %1463 : vector<8x8xf32>
    %cst_531 = arith.constant -1.000000e+30 : f32
    %1465 = vector.broadcast %cst_531 : f32 to vector<8x8xf32>
    %1466 = arith.select %1394, %1464, %1465 : vector<8x8xi1>, vector<8x8xf32>
    %cst_532 = arith.constant dense<0xFF800000> : vector<8xf32>
    %1467 = vector.multi_reduction <maximumf>, %1466, %cst_532 [1] : vector<8x8xf32> to vector<8xf32>
    %1468 = vector.shape_cast %1467 : vector<8xf32> to vector<8x1xf32>
    %1469 = vector.broadcast %1468 : vector<8x1xf32> to vector<8x8xf32>
    %1470 = arith.subf %1466, %1469 : vector<8x8xf32>
    %1471 = math.exp %1470 : vector<8x8xf32>
    %cst_533 = arith.constant dense<0.000000e+00> : vector<8x8xf32>
    %1472 = tpu.matmul %1471, %1461, %cst_533 {dimension_numbers = #tpu.dot_dimension_numbers<[1], [0], [0], [1], [0, 0, 1, 1], [], []>} : vector<8x8xf32>, vector<8x8xf32>, vector<8x8xf32> -> vector<8x8xf32>
    %cst_534 = arith.constant dense<0.000000e+00> : vector<8xf32>
    %1473 = vector.multi_reduction <add>, %1471, %cst_534 [1] : vector<8x8xf32> to vector<8xf32>
    %1474 = vector.shape_cast %1473 : vector<8xf32> to vector<8x1xf32>
    %1475 = vector.broadcast %1474 : vector<8x1xf32> to vector<8x8xf32>
    %1476 = arith.divf %1472, %1475 : vector<8x8xf32>
    %1477 = vector.extract_strided_slice %1393 {offsets = [24, 0], sizes = [8, 32], strides = [1, 1]} : vector<32x32xf32> to vector<8x32xf32>
    %cst_535 = arith.constant dense<0.000000e+00> : vector<8x32xf32>
    %1478 = tpu.matmul %1476, %1477, %cst_535 {dimension_numbers = #tpu.dot_dimension_numbers<[1], [0], [0], [1], [0, 0, 1, 1], [], []>} : vector<8x8xf32>, vector<8x32xf32>, vector<8x32xf32> -> vector<8x32xf32>
    %1479 = arith.addf %1458, %1478 : vector<8x32xf32>
    %c17_536 = arith.constant 17 : index
    %c0_537 = arith.constant 0 : index
    %1480 = vector.load %arg8[%c17_536, %c0_537] : memref<40x128xf32, #tpu.memory_space<vmem>>, vector<1x128xf32>
    %1481 = vector.shape_cast %1480 : vector<1x128xf32> to vector<128xf32>
    %1482 = vector.extract_strided_slice %1481 {offsets = [0], sizes = [32], strides = [1]} : vector<128xf32> to vector<32xf32>
    %1483 = vector.shape_cast %1482 : vector<32xf32> to vector<1x32xf32>
    %1484 = vector.broadcast %1483 : vector<1x32xf32> to vector<8x32xf32>
    %1485 = arith.addf %1479, %1484 : vector<8x32xf32>
    %1486 = arith.addf %1379, %1485 : vector<8x32xf32>
    %c23_538 = arith.constant 23 : index
    %c0_539 = arith.constant 0 : index
    %1487 = vector.load %arg8[%c23_538, %c0_539] : memref<40x128xf32, #tpu.memory_space<vmem>>, vector<1x128xf32>
    %1488 = vector.shape_cast %1487 : vector<1x128xf32> to vector<128xf32>
    %1489 = vector.extract_strided_slice %1488 {offsets = [0], sizes = [32], strides = [1]} : vector<128xf32> to vector<32xf32>
    %1490 = vector.shape_cast %1489 : vector<32xf32> to vector<1x32xf32>
    %c24_540 = arith.constant 24 : index
    %c0_541 = arith.constant 0 : index
    %1491 = vector.load %arg8[%c24_540, %c0_541] : memref<40x128xf32, #tpu.memory_space<vmem>>, vector<1x128xf32>
    %1492 = vector.shape_cast %1491 : vector<1x128xf32> to vector<128xf32>
    %1493 = vector.extract_strided_slice %1492 {offsets = [0], sizes = [32], strides = [1]} : vector<128xf32> to vector<32xf32>
    %1494 = vector.shape_cast %1493 : vector<32xf32> to vector<1x32xf32>
    %cst_542 = arith.constant dense<0.000000e+00> : vector<8xf32>
    %1495 = vector.multi_reduction <add>, %1486, %cst_542 [1] : vector<8x32xf32> to vector<8xf32>
    %1496 = vector.shape_cast %1495 : vector<8xf32> to vector<8x1xf32>
    %cst_543 = arith.constant 3.200000e+01 : f32
    %1497 = vector.broadcast %cst_543 : f32 to vector<8x1xf32>
    %1498 = arith.divf %1496, %1497 : vector<8x1xf32>
    %1499 = vector.broadcast %1498 : vector<8x1xf32> to vector<8x32xf32>
    %1500 = arith.subf %1486, %1499 : vector<8x32xf32>
    %1501 = arith.mulf %1500, %1500 : vector<8x32xf32>
    %cst_544 = arith.constant dense<0.000000e+00> : vector<8xf32>
    %1502 = vector.multi_reduction <add>, %1501, %cst_544 [1] : vector<8x32xf32> to vector<8xf32>
    %1503 = vector.shape_cast %1502 : vector<8xf32> to vector<8x1xf32>
    %cst_545 = arith.constant 3.200000e+01 : f32
    %1504 = vector.broadcast %cst_545 : f32 to vector<8x1xf32>
    %1505 = arith.divf %1503, %1504 : vector<8x1xf32>
    %1506 = vector.broadcast %1498 : vector<8x1xf32> to vector<8x32xf32>
    %1507 = arith.subf %1486, %1506 : vector<8x32xf32>
    %cst_546 = arith.constant 9.99999974E-6 : f32
    %1508 = vector.broadcast %cst_546 : f32 to vector<8x1xf32>
    %1509 = arith.addf %1505, %1508 : vector<8x1xf32>
    %1510 = math.rsqrt %1509 : vector<8x1xf32>
    %1511 = vector.broadcast %1510 : vector<8x1xf32> to vector<8x32xf32>
    %1512 = arith.mulf %1507, %1511 : vector<8x32xf32>
    %1513 = vector.broadcast %1490 : vector<1x32xf32> to vector<8x32xf32>
    %1514 = arith.mulf %1512, %1513 : vector<8x32xf32>
    %1515 = vector.broadcast %1494 : vector<1x32xf32> to vector<8x32xf32>
    %1516 = arith.addf %1514, %1515 : vector<8x32xf32>
    %c0_547 = arith.constant 0 : index
    %c1024_548 = arith.constant 1024 : index
    %1517 = vector.load %arg6[%c0_547, %c1024_548] : memref<32x1664xf32, #tpu.memory_space<vmem>>, vector<32x32xf32>
    %cst_549 = arith.constant dense<0.000000e+00> : vector<8x32xf32>
    %1518 = tpu.matmul %1516, %1517, %cst_549 {dimension_numbers = #tpu.dot_dimension_numbers<[1], [0], [0], [1], [0, 0, 1, 1], [], []>} : vector<8x32xf32>, vector<32x32xf32>, vector<8x32xf32> -> vector<8x32xf32>
    %c18_550 = arith.constant 18 : index
    %c0_551 = arith.constant 0 : index
    %1519 = vector.load %arg8[%c18_550, %c0_551] : memref<40x128xf32, #tpu.memory_space<vmem>>, vector<1x128xf32>
    %1520 = vector.shape_cast %1519 : vector<1x128xf32> to vector<128xf32>
    %1521 = vector.extract_strided_slice %1520 {offsets = [0], sizes = [32], strides = [1]} : vector<128xf32> to vector<32xf32>
    %1522 = vector.shape_cast %1521 : vector<32xf32> to vector<1x32xf32>
    %1523 = vector.broadcast %1522 : vector<1x32xf32> to vector<8x32xf32>
    %1524 = arith.addf %1518, %1523 : vector<8x32xf32>
    %c0_552 = arith.constant 0 : index
    %c1152_553 = arith.constant 1152 : index
    %1525 = vector.load %arg6[%c0_552, %c1152_553] : memref<32x1664xf32, #tpu.memory_space<vmem>>, vector<32x64xf32>
    %cst_554 = arith.constant dense<0.000000e+00> : vector<8x64xf32>
    %1526 = tpu.matmul %1314, %1525, %cst_554 {dimension_numbers = #tpu.dot_dimension_numbers<[1], [0], [0], [1], [0, 0, 1, 1], [], []>} : vector<8x32xf32>, vector<32x64xf32>, vector<8x64xf32> -> vector<8x64xf32>
    %c19_555 = arith.constant 19 : index
    %c0_556 = arith.constant 0 : index
    %1527 = vector.load %arg8[%c19_555, %c0_556] : memref<40x128xf32, #tpu.memory_space<vmem>>, vector<1x128xf32>
    %1528 = vector.shape_cast %1527 : vector<1x128xf32> to vector<128xf32>
    %1529 = vector.extract_strided_slice %1528 {offsets = [0], sizes = [64], strides = [1]} : vector<128xf32> to vector<64xf32>
    %1530 = vector.shape_cast %1529 : vector<64xf32> to vector<1x64xf32>
    %1531 = vector.broadcast %1530 : vector<1x64xf32> to vector<8x64xf32>
    %1532 = arith.addf %1526, %1531 : vector<8x64xf32>
    %1533 = vector.extract_strided_slice %1532 {offsets = [0, 0], sizes = [8, 32], strides = [1, 1]} : vector<8x64xf32> to vector<8x32xf32>
    %1534 = vector.extract_strided_slice %1532 {offsets = [0, 32], sizes = [8, 32], strides = [1, 1]} : vector<8x64xf32> to vector<8x32xf32>
    %c0_557 = arith.constant 0 : index
    %c1280_558 = arith.constant 1280 : index
    %1535 = vector.load %arg6[%c0_557, %c1280_558] : memref<32x1664xf32, #tpu.memory_space<vmem>>, vector<32x32xf32>
    %cst_559 = arith.constant 0.000000e+00 : f32
    %1536 = vector.broadcast %cst_559 : f32 to vector<8x32xf32>
    %1537 = vector.extract_strided_slice %1524 {offsets = [0, 0], sizes = [8, 8], strides = [1, 1]} : vector<8x32xf32> to vector<8x8xf32>
    %1538 = vector.extract_strided_slice %1533 {offsets = [0, 0], sizes = [8, 8], strides = [1, 1]} : vector<8x32xf32> to vector<8x8xf32>
    %1539 = vector.extract_strided_slice %1534 {offsets = [0, 0], sizes = [8, 8], strides = [1, 1]} : vector<8x32xf32> to vector<8x8xf32>
    %cst_560 = arith.constant dense<0.000000e+00> : vector<8x8xf32>
    %1540 = tpu.matmul %1537, %1538, %cst_560 {dimension_numbers = #tpu.dot_dimension_numbers<[1], [1], [0], [0], [0, 0, 1, 0], [], []>} : vector<8x8xf32>, vector<8x8xf32>, vector<8x8xf32> -> vector<8x8xf32>
    %cst_561 = arith.constant 0.353553385 : f32
    %1541 = vector.broadcast %cst_561 : f32 to vector<8x8xf32>
    %1542 = arith.mulf %1540, %1541 : vector<8x8xf32>
    %cst_562 = arith.constant dense<0xFF800000> : vector<8xf32>
    %1543 = vector.multi_reduction <maximumf>, %1542, %cst_562 [1] : vector<8x8xf32> to vector<8xf32>
    %1544 = vector.shape_cast %1543 : vector<8xf32> to vector<8x1xf32>
    %1545 = vector.broadcast %1544 : vector<8x1xf32> to vector<8x8xf32>
    %1546 = arith.subf %1542, %1545 : vector<8x8xf32>
    %1547 = math.exp %1546 : vector<8x8xf32>
    %cst_563 = arith.constant dense<0.000000e+00> : vector<8x8xf32>
    %1548 = tpu.matmul %1547, %1539, %cst_563 {dimension_numbers = #tpu.dot_dimension_numbers<[1], [0], [0], [1], [0, 0, 1, 1], [], []>} : vector<8x8xf32>, vector<8x8xf32>, vector<8x8xf32> -> vector<8x8xf32>
    %cst_564 = arith.constant dense<0.000000e+00> : vector<8xf32>
    %1549 = vector.multi_reduction <add>, %1547, %cst_564 [1] : vector<8x8xf32> to vector<8xf32>
    %1550 = vector.shape_cast %1549 : vector<8xf32> to vector<8x1xf32>
    %1551 = vector.broadcast %1550 : vector<8x1xf32> to vector<8x8xf32>
    %1552 = arith.divf %1548, %1551 : vector<8x8xf32>
    %1553 = vector.extract_strided_slice %1535 {offsets = [0, 0], sizes = [8, 32], strides = [1, 1]} : vector<32x32xf32> to vector<8x32xf32>
    %cst_565 = arith.constant dense<0.000000e+00> : vector<8x32xf32>
    %1554 = tpu.matmul %1552, %1553, %cst_565 {dimension_numbers = #tpu.dot_dimension_numbers<[1], [0], [0], [1], [0, 0, 1, 1], [], []>} : vector<8x8xf32>, vector<8x32xf32>, vector<8x32xf32> -> vector<8x32xf32>
    %1555 = arith.addf %1536, %1554 : vector<8x32xf32>
    %1556 = vector.extract_strided_slice %1524 {offsets = [0, 8], sizes = [8, 8], strides = [1, 1]} : vector<8x32xf32> to vector<8x8xf32>
    %1557 = vector.extract_strided_slice %1533 {offsets = [0, 8], sizes = [8, 8], strides = [1, 1]} : vector<8x32xf32> to vector<8x8xf32>
    %1558 = vector.extract_strided_slice %1534 {offsets = [0, 8], sizes = [8, 8], strides = [1, 1]} : vector<8x32xf32> to vector<8x8xf32>
    %cst_566 = arith.constant dense<0.000000e+00> : vector<8x8xf32>
    %1559 = tpu.matmul %1556, %1557, %cst_566 {dimension_numbers = #tpu.dot_dimension_numbers<[1], [1], [0], [0], [0, 0, 1, 0], [], []>} : vector<8x8xf32>, vector<8x8xf32>, vector<8x8xf32> -> vector<8x8xf32>
    %cst_567 = arith.constant 0.353553385 : f32
    %1560 = vector.broadcast %cst_567 : f32 to vector<8x8xf32>
    %1561 = arith.mulf %1559, %1560 : vector<8x8xf32>
    %cst_568 = arith.constant dense<0xFF800000> : vector<8xf32>
    %1562 = vector.multi_reduction <maximumf>, %1561, %cst_568 [1] : vector<8x8xf32> to vector<8xf32>
    %1563 = vector.shape_cast %1562 : vector<8xf32> to vector<8x1xf32>
    %1564 = vector.broadcast %1563 : vector<8x1xf32> to vector<8x8xf32>
    %1565 = arith.subf %1561, %1564 : vector<8x8xf32>
    %1566 = math.exp %1565 : vector<8x8xf32>
    %cst_569 = arith.constant dense<0.000000e+00> : vector<8x8xf32>
    %1567 = tpu.matmul %1566, %1558, %cst_569 {dimension_numbers = #tpu.dot_dimension_numbers<[1], [0], [0], [1], [0, 0, 1, 1], [], []>} : vector<8x8xf32>, vector<8x8xf32>, vector<8x8xf32> -> vector<8x8xf32>
    %cst_570 = arith.constant dense<0.000000e+00> : vector<8xf32>
    %1568 = vector.multi_reduction <add>, %1566, %cst_570 [1] : vector<8x8xf32> to vector<8xf32>
    %1569 = vector.shape_cast %1568 : vector<8xf32> to vector<8x1xf32>
    %1570 = vector.broadcast %1569 : vector<8x1xf32> to vector<8x8xf32>
    %1571 = arith.divf %1567, %1570 : vector<8x8xf32>
    %1572 = vector.extract_strided_slice %1535 {offsets = [8, 0], sizes = [8, 32], strides = [1, 1]} : vector<32x32xf32> to vector<8x32xf32>
    %cst_571 = arith.constant dense<0.000000e+00> : vector<8x32xf32>
    %1573 = tpu.matmul %1571, %1572, %cst_571 {dimension_numbers = #tpu.dot_dimension_numbers<[1], [0], [0], [1], [0, 0, 1, 1], [], []>} : vector<8x8xf32>, vector<8x32xf32>, vector<8x32xf32> -> vector<8x32xf32>
    %1574 = arith.addf %1555, %1573 : vector<8x32xf32>
    %1575 = vector.extract_strided_slice %1524 {offsets = [0, 16], sizes = [8, 8], strides = [1, 1]} : vector<8x32xf32> to vector<8x8xf32>
    %1576 = vector.extract_strided_slice %1533 {offsets = [0, 16], sizes = [8, 8], strides = [1, 1]} : vector<8x32xf32> to vector<8x8xf32>
    %1577 = vector.extract_strided_slice %1534 {offsets = [0, 16], sizes = [8, 8], strides = [1, 1]} : vector<8x32xf32> to vector<8x8xf32>
    %cst_572 = arith.constant dense<0.000000e+00> : vector<8x8xf32>
    %1578 = tpu.matmul %1575, %1576, %cst_572 {dimension_numbers = #tpu.dot_dimension_numbers<[1], [1], [0], [0], [0, 0, 1, 0], [], []>} : vector<8x8xf32>, vector<8x8xf32>, vector<8x8xf32> -> vector<8x8xf32>
    %cst_573 = arith.constant 0.353553385 : f32
    %1579 = vector.broadcast %cst_573 : f32 to vector<8x8xf32>
    %1580 = arith.mulf %1578, %1579 : vector<8x8xf32>
    %cst_574 = arith.constant dense<0xFF800000> : vector<8xf32>
    %1581 = vector.multi_reduction <maximumf>, %1580, %cst_574 [1] : vector<8x8xf32> to vector<8xf32>
    %1582 = vector.shape_cast %1581 : vector<8xf32> to vector<8x1xf32>
    %1583 = vector.broadcast %1582 : vector<8x1xf32> to vector<8x8xf32>
    %1584 = arith.subf %1580, %1583 : vector<8x8xf32>
    %1585 = math.exp %1584 : vector<8x8xf32>
    %cst_575 = arith.constant dense<0.000000e+00> : vector<8x8xf32>
    %1586 = tpu.matmul %1585, %1577, %cst_575 {dimension_numbers = #tpu.dot_dimension_numbers<[1], [0], [0], [1], [0, 0, 1, 1], [], []>} : vector<8x8xf32>, vector<8x8xf32>, vector<8x8xf32> -> vector<8x8xf32>
    %cst_576 = arith.constant dense<0.000000e+00> : vector<8xf32>
    %1587 = vector.multi_reduction <add>, %1585, %cst_576 [1] : vector<8x8xf32> to vector<8xf32>
    %1588 = vector.shape_cast %1587 : vector<8xf32> to vector<8x1xf32>
    %1589 = vector.broadcast %1588 : vector<8x1xf32> to vector<8x8xf32>
    %1590 = arith.divf %1586, %1589 : vector<8x8xf32>
    %1591 = vector.extract_strided_slice %1535 {offsets = [16, 0], sizes = [8, 32], strides = [1, 1]} : vector<32x32xf32> to vector<8x32xf32>
    %cst_577 = arith.constant dense<0.000000e+00> : vector<8x32xf32>
    %1592 = tpu.matmul %1590, %1591, %cst_577 {dimension_numbers = #tpu.dot_dimension_numbers<[1], [0], [0], [1], [0, 0, 1, 1], [], []>} : vector<8x8xf32>, vector<8x32xf32>, vector<8x32xf32> -> vector<8x32xf32>
    %1593 = arith.addf %1574, %1592 : vector<8x32xf32>
    %1594 = vector.extract_strided_slice %1524 {offsets = [0, 24], sizes = [8, 8], strides = [1, 1]} : vector<8x32xf32> to vector<8x8xf32>
    %1595 = vector.extract_strided_slice %1533 {offsets = [0, 24], sizes = [8, 8], strides = [1, 1]} : vector<8x32xf32> to vector<8x8xf32>
    %1596 = vector.extract_strided_slice %1534 {offsets = [0, 24], sizes = [8, 8], strides = [1, 1]} : vector<8x32xf32> to vector<8x8xf32>
    %cst_578 = arith.constant dense<0.000000e+00> : vector<8x8xf32>
    %1597 = tpu.matmul %1594, %1595, %cst_578 {dimension_numbers = #tpu.dot_dimension_numbers<[1], [1], [0], [0], [0, 0, 1, 0], [], []>} : vector<8x8xf32>, vector<8x8xf32>, vector<8x8xf32> -> vector<8x8xf32>
    %cst_579 = arith.constant 0.353553385 : f32
    %1598 = vector.broadcast %cst_579 : f32 to vector<8x8xf32>
    %1599 = arith.mulf %1597, %1598 : vector<8x8xf32>
    %cst_580 = arith.constant dense<0xFF800000> : vector<8xf32>
    %1600 = vector.multi_reduction <maximumf>, %1599, %cst_580 [1] : vector<8x8xf32> to vector<8xf32>
    %1601 = vector.shape_cast %1600 : vector<8xf32> to vector<8x1xf32>
    %1602 = vector.broadcast %1601 : vector<8x1xf32> to vector<8x8xf32>
    %1603 = arith.subf %1599, %1602 : vector<8x8xf32>
    %1604 = math.exp %1603 : vector<8x8xf32>
    %cst_581 = arith.constant dense<0.000000e+00> : vector<8x8xf32>
    %1605 = tpu.matmul %1604, %1596, %cst_581 {dimension_numbers = #tpu.dot_dimension_numbers<[1], [0], [0], [1], [0, 0, 1, 1], [], []>} : vector<8x8xf32>, vector<8x8xf32>, vector<8x8xf32> -> vector<8x8xf32>
    %cst_582 = arith.constant dense<0.000000e+00> : vector<8xf32>
    %1606 = vector.multi_reduction <add>, %1604, %cst_582 [1] : vector<8x8xf32> to vector<8xf32>
    %1607 = vector.shape_cast %1606 : vector<8xf32> to vector<8x1xf32>
    %1608 = vector.broadcast %1607 : vector<8x1xf32> to vector<8x8xf32>
    %1609 = arith.divf %1605, %1608 : vector<8x8xf32>
    %1610 = vector.extract_strided_slice %1535 {offsets = [24, 0], sizes = [8, 32], strides = [1, 1]} : vector<32x32xf32> to vector<8x32xf32>
    %cst_583 = arith.constant dense<0.000000e+00> : vector<8x32xf32>
    %1611 = tpu.matmul %1609, %1610, %cst_583 {dimension_numbers = #tpu.dot_dimension_numbers<[1], [0], [0], [1], [0, 0, 1, 1], [], []>} : vector<8x8xf32>, vector<8x32xf32>, vector<8x32xf32> -> vector<8x32xf32>
    %1612 = arith.addf %1593, %1611 : vector<8x32xf32>
    %c20_584 = arith.constant 20 : index
    %c0_585 = arith.constant 0 : index
    %1613 = vector.load %arg8[%c20_584, %c0_585] : memref<40x128xf32, #tpu.memory_space<vmem>>, vector<1x128xf32>
    %1614 = vector.shape_cast %1613 : vector<1x128xf32> to vector<128xf32>
    %1615 = vector.extract_strided_slice %1614 {offsets = [0], sizes = [32], strides = [1]} : vector<128xf32> to vector<32xf32>
    %1616 = vector.shape_cast %1615 : vector<32xf32> to vector<1x32xf32>
    %1617 = vector.broadcast %1616 : vector<1x32xf32> to vector<8x32xf32>
    %1618 = arith.addf %1612, %1617 : vector<8x32xf32>
    %1619 = arith.addf %1516, %1618 : vector<8x32xf32>
    %c25_586 = arith.constant 25 : index
    %c0_587 = arith.constant 0 : index
    %1620 = vector.load %arg8[%c25_586, %c0_587] : memref<40x128xf32, #tpu.memory_space<vmem>>, vector<1x128xf32>
    %1621 = vector.shape_cast %1620 : vector<1x128xf32> to vector<128xf32>
    %1622 = vector.extract_strided_slice %1621 {offsets = [0], sizes = [32], strides = [1]} : vector<128xf32> to vector<32xf32>
    %1623 = vector.shape_cast %1622 : vector<32xf32> to vector<1x32xf32>
    %c26_588 = arith.constant 26 : index
    %c0_589 = arith.constant 0 : index
    %1624 = vector.load %arg8[%c26_588, %c0_589] : memref<40x128xf32, #tpu.memory_space<vmem>>, vector<1x128xf32>
    %1625 = vector.shape_cast %1624 : vector<1x128xf32> to vector<128xf32>
    %1626 = vector.extract_strided_slice %1625 {offsets = [0], sizes = [32], strides = [1]} : vector<128xf32> to vector<32xf32>
    %1627 = vector.shape_cast %1626 : vector<32xf32> to vector<1x32xf32>
    %cst_590 = arith.constant dense<0.000000e+00> : vector<8xf32>
    %1628 = vector.multi_reduction <add>, %1619, %cst_590 [1] : vector<8x32xf32> to vector<8xf32>
    %1629 = vector.shape_cast %1628 : vector<8xf32> to vector<8x1xf32>
    %cst_591 = arith.constant 3.200000e+01 : f32
    %1630 = vector.broadcast %cst_591 : f32 to vector<8x1xf32>
    %1631 = arith.divf %1629, %1630 : vector<8x1xf32>
    %1632 = vector.broadcast %1631 : vector<8x1xf32> to vector<8x32xf32>
    %1633 = arith.subf %1619, %1632 : vector<8x32xf32>
    %1634 = arith.mulf %1633, %1633 : vector<8x32xf32>
    %cst_592 = arith.constant dense<0.000000e+00> : vector<8xf32>
    %1635 = vector.multi_reduction <add>, %1634, %cst_592 [1] : vector<8x32xf32> to vector<8xf32>
    %1636 = vector.shape_cast %1635 : vector<8xf32> to vector<8x1xf32>
    %cst_593 = arith.constant 3.200000e+01 : f32
    %1637 = vector.broadcast %cst_593 : f32 to vector<8x1xf32>
    %1638 = arith.divf %1636, %1637 : vector<8x1xf32>
    %1639 = vector.broadcast %1631 : vector<8x1xf32> to vector<8x32xf32>
    %1640 = arith.subf %1619, %1639 : vector<8x32xf32>
    %cst_594 = arith.constant 9.99999974E-6 : f32
    %1641 = vector.broadcast %cst_594 : f32 to vector<8x1xf32>
    %1642 = arith.addf %1638, %1641 : vector<8x1xf32>
    %1643 = math.rsqrt %1642 : vector<8x1xf32>
    %1644 = vector.broadcast %1643 : vector<8x1xf32> to vector<8x32xf32>
    %1645 = arith.mulf %1640, %1644 : vector<8x32xf32>
    %1646 = vector.broadcast %1623 : vector<1x32xf32> to vector<8x32xf32>
    %1647 = arith.mulf %1645, %1646 : vector<8x32xf32>
    %1648 = vector.broadcast %1627 : vector<1x32xf32> to vector<8x32xf32>
    %1649 = arith.addf %1647, %1648 : vector<8x32xf32>
    %c0_595 = arith.constant 0 : index
    %c1408_596 = arith.constant 1408 : index
    %1650 = vector.load %arg6[%c0_595, %c1408_596] : memref<32x1664xf32, #tpu.memory_space<vmem>>, vector<32x64xf32>
    %cst_597 = arith.constant dense<0.000000e+00> : vector<8x64xf32>
    %1651 = tpu.matmul %1649, %1650, %cst_597 {dimension_numbers = #tpu.dot_dimension_numbers<[1], [0], [0], [1], [0, 0, 1, 1], [], []>} : vector<8x32xf32>, vector<32x64xf32>, vector<8x64xf32> -> vector<8x64xf32>
    %c21_598 = arith.constant 21 : index
    %c0_599 = arith.constant 0 : index
    %1652 = vector.load %arg8[%c21_598, %c0_599] : memref<40x128xf32, #tpu.memory_space<vmem>>, vector<1x128xf32>
    %1653 = vector.shape_cast %1652 : vector<1x128xf32> to vector<128xf32>
    %1654 = vector.extract_strided_slice %1653 {offsets = [0], sizes = [64], strides = [1]} : vector<128xf32> to vector<64xf32>
    %1655 = vector.shape_cast %1654 : vector<64xf32> to vector<1x64xf32>
    %1656 = vector.broadcast %1655 : vector<1x64xf32> to vector<8x64xf32>
    %1657 = arith.addf %1651, %1656 : vector<8x64xf32>
    %cst_600 = arith.constant 0.000000e+00 : f32
    %1658 = vector.broadcast %cst_600 : f32 to vector<8x64xf32>
    %1659 = arith.maximumf %1657, %1658 : vector<8x64xf32>
    %c0_601 = arith.constant 0 : index
    %c256_602 = arith.constant 256 : index
    %1660 = vector.load %arg7[%c0_601, %c256_602] : memref<64x384xf32, #tpu.memory_space<vmem>>, vector<64x32xf32>
    %cst_603 = arith.constant dense<0.000000e+00> : vector<8x32xf32>
    %1661 = tpu.matmul %1659, %1660, %cst_603 {dimension_numbers = #tpu.dot_dimension_numbers<[1], [0], [0], [1], [0, 0, 1, 1], [], []>} : vector<8x64xf32>, vector<64x32xf32>, vector<8x32xf32> -> vector<8x32xf32>
    %c22_604 = arith.constant 22 : index
    %c0_605 = arith.constant 0 : index
    %1662 = vector.load %arg8[%c22_604, %c0_605] : memref<40x128xf32, #tpu.memory_space<vmem>>, vector<1x128xf32>
    %1663 = vector.shape_cast %1662 : vector<1x128xf32> to vector<128xf32>
    %1664 = vector.extract_strided_slice %1663 {offsets = [0], sizes = [32], strides = [1]} : vector<128xf32> to vector<32xf32>
    %1665 = vector.shape_cast %1664 : vector<32xf32> to vector<1x32xf32>
    %1666 = vector.broadcast %1665 : vector<1x32xf32> to vector<8x32xf32>
    %1667 = arith.addf %1661, %1666 : vector<8x32xf32>
    %1668 = arith.addf %1649, %1667 : vector<8x32xf32>
    %c27_606 = arith.constant 27 : index
    %c0_607 = arith.constant 0 : index
    %1669 = vector.load %arg8[%c27_606, %c0_607] : memref<40x128xf32, #tpu.memory_space<vmem>>, vector<1x128xf32>
    %1670 = vector.shape_cast %1669 : vector<1x128xf32> to vector<128xf32>
    %1671 = vector.extract_strided_slice %1670 {offsets = [0], sizes = [32], strides = [1]} : vector<128xf32> to vector<32xf32>
    %1672 = vector.shape_cast %1671 : vector<32xf32> to vector<1x32xf32>
    %c28_608 = arith.constant 28 : index
    %c0_609 = arith.constant 0 : index
    %1673 = vector.load %arg8[%c28_608, %c0_609] : memref<40x128xf32, #tpu.memory_space<vmem>>, vector<1x128xf32>
    %1674 = vector.shape_cast %1673 : vector<1x128xf32> to vector<128xf32>
    %1675 = vector.extract_strided_slice %1674 {offsets = [0], sizes = [32], strides = [1]} : vector<128xf32> to vector<32xf32>
    %1676 = vector.shape_cast %1675 : vector<32xf32> to vector<1x32xf32>
    %cst_610 = arith.constant dense<0.000000e+00> : vector<8xf32>
    %1677 = vector.multi_reduction <add>, %1668, %cst_610 [1] : vector<8x32xf32> to vector<8xf32>
    %1678 = vector.shape_cast %1677 : vector<8xf32> to vector<8x1xf32>
    %cst_611 = arith.constant 3.200000e+01 : f32
    %1679 = vector.broadcast %cst_611 : f32 to vector<8x1xf32>
    %1680 = arith.divf %1678, %1679 : vector<8x1xf32>
    %1681 = vector.broadcast %1680 : vector<8x1xf32> to vector<8x32xf32>
    %1682 = arith.subf %1668, %1681 : vector<8x32xf32>
    %1683 = arith.mulf %1682, %1682 : vector<8x32xf32>
    %cst_612 = arith.constant dense<0.000000e+00> : vector<8xf32>
    %1684 = vector.multi_reduction <add>, %1683, %cst_612 [1] : vector<8x32xf32> to vector<8xf32>
    %1685 = vector.shape_cast %1684 : vector<8xf32> to vector<8x1xf32>
    %cst_613 = arith.constant 3.200000e+01 : f32
    %1686 = vector.broadcast %cst_613 : f32 to vector<8x1xf32>
    %1687 = arith.divf %1685, %1686 : vector<8x1xf32>
    %1688 = vector.broadcast %1680 : vector<8x1xf32> to vector<8x32xf32>
    %1689 = arith.subf %1668, %1688 : vector<8x32xf32>
    %cst_614 = arith.constant 9.99999974E-6 : f32
    %1690 = vector.broadcast %cst_614 : f32 to vector<8x1xf32>
    %1691 = arith.addf %1687, %1690 : vector<8x1xf32>
    %1692 = math.rsqrt %1691 : vector<8x1xf32>
    %1693 = vector.broadcast %1692 : vector<8x1xf32> to vector<8x32xf32>
    %1694 = arith.mulf %1689, %1693 : vector<8x32xf32>
    %1695 = vector.broadcast %1672 : vector<1x32xf32> to vector<8x32xf32>
    %1696 = arith.mulf %1694, %1695 : vector<8x32xf32>
    %1697 = vector.broadcast %1676 : vector<1x32xf32> to vector<8x32xf32>
    %1698 = arith.addf %1696, %1697 : vector<8x32xf32>
    %c31_615 = arith.constant 31 : index
    %c0_616 = arith.constant 0 : index
    %1699 = vector.load %arg8[%c31_615, %c0_616] : memref<40x128xf32, #tpu.memory_space<vmem>>, vector<1x128xf32>
    %1700 = vector.shape_cast %1699 : vector<1x128xf32> to vector<128xf32>
    %1701 = vector.extract_strided_slice %1700 {offsets = [0], sizes = [32], strides = [1]} : vector<128xf32> to vector<32xf32>
    %1702 = vector.shape_cast %1701 : vector<32xf32> to vector<1x32xf32>
    %c32_617 = arith.constant 32 : index
    %c0_618 = arith.constant 0 : index
    %1703 = vector.load %arg8[%c32_617, %c0_618] : memref<40x128xf32, #tpu.memory_space<vmem>>, vector<1x128xf32>
    %1704 = vector.shape_cast %1703 : vector<1x128xf32> to vector<128xf32>
    %1705 = vector.extract_strided_slice %1704 {offsets = [0], sizes = [32], strides = [1]} : vector<128xf32> to vector<32xf32>
    %1706 = vector.shape_cast %1705 : vector<32xf32> to vector<1x32xf32>
    %cst_619 = arith.constant dense<0.000000e+00> : vector<8xf32>
    %1707 = vector.multi_reduction <add>, %1698, %cst_619 [1] : vector<8x32xf32> to vector<8xf32>
    %1708 = vector.shape_cast %1707 : vector<8xf32> to vector<8x1xf32>
    %cst_620 = arith.constant 3.200000e+01 : f32
    %1709 = vector.broadcast %cst_620 : f32 to vector<8x1xf32>
    %1710 = arith.divf %1708, %1709 : vector<8x1xf32>
    %1711 = vector.broadcast %1710 : vector<8x1xf32> to vector<8x32xf32>
    %1712 = arith.subf %1698, %1711 : vector<8x32xf32>
    %1713 = arith.mulf %1712, %1712 : vector<8x32xf32>
    %cst_621 = arith.constant dense<0.000000e+00> : vector<8xf32>
    %1714 = vector.multi_reduction <add>, %1713, %cst_621 [1] : vector<8x32xf32> to vector<8xf32>
    %1715 = vector.shape_cast %1714 : vector<8xf32> to vector<8x1xf32>
    %cst_622 = arith.constant 3.200000e+01 : f32
    %1716 = vector.broadcast %cst_622 : f32 to vector<8x1xf32>
    %1717 = arith.divf %1715, %1716 : vector<8x1xf32>
    %1718 = vector.broadcast %1710 : vector<8x1xf32> to vector<8x32xf32>
    %1719 = arith.subf %1698, %1718 : vector<8x32xf32>
    %cst_623 = arith.constant 9.99999974E-6 : f32
    %1720 = vector.broadcast %cst_623 : f32 to vector<8x1xf32>
    %1721 = arith.addf %1717, %1720 : vector<8x1xf32>
    %1722 = math.rsqrt %1721 : vector<8x1xf32>
    %1723 = vector.broadcast %1722 : vector<8x1xf32> to vector<8x32xf32>
    %1724 = arith.mulf %1719, %1723 : vector<8x32xf32>
    %1725 = vector.broadcast %1702 : vector<1x32xf32> to vector<8x32xf32>
    %1726 = arith.mulf %1724, %1725 : vector<8x32xf32>
    %1727 = vector.broadcast %1706 : vector<1x32xf32> to vector<8x32xf32>
    %1728 = arith.addf %1726, %1727 : vector<8x32xf32>
    %c0_624 = arith.constant 0 : index
    %c1536_625 = arith.constant 1536 : index
    %1729 = vector.load %arg6[%c0_624, %c1536_625] : memref<32x1664xf32, #tpu.memory_space<vmem>>, vector<32x4xf32>
    %cst_626 = arith.constant dense<0.000000e+00> : vector<8x4xf32>
    %1730 = tpu.matmul %1728, %1729, %cst_626 {dimension_numbers = #tpu.dot_dimension_numbers<[1], [0], [0], [1], [0, 0, 1, 1], [], []>} : vector<8x32xf32>, vector<32x4xf32>, vector<8x4xf32> -> vector<8x4xf32>
    %c33_627 = arith.constant 33 : index
    %c0_628 = arith.constant 0 : index
    %1731 = vector.load %arg8[%c33_627, %c0_628] : memref<40x128xf32, #tpu.memory_space<vmem>>, vector<1x128xf32>
    %1732 = vector.shape_cast %1731 : vector<1x128xf32> to vector<128xf32>
    %1733 = vector.extract_strided_slice %1732 {offsets = [0], sizes = [4], strides = [1]} : vector<128xf32> to vector<4xf32>
    %1734 = vector.shape_cast %1733 : vector<4xf32> to vector<1x4xf32>
    %1735 = vector.broadcast %1734 : vector<1x4xf32> to vector<8x4xf32>
    %1736 = arith.addf %1730, %1735 : vector<8x4xf32>
    %c1_629 = arith.constant 1 : index
    %c0_630 = arith.constant 0 : index
    %c0_631 = arith.constant 0 : index
    %1737 = vector.load %arg9[%c1_629, %c0_630, %c0_631] : memref<2x8x4xf32, #tpu.memory_space<vmem>>, vector<1x8x4xf32>
    %1738 = vector.shape_cast %1737 : vector<1x8x4xf32> to vector<8x4xf32>
    %1739 = vector.shape_cast %1736 : vector<8x4xf32> to vector<1x8x4xf32>
    tpu.vector_store %arg9[%c1_629, %c0_630, %c0_631], %1739 {strides = array<i32>} : memref<2x8x4xf32, #tpu.memory_space<vmem>>, vector<1x8x4xf32>,
    return
  }
}

</mosaic_0001>

<bundles_post_ra>
// kernel: informer_forward.1
= control target key start
LH: loop header
LB: loop body
LE: loop exit
PB: predicated region body
PF: predicated region fallthrough
CT: control target
= control target key end

     0   :  { %14 = vsyncpa [#allocation3], 0  ;;  %s15582_s0 = inlined_call_operand.vmem [shape: f32[2,8,4], index: 0, kind: input, shape index: {}]   ;;  %s15583_s1 = inlined_call_operand.vmem [shape: f32[2,8,4], index: 1, kind: input, shape index: {}]   ;;  %s15584_s2 = inlined_call_operand.vmem [shape: f32[2,8,4], index: 2, kind: input, shape index: {}]   ;;  %s15585_s3 = inlined_call_operand.vmem [shape: f32[2,8,4], index: 3, kind: input, shape index: {}]   ;;  %s15586_s4 = inlined_call_operand.vmem [shape: f32[8,32], index: 4, kind: input, shape index: {}]   ;;  %s15587_s5 = inlined_call_operand.vmem [shape: f32[4,1024], index: 5, kind: input, shape index: {}]   ;;  %s15588_s6 = inlined_call_operand.hbm [shape: f32[32,1664], index: 6, kind: input, shape index: {}]   ;;  %s15589_s7 = inlined_call_operand.hbm [shape: f32[64,384], index: 7, kind: input, shape index: {}]   ;;  %s15590_s8 = inlined_call_operand.vmem [shape: f32[40,128], index: 8, kind: input, shape index: {}]   ;;  %s15591_s9 = inlined_call_operand.vmem [shape: f32[2,8,4], index: 9, kind: output, shape index: {}]  }
   0x1   :  { %15 = vsyncpa [#allocation5], 0  ;;  %s14150_s30 = smov [#allocation2]   ;;  %s14102_s13 = scalar_lea.hbm %s15588_s6, 6656 }
   0x2   :  { %s33_s10 = sshll.u32 %s14150_s30, 4  ;;  %p14103_p0 = scmp.ne.s32.totalorder %s15588_s6, %s14102_s13  ;;  %s34_s10 = int_to_ptr.vmem [resolvable:$true] %s33_s10 }
   0x3   :  { %p14106_p1 = scmp.lt.u32.totalorder %s14102_s13, %s15588_s6 }
   0x5   :  { %p14108_p2 = pnand %p14106_p1, %p14103_p0 }
   0x7   :  { %14111 = shalt.err (!%p14108_p2)
}
   0x8   :  { %s14112_s18 = scalar_lea.vmem %s34_s10, 6656  ;;  %p14117_p4 = scmp.lt.s32.totalorder %s34_s10, %s34_s10 }
   0x9   :  { %p14113_p3 = scmp.ne.s32.totalorder %s34_s10, %s14112_s18  ;;  %p14118_p5 = scmp.lt.s32.totalorder %s14112_s18, %s14112_s18 }
   0xb   :  { %p14119_p6 = por %p14118_p5, %p14117_p4 }
   0xd   :  { %p14120_p7 = pnand %p14119_p6, %p14113_p3 }
   0xf   :  { %14123 = shalt.err (!%p14120_p7)
}
  0x10   :  { %s14151_s19 = smov 1664   ;;  %s14152_s20 = smov 104  }
  0x11   :  { %39 = dma.hbm_to_vmem [thread:$0]  %s15588_s6, 6656, %s34_s10, [#allocation3], %s14151_s19, %s14151_s19, %s14152_s20  }
  0x12   :  { %s14153_s23 = smov [#allocation4]   ;;  %s14124_s27 = scalar_lea.hbm %s15589_s7, 3072 }
  0x13   :  { %s45_s24 = sshll.u32 %s14153_s23, 4  ;;  %p14125_p8 = scmp.ne.s32.totalorder %s15589_s7, %s14124_s27  ;;  %s46_s24 = int_to_ptr.vmem [resolvable:$true] %s45_s24 }
  0x14   :  { %p14128_p9 = scmp.lt.u32.totalorder %s14124_s27, %s15589_s7 }
  0x16   :  { %p14130_p10 = pnand %p14128_p9, %p14125_p8 }
  0x18   :  { %14133 = shalt.err (!%p14130_p10)
}
  0x19   :  { %s14134_s12 = scalar_lea.vmem %s46_s24, 3072  ;;  %p14139_p12 = scmp.lt.s32.totalorder %s46_s24, %s46_s24 }
  0x1a   :  { %p14135_p11 = scmp.ne.s32.totalorder %s46_s24, %s14134_s12  ;;  %p14140_p13 = scmp.lt.s32.totalorder %s14134_s12, %s14134_s12 }
  0x1c   :  { %p14141_p0 = por %p14140_p13, %p14139_p12 }
  0x1e   :  { %p14142_p1 = pnand %p14141_p0, %p14135_p11 }
  0x20   :  { %14145 = shalt.err (!%p14142_p1)
}
  0x21   :  { %s14154_s6 = smov 384   ;;  %s14155_s10 = smov 24  }
  0x22   :  { %51 = dma.hbm_to_vmem [thread:$0]  %s15589_s7, 3072, %s46_s24, [#allocation5], %s14154_s6, %s14154_s6, %s14155_s10  }
  0x23   :  { %14146 = dma.done.wait [#allocation3], 6656  }
  0x24   :  { %14147 = vsyncadd [#allocation3], 4294960640 }
  0x25   :  { %14148 = dma.done.wait [#allocation5], 3072  }
  0x26   :  { %14149 = vsyncadd [#allocation5], 4294964224  ;;  %v62_v0 = vlaneseq  ;;  %v14156_v1 = vmov 0.0   ;;  %vm14157_vm0 = vmmov 0   ;;  %v60_v9 = vld [vmem:[%s15582_s0] sm:$0xff]  ;;  %vm99_vm3 = vcmask 64512  }
  0x27   :  { %12797 = vmatprep.subr.mxu0 %v14156_v1  ;;  %12799 = vmatprep.mubr.msk.f32.mxu0 %vm14157_vm0, %v14156_v1  ;;  %v247_v12 = vld [vmem:[%s15587_s5] sm:$0xf]  ;;  %vm252_vm5 = vcmask 1043456   ;;  %v562_v15 = vld [vmem:[#allocation2 + $0x68] sm:$0xff]  ;;  %v14158_v16 = vmov 0.0|0.0   ;;  %vm248_vm6 = vcmask 31744  }
  0x28   :  { %v63_v2 = vshrl.u32 %v62_v0, 7  ;;  %v65_v3 = vand.u32 127, %v62_v0  ;;  %12802 = vmatprep.subr.mxu1 %v14156_v1  ;;  %12804 = vmatprep.mubr.msk.f32.mxu1 %vm14157_vm0, %v14156_v1  ;;  %v561_v14 = vld [vmem:[#allocation2] sm:$0xff]  ;;  %v405_v23 = vld [vmem:[%s15587_s5 + $0x8] sm:$0xf]  ;;  %v563_v26 = vld [vmem:[#allocation2 + $0xd0] sm:$0xff] }
  0x29   :  { %12798 = vmatpush3.msra.mxu0 %v60_v9  ;;  %12803 = vmatpush3.msra.mxu1 %v60_v9  ;;  %v13710_v17 = vpack.c.bf16 %v562_v15, %v561_v14  ;;  %v327_v19 = vld [vmem:[%s15587_s5 + $0x4] sm:$0xf]  ;;  %v483_v24 = vld [vmem:[%s15587_s5 + $0xc] sm:$0xf]  ;;  %v564_v27 = vld [vmem:[#allocation2 + $0x138] sm:$0xff]  ;;  %vm570_vm7 = vcmask 261120  }
  0x2a   :  { %v66_v4 = vadd.s32 8, %v63_v2  ;;  %vm14250_vm1 = vcmp.le.s32.totalorder %v65_v3, %v63_v2  ;;  %v83_v6 = vadd.s32 1, %v63_v2  ;;  %12807 = vmatprep.subr.mxu0 %v14156_v1  ;;  %13709 = vmatprep.subr.bf16.mxu1 %v14158_v16  ;;  %v61_v25 = vld [vmem:[%s15583_s1] sm:$0xff]  ;;  %v13713_v28 = vpack.c.bf16 %v564_v27, %v563_v26  ;;  %s14159_s11 = smov 120   ;;  %s14160_s12 = smov 96   ;;  %v645_v60 = vld [vmem:[#allocation2 + $0x70] sm:$0xff] }
  0x2b   :  { %v246_v29 = vld [vmem:[%s15586_s4] sm:$0xff]  ;;  %s14161_s6 = smov 88   ;;  %s14162_s10 = smov 56   ;;  %v644_v61 = vld [vmem:[#allocation2 + $0x8] sm:$0xff]  ;;  %vm1734_vm8 = vcmask 523264  }
  0x2c   :  { %v12145_v7 = vadd.s32 4294967295, %v66_v4  ;;  %v88_v8 = vand.u32 7, %v83_v6  ;;  %v12158_v33 = vld [vmem:[%s15590_s8] ss:$0 sm:$0xff]  ;;  %s14163_s13 = smov 64   ;;  %s14164_s14 = smov 80  }
  0x2d   :  { %s14165_s7 = smov 112   ;;  %s14166_s15 = smov 48  }
  0x2e   :  { %v72_v10 = vand.u32 7, %v12145_v7  ;;  %vm96_vm2 = vcmp.eq.s32.totalorder %v88_v8, %v65_v3  ;;  %s14167_s16 = smov 72   ;;  %s14168_s17 = smov 40  }
  0x2f   :  { %v14258_v11 = vsel %vm96_vm2, 1.0, %v14156_v1 }
  0x30   :  { %vm80_vm4 = vcmp.eq.s32.totalorder %v72_v10, %v65_v3  ;;  %12805 = vmatmul.mubr.msk.f32.vlgmr.msra.gmra.mrb[0].mxu1 %vm99_vm3, %v14258_v11 }
  0x31   :  { %v14267_v13 = vsel %vm80_vm4, 1.0, %v14156_v1  ;;  %12835 = vmatprep.mubr.msk.f32.mxu1 %vm14157_vm0, %v14156_v1  ;;  %13711 = vmatpush3.bf16.msra.mxu1 %v13710_v17 }
  0x32   :  { %12800 = vmatmul.mubr.msk.f32.vlgmr.msra.gmra.mrb[0].mxu0 %vm99_vm3, %v14267_v13  ;;  %13712 = vmatprep.subr.bf16.mxu1 %v14158_v16 }
  0x33   :  { %12808 = vmatpush3.msk.msra.mxu0 %vm252_vm5, %v247_v12  ;;  %12809 = vmatprep.mubr.msk.f32.mxu0 %vm14157_vm0, %v14156_v1 }
  0x34   :  { %12812 = vmatprep.subr.mxu0 %v14156_v1 }
  0x35   :  { %13714 = vmatpush3.bf16.msra.mxu1 %v13713_v28 }
  0x36   :  { %12838 = vmatprep.subr.mxu1 %v14156_v1 }
 0x103   :  { %v242_v18 = vpop.f32.mrb[0].mxu1 }
 0x104   :  { %v12806_v20 = vpop.f32.mrb[1].mxu1 }
 0x105   :  { %v169_v21 = vpop.f32.mrb[0].mxu0 }
 0x106   :  { %v12801_v22 = vpop.f32.mrb[1].mxu0  ;;  %12810 = vmatmul.mubr.msk.f32.vlgmr.msra.gmra.mrb[2].mxu0 %vm248_vm6, %v169_v21 }
 0x107   :  { %12813 = vmatpush3.msk.msra.mxu0 %vm252_vm5, %v327_v19  ;;  %12814 = vmatprep.mubr.msk.f32.mxu0 %vm14157_vm0, %v14156_v1 }
 0x108   :  { %12817 = vmatprep.subr.mxu0 %v14156_v1 }
 0x10e   :  { %12815 = vmatmul.mubr.msk.f32.vlgmr.msra.gmra.mrb[2].mxu0 %vm248_vm6, %v60_v9 }
 0x10f   :  { %12818 = vmatpush3.msk.msra.mxu0 %vm252_vm5, %v405_v23  ;;  %12819 = vmatprep.mubr.msk.f32.mxu0 %vm14157_vm0, %v14156_v1 }
 0x110   :  { %12822 = vmatprep.subr.mxu0 %v14156_v1 }
 0x116   :  { %12820 = vmatmul.mubr.msk.f32.vlgmr.msra.gmra.mrb[2].mxu0 %vm248_vm6, %v242_v18 }
 0x117   :  { %12823 = vmatpush3.msk.msra.mxu0 %vm252_vm5, %v483_v24  ;;  %12824 = vmatprep.mubr.msk.f32.mxu0 %vm14157_vm0, %v14156_v1 }
 0x118   :  { %12848 = vmatprep.subr.mxu0 %v14156_v1 }
 0x11e   :  { %12825 = vmatmul.mubr.msk.f32.vlgmr.msra.gmra.mrb[2].mxu0 %vm248_vm6, %v61_v25 }
 0x11f   :  { %12850 = vmatprep.mubr.msk.f32.mxu0 %vm14157_vm0, %v14156_v1 }
 0x1f1   :  { %v556_v30 = vpop.f32.mrb[2].mxu0 }
 0x1f2   :  { %v14313_v31 = vadd.f32 %v556_v30, %v246_v29  ;;  %v12826_v32 = vpop.f32.mrb[3].mxu0 }
 0x1f4   :  { %12836 = vmatmul.mubr.msk.f32.vlgmr.msra.gmra.mrb[2].mxu1 %vm570_vm7, %v14313_v31 }
 0x1f5   :  { %12840 = vmatprep.mubr.msk.f32.mxu1 %vm14157_vm0, %v14156_v1 }
 0x2c7   :  { %v640_v34 = vpop.f32.mrb[2].mxu1 }
 0x2c8   :  { %v14322_v35 = vadd.f32 %v12158_v33, %v640_v34  ;;  %v12837_v36 = vpop.f32.mrb[3].mxu1  ;;  %v646_v33 = vld [vmem:[#allocation2 + $0xd8] sm:$0xff] }
 0x2ca   :  { %813 = vrot.lane.b32.xlu1 %v14322_v35, %s14159_s11  ;;  %649 = vrot.lane.b32.xlu0 %v14322_v35, %s14160_s12 }
 0x2ce   :  { %815 = vrot.lane.b32.xlu0 %v14322_v35, %s14161_s6 }
 0x33c   :  { %v650_v37 = vpop.permute.xlu0 %649  ;;  %v814_v39 = vpop.permute.xlu1 %813 }
 0x33d   :  { %12839 = vmatpush3.xpose.msk.msra.mxu1 %vm99_vm3, %v650_v37 }
 0x33e   :  { %12843 = vmatprep.subr.mxu1 %v14156_v1 }
 0x340   :  { %12841 = vmatmul.mubr.msk.f32.vlgmr.msra.gmra.mrb[4].mxu1 %vm99_vm3, %v14322_v35  ;;  %v816_v38 = vpop.permute.xlu0 %815 }
 0x341   :  { %12849 = vmatpush3.xpose.msk.msra.mxu0 %vm99_vm3, %v816_v38  ;;  %12845 = vmatprep.mubr.msk.f32.mxu1 %vm14157_vm0, %v14156_v1 }
 0x342   :  { %12858 = vmatprep.subr.mxu0 %v14156_v1 }
 0x344   :  { %12851 = vmatmul.mubr.msk.f32.vlgmr.msra.gmra.mrb[4].mxu0 %vm99_vm3, %v814_v39 }
 0x345   :  { %12860 = vmatprep.mubr.msk.f32.mxu0 %vm14157_vm0, %v14156_v1  ;;  %12859 = vmatpush3.msra.mxu0 %v645_v60 }
 0x346   :  { %12868 = vmatprep.subr.mxu0 %v14156_v1 }
 0x413   :  { %v721_v40 = vpop.f32.mrb[4].mxu1 }
 0x414   :  { %v725_v41 = vmul.f32 0.35355338, %v721_v40  ;;  %v12842_v42 = vpop.f32.mrb[5].mxu1 }
 0x416   :  { %v726_v43 = vsel %vm99_vm3, %v725_v41, -inf }
 0x417   :  { %727 = vmax.xlane.f32.xlu1 %v726_v43  ;;  %v887_v44 = vpop.f32.mrb[4].mxu0 }
 0x418   :  { %v891_v45 = vmul.f32 0.35355338, %v887_v44  ;;  %v12852_v46 = vpop.f32.mrb[5].mxu0 }
 0x41a   :  { %v892_v47 = vsel %vm99_vm3, %v891_v45, -inf }
 0x41b   :  { %893 = vmax.xlane.f32.xlu0 %v892_v47 }
 0x428   :  { %898 = vrot.lane.b32.xlu1 %v14322_v35, %s14162_s10 }
 0x431   :  { %732 = vrot.lane.b32.xlu0 %v14322_v35, %s14163_s13 }
 0x435   :  { %1127 = vrot.lane.b32.xlu0 %v14322_v35, %s14164_s14 }
 0x439   :  { %1125 = vrot.lane.b32.xlu0 %v14322_v35, %s14165_s7 }
 0x4a4   :  { %v728_v48 = vpop.xlane.xlu1 %727 }
 0x4a5   :  { %v729_v49 = vsub.f32 %v725_v41, %v728_v48 }
 0x4a7   :  { %v730_v50 = vmul.f32 1.442695, %v729_v49 }
 0x4a8   :  { %v894_v51 = vpop.xlane.xlu0 %893  ;;  %v899_v56 = vpop.permute.xlu1 %898 }
 0x4a9   :  { %13936 = vpow2.f32 %v730_v50  ;;  %v895_v52 = vsub.f32 %v891_v45, %v894_v51 }
 0x4ab   :  { %v896_v53 = vmul.f32 1.442695, %v895_v52  ;;  %v647_v52 = vld [vmem:[#allocation2 + $0x140] sm:$0xff] }
 0x4ac   :  { %v733_v54 = vpop.permute.xlu0 %732 }
 0x4ad   :  { %13938 = vpow2.f32 %v896_v53  ;;  %12844 = vmatpush3.msra.mxu1 %v733_v54 }
 0x4ae   :  { %12853 = vmatprep.subr.mxu1 %v14156_v1 }
 0x4b0   :  { %v1128_v62 = vpop.permute.xlu0 %1127 }
 0x4b3   :  { %v13937_v55 = vpop.eup %13936 }
 0x4b4   :  { %12846 = vmatmul.mubr.msk.f32.vlgmr.msra.gmra.mrb[6].mxu1 %vm99_vm3, %v13937_v55  ;;  %v808_v57 = vsel %vm99_vm3, %v13937_v55, 0.0  ;;  %v1126_v63 = vpop.permute.xlu0 %1125 }
 0x4b5   :  { %12854 = vmatpush3.msra.mxu1 %v899_v56  ;;  %809 = vadd.xlane.f32.xlu0 %v808_v57 }
 0x4b6   :  { %12855 = vmatprep.mubr.msk.f32.mxu1 %vm14157_vm0, %v14156_v1  ;;  %12863 = vmatprep.subr.mxu1 %v14156_v1 }
 0x4b7   :  { %v13939_v58 = vpop.eup %13938 }
 0x4b8   :  { %12856 = vmatmul.mubr.msk.f32.vlgmr.msra.gmra.mrb[8].mxu1 %vm99_vm3, %v13939_v58  ;;  %v974_v59 = vsel %vm99_vm3, %v13939_v58, 0.0 }
 0x4b9   :  { %975 = vadd.xlane.f32.xlu1 %v974_v59  ;;  %12865 = vmatprep.mubr.msk.f32.mxu1 %vm14157_vm0, %v14156_v1  ;;  %v12176_v59 = vld [vmem:[%s15590_s8 + $0x1] ss:$0 sm:$0xff] }
 0x4ba   :  { %12864 = vmatpush3.msra.mxu1 %v644_v61 }
 0x4bb   :  { %12873 = vmatprep.subr.mxu1 %v14156_v1 }
 0x4ca   :  { %1210 = vrot.lane.b32.xlu1 %v14322_v35, %s14166_s15 }
 0x4cb   :  { %1367 = vrot.lane.b32.xlu0 %v14322_v35, %s14167_s16 }
 0x542   :  { %v810_v0 = vpop.xlane.xlu0 %809 }
 0x543   :  { %13940 = vrcp.f32 %v810_v0 }
 0x546   :  { %v976_v2 = vpop.xlane.xlu1 %975  ;;  %v1368_v29 = vpop.permute.xlu0 %1367 }
 0x547   :  { %13942 = vrcp.f32 %v976_v2 }
 0x54a   :  { %v1211_v8 = vpop.permute.xlu1 %1210 }
 0x54d   :  { %v13941_v3 = vpop.eup %13940 }
 0x551   :  { %v13943_v9 = vpop.eup %13942 }
 0x587   :  { %v804_v4 = vpop.f32.mrb[6].mxu1 }
 0x588   :  { %v812_v6 = vmul.f32 %v13941_v3, %v804_v4  ;;  %v12847_v7 = vpop.f32.mrb[7].mxu1 }
 0x58a   :  { %12866 = vmatmul.mubr.msk.f32.vlgmr.msra.gmra.mrb[10].mxu1 %vm99_vm3, %v812_v6 }
 0x58b   :  { %12874 = vmatpush3.msra.mxu1 %v1211_v8  ;;  %v970_v10 = vpop.f32.mrb[8].mxu1  ;;  %12875 = vmatprep.mubr.msk.f32.mxu1 %vm14157_vm0, %v14156_v1  ;;  %v1638_v8 = vld [vmem:[#allocation2 + $0x10] sm:$0xff] }
 0x58c   :  { %v978_v12 = vmul.f32 %v13943_v9, %v970_v10  ;;  %v12857_v14 = vpop.f32.mrb[9].mxu1  ;;  %12883 = vmatprep.subr.mxu1 %v14156_v1  ;;  %v1639_v9 = vld [vmem:[#allocation2 + $0x78] sm:$0xff] }
 0x58d   :  { %v13716_v10 = vpack.c.bf16 %v1639_v9, %v1638_v8  ;;  %v1641_v14 = vld [vmem:[#allocation2 + $0x148] sm:$0xff] }
 0x58e   :  { %12861 = vmatmul.mubr.msk.f32.vlgmr.msra.gmra.mrb[6].mxu0 %vm99_vm3, %v978_v12  ;;  %v1640_v12 = vld [vmem:[#allocation2 + $0xe0] sm:$0xff] }
 0x58f   :  { %12869 = vmatpush3.xpose.msk.msra.mxu0 %vm99_vm3, %v1128_v62  ;;  %12870 = vmatprep.mubr.msk.f32.mxu0 %vm14157_vm0, %v14156_v1 }
 0x590   :  { %12878 = vmatprep.subr.mxu0 %v14156_v1 }
 0x592   :  { %12871 = vmatmul.mubr.msk.f32.vlgmr.msra.gmra.mrb[8].mxu0 %vm99_vm3, %v1126_v63 }
 0x593   :  { %12880 = vmatprep.mubr.msk.f32.mxu0 %vm14157_vm0, %v14156_v1  ;;  %12879 = vmatpush3.msra.mxu0 %v646_v33 }
 0x594   :  { %12888 = vmatprep.subr.mxu0 %v14156_v1 }
 0x65d   :  { %v1121_v15 = vpop.f32.mrb[10].mxu1 }
 0x65e   :  { %v12867_v17 = vpop.f32.mrb[11].mxu1 }
 0x65f   :  { %v1722_v17 = vld [vmem:[#allocation4 + $0x18] sm:$0xff] }
 0x661   :  { %v1048_v18 = vpop.f32.mrb[6].mxu0 }
 0x662   :  { %v1122_v19 = vadd.f32 %v1121_v15, %v1048_v18  ;;  %v12862_v20 = vpop.f32.mrb[7].mxu0  ;;  %v13719_v15 = vpack.c.bf16 %v1641_v14, %v1640_v12  ;;  %v1723_v18 = vld [vmem:[#allocation4 + $0x30] sm:$0xff] }
 0x663   :  { %v1724_v20 = vld [vmem:[#allocation4 + $0x48] sm:$0xff] }
 0x665   :  { %v1199_v21 = vpop.f32.mrb[8].mxu0 }
 0x666   :  { %v1203_v22 = vmul.f32 0.35355338, %v1199_v21  ;;  %v12872_v23 = vpop.f32.mrb[9].mxu0  ;;  %v13725_v21 = vpack.c.bf16 %v1724_v20, %v1723_v18 }
 0x667   :  { %v1726_v23 = vld [vmem:[#allocation4 + $0x78] sm:$0xff] }
 0x668   :  { %v1204_v24 = vsel %vm99_vm3, %v1203_v22, -inf }
 0x669   :  { %1205 = vmax.xlane.f32.xlu1 %v1204_v24 }
 0x67a   :  { %1365 = vrot.lane.b32.xlu1 %v14322_v35, %s14152_s20 }
 0x6f6   :  { %v1206_v25 = vpop.xlane.xlu1 %1205 }
 0x6f7   :  { %v1207_v26 = vsub.f32 %v1203_v22, %v1206_v25  ;;  %v1725_v22 = vld [vmem:[#allocation4 + $0x60] sm:$0xff] }
 0x6f8   :  { %v13728_v24 = vpack.c.bf16 %v1726_v23, %v1725_v22 }
 0x6f9   :  { %v1208_v27 = vmul.f32 1.442695, %v1207_v26 }
 0x6fa   :  { %v1366_v32 = vpop.permute.xlu1 %1365 }
 0x6fb   :  { %13944 = vpow2.f32 %v1208_v27 }
 0x705   :  { %v13945_v28 = vpop.eup %13944 }
 0x706   :  { %12876 = vmatmul.mubr.msk.f32.vlgmr.msra.gmra.mrb[12].mxu1 %vm99_vm3, %v13945_v28  ;;  %v1286_v30 = vsel %vm99_vm3, %v13945_v28, 0.0 }
 0x707   :  { %12884 = vmatpush3.xpose.msk.msra.mxu1 %vm99_vm3, %v1368_v29  ;;  %1287 = vadd.xlane.f32.xlu1 %v1286_v30  ;;  %v12177_v29 = vld [vmem:[%s15590_s8 + $0x4] ss:$0 sm:$0xff] }
 0x708   :  { %12885 = vmatprep.mubr.msk.f32.mxu1 %vm14157_vm0, %v14156_v1  ;;  %12893 = vmatprep.subr.mxu1 %v14156_v1 }
 0x70a   :  { %12886 = vmatmul.mubr.msk.f32.vlgmr.msra.gmra.mrb[14].mxu1 %vm99_vm3, %v1366_v32  ;;  %v12178_v32 = vld [vmem:[%s15590_s8 + $0x5] ss:$0 sm:$0xff] }
 0x70b   :  { %12895 = vmatprep.mubr.msk.f32.mxu1 %vm14157_vm0, %v14156_v1  ;;  %12894 = vmatpush3.msra.mxu1 %v647_v52 }
 0x70c   :  { %13721 = vmatprep.subr.bf16.mxu1 %v14158_v16 }
 0x794   :  { %v1288_v34 = vpop.xlane.xlu1 %1287 }
 0x795   :  { %13946 = vrcp.f32 %v1288_v34 }
 0x79f   :  { %v13947_v36 = vpop.eup %13946 }
 0x7d9   :  { %v1282_v37 = vpop.f32.mrb[12].mxu1 }
 0x7da   :  { %v1290_v38 = vmul.f32 %v13947_v36, %v1282_v37  ;;  %v12877_v39 = vpop.f32.mrb[13].mxu1  ;;  %v1727_v36 = vld [vmem:[#allocation4 + $0x90] sm:$0xff]  ;;  %v1728_v37 = vld [vmem:[#allocation4 + $0xa8] sm:$0xff] }
 0x7db   :  { %v12179_v39 = vld [vmem:[%s15590_s8 + $0x2] ss:$0 sm:$0xff] }
 0x7dc   :  { %12881 = vmatmul.mubr.msk.f32.vlgmr.msra.gmra.mrb[10].mxu0 %vm99_vm3, %v1290_v38  ;;  %v13731_v38 = vpack.c.bf16 %v1728_v37, %v1727_v36 }
 0x7dd   :  { %v1439_v40 = vpop.f32.mrb[14].mxu1  ;;  %12890 = vmatprep.mubr.msk.f32.mxu0 %vm14157_vm0, %v14156_v1 }
 0x7de   :  { %v1443_v41 = vmul.f32 0.35355338, %v1439_v40  ;;  %v12887_v42 = vpop.f32.mrb[15].mxu1 }
 0x7e0   :  { %v1444_v43 = vsel %vm99_vm3, %v1443_v41, -inf }
 0x7e1   :  { %1445 = vmax.xlane.f32.xlu0 %v1444_v43 }
 0x7f7   :  { %1450 = vrot.lane.b32.xlu0 %v14322_v35, %s14168_s17 }
 0x86e   :  { %v1446_v44 = vpop.xlane.xlu0 %1445 }
 0x86f   :  { %v1447_v45 = vsub.f32 %v1443_v41, %v1446_v44  ;;  %v12181_v44 = vld [vmem:[%s15590_s8 + $0x3] ss:$0 sm:$0xff] }
 0x871   :  { %v1448_v46 = vmul.f32 1.442695, %v1447_v45 }
 0x872   :  { %v1451_v47 = vpop.permute.xlu0 %1450 }
 0x873   :  { %13948 = vpow2.f32 %v1448_v46  ;;  %12889 = vmatpush3.msra.mxu0 %v1451_v47 }
 0x874   :  { %13715 = vmatprep.subr.bf16.mxu0 %v14158_v16 }
 0x87d   :  { %v13949_v48 = vpop.eup %13948 }
 0x87e   :  { %12891 = vmatmul.mubr.msk.f32.vlgmr.msra.gmra.mrb[12].mxu0 %vm99_vm3, %v13949_v48  ;;  %v1526_v49 = vsel %vm99_vm3, %v13949_v48, 0.0 }
 0x87f   :  { %1527 = vadd.xlane.f32.xlu1 %v1526_v49  ;;  %12906 = vmatprep.mubr.msk.f32.mxu0 %vm14157_vm0, %v14156_v1 }
 0x880   :  { %13717 = vmatpush3.bf16.msra.mxu0 %v13716_v10 }
 0x881   :  { %13718 = vmatprep.subr.bf16.mxu0 %v14158_v16 }
 0x884   :  { %13720 = vmatpush3.bf16.msra.mxu0 %v13719_v15 }
 0x885   :  { %13733 = vmatprep.subr.bf16.mxu0 %v14158_v16 }
 0x8af   :  { %v1360_v50 = vpop.f32.mrb[10].mxu0 }
 0x8b0   :  { %v1364_v51 = vadd.f32 %v1360_v50, %v1122_v19  ;;  %v12882_v35 = vpop.f32.mrb[11].mxu0 }
 0x90c   :  { %v1528_v53 = vpop.xlane.xlu1 %1527 }
 0x90d   :  { %13950 = vrcp.f32 %v1528_v53 }
 0x917   :  { %v13951_v54 = vpop.eup %13950 }
 0x951   :  { %v1522_v55 = vpop.f32.mrb[12].mxu0 }
 0x952   :  { %v1530_v56 = vmul.f32 %v13951_v54, %v1522_v55  ;;  %v12892_v57 = vpop.f32.mrb[13].mxu0  ;;  %v1834_v54 = vld [vmem:[#allocation2 + $0x18] sm:$0xff]  ;;  %v1835_v55 = vld [vmem:[#allocation2 + $0x80] sm:$0xff] }
 0x953   :  { %v1836_v57 = vld [vmem:[#allocation2 + $0xe8] sm:$0xff] }
 0x954   :  { %12896 = vmatmul.mubr.msk.f32.vlgmr.msra.gmra.mrb[16].mxu1 %vm99_vm3, %v1530_v56  ;;  %v13734_v56 = vpack.c.bf16 %v1835_v55, %v1834_v54 }
 0x955   :  { %12925 = vmatprep.mubr.msk.f32.mxu1 %vm14157_vm0, %v14156_v1 }
 0xa27   :  { %v1600_v58 = vpop.f32.mrb[16].mxu1 }
 0xa28   :  { %v1604_v60 = vadd.f32 %v1600_v58, %v1364_v51  ;;  %v12897_v61 = vpop.f32.mrb[17].mxu1  ;;  %v1837_v58 = vld [vmem:[#allocation2 + $0x150] sm:$0xff] }
 0xa2a   :  { %v1610_v62 = vadd.f32 %v12176_v59, %v1604_v60  ;;  %v13737_v59 = vpack.c.bf16 %v1837_v58, %v1836_v57 }
 0xa2c   :  { %v1611_v63 = vadd.f32 %v14313_v31, %v1610_v62  ;;  %v1721_v31 = vld [vmem:[#allocation4] sm:$0xff] }
 0xa2d   :  { %v13722_v19 = vpack.c.bf16 %v1722_v17, %v1721_v31 }
 0xa2e   :  { %v1614_v0 = vsel %vm570_vm7, %v1611_v63, 0.0 }
 0xa2f   :  { %1615 = vadd.xlane.f32.xlu1 %v1614_v0  ;;  %13723 = vmatpush3.bf16.msra.mxu1 %v13722_v19  ;;  %v12183_v0 = vld [vmem:[%s15590_s8 + $0x6] ss:$0 sm:$0xff] }
 0xa30   :  { %13724 = vmatprep.subr.bf16.mxu1 %v14158_v16 }
 0xa33   :  { %13726 = vmatpush3.bf16.msra.mxu1 %v13725_v21 }
 0xa34   :  { %13727 = vmatprep.subr.bf16.mxu1 %v14158_v16 }
 0xa37   :  { %13729 = vmatpush3.bf16.msra.mxu1 %v13728_v24 }
 0xa38   :  { %13730 = vmatprep.subr.bf16.mxu1 %v14158_v16 }
 0xa3b   :  { %13732 = vmatpush3.bf16.msra.mxu1 %v13731_v38  ;;  %v1917_v38 = vld [vmem:[#allocation2 + $0x88] sm:$0xff] }
 0xa3c   :  { %12944 = vmatprep.subr.mxu1 %v14156_v1 }
 0xabc   :  { %v1616_v2 = vpop.xlane.xlu1 %1615 }
 0xabd   :  { %v1618_v3 = vmul.f32 0.03125, %v1616_v2 }
 0xabf   :  { %v1619_v4 = vsub.f32 %v1611_v63, %v1618_v3  ;;  %v12184_v3 = vld [vmem:[%s15590_s8 + $0x7] ss:$0 sm:$0xff] }
 0xac1   :  { %v1620_v6 = vmul.f32 %v1619_v4, %v1619_v4 }
 0xac3   :  { %v1621_v7 = vsel %vm570_vm7, %v1620_v6, 0.0 }
 0xac4   :  { %1622 = vadd.xlane.f32.xlu1 %v1621_v7  ;;  %v12185_v7 = vld [vmem:[%s15590_s8 + $0x8] ss:$0 sm:$0xff] }
 0xb51   :  { %v1623_v25 = vpop.xlane.xlu1 %1622 }
 0xb52   :  { %v1624_v26 = vmul.f32 0.03125, %v1623_v25 }
 0xb54   :  { %v1625_v27 = vadd.f32 1e-05, %v1624_v26 }
 0xb56   :  { %13952 = vrsqrt.f32 %v1625_v27 }
 0xb60   :  { %v13953_v28 = vpop.eup %13952 }
 0xb61   :  { %v1627_v30 = vmul.f32 %v13953_v28, %v1619_v4 }
 0xb63   :  { %v1632_v33 = vmul.f32 %v12177_v29, %v1627_v30 }
 0xb65   :  { %v1637_v34 = vadd.f32 %v12178_v32, %v1632_v33 }
 0xb67   :  { %12907 = vmatmul.mubr.msk.f32.vlgmr.msra.gmra.mrb[14].mxu0 %vm570_vm7, %v1637_v34 }
 0xb68   :  { %12936 = vmatprep.mubr.msk.f32.mxu0 %vm14157_vm0, %v14156_v1  ;;  %13735 = vmatpush3.bf16.msra.mxu0 %v13734_v56 }
 0xb69   :  { %13736 = vmatprep.subr.bf16.mxu0 %v14158_v16 }
 0xb6c   :  { %13738 = vmatpush3.bf16.msra.mxu0 %v13737_v59 }
 0xb6d   :  { %12939 = vmatprep.subr.mxu0 %v14156_v1 }
 0xc3a   :  { %v1716_v40 = vpop.f32.mrb[14].mxu0 }
 0xc3b   :  { %v1717_v41 = vadd.f32 %v12179_v39, %v1716_v40  ;;  %v12908_v42 = vpop.f32.mrb[15].mxu0  ;;  %v1916_v39 = vld [vmem:[#allocation2 + $0x20] sm:$0xff] }
 0xc3d   :  { %v1720_v43 = vmax.f32 %v1717_v41, 0.0 }
 0xc3f   :  { %12926 = vmatmul.mubr.msk.f32.vlgmr.msra.gmra.mrb[18].mxu1 %vm1734_vm8, %v1720_v43 }
 0xc40   :  { %12946 = vmatprep.mubr.msk.f32.mxu1 %vm14157_vm0, %v14156_v1 }
 0xd12   :  { %v1804_v45 = vpop.f32.mrb[18].mxu1 }
 0xd13   :  { %v1805_v46 = vadd.f32 %v12181_v44, %v1804_v45  ;;  %v12927_v47 = vpop.f32.mrb[19].mxu1 }
 0xd15   :  { %v1808_v48 = vadd.f32 %v1805_v46, %v1637_v34 }
 0xd17   :  { %v1811_v49 = vsel %vm570_vm7, %v1808_v48, 0.0 }
 0xd18   :  { %1812 = vadd.xlane.f32.xlu1 %v1811_v49 }
 0xda5   :  { %v1813_v50 = vpop.xlane.xlu1 %1812 }
 0xda6   :  { %v1814_v51 = vmul.f32 0.03125, %v1813_v50 }
 0xda8   :  { %v1815_v35 = vsub.f32 %v1808_v48, %v1814_v51 }
 0xdaa   :  { %v1816_v52 = vmul.f32 %v1815_v35, %v1815_v35 }
 0xdac   :  { %v1817_v53 = vsel %vm570_vm7, %v1816_v52, 0.0 }
 0xdad   :  { %1818 = vadd.xlane.f32.xlu1 %v1817_v53 }
 0xe3a   :  { %v1819_v60 = vpop.xlane.xlu1 %1818 }
 0xe3b   :  { %v1820_v61 = vmul.f32 0.03125, %v1819_v60 }
 0xe3d   :  { %v1821_v62 = vadd.f32 1e-05, %v1820_v61 }
 0xe3f   :  { %13954 = vrsqrt.f32 %v1821_v62 }
 0xe49   :  { %v13955_v63 = vpop.eup %13954 }
 0xe4a   :  { %v1823_v2 = vmul.f32 %v13955_v63, %v1815_v35 }
 0xe4c   :  { %v1828_v4 = vmul.f32 %v12183_v0, %v1823_v2 }
 0xe4e   :  { %v14447_v6 = vadd.f32 %v12184_v3, %v1828_v4 }
 0xe50   :  { %12937 = vmatmul.mubr.msk.f32.vlgmr.msra.gmra.mrb[16].mxu0 %vm570_vm7, %v14447_v6 }
 0xe51   :  { %12941 = vmatprep.mubr.msk.f32.mxu0 %vm14157_vm0, %v14156_v1 }
 0xf23   :  { %v1912_v8 = vpop.f32.mrb[16].mxu0 }
 0xf24   :  { %v14456_v9 = vadd.f32 %v12185_v7, %v1912_v8  ;;  %v12938_v10 = vpop.f32.mrb[17].mxu0  ;;  %v1918_v7 = vld [vmem:[#allocation2 + $0xf0] sm:$0xff] }
 0xf26   :  { %2087 = vrot.lane.b32.xlu0 %v14456_v9, %s14161_s6  ;;  %1921 = vrot.lane.b32.xlu1 %v14456_v9, %s14160_s12 }
 0xf2a   :  { %2085 = vrot.lane.b32.xlu0 %v14456_v9, %s14159_s11 }
 0xf98   :  { %v1922_v12 = vpop.permute.xlu1 %1921  ;;  %v2088_v14 = vpop.permute.xlu0 %2087 }
 0xf99   :  { %12940 = vmatpush3.xpose.msk.msra.mxu0 %vm99_vm3, %v1922_v12 }
 0xf9a   :  { %12949 = vmatprep.subr.mxu0 %v14156_v1 }
 0xf9c   :  { %12942 = vmatmul.mubr.msk.f32.vlgmr.msra.gmra.mrb[18].mxu0 %vm99_vm3, %v14456_v9  ;;  %v2086_v15 = vpop.permute.xlu0 %2085 }
 0xf9d   :  { %12950 = vmatpush3.xpose.msk.msra.mxu0 %vm99_vm3, %v2088_v14  ;;  %12951 = vmatprep.mubr.msk.f32.mxu0 %vm14157_vm0, %v14156_v1 }
 0xf9e   :  { %12959 = vmatprep.subr.mxu0 %v14156_v1 }
 0xfa0   :  { %12952 = vmatmul.mubr.msk.f32.vlgmr.msra.gmra.mrb[20].mxu0 %vm99_vm3, %v2086_v15 }
 0xfa1   :  { %12961 = vmatprep.mubr.msk.f32.mxu0 %vm14157_vm0, %v14156_v1  ;;  %12960 = vmatpush3.msra.mxu0 %v1917_v38 }
 0xfa2   :  { %12969 = vmatprep.subr.mxu0 %v14156_v1 }
0x106f   :  { %v1993_v31 = vpop.f32.mrb[18].mxu0 }
0x1070   :  { %v1997_v17 = vmul.f32 0.35355338, %v1993_v31  ;;  %v12943_v18 = vpop.f32.mrb[19].mxu0 }
0x1072   :  { %v1998_v19 = vsel %vm99_vm3, %v1997_v17, -inf }
0x1073   :  { %1999 = vmax.xlane.f32.xlu0 %v1998_v19  ;;  %v2159_v20 = vpop.f32.mrb[20].mxu0 }
0x1074   :  { %v2163_v21 = vmul.f32 0.35355338, %v2159_v20  ;;  %v12953_v22 = vpop.f32.mrb[21].mxu0 }
0x1076   :  { %v2164_v23 = vsel %vm99_vm3, %v2163_v21, -inf }
0x1077   :  { %2165 = vmax.xlane.f32.xlu1 %v2164_v23 }
0x1088   :  { %2170 = vrot.lane.b32.xlu1 %v14456_v9, %s14162_s10 }
0x1089   :  { %2004 = vrot.lane.b32.xlu0 %v14456_v9, %s14163_s13 }
0x108c   :  { %2399 = vrot.lane.b32.xlu1 %v14456_v9, %s14164_s14 }
0x1090   :  { %2397 = vrot.lane.b32.xlu1 %v14456_v9, %s14165_s7 }
0x1100   :  { %v2000_v24 = vpop.xlane.xlu0 %1999 }
0x1101   :  { %v2001_v25 = vsub.f32 %v1997_v17, %v2000_v24 }
0x1103   :  { %v2002_v26 = vmul.f32 1.442695, %v2001_v25 }
0x1104   :  { %v2005_v27 = vpop.permute.xlu0 %2004  ;;  %v2166_v28 = vpop.xlane.xlu1 %2165 }
0x1105   :  { %13956 = vpow2.f32 %v2002_v26  ;;  %v2167_v29 = vsub.f32 %v2163_v21, %v2166_v28  ;;  %12945 = vmatpush3.msra.mxu1 %v2005_v27  ;;  %v1919_v28 = vld [vmem:[#allocation2 + $0x158] sm:$0xff] }
0x1106   :  { %12954 = vmatprep.subr.mxu1 %v14156_v1 }
0x1107   :  { %v2168_v30 = vmul.f32 1.442695, %v2167_v29 }
0x1108   :  { %v2171_v33 = vpop.permute.xlu1 %2170 }
0x1109   :  { %13958 = vpow2.f32 %v2168_v30 }
0x110c   :  { %v2400_v40 = vpop.permute.xlu1 %2399 }
0x110f   :  { %v13957_v32 = vpop.eup %13956 }
0x1110   :  { %12947 = vmatmul.mubr.msk.f32.vlgmr.msra.gmra.mrb[20].mxu1 %vm99_vm3, %v13957_v32  ;;  %v2080_v34 = vsel %vm99_vm3, %v13957_v32, 0.0  ;;  %v2398_v41 = vpop.permute.xlu1 %2397 }
0x1111   :  { %12955 = vmatpush3.msra.mxu1 %v2171_v33  ;;  %2081 = vadd.xlane.f32.xlu1 %v2080_v34 }
0x1112   :  { %12956 = vmatprep.mubr.msk.f32.mxu1 %vm14157_vm0, %v14156_v1  ;;  %12964 = vmatprep.subr.mxu1 %v14156_v1 }
0x1113   :  { %v13959_v36 = vpop.eup %13958 }
0x1114   :  { %12957 = vmatmul.mubr.msk.f32.vlgmr.msra.gmra.mrb[22].mxu1 %vm99_vm3, %v13959_v36  ;;  %v2246_v37 = vsel %vm99_vm3, %v13959_v36, 0.0 }
0x1115   :  { %2247 = vadd.xlane.f32.xlu0 %v2246_v37  ;;  %12966 = vmatprep.mubr.msk.f32.mxu1 %vm14157_vm0, %v14156_v1  ;;  %v12203_v37 = vld [vmem:[%s15590_s8 + $0x9] ss:$0 sm:$0xff] }
0x1116   :  { %12965 = vmatpush3.msra.mxu1 %v1916_v39 }
0x1117   :  { %12974 = vmatprep.subr.mxu1 %v14156_v1 }
0x1122   :  { %2639 = vrot.lane.b32.xlu1 %v14456_v9, %s14167_s16 }
0x119e   :  { %v2082_v42 = vpop.xlane.xlu1 %2081 }
0x119f   :  { %13960 = vrcp.f32 %v2082_v42 }
0x11a2   :  { %v2248_v43 = vpop.xlane.xlu0 %2247  ;;  %v2640_v2 = vpop.permute.xlu1 %2639 }
0x11a3   :  { %13962 = vrcp.f32 %v2248_v43 }
0x11a9   :  { %v13961_v44 = vpop.eup %13960 }
0x11ad   :  { %v13963_v48 = vpop.eup %13962 }
0x11e3   :  { %v2076_v45 = vpop.f32.mrb[20].mxu1 }
0x11e4   :  { %v2084_v46 = vmul.f32 %v13961_v44, %v2076_v45  ;;  %v12948_v47 = vpop.f32.mrb[21].mxu1 }
0x11e6   :  { %12967 = vmatmul.mubr.msk.f32.vlgmr.msra.gmra.mrb[24].mxu1 %vm99_vm3, %v2084_v46 }
0x11e7   :  { %v2242_v49 = vpop.f32.mrb[22].mxu1  ;;  %12976 = vmatprep.mubr.msk.f32.mxu1 %vm14157_vm0, %v14156_v1 }
0x11e8   :  { %v2250_v50 = vmul.f32 %v13963_v48, %v2242_v49  ;;  %v12958_v51 = vpop.f32.mrb[23].mxu1  ;;  %v2909_v48 = vld [vmem:[#allocation2 + $0x28] sm:$0xff]  ;;  %v2910_v49 = vld [vmem:[#allocation2 + $0x90] sm:$0xff] }
0x11e9   :  { %v2911_v51 = vld [vmem:[#allocation2 + $0xf8] sm:$0xff] }
0x11ea   :  { %12962 = vmatmul.mubr.msk.f32.vlgmr.msra.gmra.mrb[22].mxu0 %vm99_vm3, %v2250_v50  ;;  %v13740_v50 = vpack.c.bf16 %v2910_v49, %v2909_v48 }
0x11eb   :  { %12970 = vmatpush3.xpose.msk.msra.mxu0 %vm99_vm3, %v2400_v40  ;;  %12971 = vmatprep.mubr.msk.f32.mxu0 %vm14157_vm0, %v14156_v1 }
0x11ec   :  { %12979 = vmatprep.subr.mxu0 %v14156_v1 }
0x11ee   :  { %12972 = vmatmul.mubr.msk.f32.vlgmr.msra.gmra.mrb[24].mxu0 %vm99_vm3, %v2398_v41 }
0x11ef   :  { %12981 = vmatprep.mubr.msk.f32.mxu0 %vm14157_vm0, %v14156_v1  ;;  %12980 = vmatpush3.msra.mxu0 %v1918_v7 }
0x11f0   :  { %12989 = vmatprep.subr.mxu0 %v14156_v1 }
0x12b9   :  { %v2393_v35 = vpop.f32.mrb[24].mxu1 }
0x12ba   :  { %v12968_v52 = vpop.f32.mrb[25].mxu1 }
0x12bd   :  { %v2320_v53 = vpop.f32.mrb[22].mxu0 }
0x12be   :  { %v2394_v54 = vadd.f32 %v2393_v35, %v2320_v53  ;;  %v12963_v55 = vpop.f32.mrb[23].mxu0  ;;  %v2912_v35 = vld [vmem:[#allocation2 + $0x160] sm:$0xff] }
0x12bf   :  { %v13743_v52 = vpack.c.bf16 %v2912_v35, %v2911_v51  ;;  %v2993_v53 = vld [vmem:[#allocation4 + $0x20] sm:$0xff] }
0x12c1   :  { %v2471_v56 = vpop.f32.mrb[24].mxu0 }
0x12c2   :  { %v2475_v57 = vmul.f32 0.35355338, %v2471_v56  ;;  %v12973_v58 = vpop.f32.mrb[25].mxu0  ;;  %v2995_v56 = vld [vmem:[#allocation4 + $0x50] sm:$0xff] }
0x12c3   :  { %v2996_v58 = vld [vmem:[#allocation4 + $0x68] sm:$0xff] }
0x12c4   :  { %v2476_v59 = vsel %vm99_vm3, %v2475_v57, -inf }
0x12c5   :  { %2477 = vmax.xlane.f32.xlu0 %v2476_v59  ;;  %v2997_v59 = vld [vmem:[#allocation4 + $0x80] sm:$0xff] }
0x12db   :  { %2482 = vrot.lane.b32.xlu0 %v14456_v9, %s14166_s15 }
0x12df   :  { %2637 = vrot.lane.b32.xlu0 %v14456_v9, %s14152_s20 }
0x1352   :  { %v2478_v60 = vpop.xlane.xlu0 %2477 }
0x1353   :  { %v2479_v61 = vsub.f32 %v2475_v57, %v2478_v60  ;;  %v13752_v60 = vpack.c.bf16 %v2997_v59, %v2996_v58 }
0x1355   :  { %v2480_v62 = vmul.f32 1.442695, %v2479_v61 }
0x1356   :  { %v2483_v63 = vpop.permute.xlu0 %2482 }
0x1357   :  { %13964 = vpow2.f32 %v2480_v62  ;;  %12975 = vmatpush3.msra.mxu1 %v2483_v63 }
0x1358   :  { %12984 = vmatprep.subr.mxu1 %v14156_v1 }
0x135a   :  { %v2638_v4 = vpop.permute.xlu0 %2637 }
0x1361   :  { %v13965_v0 = vpop.eup %13964 }
0x1362   :  { %12977 = vmatmul.mubr.msk.f32.vlgmr.msra.gmra.mrb[26].mxu1 %vm99_vm3, %v13965_v0  ;;  %v2558_v3 = vsel %vm99_vm3, %v13965_v0, 0.0 }
0x1363   :  { %12985 = vmatpush3.xpose.msk.msra.mxu1 %vm99_vm3, %v2640_v2  ;;  %2559 = vadd.xlane.f32.xlu0 %v2558_v3  ;;  %v12204_v2 = vld [vmem:[%s15590_s8 + $0xc] ss:$0 sm:$0xff] }
0x1364   :  { %12986 = vmatprep.mubr.msk.f32.mxu1 %vm14157_vm0, %v14156_v1  ;;  %12994 = vmatprep.subr.mxu1 %v14156_v1 }
0x1366   :  { %12987 = vmatmul.mubr.msk.f32.vlgmr.msra.gmra.mrb[28].mxu1 %vm99_vm3, %v2638_v4  ;;  %v12205_v4 = vld [vmem:[%s15590_s8 + $0xd] ss:$0 sm:$0xff] }
0x1367   :  { %12996 = vmatprep.mubr.msk.f32.mxu1 %vm14157_vm0, %v14156_v1  ;;  %12995 = vmatpush3.msra.mxu1 %v1919_v28  ;;  %v3130_v28 = vld [vmem:[%s15585_s3] sm:$0xff] }
0x1368   :  { %13745 = vmatprep.subr.bf16.mxu1 %v14158_v16 }
0x1379   :  { %2722 = vrot.lane.b32.xlu0 %v14456_v9, %s14168_s17 }
0x13f0   :  { %v2560_v8 = vpop.xlane.xlu0 %2559 }
0x13f1   :  { %13966 = vrcp.f32 %v2560_v8 }
0x13f4   :  { %v2723_v31 = vpop.permute.xlu0 %2722 }
0x13fb   :  { %v13967_v10 = vpop.eup %13966 }
0x1435   :  { %v2554_v12 = vpop.f32.mrb[26].mxu1 }
0x1436   :  { %v2562_v14 = vmul.f32 %v13967_v10, %v2554_v12  ;;  %v12978_v15 = vpop.f32.mrb[27].mxu1  ;;  %v3129_v10 = vld [vmem:[%s15584_s2] sm:$0xff]  ;;  %v2998_v12 = vld [vmem:[#allocation4 + $0x98] sm:$0xff] }
0x1438   :  { %12982 = vmatmul.mubr.msk.f32.vlgmr.msra.gmra.mrb[26].mxu0 %vm99_vm3, %v2562_v14  ;;  %v2999_v14 = vld [vmem:[#allocation4 + $0xb0] sm:$0xff] }
0x1439   :  { %12990 = vmatpush3.msra.mxu0 %v2723_v31  ;;  %v2711_v17 = vpop.f32.mrb[28].mxu1  ;;  %12991 = vmatprep.mubr.msk.f32.mxu0 %vm14157_vm0, %v14156_v1  ;;  %v13755_v15 = vpack.c.bf16 %v2999_v14, %v2998_v12  ;;  %v3271_v31 = vld [vmem:[%s15587_s5 + $0x10] sm:$0xf]  ;;  %v3666_v12 = vld [vmem:[#allocation2 + $0xa0] sm:$0xff]  ;;  %v3665_v14 = vld [vmem:[#allocation2 + $0x38] sm:$0xff] }
0x143a   :  { %v2715_v18 = vmul.f32 0.35355338, %v2711_v17  ;;  %v12988_v9 = vpop.f32.mrb[29].mxu1  ;;  %13739 = vmatprep.subr.bf16.mxu0 %v14158_v16  ;;  %v12206_v17 = vld [vmem:[%s15590_s8 + $0xa] ss:$0 sm:$0xff] }
0x143c   :  { %v2716_v19 = vsel %vm99_vm3, %v2715_v18, -inf }
0x143d   :  { %2717 = vmax.xlane.f32.xlu1 %v2716_v19 }
0x14ca   :  { %v2718_v20 = vpop.xlane.xlu1 %2717 }
0x14cb   :  { %v2719_v21 = vsub.f32 %v2715_v18, %v2718_v20 }
0x14cd   :  { %v2720_v22 = vmul.f32 1.442695, %v2719_v21  ;;  %v3349_v21 = vld [vmem:[%s15587_s5 + $0x14] sm:$0xf] }
0x14cf   :  { %13968 = vpow2.f32 %v2720_v22 }
0x14d9   :  { %v13969_v23 = vpop.eup %13968 }
0x14da   :  { %12992 = vmatmul.mubr.msk.f32.vlgmr.msra.gmra.mrb[28].mxu0 %vm99_vm3, %v13969_v23  ;;  %v2798_v24 = vsel %vm99_vm3, %v13969_v23, 0.0 }
0x14db   :  { %2799 = vadd.xlane.f32.xlu1 %v2798_v24  ;;  %13007 = vmatprep.mubr.msk.f32.mxu0 %vm14157_vm0, %v14156_v1 }
0x14dc   :  { %13741 = vmatpush3.bf16.msra.mxu0 %v13740_v50 }
0x14dd   :  { %13742 = vmatprep.subr.bf16.mxu0 %v14158_v16 }
0x14e0   :  { %13744 = vmatpush3.bf16.msra.mxu0 %v13743_v52 }
0x14e1   :  { %13029 = vmatprep.subr.mxu0 %v14156_v1 }
0x150b   :  { %v2632_v25 = vpop.f32.mrb[26].mxu0 }
0x150c   :  { %v2636_v26 = vadd.f32 %v2632_v25, %v2394_v54  ;;  %v12983_v27 = vpop.f32.mrb[27].mxu0  ;;  %v2994_v54 = vld [vmem:[#allocation4 + $0x38] sm:$0xff] }
0x150d   :  { %v13749_v57 = vpack.c.bf16 %v2995_v56, %v2994_v54  ;;  %v3505_v27 = vld [vmem:[%s15587_s5 + $0x1c] sm:$0xf] }
0x1568   :  { %v2800_v29 = vpop.xlane.xlu1 %2799 }
0x1569   :  { %13970 = vrcp.f32 %v2800_v29  ;;  %v3583_v29 = vld [vmem:[#allocation2 + $0x30] sm:$0xff] }
0x1573   :  { %v13971_v30 = vpop.eup %13970 }
0x15ad   :  { %v2794_v32 = vpop.f32.mrb[28].mxu0 }
0x15ae   :  { %v2802_v33 = vmul.f32 %v13971_v30, %v2794_v32  ;;  %v12993_v34 = vpop.f32.mrb[29].mxu0  ;;  %v3584_v30 = vld [vmem:[#allocation2 + $0x98] sm:$0xff] }
0x15af   :  { %v13758_v32 = vpack.c.bf16 %v3584_v30, %v3583_v29  ;;  %v3586_v34 = vld [vmem:[#allocation2 + $0x168] sm:$0xff] }
0x15b0   :  { %12997 = vmatmul.mubr.msk.f32.vlgmr.msra.gmra.mrb[30].mxu1 %vm99_vm3, %v2802_v33  ;;  %v3585_v33 = vld [vmem:[#allocation2 + $0x100] sm:$0xff] }
0x15b1   :  { %13026 = vmatprep.mubr.msk.f32.mxu1 %vm14157_vm0, %v14156_v1 }
0x1683   :  { %v2872_v36 = vpop.f32.mrb[30].mxu1 }
0x1684   :  { %v2876_v38 = vadd.f32 %v2872_v36, %v2636_v26  ;;  %v12998_v39 = vpop.f32.mrb[31].mxu1  ;;  %v3427_v26 = vld [vmem:[%s15587_s5 + $0x18] sm:$0xf]  ;;  %v13761_v36 = vpack.c.bf16 %v3586_v34, %v3585_v33 }
0x1686   :  { %v2882_v40 = vadd.f32 %v12203_v37, %v2876_v38 }
0x1688   :  { %v2883_v41 = vadd.f32 %v2882_v40, %v14447_v6  ;;  %v2992_v6 = vld [vmem:[#allocation4 + $0x8] sm:$0xff]  ;;  %v14100_v40 = vld [vmem:[%s15586_s4] sm:$0xff] }
0x1689   :  { %v13746_v55 = vpack.c.bf16 %v2993_v53, %v2992_v6 }
0x168a   :  { %v2886_v42 = vsel %vm570_vm7, %v2883_v41, 0.0 }
0x168b   :  { %2887 = vadd.xlane.f32.xlu1 %v2886_v42  ;;  %13747 = vmatpush3.bf16.msra.mxu1 %v13746_v55 }
0x168c   :  { %13748 = vmatprep.subr.bf16.mxu1 %v14158_v16 }
0x168f   :  { %13750 = vmatpush3.bf16.msra.mxu1 %v13749_v57 }
0x1690   :  { %13751 = vmatprep.subr.bf16.mxu1 %v14158_v16 }
0x1693   :  { %13753 = vmatpush3.bf16.msra.mxu1 %v13752_v60 }
0x1694   :  { %13754 = vmatprep.subr.bf16.mxu1 %v14158_v16 }
0x1697   :  { %13756 = vmatpush3.bf16.msra.mxu1 %v13755_v15 }
0x1698   :  { %13757 = vmatprep.subr.bf16.mxu1 %v14158_v16 }
0x1718   :  { %v2888_v43 = vpop.xlane.xlu1 %2887 }
0x1719   :  { %v2889_v44 = vmul.f32 0.03125, %v2888_v43  ;;  %v12224_v43 = vld [vmem:[%s15590_s8 + $0x10] ss:$0 sm:$0xff] }
0x171b   :  { %v2890_v45 = vsub.f32 %v2883_v41, %v2889_v44 }
0x171d   :  { %v2891_v46 = vmul.f32 %v2890_v45, %v2890_v45 }
0x171f   :  { %v2892_v47 = vsel %vm570_vm7, %v2891_v46, 0.0 }
0x1720   :  { %2893 = vadd.xlane.f32.xlu1 %v2892_v47 }
0x17ad   :  { %v2894_v61 = vpop.xlane.xlu1 %2893 }
0x17ae   :  { %v2895_v62 = vmul.f32 0.03125, %v2894_v61 }
0x17b0   :  { %v2896_v63 = vadd.f32 1e-05, %v2895_v62 }
0x17b2   :  { %13972 = vrsqrt.f32 %v2896_v63 }
0x17bc   :  { %v13973_v0 = vpop.eup %13972 }
0x17bd   :  { %v2898_v3 = vmul.f32 %v13973_v0, %v2890_v45 }
0x17bf   :  { %v2903_v7 = vmul.f32 %v12204_v2, %v2898_v3 }
0x17c1   :  { %v14558_v8 = vadd.f32 %v12205_v4, %v2903_v7 }
0x17c3   :  { %13008 = vmatmul.mubr.msk.f32.vlgmr.msra.gmra.mrb[30].mxu0 %vm570_vm7, %v14558_v8 }
0x17c4   :  { %13030 = vmatpush3.msra.mxu0 %v3129_v10  ;;  %13031 = vmatprep.mubr.msk.f32.mxu0 %vm14157_vm0, %v14156_v1 }
0x17c5   :  { %13034 = vmatprep.subr.mxu0 %v14156_v1 }
0x17c7   :  { %13032 = vmatmul.mubr.msk.f32.vlgmr.msra.gmra.mrb[32].mxu0 %vm99_vm3, %v14267_v13 }
0x17c8   :  { %13035 = vmatpush3.msra.mxu0 %v3129_v10  ;;  %13036 = vmatprep.mubr.msk.f32.mxu0 %vm14157_vm0, %v14156_v1 }
0x17c9   :  { %13039 = vmatprep.subr.mxu0 %v14156_v1 }
0x17cb   :  { %13037 = vmatmul.mubr.msk.f32.vlgmr.msra.gmra.mrb[34].mxu0 %vm99_vm3, %v14258_v11 }
0x17cc   :  { %13041 = vmatprep.mubr.msk.f32.mxu0 %vm14157_vm0, %v14156_v1  ;;  %13040 = vmatpush3.msk.msra.mxu0 %vm252_vm5, %v3271_v31 }
0x17cd   :  { %13044 = vmatprep.subr.mxu0 %v14156_v1 }
0x1896   :  { %v2987_v18 = vpop.f32.mrb[30].mxu0 }
0x1897   :  { %v2988_v9 = vadd.f32 %v12206_v17, %v2987_v18  ;;  %v13009_v19 = vpop.f32.mrb[31].mxu0 }
0x1899   :  { %v2991_v20 = vmax.f32 %v2988_v9, 0.0 }
0x189a   :  { %v3197_v22 = vpop.f32.mrb[32].mxu0 }
0x189b   :  { %13027 = vmatmul.mubr.msk.f32.vlgmr.msra.gmra.mrb[32].mxu1 %vm1734_vm8, %v2991_v20  ;;  %v13033_v23 = vpop.f32.mrb[33].mxu0  ;;  %13042 = vmatmul.mubr.msk.f32.vlgmr.msra.gmra.mrb[36].mxu0 %vm248_vm6, %v3197_v22 }
0x189c   :  { %13045 = vmatpush3.msk.msra.mxu0 %vm252_vm5, %v3349_v21  ;;  %13046 = vmatprep.mubr.msk.f32.mxu0 %vm14157_vm0, %v14156_v1 }
0x189d   :  { %13049 = vmatprep.subr.mxu0 %v14156_v1  ;;  %13067 = vmatprep.mubr.msk.f32.mxu1 %vm14157_vm0, %v14156_v1 }
0x189e   :  { %v3267_v24 = vpop.f32.mrb[34].mxu0  ;;  %13759 = vmatpush3.bf16.msra.mxu1 %v13758_v32 }
0x189f   :  { %v13038_v25 = vpop.f32.mrb[35].mxu0  ;;  %13760 = vmatprep.subr.bf16.mxu1 %v14158_v16 }
0x18a2   :  { %13762 = vmatpush3.bf16.msra.mxu1 %v13761_v36 }
0x18a3   :  { %13047 = vmatmul.mubr.msk.f32.vlgmr.msra.gmra.mrb[36].mxu0 %vm248_vm6, %v3129_v10  ;;  %13070 = vmatprep.subr.mxu1 %v14156_v1 }
0x18a4   :  { %13050 = vmatpush3.msk.msra.mxu0 %vm252_vm5, %v3427_v26  ;;  %13051 = vmatprep.mubr.msk.f32.mxu0 %vm14157_vm0, %v14156_v1 }
0x18a5   :  { %13054 = vmatprep.subr.mxu0 %v14156_v1 }
0x18ab   :  { %13052 = vmatmul.mubr.msk.f32.vlgmr.msra.gmra.mrb[36].mxu0 %vm248_vm6, %v3267_v24 }
0x18ac   :  { %13055 = vmatpush3.msk.msra.mxu0 %vm252_vm5, %v3505_v27  ;;  %13056 = vmatprep.mubr.msk.f32.mxu0 %vm14157_vm0, %v14156_v1 }
0x18ad   :  { %13080 = vmatprep.subr.mxu0 %v14156_v1 }
0x18b3   :  { %13057 = vmatmul.mubr.msk.f32.vlgmr.msra.gmra.mrb[36].mxu0 %vm248_vm6, %v3130_v28 }
0x18b4   :  { %13082 = vmatprep.mubr.msk.f32.mxu0 %vm14157_vm0, %v14156_v1 }
0x196e   :  { %v14621_v37 = vpop.f32.mrb[32].mxu1 }
0x196f   :  { %v13028_v38 = vpop.f32.mrb[33].mxu1 }
0x1986   :  { %v3578_v39 = vpop.f32.mrb[36].mxu0 }
0x1987   :  { %v14626_v41 = vadd.f32 %v14100_v40, %v3578_v39  ;;  %v13058_v42 = vpop.f32.mrb[37].mxu0 }
0x1989   :  { %13068 = vmatmul.mubr.msk.f32.vlgmr.msra.gmra.mrb[34].mxu1 %vm570_vm7, %v14626_v41 }
0x198a   :  { %13072 = vmatprep.mubr.msk.f32.mxu1 %vm14157_vm0, %v14156_v1 }
0x1a5c   :  { %v3661_v44 = vpop.f32.mrb[34].mxu1 }
0x1a5d   :  { %v14635_v45 = vadd.f32 %v12224_v43, %v3661_v44  ;;  %v13069_v46 = vpop.f32.mrb[35].mxu1 }
0x1a5f   :  { %3838 = vrot.lane.b32.xlu1 %v14635_v45, %s14161_s6  ;;  %3671 = vrot.lane.b32.xlu0 %v14635_v45, %s14160_s12 }
0x1a63   :  { %3836 = vrot.lane.b32.xlu0 %v14635_v45, %s14159_s11 }
0x1ad1   :  { %v3839_v47 = vpop.permute.xlu1 %3838  ;;  %v3672_v48 = vpop.permute.xlu0 %3671 }
0x1ad2   :  { %13071 = vmatpush3.xpose.msk.msra.mxu1 %vm99_vm3, %v3672_v48  ;;  %13081 = vmatpush3.xpose.msk.msra.mxu0 %vm99_vm3, %v3839_v47 }
0x1ad3   :  { %13075 = vmatprep.subr.mxu1 %v14156_v1  ;;  %13090 = vmatprep.subr.mxu0 %v14156_v1 }
0x1ad5   :  { %13073 = vmatmul.mubr.msk.f32.vlgmr.msra.gmra.mrb[36].mxu1 %vm99_vm3, %v14635_v45  ;;  %v3837_v49 = vpop.permute.xlu0 %3836 }
0x1ad6   :  { %13083 = vmatmul.mubr.msk.f32.vlgmr.msra.gmra.mrb[38].mxu0 %vm99_vm3, %v3837_v49  ;;  %13077 = vmatprep.mubr.msk.f32.mxu1 %vm14157_vm0, %v14156_v1  ;;  %v3667_v49 = vld [vmem:[#allocation2 + $0x108] sm:$0xff] }
0x1ad7   :  { %13092 = vmatprep.mubr.msk.f32.mxu0 %vm14157_vm0, %v14156_v1  ;;  %13091 = vmatpush3.msra.mxu0 %v3666_v12  ;;  %v3668_v12 = vld [vmem:[#allocation2 + $0x170] sm:$0xff] }
0x1ad8   :  { %13100 = vmatprep.subr.mxu0 %v14156_v1 }
0x1ba8   :  { %v3743_v50 = vpop.f32.mrb[36].mxu1 }
0x1ba9   :  { %v3747_v51 = vmul.f32 0.35355338, %v3743_v50  ;;  %v13074_v35 = vpop.f32.mrb[37].mxu1  ;;  %v3910_v52 = vpop.f32.mrb[38].mxu0 }
0x1baa   :  { %v3914_v6 = vmul.f32 0.35355338, %v3910_v52  ;;  %v13084_v53 = vpop.f32.mrb[39].mxu0 }
0x1bab   :  { %v3748_v54 = vsel %vm14250_vm1, %v3747_v51, -1e+30 }
0x1bac   :  { %v3749_v55 = vsel %vm99_vm3, %v3748_v54, -inf  ;;  %v3915_v56 = vsel %vm14250_vm1, %v3914_v6, -1e+30 }
0x1bad   :  { %3750 = vmax.xlane.f32.xlu0 %v3749_v55  ;;  %v3916_v57 = vsel %vm99_vm3, %v3915_v56, -inf }
0x1bae   :  { %3917 = vmax.xlane.f32.xlu1 %v3916_v57 }
0x1bbf   :  { %3922 = vrot.lane.b32.xlu1 %v14635_v45, %s14162_s10 }
0x1bc3   :  { %3755 = vrot.lane.b32.xlu0 %v14635_v45, %s14163_s13  ;;  %4151 = vrot.lane.b32.xlu1 %v14635_v45, %s14164_s14 }
0x1bc7   :  { %4149 = vrot.lane.b32.xlu1 %v14635_v45, %s14165_s7 }
0x1c3a   :  { %v3751_v58 = vpop.xlane.xlu0 %3750 }
0x1c3b   :  { %v3752_v59 = vsub.f32 %v3748_v54, %v3751_v58  ;;  %v3918_v60 = vpop.xlane.xlu1 %3917 }
0x1c3c   :  { %v3919_v61 = vsub.f32 %v3915_v56, %v3918_v60 }
0x1c3d   :  { %v3753_v62 = vmul.f32 1.442695, %v3752_v59 }
0x1c3e   :  { %v3920_v63 = vmul.f32 1.442695, %v3919_v61  ;;  %v3756_v0 = vpop.permute.xlu0 %3755  ;;  %v12208_v61 = vld [vmem:[%s15590_s8 + $0xb] ss:$0 sm:$0xff] }
0x1c3f   :  { %13974 = vpow2.f32 %v3753_v62  ;;  %13076 = vmatpush3.msra.mxu1 %v3756_v0  ;;  %v3923_v4 = vpop.permute.xlu1 %3922  ;;  %v3075_v62 = vadd.f32 %v12208_v61, %v14621_v37  ;;  %v4665_v61 = vld [vmem:[#allocation2 + $0x110] sm:$0xff] }
0x1c40   :  { %13976 = vpow2.f32 %v3920_v63  ;;  %13085 = vmatprep.subr.mxu1 %v14156_v1 }
0x1c43   :  { %v4152_v15 = vpop.permute.xlu1 %4151 }
0x1c47   :  { %v4150_v31 = vpop.permute.xlu1 %4149 }
0x1c49   :  { %v13975_v2 = vpop.eup %13974 }
0x1c4a   :  { %v13977_v3 = vpop.eup %13976  ;;  %13078 = vmatmul.mubr.msk.f32.vlgmr.msra.gmra.mrb[38].mxu1 %vm99_vm3, %v13975_v2  ;;  %v3831_v7 = vsel %vm99_vm3, %v13975_v2, 0.0  ;;  %v3078_v2 = vadd.f32 %v3075_v62, %v14558_v8  ;;  %v4666_v62 = vld [vmem:[#allocation2 + $0x178] sm:$0xff] }
0x1c4b   :  { %13086 = vmatpush3.msra.mxu1 %v3923_v4  ;;  %3832 = vadd.xlane.f32.xlu1 %v3831_v7  ;;  %v3998_v10 = vsel %vm99_vm3, %v13977_v3, 0.0 }
0x1c4c   :  { %3999 = vadd.xlane.f32.xlu0 %v3998_v10  ;;  %13087 = vmatprep.mubr.msk.f32.mxu1 %vm14157_vm0, %v14156_v1 }
0x1c4d   :  { %13095 = vmatprep.subr.mxu1 %v14156_v1 }
0x1c4e   :  { %13088 = vmatmul.mubr.msk.f32.vlgmr.msra.gmra.mrb[40].mxu1 %vm99_vm3, %v13977_v3  ;;  %v3081_v3 = vsel %vm570_vm7, %v3078_v2, 0.0 }
0x1c4f   :  { %13097 = vmatprep.mubr.msk.f32.mxu1 %vm14157_vm0, %v14156_v1  ;;  %13096 = vmatpush3.msra.mxu1 %v3665_v14 }
0x1c50   :  { %13105 = vmatprep.subr.mxu1 %v14156_v1 }
0x1c5c   :  { %4392 = vrot.lane.b32.xlu1 %v14635_v45, %s14167_s16 }
0x1cd8   :  { %v3833_v17 = vpop.xlane.xlu1 %3832 }
0x1cd9   :  { %13978 = vrcp.f32 %v3833_v17  ;;  %v4000_v18 = vpop.xlane.xlu0 %3999 }
0x1cda   :  { %13980 = vrcp.f32 %v4000_v18 }
0x1cdc   :  { %v4393_v46 = vpop.permute.xlu1 %4392 }
0x1ce3   :  { %v13979_v9 = vpop.eup %13978 }
0x1ce4   :  { %v13981_v22 = vpop.eup %13980 }
0x1d1d   :  { %v3827_v19 = vpop.f32.mrb[38].mxu1 }
0x1d1e   :  { %v3835_v20 = vmul.f32 %v13979_v9, %v3827_v19  ;;  %v13079_v21 = vpop.f32.mrb[39].mxu1 }
0x1d20   :  { %13098 = vmatmul.mubr.msk.f32.vlgmr.msra.gmra.mrb[42].mxu1 %vm99_vm3, %v3835_v20 }
0x1d21   :  { %v3994_v23 = vpop.f32.mrb[40].mxu1  ;;  %13107 = vmatprep.mubr.msk.f32.mxu1 %vm14157_vm0, %v14156_v1 }
0x1d22   :  { %v4002_v24 = vmul.f32 %v13981_v22, %v3994_v23  ;;  %v13089_v25 = vpop.f32.mrb[41].mxu1 }
0x1d23   :  { %v12210_v25 = vld [vmem:[%s15590_s8 + $0xe] ss:$0 sm:$0xff] }
0x1d24   :  { %13093 = vmatmul.mubr.msk.f32.vlgmr.msra.gmra.mrb[40].mxu0 %vm99_vm3, %v4002_v24 }
0x1d25   :  { %13101 = vmatpush3.xpose.msk.msra.mxu0 %vm99_vm3, %v4152_v15  ;;  %13102 = vmatprep.mubr.msk.f32.mxu0 %vm14157_vm0, %v14156_v1 }
0x1d26   :  { %13110 = vmatprep.subr.mxu0 %v14156_v1 }
0x1d28   :  { %13103 = vmatmul.mubr.msk.f32.vlgmr.msra.gmra.mrb[42].mxu0 %vm99_vm3, %v4150_v31 }
0x1d29   :  { %13112 = vmatprep.mubr.msk.f32.mxu0 %vm14157_vm0, %v14156_v1  ;;  %13111 = vmatpush3.msra.mxu0 %v3667_v49  ;;  %v4746_v49 = vld [vmem:[#allocation2 + $0xb0] sm:$0xff] }
0x1d2a   :  { %13120 = vmatprep.subr.mxu0 %v14156_v1 }
0x1df3   :  { %v4145_v26 = vpop.f32.mrb[42].mxu1 }
0x1df4   :  { %v13099_v27 = vpop.f32.mrb[43].mxu1 }
0x1df5   :  { %v12211_v27 = vld [vmem:[%s15590_s8 + $0xf] ss:$0 sm:$0xff] }
0x1df7   :  { %v4072_v28 = vpop.f32.mrb[40].mxu0 }
0x1df8   :  { %v14693_v29 = vadd.f32 %v4145_v26, %v4072_v28  ;;  %v13094_v30 = vpop.f32.mrb[41].mxu0 }
0x1dfb   :  { %v4223_v32 = vpop.f32.mrb[42].mxu0 }
0x1dfc   :  { %v4227_v33 = vmul.f32 0.35355338, %v4223_v32  ;;  %v13104_v34 = vpop.f32.mrb[43].mxu0 }
0x1dfe   :  { %v4228_v36 = vsel %vm14250_vm1, %v4227_v33, -1e+30  ;;  %v12242_v33 = vld [vmem:[%s15590_s8 + $0x11] ss:$0 sm:$0xff] }
0x1dff   :  { %v4229_v38 = vsel %vm99_vm3, %v4228_v36, -inf }
0x1e00   :  { %4230 = vmax.xlane.f32.xlu0 %v4229_v38 }
0x1e16   :  { %4235 = vrot.lane.b32.xlu0 %v14635_v45, %s14166_s15 }
0x1e1a   :  { %4390 = vrot.lane.b32.xlu0 %v14635_v45, %s14152_s20 }
0x1e8d   :  { %v4231_v39 = vpop.xlane.xlu0 %4230 }
0x1e8e   :  { %v4232_v40 = vsub.f32 %v4228_v36, %v4231_v39 }
0x1e90   :  { %v4233_v42 = vmul.f32 1.442695, %v4232_v40 }
0x1e91   :  { %v4236_v43 = vpop.permute.xlu0 %4235 }
0x1e92   :  { %13982 = vpow2.f32 %v4233_v42  ;;  %13106 = vmatpush3.msra.mxu1 %v4236_v43 }
0x1e93   :  { %13115 = vmatprep.subr.mxu1 %v14156_v1 }
0x1e95   :  { %v4391_v48 = vpop.permute.xlu0 %4390 }
0x1e9c   :  { %v13983_v44 = vpop.eup %13982 }
0x1e9d   :  { %13108 = vmatmul.mubr.msk.f32.vlgmr.msra.gmra.mrb[44].mxu1 %vm99_vm3, %v13983_v44  ;;  %v4311_v47 = vsel %vm99_vm3, %v13983_v44, 0.0 }
0x1e9e   :  { %13116 = vmatpush3.xpose.msk.msra.mxu1 %vm99_vm3, %v4393_v46  ;;  %4312 = vadd.xlane.f32.xlu0 %v4311_v47 }
0x1e9f   :  { %13117 = vmatprep.mubr.msk.f32.mxu1 %vm14157_vm0, %v14156_v1  ;;  %13125 = vmatprep.subr.mxu1 %v14156_v1 }
0x1ea1   :  { %13118 = vmatmul.mubr.msk.f32.vlgmr.msra.gmra.mrb[46].mxu1 %vm99_vm3, %v4391_v48  ;;  %v4745_v48 = vld [vmem:[#allocation2 + $0x48] sm:$0xff] }
0x1ea2   :  { %13127 = vmatprep.mubr.msk.f32.mxu1 %vm14157_vm0, %v14156_v1  ;;  %13126 = vmatpush3.msra.mxu1 %v3668_v12 }
0x1ea3   :  { %13769 = vmatprep.subr.bf16.mxu1 %v14158_v16 }
0x1eb4   :  { %4476 = vrot.lane.b32.xlu0 %v14635_v45, %s14168_s17 }
0x1f2b   :  { %v4313_v50 = vpop.xlane.xlu0 %4312 }
0x1f2c   :  { %13984 = vrcp.f32 %v4313_v50  ;;  %v13770_v50 = vpack.c.bf16 %v4746_v49, %v4745_v48 }
0x1f2f   :  { %v4477_v53 = vpop.permute.xlu0 %4476 }
0x1f36   :  { %v13985_v51 = vpop.eup %13984 }
0x1f70   :  { %v4307_v35 = vpop.f32.mrb[44].mxu1 }
0x1f71   :  { %v4315_v52 = vmul.f32 %v13985_v51, %v4307_v35  ;;  %v13109_v6 = vpop.f32.mrb[45].mxu1  ;;  %v4747_v51 = vld [vmem:[#allocation2 + $0x118] sm:$0xff]  ;;  %v4748_v35 = vld [vmem:[#allocation2 + $0x180] sm:$0xff] }
0x1f73   :  { %13113 = vmatmul.mubr.msk.f32.vlgmr.msra.gmra.mrb[44].mxu0 %vm99_vm3, %v4315_v52  ;;  %v13773_v52 = vpack.c.bf16 %v4748_v35, %v4747_v51  ;;  %v4827_v35 = vld [vmem:[#allocation2 + $0x50] sm:$0xff] }
0x1f74   :  { %13121 = vmatpush3.msra.mxu0 %v4477_v53  ;;  %v4464_v54 = vpop.f32.mrb[46].mxu1  ;;  %13122 = vmatprep.mubr.msk.f32.mxu0 %vm14157_vm0, %v14156_v1 }
0x1f75   :  { %v4468_v55 = vmul.f32 0.35355338, %v4464_v54  ;;  %v13119_v45 = vpop.f32.mrb[47].mxu1  ;;  %13763 = vmatprep.subr.bf16.mxu0 %v14158_v16 }
0x1f77   :  { %v4469_v56 = vsel %vm14250_vm1, %v4468_v55, -1e+30 }
0x1f78   :  { %v4470_v57 = vsel %vm99_vm3, %v4469_v56, -inf }
0x1f79   :  { %4471 = vmax.xlane.f32.xlu1 %v4470_v57  ;;  %v4664_v57 = vld [vmem:[#allocation2 + $0xa8] sm:$0xff] }
0x2006   :  { %v4472_v58 = vpop.xlane.xlu1 %4471 }
0x2007   :  { %v4473_v59 = vsub.f32 %v4469_v56, %v4472_v58  ;;  %v4663_v56 = vld [vmem:[#allocation2 + $0x40] sm:$0xff] }
0x2009   :  { %v4474_v60 = vmul.f32 1.442695, %v4473_v59  ;;  %v13764_v59 = vpack.c.bf16 %v4664_v57, %v4663_v56 }
0x200b   :  { %13986 = vpow2.f32 %v4474_v60 }
0x2015   :  { %v13987_v63 = vpop.eup %13986 }
0x2016   :  { %13123 = vmatmul.mubr.msk.f32.vlgmr.msra.gmra.mrb[46].mxu0 %vm99_vm3, %v13987_v63  ;;  %v4552_v0 = vsel %vm99_vm3, %v13987_v63, 0.0  ;;  %v13767_v63 = vpack.c.bf16 %v4666_v62, %v4665_v61 }
0x2017   :  { %4553 = vadd.xlane.f32.xlu1 %v4552_v0  ;;  %13138 = vmatprep.mubr.msk.f32.mxu0 %vm14157_vm0, %v14156_v1 }
0x2018   :  { %13765 = vmatpush3.bf16.msra.mxu0 %v13764_v59 }
0x2019   :  { %13766 = vmatprep.subr.bf16.mxu0 %v14158_v16 }
0x201b   :  { %3082 = vadd.xlane.f32.xlu1 %v3081_v3 }
0x201c   :  { %13768 = vmatpush3.bf16.msra.mxu0 %v13767_v63 }
0x201d   :  { %13152 = vmatprep.subr.mxu0 %v14156_v1 }
0x2046   :  { %v4385_v4 = vpop.f32.mrb[44].mxu0 }
0x2047   :  { %v4389_v7 = vadd.f32 %v4385_v4, %v14693_v29  ;;  %v13114_v10 = vpop.f32.mrb[45].mxu0  ;;  %v12213_v4 = vld [vmem:[%s15590_s8 + $0x1e] ss:$0 sm:$0xff] }
0x20a4   :  { %v4554_v37 = vpop.xlane.xlu1 %4553 }
0x20a5   :  { %13988 = vrcp.f32 %v4554_v37 }
0x20a8   :  { %v3083_v14 = vpop.xlane.xlu1 %3082 }
0x20a9   :  { %v3084_v15 = vmul.f32 0.03125, %v3083_v14 }
0x20ab   :  { %v3085_v31 = vsub.f32 %v3078_v2, %v3084_v15  ;;  %v12212_v2 = vld [vmem:[%s15590_s8 + $0x1d] ss:$0 sm:$0xff] }
0x20ad   :  { %v3086_v8 = vmul.f32 %v3085_v31, %v3085_v31 }
0x20af   :  { %v3087_v17 = vsel %vm570_vm7, %v3086_v8, 0.0  ;;  %v13989_v18 = vpop.eup %13988 }
0x20b0   :  { %3088 = vadd.xlane.f32.xlu0 %v3087_v17  ;;  %v12244_v17 = vld [vmem:[%s15590_s8 + $0x18] ss:$0 sm:$0xff] }
0x20e9   :  { %v4548_v9 = vpop.f32.mrb[46].mxu0 }
0x20ea   :  { %v4556_v19 = vmul.f32 %v13989_v18, %v4548_v9  ;;  %v13124_v20 = vpop.f32.mrb[47].mxu0 }
0x20ec   :  { %13128 = vmatmul.mubr.msk.f32.vlgmr.msra.gmra.mrb[48].mxu1 %vm99_vm3, %v4556_v19  ;;  %v12247_v19 = vld [vmem:[%s15590_s8 + $0x13] ss:$0 sm:$0xff] }
0x20ed   :  { %13149 = vmatprep.mubr.msk.f32.mxu1 %vm14157_vm0, %v14156_v1  ;;  %13771 = vmatpush3.bf16.msra.mxu1 %v13770_v50 }
0x20ee   :  { %13772 = vmatprep.subr.bf16.mxu1 %v14158_v16 }
0x20f1   :  { %13774 = vmatpush3.bf16.msra.mxu1 %v13773_v52 }
0x20f2   :  { %13157 = vmatprep.subr.mxu1 %v14156_v1 }
0x213d   :  { %v3089_v21 = vpop.xlane.xlu0 %3088 }
0x213e   :  { %v3090_v22 = vmul.f32 0.03125, %v3089_v21 }
0x2140   :  { %v3091_v23 = vadd.f32 1e-05, %v3090_v22 }
0x2142   :  { %13990 = vrsqrt.f32 %v3091_v23  ;;  %v12245_v23 = vld [vmem:[%s15590_s8 + $0x12] ss:$0 sm:$0xff] }
0x214c   :  { %v13991_v24 = vpop.eup %13990 }
0x214d   :  { %v3093_v26 = vmul.f32 %v13991_v24, %v3085_v31  ;;  %v12243_v31 = vld [vmem:[%s15590_s8 + $0x17] ss:$0 sm:$0xff] }
0x214f   :  { %v3098_v28 = vmul.f32 %v12210_v25, %v3093_v26 }
0x2151   :  { %v3103_v29 = vadd.f32 %v12211_v27, %v3098_v28 }
0x2153   :  { %v3106_v30 = vsel %vm570_vm7, %v3103_v29, 0.0 }
0x2154   :  { %3107 = vadd.xlane.f32.xlu1 %v3106_v30 }
0x21bf   :  { %v4626_v32 = vpop.f32.mrb[48].mxu1 }
0x21c0   :  { %v4630_v34 = vadd.f32 %v4626_v32, %v4389_v7  ;;  %v13129_v36 = vpop.f32.mrb[49].mxu1 }
0x21c2   :  { %v4636_v38 = vadd.f32 %v12242_v33, %v4630_v34 }
0x21c4   :  { %v4637_v39 = vadd.f32 %v14626_v41, %v4636_v38 }
0x21c6   :  { %v4640_v40 = vsel %vm570_vm7, %v4637_v39, 0.0 }
0x21c7   :  { %4641 = vadd.xlane.f32.xlu1 %v4640_v40 }
0x21e1   :  { %v3108_v42 = vpop.xlane.xlu1 %3107 }
0x21e2   :  { %v3109_v43 = vmul.f32 0.03125, %v3108_v42 }
0x21e4   :  { %v3110_v44 = vsub.f32 %v3103_v29, %v3109_v43 }
0x21e6   :  { %v3111_v46 = vmul.f32 %v3110_v44, %v3110_v44 }
0x21e8   :  { %v3112_v47 = vsel %vm570_vm7, %v3111_v46, 0.0 }
0x21e9   :  { %3113 = vadd.xlane.f32.xlu1 %v3112_v47 }
0x2254   :  { %v4642_v41 = vpop.xlane.xlu1 %4641 }
0x2255   :  { %v4643_v6 = vmul.f32 0.03125, %v4642_v41 }
0x2257   :  { %v4644_v53 = vsub.f32 %v4637_v39, %v4643_v6  ;;  %v4828_v6 = vld [vmem:[#allocation2 + $0xb8] sm:$0xff] }
0x2259   :  { %v4645_v54 = vmul.f32 %v4644_v53, %v4644_v53 }
0x225b   :  { %v4646_v55 = vsel %vm570_vm7, %v4645_v54, 0.0 }
0x225c   :  { %4647 = vadd.xlane.f32.xlu1 %v4646_v55 }
0x2276   :  { %v3114_v45 = vpop.xlane.xlu1 %3113 }
0x2277   :  { %v3115_v58 = vmul.f32 0.03125, %v3114_v45 }
0x2279   :  { %v3116_v60 = vadd.f32 1e-05, %v3115_v58 }
0x227b   :  { %13992 = vrsqrt.f32 %v3116_v60 }
0x2285   :  { %v13993_v0 = vpop.eup %13992 }
0x2286   :  { %v3118_v3 = vmul.f32 %v13993_v0, %v3110_v44 }
0x2288   :  { %v3123_v7 = vmul.f32 %v12212_v2, %v3118_v3 }
0x228a   :  { %v3128_v10 = vadd.f32 %v12213_v4, %v3123_v7 }
0x228c   :  { %13150 = vmatmul.mubr.msk.f32.vlgmr.msra.gmra.mrb[50].mxu1 %vm570_vm7, %v3128_v10 }
0x228d   :  { %13159 = vmatprep.mubr.msk.f32.mxu1 %vm14157_vm0, %v14156_v1 }
0x22e9   :  { %v4648_v12 = vpop.xlane.xlu1 %4647 }
0x22ea   :  { %v4649_v37 = vmul.f32 0.03125, %v4648_v12 }
0x22ec   :  { %v4650_v14 = vadd.f32 1e-05, %v4649_v37 }
0x22ee   :  { %13994 = vrsqrt.f32 %v4650_v14 }
0x22f8   :  { %v13995_v15 = vpop.eup %13994 }
0x22f9   :  { %v4652_v8 = vmul.f32 %v13995_v15, %v4644_v53 }
0x22fb   :  { %v4657_v18 = vmul.f32 %v12243_v31, %v4652_v8 }
0x22fd   :  { %v14771_v9 = vadd.f32 %v12244_v17, %v4657_v18 }
0x22ff   :  { %13139 = vmatmul.mubr.msk.f32.vlgmr.msra.gmra.mrb[48].mxu0 %vm570_vm7, %v14771_v9 }
0x2300   :  { %13154 = vmatprep.mubr.msk.f32.mxu0 %vm14157_vm0, %v14156_v1 }
0x235f   :  { %v4823_v20 = vpop.f32.mrb[50].mxu1 }
0x2360   :  { %v14780_v21 = vadd.f32 %v12247_v19, %v4823_v20  ;;  %v13151_v22 = vpop.f32.mrb[51].mxu1 }
0x2362   :  { %4997 = vrot.lane.b32.xlu1 %v14780_v21, %s14159_s11  ;;  %13153 = vmatpush3.xpose.msk.msra.mxu0 %vm99_vm3, %v14780_v21 }
0x2363   :  { %13162 = vmatprep.subr.mxu0 %v14156_v1 }
0x23d2   :  { %v4741_v24 = vpop.f32.mrb[48].mxu0 }
0x23d3   :  { %v14790_v25 = vadd.f32 %v12245_v23, %v4741_v24  ;;  %v13140_v26 = vpop.f32.mrb[49].mxu0  ;;  %v4829_v23 = vld [vmem:[#allocation2 + $0x120] sm:$0xff] }
0x23d4   :  { %v4998_v27 = vpop.permute.xlu1 %4997 }
0x23d5   :  { %4995 = vrot.lane.b32.xlu0 %v14790_v25, %s14159_s11  ;;  %13155 = vmatmul.mubr.msk.f32.vlgmr.msra.gmra.mrb[50].mxu0 %vm99_vm3, %v14790_v25 }
0x23d6   :  { %13163 = vmatpush3.xpose.msk.msra.mxu0 %vm99_vm3, %v4998_v27  ;;  %13164 = vmatprep.mubr.msk.f32.mxu0 %vm14157_vm0, %v14156_v1 }
0x23d7   :  { %13172 = vmatprep.subr.mxu0 %v14156_v1 }
0x2447   :  { %v4996_v28 = vpop.permute.xlu0 %4995 }
0x2448   :  { %13165 = vmatmul.mubr.msk.f32.vlgmr.msra.gmra.mrb[52].mxu0 %vm99_vm3, %v4996_v28 }
0x2449   :  { %13174 = vmatprep.mubr.msk.f32.mxu0 %vm14157_vm0, %v14156_v1  ;;  %13173 = vmatpush3.msra.mxu0 %v4828_v6 }
0x244a   :  { %13182 = vmatprep.subr.mxu0 %v14156_v1 }
0x24a8   :  { %v4903_v29 = vpop.f32.mrb[50].mxu0 }
0x24a9   :  { %v4907_v30 = vmul.f32 0.35355338, %v4903_v29  ;;  %v13156_v32 = vpop.f32.mrb[51].mxu0 }
0x24ab   :  { %v4908_v33 = vsel %vm99_vm3, %v4907_v30, -inf }
0x24ac   :  { %4909 = vmax.xlane.f32.xlu1 %v4908_v33 }
0x24bd   :  { %4914 = vrot.lane.b32.xlu1 %v14780_v21, %s14160_s12 }
0x251b   :  { %v5069_v34 = vpop.f32.mrb[52].mxu0 }
0x251c   :  { %v5073_v36 = vmul.f32 0.35355338, %v5069_v34  ;;  %v13166_v38 = vpop.f32.mrb[53].mxu0 }
0x251e   :  { %v5074_v39 = vsel %vm99_vm3, %v5073_v36, -inf }
0x251f   :  { %5075 = vmax.xlane.f32.xlu0 %v5074_v39 }
0x2535   :  { %5080 = vrot.lane.b32.xlu0 %v14780_v21, %s14161_s6 }
0x2539   :  { %v4910_v40 = vpop.xlane.xlu1 %4909  ;;  %5309 = vrot.lane.b32.xlu0 %v14780_v21, %s14165_s7 }
0x253a   :  { %v4911_v42 = vsub.f32 %v4907_v30, %v4910_v40 }
0x253c   :  { %v4912_v43 = vmul.f32 1.442695, %v4911_v42 }
0x253d   :  { %v4915_v44 = vpop.permute.xlu1 %4914  ;;  %5307 = vrot.lane.b32.xlu0 %v14790_v25, %s14165_s7 }
0x253e   :  { %13996 = vpow2.f32 %v4912_v43  ;;  %13158 = vmatpush3.msra.mxu1 %v4915_v44 }
0x253f   :  { %13167 = vmatprep.subr.mxu1 %v14156_v1 }
0x2548   :  { %v13997_v46 = vpop.eup %13996 }
0x2549   :  { %13160 = vmatmul.mubr.msk.f32.vlgmr.msra.gmra.mrb[52].mxu1 %vm99_vm3, %v13997_v46  ;;  %v4990_v47 = vsel %vm99_vm3, %v13997_v46, 0.0  ;;  %v4830_v46 = vld [vmem:[#allocation2 + $0x188] sm:$0xff] }
0x254a   :  { %13169 = vmatprep.mubr.msk.f32.mxu1 %vm14157_vm0, %v14156_v1 }
0x255c   :  { %4991 = vadd.xlane.f32.xlu0 %v4990_v47 }
0x2572   :  { %5549 = vrot.lane.b32.xlu0 %v14780_v21, %s14152_s20 }
0x25ac   :  { %v5076_v48 = vpop.xlane.xlu0 %5075 }
0x25ad   :  { %v5077_v49 = vsub.f32 %v5073_v36, %v5076_v48 }
0x25af   :  { %v5078_v50 = vmul.f32 1.442695, %v5077_v49 }
0x25b0   :  { %v5081_v51 = vpop.permute.xlu0 %5080 }
0x25b1   :  { %13998 = vpow2.f32 %v5078_v50  ;;  %13168 = vmatpush3.msra.mxu1 %v5081_v51 }
0x25b2   :  { %13177 = vmatprep.subr.mxu1 %v14156_v1 }
0x25b4   :  { %v5310_v53 = vpop.permute.xlu0 %5309 }
0x25b8   :  { %v5308_v54 = vpop.permute.xlu0 %5307 }
0x25bb   :  { %v13999_v52 = vpop.eup %13998 }
0x25bc   :  { %13170 = vmatmul.mubr.msk.f32.vlgmr.msra.gmra.mrb[54].mxu1 %vm99_vm3, %v13999_v52  ;;  %v5156_v41 = vsel %vm99_vm3, %v13999_v52, 0.0  ;;  %v12265_v52 = vld [vmem:[%s15590_s8 + $0x14] ss:$0 sm:$0xff] }
0x25bd   :  { %5157 = vadd.xlane.f32.xlu1 %v5156_v41  ;;  %13178 = vmatpush3.msra.mxu1 %v4827_v35 }
0x25be   :  { %13179 = vmatprep.mubr.msk.f32.mxu1 %vm14157_vm0, %v14156_v1  ;;  %13187 = vmatprep.subr.mxu1 %v14156_v1 }
0x25ce   :  { %5392 = vrot.lane.b32.xlu1 %v14780_v21, %s14164_s14 }
0x25e9   :  { %v4992_v55 = vpop.xlane.xlu0 %4991 }
0x25ea   :  { %14000 = vrcp.f32 %v4992_v55 }
0x25ed   :  { %v5550_v19 = vpop.permute.xlu0 %5549 }
0x25f4   :  { %v14001_v45 = vpop.eup %14000 }
0x261c   :  { %v4986_v56 = vpop.f32.mrb[52].mxu1 }
0x261d   :  { %v4994_v57 = vmul.f32 %v14001_v45, %v4986_v56  ;;  %v13161_v58 = vpop.f32.mrb[53].mxu1 }
0x261f   :  { %13180 = vmatmul.mubr.msk.f32.vlgmr.msra.gmra.mrb[56].mxu1 %vm99_vm3, %v4994_v57 }
0x2620   :  { %13189 = vmatprep.mubr.msk.f32.mxu1 %vm14157_vm0, %v14156_v1 }
0x264a   :  { %v5158_v59 = vpop.xlane.xlu1 %5157 }
0x264b   :  { %14002 = vrcp.f32 %v5158_v59 }
0x264e   :  { %v5393_v60 = vpop.permute.xlu1 %5392 }
0x264f   :  { %13188 = vmatpush3.msra.mxu1 %v5393_v60  ;;  %v5819_v60 = vld [vmem:[#allocation2 + $0x58] sm:$0xff] }
0x2650   :  { %13197 = vmatprep.subr.mxu1 %v14156_v1 }
0x2655   :  { %v14003_v61 = vpop.eup %14002 }
0x268f   :  { %v5152_v62 = vpop.f32.mrb[54].mxu1 }
0x2690   :  { %v5160_v63 = vmul.f32 %v14003_v61, %v5152_v62  ;;  %v13171_v0 = vpop.f32.mrb[55].mxu1  ;;  %v5820_v61 = vld [vmem:[#allocation2 + $0xc0] sm:$0xff] }
0x2691   :  { %v13776_v62 = vpack.c.bf16 %v5820_v61, %v5819_v60  ;;  %v5822_v0 = vld [vmem:[#allocation2 + $0x190] sm:$0xff]  ;;  %v6040_v60 = vld [vmem:[#allocation2 + $0xc8] sm:$0xff] }
0x2692   :  { %13175 = vmatmul.mubr.msk.f32.vlgmr.msra.gmra.mrb[54].mxu0 %vm99_vm3, %v5160_v63  ;;  %v5821_v63 = vld [vmem:[#allocation2 + $0x128] sm:$0xff] }
0x2693   :  { %13183 = vmatpush3.xpose.msk.msra.mxu0 %vm99_vm3, %v5310_v53  ;;  %13184 = vmatprep.mubr.msk.f32.mxu0 %vm14157_vm0, %v14156_v1 }
0x2694   :  { %13192 = vmatprep.subr.mxu0 %v14156_v1 }
0x2696   :  { %13185 = vmatmul.mubr.msk.f32.vlgmr.msra.gmra.mrb[56].mxu0 %vm99_vm3, %v5308_v54 }
0x2697   :  { %13194 = vmatprep.mubr.msk.f32.mxu0 %vm14157_vm0, %v14156_v1  ;;  %13193 = vmatpush3.msra.mxu0 %v4829_v23 }
0x2698   :  { %13202 = vmatprep.subr.mxu0 %v14156_v1 }
0x26f2   :  { %v5303_v2 = vpop.f32.mrb[56].mxu1 }
0x26f3   :  { %v13181_v3 = vpop.f32.mrb[57].mxu1 }
0x26f4   :  { %v5903_v3 = vld [vmem:[#allocation4 + $0x28] sm:$0xff] }
0x2765   :  { %v5230_v4 = vpop.f32.mrb[54].mxu0 }
0x2766   :  { %v5304_v7 = vadd.f32 %v5303_v2, %v5230_v4  ;;  %v13176_v10 = vpop.f32.mrb[55].mxu0  ;;  %v13779_v2 = vpack.c.bf16 %v5822_v0, %v5821_v63  ;;  %v5904_v4 = vld [vmem:[#allocation4 + $0x40] sm:$0xff]  ;;  %v6042_v63 = vld [vmem:[#allocation2 + $0x198] sm:$0xff] }
0x2767   :  { %v5905_v10 = vld [vmem:[#allocation4 + $0x58] sm:$0xff] }
0x2769   :  { %v5381_v12 = vpop.f32.mrb[56].mxu0 }
0x276a   :  { %v5385_v37 = vmul.f32 0.35355338, %v5381_v12  ;;  %v13186_v14 = vpop.f32.mrb[57].mxu0  ;;  %v13785_v12 = vpack.c.bf16 %v5905_v10, %v5904_v4  ;;  %v12274_v10 = vld [vmem:[%s15590_s8 + $0x1f] ss:$0 sm:$0xff] }
0x276b   :  { %v5907_v14 = vld [vmem:[#allocation4 + $0x88] sm:$0xff] }
0x276c   :  { %v5386_v15 = vsel %vm99_vm3, %v5385_v37, -inf }
0x276d   :  { %5387 = vmax.xlane.f32.xlu1 %v5386_v15 }
0x277e   :  { %5547 = vrot.lane.b32.xlu1 %v14790_v25, %s14152_s20 }
0x27fa   :  { %v5388_v31 = vpop.xlane.xlu1 %5387 }
0x27fb   :  { %v5389_v8 = vsub.f32 %v5385_v37, %v5388_v31  ;;  %v5906_v37 = vld [vmem:[#allocation4 + $0x70] sm:$0xff] }
0x27fc   :  { %v13788_v15 = vpack.c.bf16 %v5907_v14, %v5906_v37  ;;  %v12275_v37 = vld [vmem:[%s15590_s8 + $0x20] ss:$0 sm:$0xff] }
0x27fd   :  { %v5390_v17 = vmul.f32 1.442695, %v5389_v8 }
0x27fe   :  { %v5548_v22 = vpop.permute.xlu1 %5547 }
0x27ff   :  { %14004 = vpow2.f32 %v5390_v17 }
0x2809   :  { %v14005_v18 = vpop.eup %14004 }
0x280a   :  { %13190 = vmatmul.mubr.msk.f32.vlgmr.msra.gmra.mrb[58].mxu1 %vm99_vm3, %v14005_v18  ;;  %v5468_v20 = vsel %vm99_vm3, %v14005_v18, 0.0 }
0x280b   :  { %13198 = vmatpush3.xpose.msk.msra.mxu1 %vm99_vm3, %v5550_v19  ;;  %5469 = vadd.xlane.f32.xlu1 %v5468_v20  ;;  %v12266_v19 = vld [vmem:[%s15590_s8 + $0x19] ss:$0 sm:$0xff] }
0x280c   :  { %13199 = vmatprep.mubr.msk.f32.mxu1 %vm14157_vm0, %v14156_v1  ;;  %13207 = vmatprep.subr.mxu1 %v14156_v1 }
0x280e   :  { %13200 = vmatmul.mubr.msk.f32.vlgmr.msra.gmra.mrb[60].mxu1 %vm99_vm3, %v5548_v22  ;;  %v12267_v22 = vld [vmem:[%s15590_s8 + $0x1a] ss:$0 sm:$0xff] }
0x280f   :  { %13209 = vmatprep.mubr.msk.f32.mxu1 %vm14157_vm0, %v14156_v1  ;;  %13208 = vmatpush3.msra.mxu1 %v4830_v46 }
0x2810   :  { %13781 = vmatprep.subr.bf16.mxu1 %v14158_v16 }
0x281c   :  { %5632 = vrot.lane.b32.xlu1 %v14780_v21, %s14167_s16 }
0x2898   :  { %v5470_v24 = vpop.xlane.xlu1 %5469 }
0x2899   :  { %14006 = vrcp.f32 %v5470_v24 }
0x289c   :  { %v5633_v29 = vpop.permute.xlu1 %5632 }
0x28a3   :  { %v14007_v25 = vpop.eup %14006 }
0x28dd   :  { %v5464_v26 = vpop.f32.mrb[58].mxu1 }
0x28de   :  { %v5472_v27 = vmul.f32 %v14007_v25, %v5464_v26  ;;  %v13191_v28 = vpop.f32.mrb[59].mxu1  ;;  %v5908_v25 = vld [vmem:[#allocation4 + $0xa0] sm:$0xff]  ;;  %v5909_v26 = vld [vmem:[#allocation4 + $0xb8] sm:$0xff] }
0x28df   :  { %v12268_v28 = vld [vmem:[%s15590_s8 + $0x15] ss:$0 sm:$0xff] }
0x28e0   :  { %13195 = vmatmul.mubr.msk.f32.vlgmr.msra.gmra.mrb[58].mxu0 %vm99_vm3, %v5472_v27  ;;  %v13791_v27 = vpack.c.bf16 %v5909_v26, %v5908_v25  ;;  %v6345_v26 = vld [vmem:[%s15587_s5 + $0x4] sm:$0xf] }
0x28e1   :  { %13203 = vmatpush3.msra.mxu0 %v5633_v29  ;;  %v5621_v30 = vpop.f32.mrb[60].mxu1  ;;  %13204 = vmatprep.mubr.msk.f32.mxu0 %vm14157_vm0, %v14156_v1 }
0x28e2   :  { %v5625_v32 = vmul.f32 0.35355338, %v5621_v30  ;;  %v13201_v21 = vpop.f32.mrb[61].mxu1  ;;  %13775 = vmatprep.subr.bf16.mxu0 %v14158_v16 }
0x28e4   :  { %v5626_v33 = vsel %vm99_vm3, %v5625_v32, -inf }
0x28e5   :  { %5627 = vmax.xlane.f32.xlu0 %v5626_v33  ;;  %v12270_v33 = vld [vmem:[%s15590_s8 + $0x16] ss:$0 sm:$0xff] }
0x2972   :  { %v5628_v34 = vpop.xlane.xlu0 %5627 }
0x2973   :  { %v5629_v36 = vsub.f32 %v5625_v32, %v5628_v34 }
0x2975   :  { %v5630_v38 = vmul.f32 1.442695, %v5629_v36 }
0x2977   :  { %14008 = vpow2.f32 %v5630_v38 }
0x2981   :  { %v14009_v39 = vpop.eup %14008 }
0x2982   :  { %13205 = vmatmul.mubr.msk.f32.vlgmr.msra.gmra.mrb[60].mxu0 %vm99_vm3, %v14009_v39  ;;  %v5708_v40 = vsel %vm99_vm3, %v14009_v39, 0.0 }
0x2983   :  { %5709 = vadd.xlane.f32.xlu0 %v5708_v40  ;;  %13220 = vmatprep.mubr.msk.f32.mxu0 %vm14157_vm0, %v14156_v1 }
0x2984   :  { %13777 = vmatpush3.bf16.msra.mxu0 %v13776_v62  ;;  %v6041_v62 = vld [vmem:[#allocation2 + $0x130] sm:$0xff] }
0x2985   :  { %13778 = vmatprep.subr.bf16.mxu0 %v14158_v16  ;;  %v13797_v0 = vpack.c.bf16 %v6042_v63, %v6041_v62 }
0x2988   :  { %13780 = vmatpush3.bf16.msra.mxu0 %v13779_v2  ;;  %v12278_v2 = vld [vmem:[%s15582_s0 + $0x8] sm:$0xff] }
0x2989   :  { %13793 = vmatprep.subr.bf16.mxu0 %v14158_v16 }
0x29b3   :  { %v5542_v42 = vpop.f32.mrb[58].mxu0 }
0x29b4   :  { %v5546_v43 = vadd.f32 %v5542_v42, %v5304_v7  ;;  %v13196_v44 = vpop.f32.mrb[59].mxu0 }
0x2a10   :  { %v5710_v47 = vpop.xlane.xlu0 %5709 }
0x2a11   :  { %14010 = vrcp.f32 %v5710_v47 }
0x2a1b   :  { %v14011_v48 = vpop.eup %14010 }
0x2a55   :  { %v5704_v49 = vpop.f32.mrb[60].mxu0 }
0x2a56   :  { %v5712_v50 = vmul.f32 %v14011_v48, %v5704_v49  ;;  %v13206_v51 = vpop.f32.mrb[61].mxu0 }
0x2a58   :  { %13210 = vmatmul.mubr.msk.f32.vlgmr.msra.gmra.mrb[62].mxu1 %vm99_vm3, %v5712_v50 }
0x2a59   :  { %13239 = vmatprep.mubr.msk.f32.mxu1 %vm14157_vm0, %v14156_v1 }
0x2b2b   :  { %v5782_v35 = vpop.f32.mrb[62].mxu1 }
0x2b2c   :  { %v5786_v41 = vadd.f32 %v5782_v35, %v5546_v43  ;;  %v13211_v6 = vpop.f32.mrb[63].mxu1  ;;  %v12272_v35 = vld [vmem:[%s15590_s8 + $0x1b] ss:$0 sm:$0xff] }
0x2b2e   :  { %v5792_v53 = vadd.f32 %v12265_v52, %v5786_v41  ;;  %v12273_v41 = vld [vmem:[%s15590_s8 + $0x1c] ss:$0 sm:$0xff] }
0x2b30   :  { %v5793_v54 = vadd.f32 %v5792_v53, %v14771_v9  ;;  %v5902_v9 = vld [vmem:[#allocation4 + $0x10] sm:$0xff] }
0x2b31   :  { %v13782_v7 = vpack.c.bf16 %v5903_v3, %v5902_v9 }
0x2b32   :  { %v5796_v55 = vsel %vm570_vm7, %v5793_v54, 0.0 }
0x2b33   :  { %5797 = vadd.xlane.f32.xlu0 %v5796_v55  ;;  %13783 = vmatpush3.bf16.msra.mxu1 %v13782_v7 }
0x2b34   :  { %13784 = vmatprep.subr.bf16.mxu1 %v14158_v16 }
0x2b37   :  { %13786 = vmatpush3.bf16.msra.mxu1 %v13785_v12 }
0x2b38   :  { %13787 = vmatprep.subr.bf16.mxu1 %v14158_v16 }
0x2b3b   :  { %13789 = vmatpush3.bf16.msra.mxu1 %v13788_v15 }
0x2b3c   :  { %13790 = vmatprep.subr.bf16.mxu1 %v14158_v16 }
0x2b3f   :  { %13792 = vmatpush3.bf16.msra.mxu1 %v13791_v27 }
0x2b40   :  { %13258 = vmatprep.subr.mxu1 %v14156_v1 }
0x2bc0   :  { %v5798_v45 = vpop.xlane.xlu0 %5797 }
0x2bc1   :  { %v5799_v56 = vmul.f32 0.03125, %v5798_v45 }
0x2bc3   :  { %v5800_v57 = vsub.f32 %v5793_v54, %v5799_v56 }
0x2bc5   :  { %v5801_v58 = vmul.f32 %v5800_v57, %v5800_v57 }
0x2bc7   :  { %v5802_v59 = vsel %vm570_vm7, %v5801_v58, 0.0 }
0x2bc8   :  { %5803 = vadd.xlane.f32.xlu1 %v5802_v59  ;;  %v6039_v59 = vld [vmem:[#allocation2 + $0x60] sm:$0xff] }
0x2bc9   :  { %v13794_v61 = vpack.c.bf16 %v6040_v60, %v6039_v59 }
0x2c55   :  { %v5804_v31 = vpop.xlane.xlu1 %5803 }
0x2c56   :  { %v5805_v8 = vmul.f32 0.03125, %v5804_v31  ;;  %v6267_v31 = vld [vmem:[%s15587_s5] sm:$0xf] }
0x2c58   :  { %v5806_v17 = vadd.f32 1e-05, %v5805_v8 }
0x2c5a   :  { %14012 = vrsqrt.f32 %v5806_v17 }
0x2c64   :  { %v14013_v18 = vpop.eup %14012 }
0x2c65   :  { %v5808_v20 = vmul.f32 %v14013_v18, %v5800_v57  ;;  %v6579_v18 = vld [vmem:[#allocation2] sm:$0xff] }
0x2c67   :  { %v5813_v23 = vmul.f32 %v12266_v19, %v5808_v20  ;;  %v6580_v19 = vld [vmem:[#allocation2 + $0x68] sm:$0xff] }
0x2c68   :  { %v13800_v20 = vpack.c.bf16 %v6580_v19, %v6579_v18 }
0x2c69   :  { %v5818_v24 = vadd.f32 %v12267_v22, %v5813_v23  ;;  %v12276_v22 = vld [vmem:[%s15590_s8 + $0x21] ss:$0 sm:$0xff] }
0x2c6b   :  { %13221 = vmatmul.mubr.msk.f32.vlgmr.msra.gmra.mrb[62].mxu0 %vm570_vm7, %v5818_v24 }
0x2c6c   :  { %13250 = vmatprep.mubr.msk.f32.mxu0 %vm14157_vm0, %v14156_v1  ;;  %13795 = vmatpush3.bf16.msra.mxu0 %v13794_v61 }
0x2c6d   :  { %13796 = vmatprep.subr.bf16.mxu0 %v14158_v16 }
0x2c70   :  { %13798 = vmatpush3.bf16.msra.mxu0 %v13797_v0 }
0x2c71   :  { %13253 = vmatprep.subr.mxu0 %v14156_v1 }
0x2d3e   :  { %v5897_v29 = vpop.f32.mrb[62].mxu0 }
0x2d3f   :  { %v5898_v30 = vadd.f32 %v12268_v28, %v5897_v29  ;;  %v13222_v32 = vpop.f32.mrb[63].mxu0  ;;  %v6423_v29 = vld [vmem:[%s15587_s5 + $0x8] sm:$0xf] }
0x2d40   :  { %v12279_v32 = vld [vmem:[%s15583_s1 + $0x8] sm:$0xff] }
0x2d41   :  { %v5901_v21 = vmax.f32 %v5898_v30, 0.0  ;;  %v6501_v30 = vld [vmem:[%s15587_s5 + $0xc] sm:$0xf] }
0x2d43   :  { %13240 = vmatmul.mubr.msk.f32.vlgmr.msra.gmra.mrb[64].mxu1 %vm1734_vm8, %v5901_v21  ;;  %v6581_v21 = vld [vmem:[#allocation2 + $0xd0] sm:$0xff] }
0x2d44   :  { %13260 = vmatprep.mubr.msk.f32.mxu1 %vm14157_vm0, %v14156_v1  ;;  %13259 = vmatpush3.msra.mxu1 %v12278_v2 }
0x2d45   :  { %13799 = vmatprep.subr.bf16.mxu1 %v14158_v16 }
0x2d47   :  { %13261 = vmatmul.mubr.msk.f32.vlgmr.msra.gmra.mrb[66].mxu1 %vm99_vm3, %v14258_v11 }
0x2d48   :  { %13291 = vmatprep.mubr.msk.f32.mxu1 %vm14157_vm0, %v14156_v1  ;;  %13801 = vmatpush3.bf16.msra.mxu1 %v13800_v20 }
0x2d49   :  { %13802 = vmatprep.subr.bf16.mxu1 %v14158_v16 }
0x2e16   :  { %v5984_v34 = vpop.f32.mrb[64].mxu1 }
0x2e17   :  { %v5985_v36 = vadd.f32 %v12270_v33, %v5984_v34  ;;  %v13241_v38 = vpop.f32.mrb[65].mxu1  ;;  %v6582_v33 = vld [vmem:[#allocation2 + $0x138] sm:$0xff] }
0x2e18   :  { %v13803_v34 = vpack.c.bf16 %v6582_v33, %v6581_v21 }
0x2e19   :  { %v5988_v39 = vadd.f32 %v5985_v36, %v5818_v24  ;;  %v6266_v36 = vld [vmem:[%s15586_s4] sm:$0xff] }
0x2e1a   :  { %v6262_v8 = vpop.f32.mrb[66].mxu1  ;;  %13804 = vmatpush3.bf16.msra.mxu1 %v13803_v34 }
0x2e1b   :  { %v5991_v40 = vsel %vm570_vm7, %v5988_v39, 0.0  ;;  %v13262_v17 = vpop.f32.mrb[67].mxu1  ;;  %13294 = vmatprep.subr.mxu1 %v14156_v1 }
0x2e1c   :  { %5992 = vadd.xlane.f32.xlu0 %v5991_v40 }
0x2ea9   :  { %v5993_v42 = vpop.xlane.xlu0 %5992 }
0x2eaa   :  { %v5994_v43 = vmul.f32 0.03125, %v5993_v42  ;;  %v12290_v42 = vld [vmem:[%s15590_s8] ss:$0 sm:$0xff] }
0x2eac   :  { %v5995_v44 = vsub.f32 %v5988_v39, %v5994_v43 }
0x2eae   :  { %v5996_v46 = vmul.f32 %v5995_v44, %v5995_v44 }
0x2eb0   :  { %v5997_v47 = vsel %vm570_vm7, %v5996_v46, 0.0 }
0x2eb1   :  { %5998 = vadd.xlane.f32.xlu0 %v5997_v47 }
0x2f3e   :  { %v5999_v48 = vpop.xlane.xlu0 %5998 }
0x2f3f   :  { %v6000_v49 = vmul.f32 0.03125, %v5999_v48 }
0x2f41   :  { %v6001_v50 = vadd.f32 1e-05, %v6000_v49 }
0x2f43   :  { %14014 = vrsqrt.f32 %v6001_v50 }
0x2f4d   :  { %v14015_v51 = vpop.eup %14014 }
0x2f4e   :  { %v6003_v52 = vmul.f32 %v14015_v51, %v5995_v44 }
0x2f50   :  { %v6008_v6 = vmul.f32 %v12272_v35, %v6003_v52 }
0x2f52   :  { %v6013_v53 = vadd.f32 %v12273_v41, %v6008_v6 }
0x2f54   :  { %v6016_v54 = vsel %vm570_vm7, %v6013_v53, 0.0 }
0x2f55   :  { %6017 = vadd.xlane.f32.xlu0 %v6016_v54 }
0x2fe2   :  { %v6018_v55 = vpop.xlane.xlu0 %6017 }
0x2fe3   :  { %v6019_v45 = vmul.f32 0.03125, %v6018_v55 }
0x2fe5   :  { %v6020_v56 = vsub.f32 %v6013_v53, %v6019_v45 }
0x2fe7   :  { %v6021_v57 = vmul.f32 %v6020_v56, %v6020_v56 }
0x2fe9   :  { %v6022_v58 = vsel %vm570_vm7, %v6021_v57, 0.0 }
0x2fea   :  { %6023 = vadd.xlane.f32.xlu0 %v6022_v58 }
0x3077   :  { %v6024_v9 = vpop.xlane.xlu0 %6023 }
0x3078   :  { %v6025_v3 = vmul.f32 0.03125, %v6024_v9  ;;  %v6662_v9 = vld [vmem:[#allocation2 + $0x70] sm:$0xff] }
0x307a   :  { %v6026_v4 = vadd.f32 1e-05, %v6025_v3  ;;  %v6661_v3 = vld [vmem:[#allocation2 + $0x8] sm:$0xff] }
0x307c   :  { %14016 = vrsqrt.f32 %v6026_v4 }
0x3086   :  { %v14017_v7 = vpop.eup %14016 }
0x3087   :  { %v6028_v12 = vmul.f32 %v14017_v7, %v6020_v56 }
0x3089   :  { %v6033_v14 = vmul.f32 %v12274_v10, %v6028_v12 }
0x308b   :  { %v6038_v15 = vadd.f32 %v12275_v37, %v6033_v14 }
0x308d   :  { %13251 = vmatmul.mubr.msk.f32.vlgmr.msra.gmra.mrb[64].mxu0 %vm570_vm7, %v6038_v15 }
0x308e   :  { %13254 = vmatpush3.msra.mxu0 %v12278_v2  ;;  %13255 = vmatprep.mubr.msk.f32.mxu0 %vm14157_vm0, %v14156_v1 }
0x308f   :  { %13263 = vmatprep.subr.mxu0 %v14156_v1 }
0x3091   :  { %13256 = vmatmul.mubr.msk.f32.vlgmr.msra.gmra.mrb[66].mxu0 %vm99_vm3, %v14267_v13 }
0x3092   :  { %13265 = vmatprep.mubr.msk.f32.mxu0 %vm14157_vm0, %v14156_v1  ;;  %13264 = vmatpush3.msk.msra.mxu0 %vm252_vm5, %v6267_v31 }
0x3093   :  { %13268 = vmatprep.subr.mxu0 %v14156_v1 }
0x3160   :  { %v6117_v23 = vpop.f32.mrb[64].mxu0 }
0x3161   :  { %v6118_v24 = vadd.f32 %v12276_v22, %v6117_v23  ;;  %v13252_v25 = vpop.f32.mrb[65].mxu0 }
0x3163   :  { %6121 = vst.msk [vmem:[%s15591_s9] sm:$0xff] %vm248_vm6, %v6118_v24 }
0x3164   :  { %v6192_v27 = vpop.f32.mrb[66].mxu0 }
0x3165   :  { %v13257_v28 = vpop.f32.mrb[67].mxu0  ;;  %13266 = vmatmul.mubr.msk.f32.vlgmr.msra.gmra.mrb[68].mxu0 %vm248_vm6, %v6192_v27 }
0x3166   :  { %13269 = vmatpush3.msk.msra.mxu0 %vm252_vm5, %v6345_v26  ;;  %13270 = vmatprep.mubr.msk.f32.mxu0 %vm14157_vm0, %v14156_v1 }
0x3167   :  { %13273 = vmatprep.subr.mxu0 %v14156_v1 }
0x316d   :  { %13271 = vmatmul.mubr.msk.f32.vlgmr.msra.gmra.mrb[68].mxu0 %vm248_vm6, %v12278_v2 }
0x316e   :  { %13274 = vmatpush3.msk.msra.mxu0 %vm252_vm5, %v6423_v29  ;;  %13275 = vmatprep.mubr.msk.f32.mxu0 %vm14157_vm0, %v14156_v1 }
0x316f   :  { %13278 = vmatprep.subr.mxu0 %v14156_v1 }
0x3175   :  { %13276 = vmatmul.mubr.msk.f32.vlgmr.msra.gmra.mrb[68].mxu0 %vm248_vm6, %v6262_v8 }
0x3176   :  { %13279 = vmatpush3.msk.msra.mxu0 %vm252_vm5, %v6501_v30  ;;  %13280 = vmatprep.mubr.msk.f32.mxu0 %vm14157_vm0, %v14156_v1 }
0x3177   :  { %13304 = vmatprep.subr.mxu0 %v14156_v1 }
0x317d   :  { %13281 = vmatmul.mubr.msk.f32.vlgmr.msra.gmra.mrb[68].mxu0 %vm248_vm6, %v12279_v32 }
0x317e   :  { %13306 = vmatprep.mubr.msk.f32.mxu0 %vm14157_vm0, %v14156_v1 }
0x3250   :  { %v6574_v38 = vpop.f32.mrb[68].mxu0 }
0x3251   :  { %v14980_v39 = vadd.f32 %v6574_v38, %v6266_v36  ;;  %v13282_v40 = vpop.f32.mrb[69].mxu0 }
0x3253   :  { %13292 = vmatmul.mubr.msk.f32.vlgmr.msra.gmra.mrb[68].mxu1 %vm570_vm7, %v14980_v39 }
0x3254   :  { %13296 = vmatprep.mubr.msk.f32.mxu1 %vm14157_vm0, %v14156_v1 }
0x3326   :  { %v6657_v43 = vpop.f32.mrb[68].mxu1 }
0x3327   :  { %v14989_v44 = vadd.f32 %v12290_v42, %v6657_v43  ;;  %v13293_v46 = vpop.f32.mrb[69].mxu1  ;;  %v6663_v42 = vld [vmem:[#allocation2 + $0xd8] sm:$0xff] }
0x3329   :  { %6832 = vrot.lane.b32.xlu1 %v14989_v44, %s14161_s6  ;;  %6666 = vrot.lane.b32.xlu0 %v14989_v44, %s14160_s12 }
0x332d   :  { %6830 = vrot.lane.b32.xlu0 %v14989_v44, %s14159_s11 }
0x339b   :  { %v6833_v47 = vpop.permute.xlu1 %6832  ;;  %v6667_v48 = vpop.permute.xlu0 %6666 }
0x339c   :  { %13295 = vmatpush3.xpose.msk.msra.mxu1 %vm99_vm3, %v6667_v48  ;;  %13305 = vmatpush3.xpose.msk.msra.mxu0 %vm99_vm3, %v6833_v47 }
0x339d   :  { %13299 = vmatprep.subr.mxu1 %v14156_v1  ;;  %13314 = vmatprep.subr.mxu0 %v14156_v1 }
0x339f   :  { %13297 = vmatmul.mubr.msk.f32.vlgmr.msra.gmra.mrb[70].mxu1 %vm99_vm3, %v14989_v44  ;;  %v6831_v49 = vpop.permute.xlu0 %6830 }
0x33a0   :  { %13307 = vmatmul.mubr.msk.f32.vlgmr.msra.gmra.mrb[70].mxu0 %vm99_vm3, %v6831_v49  ;;  %13301 = vmatprep.mubr.msk.f32.mxu1 %vm14157_vm0, %v14156_v1 }
0x33a1   :  { %13316 = vmatprep.mubr.msk.f32.mxu0 %vm14157_vm0, %v14156_v1  ;;  %13315 = vmatpush3.msra.mxu0 %v6662_v9 }
0x33a2   :  { %13324 = vmatprep.subr.mxu0 %v14156_v1 }
0x3472   :  { %v6738_v50 = vpop.f32.mrb[70].mxu1 }
0x3473   :  { %v6742_v51 = vmul.f32 0.35355338, %v6738_v50  ;;  %v13298_v35 = vpop.f32.mrb[71].mxu1  ;;  %v6904_v52 = vpop.f32.mrb[70].mxu0 }
0x3474   :  { %v6908_v41 = vmul.f32 0.35355338, %v6904_v52  ;;  %v13308_v6 = vpop.f32.mrb[71].mxu0 }
0x3475   :  { %v6743_v53 = vsel %vm99_vm3, %v6742_v51, -inf }
0x3476   :  { %6744 = vmax.xlane.f32.xlu0 %v6743_v53  ;;  %v6909_v54 = vsel %vm99_vm3, %v6908_v41, -inf }
0x3477   :  { %6910 = vmax.xlane.f32.xlu1 %v6909_v54 }
0x3488   :  { %6915 = vrot.lane.b32.xlu1 %v14989_v44, %s14162_s10 }
0x348c   :  { %6749 = vrot.lane.b32.xlu0 %v14989_v44, %s14163_s13  ;;  %7144 = vrot.lane.b32.xlu1 %v14989_v44, %s14164_s14 }
0x3490   :  { %7142 = vrot.lane.b32.xlu1 %v14989_v44, %s14165_s7 }
0x3503   :  { %v6745_v55 = vpop.xlane.xlu0 %6744 }
0x3504   :  { %v6746_v45 = vsub.f32 %v6742_v51, %v6745_v55  ;;  %v6911_v56 = vpop.xlane.xlu1 %6910 }
0x3505   :  { %v6912_v57 = vsub.f32 %v6908_v41, %v6911_v56 }
0x3506   :  { %v6747_v58 = vmul.f32 1.442695, %v6746_v45 }
0x3507   :  { %v6913_v59 = vmul.f32 1.442695, %v6912_v57  ;;  %v6750_v60 = vpop.permute.xlu0 %6749 }
0x3508   :  { %14018 = vpow2.f32 %v6747_v58  ;;  %13300 = vmatpush3.msra.mxu1 %v6750_v60  ;;  %v6916_v63 = vpop.permute.xlu1 %6915  ;;  %v6664_v58 = vld [vmem:[#allocation2 + $0x140] sm:$0xff] }
0x3509   :  { %14020 = vpow2.f32 %v6913_v59  ;;  %13309 = vmatprep.subr.mxu1 %v14156_v1 }
0x350c   :  { %v7145_v4 = vpop.permute.xlu1 %7144 }
0x3510   :  { %v7143_v7 = vpop.permute.xlu1 %7142 }
0x3512   :  { %v14019_v61 = vpop.eup %14018 }
0x3513   :  { %v14021_v62 = vpop.eup %14020  ;;  %13302 = vmatmul.mubr.msk.f32.vlgmr.msra.gmra.mrb[72].mxu1 %vm99_vm3, %v14019_v61  ;;  %v6825_v0 = vsel %vm99_vm3, %v14019_v61, 0.0 }
0x3514   :  { %13310 = vmatpush3.msra.mxu1 %v6916_v63  ;;  %6826 = vadd.xlane.f32.xlu1 %v6825_v0  ;;  %v6991_v2 = vsel %vm99_vm3, %v14021_v62, 0.0 }
0x3515   :  { %6992 = vadd.xlane.f32.xlu0 %v6991_v2  ;;  %13311 = vmatprep.mubr.msk.f32.mxu1 %vm14157_vm0, %v14156_v1  ;;  %v12308_v2 = vld [vmem:[%s15590_s8 + $0x1] ss:$0 sm:$0xff] }
0x3516   :  { %13319 = vmatprep.subr.mxu1 %v14156_v1 }
0x3517   :  { %13312 = vmatmul.mubr.msk.f32.vlgmr.msra.gmra.mrb[74].mxu1 %vm99_vm3, %v14021_v62 }
0x3518   :  { %13321 = vmatprep.mubr.msk.f32.mxu1 %vm14157_vm0, %v14156_v1  ;;  %13320 = vmatpush3.msra.mxu1 %v6661_v3 }
0x3519   :  { %13329 = vmatprep.subr.mxu1 %v14156_v1 }
0x3525   :  { %7384 = vrot.lane.b32.xlu1 %v14989_v44, %s14167_s16 }
0x35a1   :  { %v6827_v10 = vpop.xlane.xlu1 %6826 }
0x35a2   :  { %14022 = vrcp.f32 %v6827_v10  ;;  %v6993_v12 = vpop.xlane.xlu0 %6992 }
0x35a3   :  { %14024 = vrcp.f32 %v6993_v12 }
0x35a5   :  { %v7385_v36 = vpop.permute.xlu1 %7384 }
0x35ac   :  { %v14023_v37 = vpop.eup %14022 }
0x35ad   :  { %v14025_v8 = vpop.eup %14024 }
0x35e6   :  { %v6821_v14 = vpop.f32.mrb[72].mxu1 }
0x35e7   :  { %v6829_v15 = vmul.f32 %v14023_v37, %v6821_v14  ;;  %v13303_v31 = vpop.f32.mrb[73].mxu1 }
0x35e9   :  { %13322 = vmatmul.mubr.msk.f32.vlgmr.msra.gmra.mrb[76].mxu1 %vm99_vm3, %v6829_v15 }
0x35ea   :  { %v6987_v17 = vpop.f32.mrb[74].mxu1  ;;  %13331 = vmatprep.mubr.msk.f32.mxu1 %vm14157_vm0, %v14156_v1 }
0x35eb   :  { %v6995_v18 = vmul.f32 %v14025_v8, %v6987_v17  ;;  %v13313_v19 = vpop.f32.mrb[75].mxu1  ;;  %v7654_v8 = vld [vmem:[#allocation2 + $0x10] sm:$0xff]  ;;  %v7655_v17 = vld [vmem:[#allocation2 + $0x78] sm:$0xff] }
0x35ec   :  { %v7656_v19 = vld [vmem:[#allocation2 + $0xe0] sm:$0xff] }
0x35ed   :  { %13317 = vmatmul.mubr.msk.f32.vlgmr.msra.gmra.mrb[72].mxu0 %vm99_vm3, %v6995_v18  ;;  %v13806_v18 = vpack.c.bf16 %v7655_v17, %v7654_v8 }
0x35ee   :  { %13325 = vmatpush3.xpose.msk.msra.mxu0 %vm99_vm3, %v7145_v4  ;;  %13326 = vmatprep.mubr.msk.f32.mxu0 %vm14157_vm0, %v14156_v1 }
0x35ef   :  { %13334 = vmatprep.subr.mxu0 %v14156_v1 }
0x35f1   :  { %13327 = vmatmul.mubr.msk.f32.vlgmr.msra.gmra.mrb[74].mxu0 %vm99_vm3, %v7143_v7 }
0x35f2   :  { %13336 = vmatprep.mubr.msk.f32.mxu0 %vm14157_vm0, %v14156_v1  ;;  %13335 = vmatpush3.msra.mxu0 %v6663_v42 }
0x35f3   :  { %13344 = vmatprep.subr.mxu0 %v14156_v1 }
0x36bc   :  { %v7138_v20 = vpop.f32.mrb[76].mxu1 }
0x36bd   :  { %v13323_v22 = vpop.f32.mrb[77].mxu1 }
0x36c0   :  { %v7065_v23 = vpop.f32.mrb[72].mxu0 }
0x36c1   :  { %v7139_v24 = vadd.f32 %v7138_v20, %v7065_v23  ;;  %v13318_v25 = vpop.f32.mrb[73].mxu0  ;;  %v7657_v20 = vld [vmem:[#allocation2 + $0x148] sm:$0xff]  ;;  %v7738_v23 = vld [vmem:[#allocation4 + $0x18] sm:$0xff] }
0x36c2   :  { %v13809_v22 = vpack.c.bf16 %v7657_v20, %v7656_v19 }
0x36c4   :  { %v7216_v26 = vpop.f32.mrb[74].mxu0 }
0x36c5   :  { %v7220_v27 = vmul.f32 0.35355338, %v7216_v26  ;;  %v13328_v28 = vpop.f32.mrb[75].mxu0  ;;  %v7740_v26 = vld [vmem:[#allocation4 + $0x48] sm:$0xff] }
0x36c6   :  { %v7741_v28 = vld [vmem:[#allocation4 + $0x60] sm:$0xff] }
0x36c7   :  { %v7221_v29 = vsel %vm99_vm3, %v7220_v27, -inf }
0x36c8   :  { %7222 = vmax.xlane.f32.xlu0 %v7221_v29  ;;  %v7742_v29 = vld [vmem:[#allocation4 + $0x78] sm:$0xff] }
0x36de   :  { %7227 = vrot.lane.b32.xlu0 %v14989_v44, %s14166_s15 }
0x36e2   :  { %7382 = vrot.lane.b32.xlu0 %v14989_v44, %s14152_s20 }
0x3755   :  { %v7223_v30 = vpop.xlane.xlu0 %7222 }
0x3756   :  { %v7224_v32 = vsub.f32 %v7220_v27, %v7223_v30  ;;  %v13818_v30 = vpack.c.bf16 %v7742_v29, %v7741_v28 }
0x3758   :  { %v7225_v21 = vmul.f32 1.442695, %v7224_v32 }
0x3759   :  { %v7228_v33 = vpop.permute.xlu0 %7227 }
0x375a   :  { %14026 = vpow2.f32 %v7225_v21  ;;  %13330 = vmatpush3.msra.mxu1 %v7228_v33 }
0x375b   :  { %13339 = vmatprep.subr.mxu1 %v14156_v1 }
0x375d   :  { %v7383_v40 = vpop.permute.xlu0 %7382 }
0x3764   :  { %v14027_v34 = vpop.eup %14026 }
0x3765   :  { %13332 = vmatmul.mubr.msk.f32.vlgmr.msra.gmra.mrb[78].mxu1 %vm99_vm3, %v14027_v34  ;;  %v7303_v38 = vsel %vm99_vm3, %v14027_v34, 0.0 }
0x3766   :  { %13340 = vmatpush3.xpose.msk.msra.mxu1 %vm99_vm3, %v7385_v36  ;;  %7304 = vadd.xlane.f32.xlu0 %v7303_v38  ;;  %v12309_v36 = vld [vmem:[%s15590_s8 + $0x4] ss:$0 sm:$0xff] }
0x3767   :  { %13341 = vmatprep.mubr.msk.f32.mxu1 %vm14157_vm0, %v14156_v1  ;;  %13349 = vmatprep.subr.mxu1 %v14156_v1 }
0x3769   :  { %13342 = vmatmul.mubr.msk.f32.vlgmr.msra.gmra.mrb[80].mxu1 %vm99_vm3, %v7383_v40  ;;  %v12310_v40 = vld [vmem:[%s15590_s8 + $0x5] ss:$0 sm:$0xff] }
0x376a   :  { %13351 = vmatprep.mubr.msk.f32.mxu1 %vm14157_vm0, %v14156_v1  ;;  %13350 = vmatpush3.msra.mxu1 %v6664_v58 }
0x376b   :  { %13811 = vmatprep.subr.bf16.mxu1 %v14158_v16 }
0x377c   :  { %7467 = vrot.lane.b32.xlu0 %v14989_v44, %s14168_s17 }
0x37f3   :  { %v7305_v43 = vpop.xlane.xlu0 %7304 }
0x37f4   :  { %14028 = vrcp.f32 %v7305_v43 }
0x37f7   :  { %v7468_v50 = vpop.permute.xlu0 %7467 }
0x37fe   :  { %v14029_v46 = vpop.eup %14028 }
0x3838   :  { %v7299_v47 = vpop.f32.mrb[78].mxu1 }
0x3839   :  { %v7307_v48 = vmul.f32 %v14029_v46, %v7299_v47  ;;  %v13333_v49 = vpop.f32.mrb[79].mxu1  ;;  %v7743_v46 = vld [vmem:[#allocation4 + $0x90] sm:$0xff]  ;;  %v7744_v47 = vld [vmem:[#allocation4 + $0xa8] sm:$0xff] }
0x383a   :  { %v12311_v49 = vld [vmem:[%s15590_s8 + $0x2] ss:$0 sm:$0xff] }
0x383b   :  { %13337 = vmatmul.mubr.msk.f32.vlgmr.msra.gmra.mrb[76].mxu0 %vm99_vm3, %v7307_v48  ;;  %v13821_v48 = vpack.c.bf16 %v7744_v47, %v7743_v46 }
0x383c   :  { %13345 = vmatpush3.msra.mxu0 %v7468_v50  ;;  %v7456_v51 = vpop.f32.mrb[80].mxu1  ;;  %13346 = vmatprep.mubr.msk.f32.mxu0 %vm14157_vm0, %v14156_v1 }
0x383d   :  { %v7460_v35 = vmul.f32 0.35355338, %v7456_v51  ;;  %v13343_v44 = vpop.f32.mrb[81].mxu1  ;;  %13805 = vmatprep.subr.bf16.mxu0 %v14158_v16 }
0x383f   :  { %v7461_v52 = vsel %vm99_vm3, %v7460_v35, -inf }
0x3840   :  { %7462 = vmax.xlane.f32.xlu1 %v7461_v52  ;;  %v12313_v52 = vld [vmem:[%s15590_s8 + $0x3] ss:$0 sm:$0xff] }
0x38cd   :  { %v7463_v41 = vpop.xlane.xlu1 %7462 }
0x38ce   :  { %v7464_v6 = vsub.f32 %v7460_v35, %v7463_v41 }
0x38d0   :  { %v7465_v53 = vmul.f32 1.442695, %v7464_v6 }
0x38d2   :  { %14030 = vpow2.f32 %v7465_v53 }
0x38dc   :  { %v14031_v54 = vpop.eup %14030 }
0x38dd   :  { %13347 = vmatmul.mubr.msk.f32.vlgmr.msra.gmra.mrb[78].mxu0 %vm99_vm3, %v14031_v54  ;;  %v7543_v55 = vsel %vm99_vm3, %v14031_v54, 0.0 }
0x38de   :  { %7544 = vadd.xlane.f32.xlu1 %v7543_v55  ;;  %13362 = vmatprep.mubr.msk.f32.mxu0 %vm14157_vm0, %v14156_v1 }
0x38df   :  { %13807 = vmatpush3.bf16.msra.mxu0 %v13806_v18 }
0x38e0   :  { %13808 = vmatprep.subr.bf16.mxu0 %v14158_v16 }
0x38e3   :  { %13810 = vmatpush3.bf16.msra.mxu0 %v13809_v22 }
0x38e4   :  { %13823 = vmatprep.subr.bf16.mxu0 %v14158_v16 }
0x390e   :  { %v7377_v45 = vpop.f32.mrb[76].mxu0 }
0x390f   :  { %v7381_v56 = vadd.f32 %v7377_v45, %v7139_v24  ;;  %v13338_v57 = vpop.f32.mrb[77].mxu0  ;;  %v7739_v24 = vld [vmem:[#allocation4 + $0x30] sm:$0xff] }
0x3910   :  { %v13815_v27 = vpack.c.bf16 %v7740_v26, %v7739_v24 }
0x396b   :  { %v7545_v59 = vpop.xlane.xlu1 %7544 }
0x396c   :  { %14032 = vrcp.f32 %v7545_v59 }
0x3976   :  { %v14033_v60 = vpop.eup %14032 }
0x39b0   :  { %v7539_v61 = vpop.f32.mrb[78].mxu0 }
0x39b1   :  { %v7547_v62 = vmul.f32 %v14033_v60, %v7539_v61  ;;  %v13348_v63 = vpop.f32.mrb[79].mxu0  ;;  %v7849_v60 = vld [vmem:[#allocation2 + $0x18] sm:$0xff]  ;;  %v7850_v61 = vld [vmem:[#allocation2 + $0x80] sm:$0xff] }
0x39b2   :  { %v7851_v63 = vld [vmem:[#allocation2 + $0xe8] sm:$0xff] }
0x39b3   :  { %13352 = vmatmul.mubr.msk.f32.vlgmr.msra.gmra.mrb[82].mxu1 %vm99_vm3, %v7547_v62  ;;  %v13824_v62 = vpack.c.bf16 %v7850_v61, %v7849_v60 }
0x39b4   :  { %13381 = vmatprep.mubr.msk.f32.mxu1 %vm14157_vm0, %v14156_v1 }
0x3a86   :  { %v7617_v0 = vpop.f32.mrb[82].mxu1 }
0x3a87   :  { %v7621_v9 = vadd.f32 %v7617_v0, %v7381_v56  ;;  %v13353_v3 = vpop.f32.mrb[83].mxu1  ;;  %v7852_v0 = vld [vmem:[#allocation2 + $0x150] sm:$0xff] }
0x3a89   :  { %v7627_v4 = vadd.f32 %v12308_v2, %v7621_v9  ;;  %v13827_v2 = vpack.c.bf16 %v7852_v0, %v7851_v63 }
0x3a8b   :  { %v7628_v7 = vadd.f32 %v14980_v39, %v7627_v4  ;;  %v7737_v39 = vld [vmem:[#allocation4] sm:$0xff] }
0x3a8c   :  { %v13812_v25 = vpack.c.bf16 %v7738_v23, %v7737_v39 }
0x3a8d   :  { %v7631_v10 = vsel %vm570_vm7, %v7628_v7, 0.0 }
0x3a8e   :  { %7632 = vadd.xlane.f32.xlu1 %v7631_v10  ;;  %13813 = vmatpush3.bf16.msra.mxu1 %v13812_v25  ;;  %v12315_v10 = vld [vmem:[%s15590_s8 + $0x6] ss:$0 sm:$0xff] }
0x3a8f   :  { %13814 = vmatprep.subr.bf16.mxu1 %v14158_v16 }
0x3a92   :  { %13816 = vmatpush3.bf16.msra.mxu1 %v13815_v27 }
0x3a93   :  { %13817 = vmatprep.subr.bf16.mxu1 %v14158_v16 }
0x3a96   :  { %13819 = vmatpush3.bf16.msra.mxu1 %v13818_v30 }
0x3a97   :  { %13820 = vmatprep.subr.bf16.mxu1 %v14158_v16 }
0x3a9a   :  { %13822 = vmatpush3.bf16.msra.mxu1 %v13821_v48  ;;  %v7932_v48 = vld [vmem:[#allocation2 + $0x88] sm:$0xff] }
0x3a9b   :  { %13400 = vmatprep.subr.mxu1 %v14156_v1 }
0x3b1b   :  { %v7633_v12 = vpop.xlane.xlu1 %7632 }
0x3b1c   :  { %v7634_v37 = vmul.f32 0.03125, %v7633_v12 }
0x3b1e   :  { %v7635_v14 = vsub.f32 %v7628_v7, %v7634_v37  ;;  %v12316_v37 = vld [vmem:[%s15590_s8 + $0x7] ss:$0 sm:$0xff] }
0x3b20   :  { %v7636_v15 = vmul.f32 %v7635_v14, %v7635_v14 }
0x3b22   :  { %v7637_v31 = vsel %vm570_vm7, %v7636_v15, 0.0 }
0x3b23   :  { %7638 = vadd.xlane.f32.xlu1 %v7637_v31  ;;  %v12317_v31 = vld [vmem:[%s15590_s8 + $0x8] ss:$0 sm:$0xff] }
0x3bb0   :  { %v7639_v32 = vpop.xlane.xlu1 %7638 }
0x3bb1   :  { %v7640_v21 = vmul.f32 0.03125, %v7639_v32 }
0x3bb3   :  { %v7641_v33 = vadd.f32 1e-05, %v7640_v21 }
0x3bb5   :  { %14034 = vrsqrt.f32 %v7641_v33 }
0x3bbf   :  { %v14035_v34 = vpop.eup %14034 }
0x3bc0   :  { %v7643_v38 = vmul.f32 %v14035_v34, %v7635_v14 }
0x3bc2   :  { %v7648_v42 = vmul.f32 %v12309_v36, %v7643_v38 }
0x3bc4   :  { %v7653_v43 = vadd.f32 %v12310_v40, %v7648_v42 }
0x3bc6   :  { %13363 = vmatmul.mubr.msk.f32.vlgmr.msra.gmra.mrb[80].mxu0 %vm570_vm7, %v7653_v43 }
0x3bc7   :  { %13392 = vmatprep.mubr.msk.f32.mxu0 %vm14157_vm0, %v14156_v1  ;;  %13825 = vmatpush3.bf16.msra.mxu0 %v13824_v62 }
0x3bc8   :  { %13826 = vmatprep.subr.bf16.mxu0 %v14158_v16 }
0x3bcb   :  { %13828 = vmatpush3.bf16.msra.mxu0 %v13827_v2 }
0x3bcc   :  { %13395 = vmatprep.subr.mxu0 %v14156_v1 }
0x3c99   :  { %v7732_v50 = vpop.f32.mrb[80].mxu0 }
0x3c9a   :  { %v7733_v51 = vadd.f32 %v12311_v49, %v7732_v50  ;;  %v13364_v35 = vpop.f32.mrb[81].mxu0  ;;  %v7931_v49 = vld [vmem:[#allocation2 + $0x20] sm:$0xff] }
0x3c9c   :  { %v7736_v44 = vmax.f32 %v7733_v51, 0.0 }
0x3c9e   :  { %13382 = vmatmul.mubr.msk.f32.vlgmr.msra.gmra.mrb[84].mxu1 %vm1734_vm8, %v7736_v44 }
0x3c9f   :  { %13402 = vmatprep.mubr.msk.f32.mxu1 %vm14157_vm0, %v14156_v1 }
0x3d71   :  { %v7819_v41 = vpop.f32.mrb[84].mxu1 }
0x3d72   :  { %v7820_v6 = vadd.f32 %v12313_v52, %v7819_v41  ;;  %v13383_v53 = vpop.f32.mrb[85].mxu1 }
0x3d74   :  { %v7823_v54 = vadd.f32 %v7820_v6, %v7653_v43 }
0x3d76   :  { %v7826_v55 = vsel %vm570_vm7, %v7823_v54, 0.0 }
0x3d77   :  { %7827 = vadd.xlane.f32.xlu0 %v7826_v55 }
0x3e04   :  { %v7828_v45 = vpop.xlane.xlu0 %7827 }
0x3e05   :  { %v7829_v56 = vmul.f32 0.03125, %v7828_v45 }
0x3e07   :  { %v7830_v57 = vsub.f32 %v7823_v54, %v7829_v56 }
0x3e09   :  { %v7831_v58 = vmul.f32 %v7830_v57, %v7830_v57 }
0x3e0b   :  { %v7832_v59 = vsel %vm570_vm7, %v7831_v58, 0.0 }
0x3e0c   :  { %7833 = vadd.xlane.f32.xlu1 %v7832_v59 }
0x3e99   :  { %v7834_v9 = vpop.xlane.xlu1 %7833 }
0x3e9a   :  { %v7835_v3 = vmul.f32 0.03125, %v7834_v9 }
0x3e9c   :  { %v7836_v4 = vadd.f32 1e-05, %v7835_v3 }
0x3e9e   :  { %14036 = vrsqrt.f32 %v7836_v4 }
0x3ea8   :  { %v14037_v7 = vpop.eup %14036 }
0x3ea9   :  { %v7838_v12 = vmul.f32 %v14037_v7, %v7830_v57 }
0x3eab   :  { %v7843_v14 = vmul.f32 %v12315_v10, %v7838_v12 }
0x3ead   :  { %v15114_v15 = vadd.f32 %v12316_v37, %v7843_v14 }
0x3eaf   :  { %13393 = vmatmul.mubr.msk.f32.vlgmr.msra.gmra.mrb[82].mxu0 %vm570_vm7, %v15114_v15 }
0x3eb0   :  { %13397 = vmatprep.mubr.msk.f32.mxu0 %vm14157_vm0, %v14156_v1 }
0x3f82   :  { %v7927_v8 = vpop.f32.mrb[82].mxu0 }
0x3f83   :  { %v15123_v17 = vadd.f32 %v12317_v31, %v7927_v8  ;;  %v13394_v18 = vpop.f32.mrb[83].mxu0  ;;  %v7933_v31 = vld [vmem:[#allocation2 + $0xf0] sm:$0xff] }
0x3f85   :  { %7936 = vrot.lane.b32.xlu1 %v15123_v17, %s14160_s12 }
0x3f89   :  { %8102 = vrot.lane.b32.xlu1 %v15123_v17, %s14161_s6 }
0x3f8d   :  { %8100 = vrot.lane.b32.xlu1 %v15123_v17, %s14159_s11 }
0x3ff7   :  { %v7937_v19 = vpop.permute.xlu1 %7936 }
0x3ff8   :  { %13396 = vmatpush3.xpose.msk.msra.mxu0 %vm99_vm3, %v7937_v19 }
0x3ff9   :  { %13405 = vmatprep.subr.mxu0 %v14156_v1 }
0x3ffb   :  { %13398 = vmatmul.mubr.msk.f32.vlgmr.msra.gmra.mrb[84].mxu0 %vm99_vm3, %v15123_v17  ;;  %v8103_v20 = vpop.permute.xlu1 %8102 }
0x3ffc   :  { %13406 = vmatpush3.xpose.msk.msra.mxu0 %vm99_vm3, %v8103_v20  ;;  %13407 = vmatprep.mubr.msk.f32.mxu0 %vm14157_vm0, %v14156_v1 }
0x3ffd   :  { %13415 = vmatprep.subr.mxu0 %v14156_v1 }
0x3fff   :  { %v8101_v22 = vpop.permute.xlu1 %8100 }
0x4000   :  { %13408 = vmatmul.mubr.msk.f32.vlgmr.msra.gmra.mrb[86].mxu0 %vm99_vm3, %v8101_v22 }
0x4001   :  { %13417 = vmatprep.mubr.msk.f32.mxu0 %vm14157_vm0, %v14156_v1  ;;  %13416 = vmatpush3.msra.mxu0 %v7932_v48 }
0x4002   :  { %13425 = vmatprep.subr.mxu0 %v14156_v1 }
0x40ce   :  { %v8008_v39 = vpop.f32.mrb[84].mxu0 }
0x40cf   :  { %v8012_v23 = vmul.f32 0.35355338, %v8008_v39  ;;  %v13399_v24 = vpop.f32.mrb[85].mxu0 }
0x40d1   :  { %v8013_v25 = vsel %vm99_vm3, %v8012_v23, -inf }
0x40d2   :  { %8014 = vmax.xlane.f32.xlu0 %v8013_v25 }
0x40d3   :  { %v8174_v26 = vpop.f32.mrb[86].mxu0 }
0x40d4   :  { %v8178_v27 = vmul.f32 0.35355338, %v8174_v26  ;;  %v13409_v28 = vpop.f32.mrb[87].mxu0 }
0x40d6   :  { %v8179_v29 = vsel %vm99_vm3, %v8178_v27, -inf }
0x40d7   :  { %8180 = vmax.xlane.f32.xlu1 %v8179_v29 }
0x40e8   :  { %8019 = vrot.lane.b32.xlu0 %v15123_v17, %s14163_s13  ;;  %8414 = vrot.lane.b32.xlu1 %v15123_v17, %s14164_s14 }
0x40ec   :  { %8185 = vrot.lane.b32.xlu0 %v15123_v17, %s14162_s10  ;;  %8412 = vrot.lane.b32.xlu1 %v15123_v17, %s14165_s7 }
0x415f   :  { %v8015_v30 = vpop.xlane.xlu0 %8014 }
0x4160   :  { %v8016_v32 = vsub.f32 %v8012_v23, %v8015_v30 }
0x4162   :  { %v8017_v21 = vmul.f32 1.442695, %v8016_v32 }
0x4163   :  { %v8020_v33 = vpop.permute.xlu0 %8019 }
0x4164   :  { %14038 = vpow2.f32 %v8017_v21  ;;  %13401 = vmatpush3.msra.mxu1 %v8020_v33  ;;  %v8181_v34 = vpop.xlane.xlu1 %8180 }
0x4165   :  { %v8182_v36 = vsub.f32 %v8178_v27, %v8181_v34  ;;  %13410 = vmatprep.subr.mxu1 %v14156_v1  ;;  %v7934_v34 = vld [vmem:[#allocation2 + $0x158] sm:$0xff] }
0x4167   :  { %v8183_v38 = vmul.f32 1.442695, %v8182_v36  ;;  %v8186_v42 = vpop.permute.xlu0 %8185 }
0x4168   :  { %v8415_v50 = vpop.permute.xlu1 %8414 }
0x4169   :  { %14040 = vpow2.f32 %v8183_v38 }
0x416c   :  { %v8413_v51 = vpop.permute.xlu1 %8412 }
0x416e   :  { %v14039_v40 = vpop.eup %14038 }
0x416f   :  { %13403 = vmatmul.mubr.msk.f32.vlgmr.msra.gmra.mrb[86].mxu1 %vm99_vm3, %v14039_v40  ;;  %v8095_v43 = vsel %vm99_vm3, %v14039_v40, 0.0 }
0x4170   :  { %13411 = vmatpush3.msra.mxu1 %v8186_v42  ;;  %8096 = vadd.xlane.f32.xlu1 %v8095_v43 }
0x4171   :  { %13412 = vmatprep.mubr.msk.f32.mxu1 %vm14157_vm0, %v14156_v1  ;;  %13420 = vmatprep.subr.mxu1 %v14156_v1 }
0x4173   :  { %v14041_v46 = vpop.eup %14040 }
0x4174   :  { %13413 = vmatmul.mubr.msk.f32.vlgmr.msra.gmra.mrb[88].mxu1 %vm99_vm3, %v14041_v46  ;;  %v8261_v47 = vsel %vm99_vm3, %v14041_v46, 0.0 }
0x4175   :  { %8262 = vadd.xlane.f32.xlu0 %v8261_v47  ;;  %13422 = vmatprep.mubr.msk.f32.mxu1 %vm14157_vm0, %v14156_v1  ;;  %v12335_v47 = vld [vmem:[%s15590_s8 + $0x9] ss:$0 sm:$0xff] }
0x4176   :  { %13421 = vmatpush3.msra.mxu1 %v7931_v49 }
0x4177   :  { %13430 = vmatprep.subr.mxu1 %v14156_v1 }
0x418b   :  { %8497 = vrot.lane.b32.xlu0 %v15123_v17, %s14166_s15 }
0x41fd   :  { %v8097_v35 = vpop.xlane.xlu1 %8096 }
0x41fe   :  { %14042 = vrcp.f32 %v8097_v35 }
0x4202   :  { %v8263_v44 = vpop.xlane.xlu0 %8262 }
0x4203   :  { %14044 = vrcp.f32 %v8263_v44 }
0x4206   :  { %v8498_v54 = vpop.permute.xlu0 %8497 }
0x4208   :  { %v14043_v52 = vpop.eup %14042 }
0x420d   :  { %v14045_v55 = vpop.eup %14044 }
0x4242   :  { %v8091_v41 = vpop.f32.mrb[86].mxu1 }
0x4243   :  { %v8099_v6 = vmul.f32 %v14043_v52, %v8091_v41  ;;  %v13404_v53 = vpop.f32.mrb[87].mxu1 }
0x4245   :  { %13423 = vmatmul.mubr.msk.f32.vlgmr.msra.gmra.mrb[90].mxu1 %vm99_vm3, %v8099_v6 }
0x4246   :  { %13431 = vmatpush3.msra.mxu1 %v8498_v54  ;;  %13432 = vmatprep.mubr.msk.f32.mxu1 %vm14157_vm0, %v14156_v1  ;;  %v8924_v54 = vld [vmem:[#allocation2 + $0x28] sm:$0xff] }
0x4247   :  { %v8257_v45 = vpop.f32.mrb[88].mxu1  ;;  %13440 = vmatprep.subr.mxu1 %v14156_v1 }
0x4248   :  { %v8265_v56 = vmul.f32 %v14045_v55, %v8257_v45  ;;  %v13414_v57 = vpop.f32.mrb[89].mxu1  ;;  %v8925_v55 = vld [vmem:[#allocation2 + $0x90] sm:$0xff] }
0x4249   :  { %v13830_v45 = vpack.c.bf16 %v8925_v55, %v8924_v54  ;;  %v8927_v57 = vld [vmem:[#allocation2 + $0x160] sm:$0xff] }
0x424a   :  { %13418 = vmatmul.mubr.msk.f32.vlgmr.msra.gmra.mrb[88].mxu0 %vm99_vm3, %v8265_v56  ;;  %v8926_v56 = vld [vmem:[#allocation2 + $0xf8] sm:$0xff] }
0x424b   :  { %13426 = vmatpush3.xpose.msk.msra.mxu0 %vm99_vm3, %v8415_v50  ;;  %13427 = vmatprep.mubr.msk.f32.mxu0 %vm14157_vm0, %v14156_v1 }
0x424c   :  { %13435 = vmatprep.subr.mxu0 %v14156_v1 }
0x424e   :  { %13428 = vmatmul.mubr.msk.f32.vlgmr.msra.gmra.mrb[90].mxu0 %vm99_vm3, %v8413_v51 }
0x424f   :  { %13437 = vmatprep.mubr.msk.f32.mxu0 %vm14157_vm0, %v14156_v1  ;;  %13436 = vmatpush3.msra.mxu0 %v7933_v31 }
0x4250   :  { %13445 = vmatprep.subr.mxu0 %v14156_v1 }
0x4318   :  { %v8408_v58 = vpop.f32.mrb[90].mxu1 }
0x4319   :  { %v13424_v59 = vpop.f32.mrb[91].mxu1 }
0x431a   :  { %v9008_v59 = vld [vmem:[#allocation4 + $0x20] sm:$0xff] }
0x431d   :  { %v8335_v60 = vpop.f32.mrb[88].mxu0 }
0x431e   :  { %v8409_v61 = vadd.f32 %v8408_v58, %v8335_v60  ;;  %v13419_v62 = vpop.f32.mrb[89].mxu0  ;;  %v13833_v58 = vpack.c.bf16 %v8927_v57, %v8926_v56  ;;  %v9009_v60 = vld [vmem:[#allocation4 + $0x38] sm:$0xff] }
0x431f   :  { %v9010_v62 = vld [vmem:[#allocation4 + $0x50] sm:$0xff] }
0x4321   :  { %v8486_v63 = vpop.f32.mrb[90].mxu0 }
0x4322   :  { %v8490_v0 = vmul.f32 0.35355338, %v8486_v63  ;;  %v13429_v2 = vpop.f32.mrb[91].mxu0  ;;  %v13839_v63 = vpack.c.bf16 %v9010_v62, %v9009_v60 }
0x4323   :  { %v9012_v2 = vld [vmem:[#allocation4 + $0x80] sm:$0xff] }
0x4324   :  { %v8491_v9 = vsel %vm99_vm3, %v8490_v0, -inf }
0x4325   :  { %8492 = vmax.xlane.f32.xlu0 %v8491_v9 }
0x433b   :  { %8654 = vrot.lane.b32.xlu0 %v15123_v17, %s14167_s16 }
0x433f   :  { %8652 = vrot.lane.b32.xlu0 %v15123_v17, %s14152_s20 }
0x43b2   :  { %v8493_v3 = vpop.xlane.xlu0 %8492 }
0x43b3   :  { %v8494_v4 = vsub.f32 %v8490_v0, %v8493_v3  ;;  %v9011_v0 = vld [vmem:[#allocation4 + $0x68] sm:$0xff] }
0x43b4   :  { %v13842_v9 = vpack.c.bf16 %v9012_v2, %v9011_v0 }
0x43b5   :  { %v8495_v7 = vmul.f32 1.442695, %v8494_v4 }
0x43b6   :  { %v8655_v10 = vpop.permute.xlu0 %8654 }
0x43b7   :  { %14046 = vpow2.f32 %v8495_v7 }
0x43ba   :  { %v8653_v14 = vpop.permute.xlu0 %8652 }
0x43c1   :  { %v14047_v12 = vpop.eup %14046 }
0x43c2   :  { %13433 = vmatmul.mubr.msk.f32.vlgmr.msra.gmra.mrb[92].mxu1 %vm99_vm3, %v14047_v12  ;;  %v8573_v37 = vsel %vm99_vm3, %v14047_v12, 0.0  ;;  %v12336_v12 = vld [vmem:[%s15590_s8 + $0xc] ss:$0 sm:$0xff] }
0x43c3   :  { %13441 = vmatpush3.xpose.msk.msra.mxu1 %vm99_vm3, %v8655_v10  ;;  %8574 = vadd.xlane.f32.xlu1 %v8573_v37 }
0x43c4   :  { %13442 = vmatprep.mubr.msk.f32.mxu1 %vm14157_vm0, %v14156_v1  ;;  %13450 = vmatprep.subr.mxu1 %v14156_v1 }
0x43c6   :  { %13443 = vmatmul.mubr.msk.f32.vlgmr.msra.gmra.mrb[94].mxu1 %vm99_vm3, %v8653_v14  ;;  %v12337_v14 = vld [vmem:[%s15590_s8 + $0xd] ss:$0 sm:$0xff] }
0x43c7   :  { %13452 = vmatprep.mubr.msk.f32.mxu1 %vm14157_vm0, %v14156_v1  ;;  %13451 = vmatpush3.msra.mxu1 %v7934_v34  ;;  %v9601_v34 = vld [vmem:[#allocation2 + $0x98] sm:$0xff] }
0x43c8   :  { %13835 = vmatprep.subr.bf16.mxu1 %v14158_v16 }
0x43d4   :  { %8737 = vrot.lane.b32.xlu1 %v15123_v17, %s14168_s17 }
0x4450   :  { %v8575_v8 = vpop.xlane.xlu1 %8574 }
0x4451   :  { %14048 = vrcp.f32 %v8575_v8 }
0x4454   :  { %v8738_v39 = vpop.permute.xlu1 %8737 }
0x445b   :  { %v14049_v18 = vpop.eup %14048 }
0x4495   :  { %v8569_v19 = vpop.f32.mrb[92].mxu1 }
0x4496   :  { %v8577_v20 = vmul.f32 %v14049_v18, %v8569_v19  ;;  %v13434_v22 = vpop.f32.mrb[93].mxu1  ;;  %v12346_v18 = vld [vmem:[%s15584_s2 + $0x8] sm:$0xff]  ;;  %v9013_v19 = vld [vmem:[#allocation4 + $0x98] sm:$0xff] }
0x4498   :  { %13438 = vmatmul.mubr.msk.f32.vlgmr.msra.gmra.mrb[92].mxu0 %vm99_vm3, %v8577_v20  ;;  %v9014_v20 = vld [vmem:[#allocation4 + $0xb0] sm:$0xff] }
0x4499   :  { %13446 = vmatpush3.msra.mxu0 %v8738_v39  ;;  %v8726_v23 = vpop.f32.mrb[94].mxu1  ;;  %13447 = vmatprep.mubr.msk.f32.mxu0 %vm14157_vm0, %v14156_v1  ;;  %v13845_v22 = vpack.c.bf16 %v9014_v20, %v9013_v19 }
0x449a   :  { %v8730_v24 = vmul.f32 0.35355338, %v8726_v23  ;;  %v13444_v17 = vpop.f32.mrb[95].mxu1  ;;  %13829 = vmatprep.subr.bf16.mxu0 %v14158_v16 }
0x449c   :  { %v8731_v25 = vsel %vm99_vm3, %v8730_v24, -inf }
0x449d   :  { %8732 = vmax.xlane.f32.xlu0 %v8731_v25  ;;  %v9366_v25 = vld [vmem:[%s15587_s5 + $0x14] sm:$0xf] }
0x452a   :  { %v8733_v26 = vpop.xlane.xlu0 %8732 }
0x452b   :  { %v8734_v27 = vsub.f32 %v8730_v24, %v8733_v26 }
0x452d   :  { %v8735_v28 = vmul.f32 1.442695, %v8734_v27 }
0x452f   :  { %14050 = vpow2.f32 %v8735_v28 }
0x4539   :  { %v14051_v29 = vpop.eup %14050 }
0x453a   :  { %13448 = vmatmul.mubr.msk.f32.vlgmr.msra.gmra.mrb[94].mxu0 %vm99_vm3, %v14051_v29  ;;  %v8813_v30 = vsel %vm99_vm3, %v14051_v29, 0.0 }
0x453b   :  { %8814 = vadd.xlane.f32.xlu1 %v8813_v30  ;;  %13463 = vmatprep.mubr.msk.f32.mxu0 %vm14157_vm0, %v14156_v1  ;;  %v9444_v30 = vld [vmem:[%s15587_s5 + $0x18] sm:$0xf] }
0x453c   :  { %13831 = vmatpush3.bf16.msra.mxu0 %v13830_v45 }
0x453d   :  { %13832 = vmatprep.subr.bf16.mxu0 %v14158_v16 }
0x4540   :  { %13834 = vmatpush3.bf16.msra.mxu0 %v13833_v58 }
0x4541   :  { %13485 = vmatprep.subr.mxu0 %v14156_v1 }
0x456b   :  { %v8647_v32 = vpop.f32.mrb[92].mxu0 }
0x456c   :  { %v8651_v21 = vadd.f32 %v8647_v32, %v8409_v61  ;;  %v13439_v33 = vpop.f32.mrb[93].mxu0  ;;  %v9522_v32 = vld [vmem:[%s15587_s5 + $0x1c] sm:$0xf] }
0x456d   :  { %v9600_v33 = vld [vmem:[#allocation2 + $0x30] sm:$0xff] }
0x45c8   :  { %v8815_v36 = vpop.xlane.xlu1 %8814 }
0x45c9   :  { %14052 = vrcp.f32 %v8815_v36  ;;  %v13848_v36 = vpack.c.bf16 %v9601_v34, %v9600_v33 }
0x45d3   :  { %v14053_v38 = vpop.eup %14052 }
0x460d   :  { %v8809_v40 = vpop.f32.mrb[94].mxu0 }
0x460e   :  { %v8817_v42 = vmul.f32 %v14053_v38, %v8809_v40  ;;  %v13449_v43 = vpop.f32.mrb[95].mxu0  ;;  %v9602_v38 = vld [vmem:[#allocation2 + $0x100] sm:$0xff]  ;;  %v9603_v40 = vld [vmem:[#allocation2 + $0x168] sm:$0xff] }
0x4610   :  { %13453 = vmatmul.mubr.msk.f32.vlgmr.msra.gmra.mrb[96].mxu1 %vm99_vm3, %v8817_v42  ;;  %v13851_v42 = vpack.c.bf16 %v9603_v40, %v9602_v38 }
0x4611   :  { %13482 = vmatprep.mubr.msk.f32.mxu1 %vm14157_vm0, %v14156_v1 }
0x46e3   :  { %v8887_v46 = vpop.f32.mrb[96].mxu1 }
0x46e4   :  { %v8891_v48 = vadd.f32 %v8887_v46, %v8651_v21  ;;  %v13454_v49 = vpop.f32.mrb[97].mxu1  ;;  %v12347_v21 = vld [vmem:[%s15585_s3 + $0x8] sm:$0xff] }
0x46e6   :  { %v8897_v50 = vadd.f32 %v12335_v47, %v8891_v48  ;;  %v14101_v48 = vld [vmem:[%s15586_s4] sm:$0xff] }
0x46e8   :  { %v8898_v51 = vadd.f32 %v8897_v50, %v15114_v15  ;;  %v9007_v15 = vld [vmem:[#allocation4 + $0x8] sm:$0xff] }
0x46e9   :  { %v13836_v61 = vpack.c.bf16 %v9008_v59, %v9007_v15 }
0x46ea   :  { %v8901_v35 = vsel %vm570_vm7, %v8898_v51, 0.0 }
0x46eb   :  { %8902 = vadd.xlane.f32.xlu0 %v8901_v35  ;;  %13837 = vmatpush3.bf16.msra.mxu1 %v13836_v61 }
0x46ec   :  { %13838 = vmatprep.subr.bf16.mxu1 %v14158_v16 }
0x46ef   :  { %13840 = vmatpush3.bf16.msra.mxu1 %v13839_v63 }
0x46f0   :  { %13841 = vmatprep.subr.bf16.mxu1 %v14158_v16 }
0x46f3   :  { %13843 = vmatpush3.bf16.msra.mxu1 %v13842_v9 }
0x46f4   :  { %13844 = vmatprep.subr.bf16.mxu1 %v14158_v16 }
0x46f7   :  { %13846 = vmatpush3.bf16.msra.mxu1 %v13845_v22 }
0x46f8   :  { %13847 = vmatprep.subr.bf16.mxu1 %v14158_v16 }
0x4778   :  { %v8903_v44 = vpop.xlane.xlu0 %8902 }
0x4779   :  { %v8904_v52 = vmul.f32 0.03125, %v8903_v44 }
0x477b   :  { %v8905_v41 = vsub.f32 %v8898_v51, %v8904_v52  ;;  %v12358_v51 = vld [vmem:[%s15590_s8 + $0x10] ss:$0 sm:$0xff] }
0x477d   :  { %v8906_v6 = vmul.f32 %v8905_v41, %v8905_v41 }
0x477f   :  { %v8907_v53 = vsel %vm570_vm7, %v8906_v6, 0.0 }
0x4780   :  { %8908 = vadd.xlane.f32.xlu0 %v8907_v53 }
0x480d   :  { %v8909_v3 = vpop.xlane.xlu0 %8908 }
0x480e   :  { %v8910_v4 = vmul.f32 0.03125, %v8909_v3 }
0x4810   :  { %v8911_v7 = vadd.f32 1e-05, %v8910_v4 }
0x4812   :  { %14054 = vrsqrt.f32 %v8911_v7 }
0x481c   :  { %v14055_v10 = vpop.eup %14054 }
0x481d   :  { %v8913_v37 = vmul.f32 %v14055_v10, %v8905_v41 }
0x481f   :  { %v8918_v31 = vmul.f32 %v12336_v12, %v8913_v37 }
0x4821   :  { %v15225_v8 = vadd.f32 %v12337_v14, %v8918_v31  ;;  %v9683_v31 = vld [vmem:[#allocation2 + $0xa0] sm:$0xff] }
0x4823   :  { %13464 = vmatmul.mubr.msk.f32.vlgmr.msra.gmra.mrb[96].mxu0 %vm570_vm7, %v15225_v8 }
0x4824   :  { %13486 = vmatpush3.msra.mxu0 %v12346_v18  ;;  %13487 = vmatprep.mubr.msk.f32.mxu0 %vm14157_vm0, %v14156_v1 }
0x4825   :  { %13490 = vmatprep.subr.mxu0 %v14156_v1 }
0x4827   :  { %13488 = vmatmul.mubr.msk.f32.vlgmr.msra.gmra.mrb[98].mxu0 %vm99_vm3, %v14267_v13  ;;  %v9288_v13 = vld [vmem:[%s15587_s5 + $0x10] sm:$0xf] }
0x4828   :  { %13491 = vmatpush3.msra.mxu0 %v12346_v18  ;;  %13492 = vmatprep.mubr.msk.f32.mxu0 %vm14157_vm0, %v14156_v1 }
0x4829   :  { %13495 = vmatprep.subr.mxu0 %v14156_v1 }
0x482b   :  { %13493 = vmatmul.mubr.msk.f32.vlgmr.msra.gmra.mrb[100].mxu0 %vm99_vm3, %v14258_v11  ;;  %v12338_v11 = vld [vmem:[%s15590_s8 + $0xa] ss:$0 sm:$0xff] }
0x482c   :  { %13497 = vmatprep.mubr.msk.f32.mxu0 %vm14157_vm0, %v14156_v1  ;;  %13496 = vmatpush3.msk.msra.mxu0 %vm252_vm5, %v9288_v13 }
0x482d   :  { %13500 = vmatprep.subr.mxu0 %v14156_v1 }
0x48f6   :  { %v9002_v39 = vpop.f32.mrb[96].mxu0 }
0x48f7   :  { %v9003_v23 = vadd.f32 %v12338_v11, %v9002_v39  ;;  %v13465_v24 = vpop.f32.mrb[97].mxu0 }
0x48f9   :  { %v9006_v17 = vmax.f32 %v9003_v23, 0.0 }
0x48fa   :  { %v9214_v26 = vpop.f32.mrb[98].mxu0 }
0x48fb   :  { %13483 = vmatmul.mubr.msk.f32.vlgmr.msra.gmra.mrb[98].mxu1 %vm1734_vm8, %v9006_v17  ;;  %v13489_v27 = vpop.f32.mrb[99].mxu0  ;;  %13498 = vmatmul.mubr.msk.f32.vlgmr.msra.gmra.mrb[102].mxu0 %vm248_vm6, %v9214_v26 }
0x48fc   :  { %13501 = vmatpush3.msk.msra.mxu0 %vm252_vm5, %v9366_v25  ;;  %13502 = vmatprep.mubr.msk.f32.mxu0 %vm14157_vm0, %v14156_v1 }
0x48fd   :  { %13505 = vmatprep.subr.mxu0 %v14156_v1  ;;  %13523 = vmatprep.mubr.msk.f32.mxu1 %vm14157_vm0, %v14156_v1 }
0x48fe   :  { %v9284_v28 = vpop.f32.mrb[100].mxu0  ;;  %13849 = vmatpush3.bf16.msra.mxu1 %v13848_v36 }
0x48ff   :  { %v13494_v29 = vpop.f32.mrb[101].mxu0  ;;  %13850 = vmatprep.subr.bf16.mxu1 %v14158_v16 }
0x4902   :  { %13852 = vmatpush3.bf16.msra.mxu1 %v13851_v42 }
0x4903   :  { %13503 = vmatmul.mubr.msk.f32.vlgmr.msra.gmra.mrb[102].mxu0 %vm248_vm6, %v12346_v18  ;;  %13526 = vmatprep.subr.mxu1 %v14156_v1  ;;  %v9682_v18 = vld [vmem:[#allocation2 + $0x38] sm:$0xff] }
0x4904   :  { %13506 = vmatpush3.msk.msra.mxu0 %vm252_vm5, %v9444_v30  ;;  %13507 = vmatprep.mubr.msk.f32.mxu0 %vm14157_vm0, %v14156_v1 }
0x4905   :  { %13510 = vmatprep.subr.mxu0 %v14156_v1 }
0x490b   :  { %13508 = vmatmul.mubr.msk.f32.vlgmr.msra.gmra.mrb[102].mxu0 %vm248_vm6, %v9284_v28 }
0x490c   :  { %13511 = vmatpush3.msk.msra.mxu0 %vm252_vm5, %v9522_v32  ;;  %13512 = vmatprep.mubr.msk.f32.mxu0 %vm14157_vm0, %v14156_v1 }
0x490d   :  { %13536 = vmatprep.subr.mxu0 %v14156_v1 }
0x4913   :  { %13513 = vmatmul.mubr.msk.f32.vlgmr.msra.gmra.mrb[102].mxu0 %vm248_vm6, %v12347_v21 }
0x4914   :  { %13538 = vmatprep.mubr.msk.f32.mxu0 %vm14157_vm0, %v14156_v1 }
0x49ce   :  { %v15288_v43 = vpop.f32.mrb[98].mxu1 }
0x49cf   :  { %v13484_v46 = vpop.f32.mrb[99].mxu1 }
0x49e6   :  { %v9595_v47 = vpop.f32.mrb[102].mxu0 }
0x49e7   :  { %v15293_v49 = vadd.f32 %v14101_v48, %v9595_v47  ;;  %v13514_v50 = vpop.f32.mrb[103].mxu0 }
0x49e9   :  { %13524 = vmatmul.mubr.msk.f32.vlgmr.msra.gmra.mrb[100].mxu1 %vm570_vm7, %v15293_v49 }
0x49ea   :  { %13528 = vmatprep.mubr.msk.f32.mxu1 %vm14157_vm0, %v14156_v1 }
0x4abc   :  { %v9678_v35 = vpop.f32.mrb[100].mxu1 }
0x4abd   :  { %v15302_v44 = vadd.f32 %v12358_v51, %v9678_v35  ;;  %v13525_v52 = vpop.f32.mrb[101].mxu1 }
0x4abf   :  { %9854 = vrot.lane.b32.xlu1 %v15302_v44, %s14161_s6  ;;  %9687 = vrot.lane.b32.xlu0 %v15302_v44, %s14160_s12 }
0x4ac3   :  { %9852 = vrot.lane.b32.xlu0 %v15302_v44, %s14159_s11 }
0x4b31   :  { %v9855_v41 = vpop.permute.xlu1 %9854  ;;  %v9688_v6 = vpop.permute.xlu0 %9687 }
0x4b32   :  { %13527 = vmatpush3.xpose.msk.msra.mxu1 %vm99_vm3, %v9688_v6  ;;  %13537 = vmatpush3.xpose.msk.msra.mxu0 %vm99_vm3, %v9855_v41  ;;  %v9684_v41 = vld [vmem:[#allocation2 + $0x108] sm:$0xff] }
0x4b33   :  { %13531 = vmatprep.subr.mxu1 %v14156_v1  ;;  %13546 = vmatprep.subr.mxu0 %v14156_v1 }
0x4b35   :  { %13529 = vmatmul.mubr.msk.f32.vlgmr.msra.gmra.mrb[102].mxu1 %vm99_vm3, %v15302_v44  ;;  %v9853_v53 = vpop.permute.xlu0 %9852 }
0x4b36   :  { %13539 = vmatmul.mubr.msk.f32.vlgmr.msra.gmra.mrb[104].mxu0 %vm99_vm3, %v9853_v53  ;;  %13533 = vmatprep.mubr.msk.f32.mxu1 %vm14157_vm0, %v14156_v1 }
0x4b37   :  { %13548 = vmatprep.mubr.msk.f32.mxu0 %vm14157_vm0, %v14156_v1  ;;  %13547 = vmatpush3.msra.mxu0 %v9683_v31 }
0x4b38   :  { %13556 = vmatprep.subr.mxu0 %v14156_v1 }
0x4c08   :  { %v9759_v54 = vpop.f32.mrb[102].mxu1 }
0x4c09   :  { %v9763_v55 = vmul.f32 0.35355338, %v9759_v54  ;;  %v13530_v45 = vpop.f32.mrb[103].mxu1  ;;  %v9926_v56 = vpop.f32.mrb[104].mxu0 }
0x4c0a   :  { %v9930_v57 = vmul.f32 0.35355338, %v9926_v56  ;;  %v13540_v58 = vpop.f32.mrb[105].mxu0 }
0x4c0b   :  { %v9764_v15 = vsel %vm14250_vm1, %v9763_v55, -1e+30 }
0x4c0c   :  { %v9931_v59 = vsel %vm14250_vm1, %v9930_v57, -1e+30  ;;  %v9765_v60 = vsel %vm99_vm3, %v9764_v15, -inf }
0x4c0d   :  { %9766 = vmax.xlane.f32.xlu0 %v9765_v60  ;;  %v9932_v61 = vsel %vm99_vm3, %v9931_v59, -inf }
0x4c0e   :  { %9933 = vmax.xlane.f32.xlu1 %v9932_v61 }
0x4c1f   :  { %9938 = vrot.lane.b32.xlu1 %v15302_v44, %s14162_s10 }
0x4c23   :  { %9771 = vrot.lane.b32.xlu0 %v15302_v44, %s14163_s13  ;;  %10167 = vrot.lane.b32.xlu1 %v15302_v44, %s14164_s14 }
0x4c27   :  { %10165 = vrot.lane.b32.xlu1 %v15302_v44, %s14165_s7 }
0x4c9a   :  { %v9767_v62 = vpop.xlane.xlu0 %9766 }
0x4c9b   :  { %v9768_v63 = vsub.f32 %v9764_v15, %v9767_v62  ;;  %v9934_v0 = vpop.xlane.xlu1 %9933 }
0x4c9c   :  { %v9935_v2 = vsub.f32 %v9931_v59, %v9934_v0 }
0x4c9d   :  { %v9769_v9 = vmul.f32 1.442695, %v9768_v63  ;;  %v12340_v63 = vld [vmem:[%s15590_s8 + $0xb] ss:$0 sm:$0xff] }
0x4c9e   :  { %v9936_v3 = vmul.f32 1.442695, %v9935_v2  ;;  %v9772_v4 = vpop.permute.xlu0 %9771  ;;  %v9090_v0 = vadd.f32 %v12340_v63, %v15288_v43 }
0x4c9f   :  { %14056 = vpow2.f32 %v9769_v9  ;;  %13532 = vmatpush3.msra.mxu1 %v9772_v4  ;;  %v9939_v12 = vpop.permute.xlu1 %9938 }
0x4ca0   :  { %14058 = vpow2.f32 %v9936_v3  ;;  %13541 = vmatprep.subr.mxu1 %v14156_v1  ;;  %v9093_v9 = vadd.f32 %v9090_v0, %v15225_v8  ;;  %v12344_v0 = vld [vmem:[%s15590_s8 + $0x1d] ss:$0 sm:$0xff] }
0x4ca2   :  { %v9096_v3 = vsel %vm570_vm7, %v9093_v9, 0.0 }
0x4ca3   :  { %v10168_v19 = vpop.permute.xlu1 %10167 }
0x4ca7   :  { %v10166_v20 = vpop.permute.xlu1 %10165 }
0x4ca9   :  { %v14057_v7 = vpop.eup %14056 }
0x4caa   :  { %v14059_v10 = vpop.eup %14058  ;;  %13534 = vmatmul.mubr.msk.f32.vlgmr.msra.gmra.mrb[104].mxu1 %vm99_vm3, %v14057_v7  ;;  %v9847_v37 = vsel %vm99_vm3, %v14057_v7, 0.0 }
0x4cab   :  { %13542 = vmatpush3.msra.mxu1 %v9939_v12  ;;  %9848 = vadd.xlane.f32.xlu1 %v9847_v37  ;;  %v10014_v14 = vsel %vm99_vm3, %v14059_v10, 0.0  ;;  %v9685_v12 = vld [vmem:[#allocation2 + $0x170] sm:$0xff] }
0x4cac   :  { %10015 = vadd.xlane.f32.xlu0 %v10014_v14  ;;  %13543 = vmatprep.mubr.msk.f32.mxu1 %vm14157_vm0, %v14156_v1 }
0x4cad   :  { %13551 = vmatprep.subr.mxu1 %v14156_v1 }
0x4cae   :  { %13544 = vmatmul.mubr.msk.f32.vlgmr.msra.gmra.mrb[106].mxu1 %vm99_vm3, %v14059_v10 }
0x4caf   :  { %13553 = vmatprep.mubr.msk.f32.mxu1 %vm14157_vm0, %v14156_v1  ;;  %13552 = vmatpush3.msra.mxu1 %v9682_v18 }
0x4cb0   :  { %13561 = vmatprep.subr.mxu1 %v14156_v1 }
0x4cbc   :  { %10408 = vrot.lane.b32.xlu1 %v15302_v44, %s14167_s16 }
0x4d38   :  { %v9849_v22 = vpop.xlane.xlu1 %9848 }
0x4d39   :  { %14060 = vrcp.f32 %v9849_v22  ;;  %v10016_v13 = vpop.xlane.xlu0 %10015 }
0x4d3a   :  { %14062 = vrcp.f32 %v10016_v13 }
0x4d3c   :  { %v10409_v51 = vpop.permute.xlu1 %10408 }
0x4d43   :  { %v14061_v11 = vpop.eup %14060 }
0x4d44   :  { %v14063_v17 = vpop.eup %14062 }
0x4d7d   :  { %v9843_v39 = vpop.f32.mrb[104].mxu1 }
0x4d7e   :  { %v9851_v23 = vmul.f32 %v14061_v11, %v9843_v39  ;;  %v13535_v24 = vpop.f32.mrb[105].mxu1 }
0x4d80   :  { %13554 = vmatmul.mubr.msk.f32.vlgmr.msra.gmra.mrb[108].mxu1 %vm99_vm3, %v9851_v23 }
0x4d81   :  { %v10010_v25 = vpop.f32.mrb[106].mxu1  ;;  %13563 = vmatprep.mubr.msk.f32.mxu1 %vm14157_vm0, %v14156_v1 }
0x4d82   :  { %v10018_v26 = vmul.f32 %v14063_v17, %v10010_v25  ;;  %v13545_v27 = vpop.f32.mrb[107].mxu1  ;;  %v12342_v17 = vld [vmem:[%s15590_s8 + $0xe] ss:$0 sm:$0xff] }
0x4d84   :  { %13549 = vmatmul.mubr.msk.f32.vlgmr.msra.gmra.mrb[106].mxu0 %vm99_vm3, %v10018_v26  ;;  %v12343_v26 = vld [vmem:[%s15590_s8 + $0xf] ss:$0 sm:$0xff] }
0x4d85   :  { %13557 = vmatpush3.xpose.msk.msra.mxu0 %vm99_vm3, %v10168_v19  ;;  %13558 = vmatprep.mubr.msk.f32.mxu0 %vm14157_vm0, %v14156_v1 }
0x4d86   :  { %13566 = vmatprep.subr.mxu0 %v14156_v1 }
0x4d88   :  { %13559 = vmatmul.mubr.msk.f32.vlgmr.msra.gmra.mrb[108].mxu0 %vm99_vm3, %v10166_v20 }
0x4d89   :  { %13568 = vmatprep.mubr.msk.f32.mxu0 %vm14157_vm0, %v14156_v1  ;;  %13567 = vmatpush3.msra.mxu0 %v9684_v41  ;;  %v10764_v41 = vld [vmem:[#allocation2 + $0x180] sm:$0xff] }
0x4d8a   :  { %13576 = vmatprep.subr.mxu0 %v14156_v1 }
0x4e53   :  { %v10161_v28 = vpop.f32.mrb[108].mxu1 }
0x4e54   :  { %v13555_v29 = vpop.f32.mrb[109].mxu1 }
0x4e57   :  { %v10088_v30 = vpop.f32.mrb[106].mxu0 }
0x4e58   :  { %v15360_v32 = vadd.f32 %v10161_v28, %v10088_v30  ;;  %v13550_v21 = vpop.f32.mrb[107].mxu0 }
0x4e5b   :  { %v10239_v33 = vpop.f32.mrb[108].mxu0 }
0x4e5c   :  { %v10243_v34 = vmul.f32 0.35355338, %v10239_v33  ;;  %v13560_v36 = vpop.f32.mrb[109].mxu0 }
0x4e5e   :  { %v10244_v38 = vsel %vm14250_vm1, %v10243_v34, -1e+30 }
0x4e5f   :  { %v10245_v40 = vsel %vm99_vm3, %v10244_v38, -inf }
0x4e60   :  { %10246 = vmax.xlane.f32.xlu0 %v10245_v40 }
0x4e76   :  { %10251 = vrot.lane.b32.xlu0 %v15302_v44, %s14166_s15 }
0x4e7a   :  { %10406 = vrot.lane.b32.xlu0 %v15302_v44, %s14152_s20 }
0x4eed   :  { %v10247_v42 = vpop.xlane.xlu0 %10246 }
0x4eee   :  { %v10248_v46 = vsub.f32 %v10244_v38, %v10247_v42 }
0x4ef0   :  { %v10249_v47 = vmul.f32 1.442695, %v10248_v46 }
0x4ef1   :  { %v10252_v48 = vpop.permute.xlu0 %10251 }
0x4ef2   :  { %14064 = vpow2.f32 %v10249_v47  ;;  %13562 = vmatpush3.msra.mxu1 %v10252_v48 }
0x4ef3   :  { %13571 = vmatprep.subr.mxu1 %v14156_v1 }
0x4ef5   :  { %v10407_v52 = vpop.permute.xlu0 %10406 }
0x4efc   :  { %v14065_v50 = vpop.eup %14064 }
0x4efd   :  { %13564 = vmatmul.mubr.msk.f32.vlgmr.msra.gmra.mrb[110].mxu1 %vm99_vm3, %v14065_v50  ;;  %v10327_v35 = vsel %vm99_vm3, %v14065_v50, 0.0  ;;  %v10761_v50 = vld [vmem:[#allocation2 + $0x48] sm:$0xff] }
0x4efe   :  { %13572 = vmatpush3.xpose.msk.msra.mxu1 %vm99_vm3, %v10409_v51  ;;  %10328 = vadd.xlane.f32.xlu0 %v10327_v35  ;;  %v10762_v51 = vld [vmem:[#allocation2 + $0xb0] sm:$0xff] }
0x4eff   :  { %13573 = vmatprep.mubr.msk.f32.mxu1 %vm14157_vm0, %v14156_v1  ;;  %13581 = vmatprep.subr.mxu1 %v14156_v1  ;;  %v13860_v35 = vpack.c.bf16 %v10762_v51, %v10761_v50  ;;  %v10843_v51 = vld [vmem:[#allocation2 + $0x50] sm:$0xff] }
0x4f01   :  { %13574 = vmatmul.mubr.msk.f32.vlgmr.msra.gmra.mrb[112].mxu1 %vm99_vm3, %v10407_v52  ;;  %v10763_v52 = vld [vmem:[#allocation2 + $0x118] sm:$0xff] }
0x4f02   :  { %13583 = vmatprep.mubr.msk.f32.mxu1 %vm14157_vm0, %v14156_v1  ;;  %13582 = vmatpush3.msra.mxu1 %v9685_v12 }
0x4f03   :  { %13859 = vmatprep.subr.bf16.mxu1 %v14158_v16 }
0x4f14   :  { %10492 = vrot.lane.b32.xlu0 %v15302_v44, %s14168_s17 }
0x4f8b   :  { %v10329_v6 = vpop.xlane.xlu0 %10328 }
0x4f8c   :  { %14066 = vrcp.f32 %v10329_v6  ;;  %v13863_v6 = vpack.c.bf16 %v10764_v41, %v10763_v52  ;;  %v10844_v41 = vld [vmem:[#allocation2 + $0xb8] sm:$0xff] }
0x4f8f   :  { %v10493_v56 = vpop.permute.xlu0 %10492 }
0x4f96   :  { %v14067_v53 = vpop.eup %14066 }
0x4fd0   :  { %v10323_v54 = vpop.f32.mrb[110].mxu1 }
0x4fd1   :  { %v10331_v55 = vmul.f32 %v14067_v53, %v10323_v54  ;;  %v13565_v45 = vpop.f32.mrb[111].mxu1 }
0x4fd3   :  { %13569 = vmatmul.mubr.msk.f32.vlgmr.msra.gmra.mrb[110].mxu0 %vm99_vm3, %v10331_v55 }
0x4fd4   :  { %13577 = vmatpush3.msra.mxu0 %v10493_v56  ;;  %v10480_v57 = vpop.f32.mrb[112].mxu1  ;;  %13578 = vmatprep.mubr.msk.f32.mxu0 %vm14157_vm0, %v14156_v1 }
0x4fd5   :  { %v10484_v58 = vmul.f32 0.35355338, %v10480_v57  ;;  %v13575_v44 = vpop.f32.mrb[113].mxu1  ;;  %13853 = vmatprep.subr.bf16.mxu0 %v14158_v16  ;;  %v10679_v57 = vld [vmem:[#allocation2 + $0x40] sm:$0xff] }
0x4fd7   :  { %v10485_v15 = vsel %vm14250_vm1, %v10484_v58, -1e+30  ;;  %v10680_v58 = vld [vmem:[#allocation2 + $0xa8] sm:$0xff] }
0x4fd8   :  { %v10486_v59 = vsel %vm99_vm3, %v10485_v15, -inf }
0x4fd9   :  { %10487 = vmax.xlane.f32.xlu1 %v10486_v59 }
0x5066   :  { %v10488_v60 = vpop.xlane.xlu1 %10487 }
0x5067   :  { %v10489_v61 = vsub.f32 %v10485_v15, %v10488_v60  ;;  %v13854_v15 = vpack.c.bf16 %v10680_v58, %v10679_v57  ;;  %v10681_v60 = vld [vmem:[#allocation2 + $0x110] sm:$0xff] }
0x5069   :  { %v10490_v62 = vmul.f32 1.442695, %v10489_v61  ;;  %v10682_v61 = vld [vmem:[#allocation2 + $0x178] sm:$0xff] }
0x506b   :  { %14068 = vpow2.f32 %v10490_v62  ;;  %v13857_v62 = vpack.c.bf16 %v10682_v61, %v10681_v60 }
0x5075   :  { %v14069_v2 = vpop.eup %14068 }
0x5076   :  { %13579 = vmatmul.mubr.msk.f32.vlgmr.msra.gmra.mrb[112].mxu0 %vm99_vm3, %v14069_v2  ;;  %v10568_v5 = vsel %vm99_vm3, %v14069_v2, 0.0 }
0x5077   :  { %10569 = vadd.xlane.f32.xlu1 %v10568_v5  ;;  %13594 = vmatprep.mubr.msk.f32.mxu0 %vm14157_vm0, %v14156_v1 }
0x5078   :  { %13855 = vmatpush3.bf16.msra.mxu0 %v13854_v15 }
0x5079   :  { %13856 = vmatprep.subr.bf16.mxu0 %v14158_v16 }
0x507b   :  { %9097 = vadd.xlane.f32.xlu1 %v9096_v3 }
0x507c   :  { %13858 = vmatpush3.bf16.msra.mxu0 %v13857_v62 }
0x507d   :  { %13608 = vmatprep.subr.mxu0 %v14156_v1 }
0x50a6   :  { %v10401_v4 = vpop.f32.mrb[110].mxu0 }
0x50a7   :  { %v10405_v7 = vadd.f32 %v10401_v4, %v15360_v32  ;;  %v13570_v10 = vpop.f32.mrb[111].mxu0  ;;  %v12376_v32 = vld [vmem:[%s15590_s8 + $0x11] ss:$0 sm:$0xff] }
0x5104   :  { %v10570_v8 = vpop.xlane.xlu1 %10569 }
0x5105   :  { %14070 = vrcp.f32 %v10570_v8  ;;  %v12377_v8 = vld [vmem:[%s15590_s8 + $0x17] ss:$0 sm:$0xff] }
0x5108   :  { %v9098_v43 = vpop.xlane.xlu1 %9097 }
0x5109   :  { %v9099_v37 = vmul.f32 0.03125, %v9098_v43 }
0x510b   :  { %v9100_v14 = vsub.f32 %v9093_v9, %v9099_v37  ;;  %v12345_v9 = vld [vmem:[%s15590_s8 + $0x1e] ss:$0 sm:$0xff]  ;;  %v12378_v37 = vld [vmem:[%s15590_s8 + $0x18] ss:$0 sm:$0xff] }
0x510d   :  { %v9101_v31 = vmul.f32 %v9100_v14, %v9100_v14 }
0x510f   :  { %v9102_v18 = vsel %vm570_vm7, %v9101_v31, 0.0  ;;  %v14071_v19 = vpop.eup %14070 }
0x5110   :  { %9103 = vadd.xlane.f32.xlu1 %v9102_v18  ;;  %v12381_v18 = vld [vmem:[%s15590_s8 + $0x13] ss:$0 sm:$0xff] }
0x5149   :  { %v10564_v20 = vpop.f32.mrb[112].mxu0 }
0x514a   :  { %v10572_v22 = vmul.f32 %v14071_v19, %v10564_v20  ;;  %v13580_v13 = vpop.f32.mrb[113].mxu0 }
0x514b   :  { %v12379_v13 = vld [vmem:[%s15590_s8 + $0x12] ss:$0 sm:$0xff] }
0x514c   :  { %13584 = vmatmul.mubr.msk.f32.vlgmr.msra.gmra.mrb[114].mxu1 %vm99_vm3, %v10572_v22 }
0x514d   :  { %13605 = vmatprep.mubr.msk.f32.mxu1 %vm14157_vm0, %v14156_v1  ;;  %13861 = vmatpush3.bf16.msra.mxu1 %v13860_v35 }
0x514e   :  { %13862 = vmatprep.subr.bf16.mxu1 %v14158_v16 }
0x5151   :  { %13864 = vmatpush3.bf16.msra.mxu1 %v13863_v6 }
0x5152   :  { %13613 = vmatprep.subr.mxu1 %v14156_v1 }
0x519d   :  { %v9104_v11 = vpop.xlane.xlu1 %9103 }
0x519e   :  { %v9105_v39 = vmul.f32 0.03125, %v9104_v11 }
0x51a0   :  { %v9106_v23 = vadd.f32 1e-05, %v9105_v39 }
0x51a2   :  { %14072 = vrsqrt.f32 %v9106_v23 }
0x51ac   :  { %v14073_v24 = vpop.eup %14072 }
0x51ad   :  { %v9108_v25 = vmul.f32 %v14073_v24, %v9100_v14 }
0x51af   :  { %v9113_v27 = vmul.f32 %v12342_v17, %v9108_v25 }
0x51b1   :  { %v9118_v28 = vadd.f32 %v12343_v26, %v9113_v27 }
0x51b3   :  { %v9121_v29 = vsel %vm570_vm7, %v9118_v28, 0.0 }
0x51b4   :  { %9122 = vadd.xlane.f32.xlu0 %v9121_v29 }
0x521f   :  { %v10642_v30 = vpop.f32.mrb[114].mxu1 }
0x5220   :  { %v10646_v21 = vadd.f32 %v10642_v30, %v10405_v7  ;;  %v13585_v33 = vpop.f32.mrb[115].mxu1 }
0x5222   :  { %v10652_v34 = vadd.f32 %v12376_v32, %v10646_v21 }
0x5224   :  { %v10653_v36 = vadd.f32 %v15293_v49, %v10652_v34 }
0x5226   :  { %v10656_v38 = vsel %vm570_vm7, %v10653_v36, 0.0 }
0x5227   :  { %10657 = vadd.xlane.f32.xlu1 %v10656_v38 }
0x5241   :  { %v9123_v40 = vpop.xlane.xlu0 %9122 }
0x5242   :  { %v9124_v42 = vmul.f32 0.03125, %v9123_v40 }
0x5244   :  { %v9125_v46 = vsub.f32 %v9118_v28, %v9124_v42 }
0x5246   :  { %v9126_v47 = vmul.f32 %v9125_v46, %v9125_v46 }
0x5248   :  { %v9127_v48 = vsel %vm570_vm7, %v9126_v47, 0.0 }
0x5249   :  { %9128 = vadd.xlane.f32.xlu1 %v9127_v48 }
0x52b4   :  { %v10658_v49 = vpop.xlane.xlu1 %10657 }
0x52b5   :  { %v10659_v53 = vmul.f32 0.03125, %v10658_v49 }
0x52b7   :  { %v10660_v54 = vsub.f32 %v10653_v36, %v10659_v53 }
0x52b9   :  { %v10661_v55 = vmul.f32 %v10660_v54, %v10660_v54 }
0x52bb   :  { %v10662_v45 = vsel %vm570_vm7, %v10661_v55, 0.0 }
0x52bc   :  { %10663 = vadd.xlane.f32.xlu1 %v10662_v45 }
0x52d6   :  { %v9129_v56 = vpop.xlane.xlu1 %9128 }
0x52d7   :  { %v9130_v44 = vmul.f32 0.03125, %v9129_v56 }
0x52d9   :  { %v9131_v59 = vadd.f32 1e-05, %v9130_v44 }
0x52db   :  { %14074 = vrsqrt.f32 %v9131_v59 }
0x52e5   :  { %v14075_v63 = vpop.eup %14074 }
0x52e6   :  { %v9133_v2 = vmul.f32 %v14075_v63, %v9125_v46 }
0x52e8   :  { %v9138_v5 = vmul.f32 %v12344_v0, %v9133_v2 }
0x52ea   :  { %v9143_v3 = vadd.f32 %v12345_v9, %v9138_v5 }
0x52ec   :  { %13606 = vmatmul.mubr.msk.f32.vlgmr.msra.gmra.mrb[116].mxu1 %vm570_vm7, %v9143_v3 }
0x52ed   :  { %13615 = vmatprep.mubr.msk.f32.mxu1 %vm14157_vm0, %v14156_v1 }
0x5349   :  { %v10664_v4 = vpop.xlane.xlu1 %10663 }
0x534a   :  { %v10665_v7 = vmul.f32 0.03125, %v10664_v4 }
0x534c   :  { %v10666_v10 = vadd.f32 1e-05, %v10665_v7 }
0x534e   :  { %14076 = vrsqrt.f32 %v10666_v10 }
0x5358   :  { %v14077_v12 = vpop.eup %14076 }
0x5359   :  { %v10668_v43 = vmul.f32 %v14077_v12, %v10660_v54 }
0x535b   :  { %v10673_v14 = vmul.f32 %v12377_v8, %v10668_v43 }
0x535d   :  { %v15438_v31 = vadd.f32 %v12378_v37, %v10673_v14 }
0x535f   :  { %13595 = vmatmul.mubr.msk.f32.vlgmr.msra.gmra.mrb[114].mxu0 %vm570_vm7, %v15438_v31 }
0x5360   :  { %13610 = vmatprep.mubr.msk.f32.mxu0 %vm14157_vm0, %v14156_v1 }
0x53bf   :  { %v10839_v19 = vpop.f32.mrb[116].mxu1 }
0x53c0   :  { %v15447_v20 = vadd.f32 %v12381_v18, %v10839_v19  ;;  %v13607_v22 = vpop.f32.mrb[117].mxu1  ;;  %v10845_v18 = vld [vmem:[#allocation2 + $0x120] sm:$0xff] }
0x53c2   :  { %11013 = vrot.lane.b32.xlu1 %v15447_v20, %s14159_s11  ;;  %13609 = vmatpush3.xpose.msk.msra.mxu0 %vm99_vm3, %v15447_v20 }
0x53c3   :  { %13618 = vmatprep.subr.mxu0 %v14156_v1 }
0x5432   :  { %v10757_v11 = vpop.f32.mrb[114].mxu0 }
0x5433   :  { %v10758_v39 = vadd.f32 %v12379_v13, %v10757_v11  ;;  %v13596_v23 = vpop.f32.mrb[115].mxu0 }
0x5434   :  { %v11014_v24 = vpop.permute.xlu1 %11013 }
0x5435   :  { %11011 = vrot.lane.b32.xlu0 %v10758_v39, %s14159_s11  ;;  %13611 = vmatmul.mubr.msk.f32.vlgmr.msra.gmra.mrb[116].mxu0 %vm99_vm3, %v10758_v39 }
0x5436   :  { %13619 = vmatpush3.xpose.msk.msra.mxu0 %vm99_vm3, %v11014_v24  ;;  %13620 = vmatprep.mubr.msk.f32.mxu0 %vm14157_vm0, %v14156_v1 }
0x5437   :  { %13628 = vmatprep.subr.mxu0 %v14156_v1 }
0x54a7   :  { %v11012_v17 = vpop.permute.xlu0 %11011 }
0x54a8   :  { %13621 = vmatmul.mubr.msk.f32.vlgmr.msra.gmra.mrb[118].mxu0 %vm99_vm3, %v11012_v17 }
0x54a9   :  { %13630 = vmatprep.mubr.msk.f32.mxu0 %vm14157_vm0, %v14156_v1  ;;  %13629 = vmatpush3.msra.mxu0 %v10844_v41 }
0x54aa   :  { %13638 = vmatprep.subr.mxu0 %v14156_v1 }
0x5508   :  { %v10919_v25 = vpop.f32.mrb[116].mxu0 }
0x5509   :  { %v10923_v26 = vmul.f32 0.35355338, %v10919_v25  ;;  %v13612_v27 = vpop.f32.mrb[117].mxu0 }
0x550b   :  { %v10924_v28 = vsel %vm99_vm3, %v10923_v26, -inf }
0x550c   :  { %10925 = vmax.xlane.f32.xlu1 %v10924_v28 }
0x551d   :  { %10930 = vrot.lane.b32.xlu1 %v15447_v20, %s14160_s12 }
0x557b   :  { %v11085_v29 = vpop.f32.mrb[118].mxu0 }
0x557c   :  { %v11089_v30 = vmul.f32 0.35355338, %v11085_v29  ;;  %v13622_v32 = vpop.f32.mrb[119].mxu0 }
0x557e   :  { %v11090_v21 = vsel %vm99_vm3, %v11089_v30, -inf }
0x557f   :  { %11091 = vmax.xlane.f32.xlu0 %v11090_v21 }
0x5595   :  { %11096 = vrot.lane.b32.xlu0 %v15447_v20, %s14161_s6 }
0x5599   :  { %v10926_v33 = vpop.xlane.xlu1 %10925  ;;  %11325 = vrot.lane.b32.xlu0 %v15447_v20, %s14165_s7 }
0x559a   :  { %v10927_v34 = vsub.f32 %v10923_v26, %v10926_v33 }
0x559c   :  { %v10928_v36 = vmul.f32 1.442695, %v10927_v34  ;;  %v10846_v34 = vld [vmem:[#allocation2 + $0x188] sm:$0xff] }
0x559d   :  { %v10931_v38 = vpop.permute.xlu1 %10930  ;;  %11323 = vrot.lane.b32.xlu0 %v10758_v39, %s14165_s7 }
0x559e   :  { %14078 = vpow2.f32 %v10928_v36  ;;  %13614 = vmatpush3.msra.mxu1 %v10931_v38 }
0x559f   :  { %13623 = vmatprep.subr.mxu1 %v14156_v1 }
0x55a8   :  { %v14079_v40 = vpop.eup %14078 }
0x55a9   :  { %13616 = vmatmul.mubr.msk.f32.vlgmr.msra.gmra.mrb[118].mxu1 %vm99_vm3, %v14079_v40  ;;  %v11006_v42 = vsel %vm99_vm3, %v14079_v40, 0.0 }
0x55aa   :  { %13625 = vmatprep.mubr.msk.f32.mxu1 %vm14157_vm0, %v14156_v1 }
0x55bc   :  { %11007 = vadd.xlane.f32.xlu0 %v11006_v42 }
0x55d2   :  { %11563 = vrot.lane.b32.xlu0 %v10758_v39, %s14152_s20 }
0x560c   :  { %v11092_v46 = vpop.xlane.xlu0 %11091 }
0x560d   :  { %v11093_v47 = vsub.f32 %v11089_v30, %v11092_v46 }
0x560f   :  { %v11094_v48 = vmul.f32 1.442695, %v11093_v47 }
0x5610   :  { %v11097_v50 = vpop.permute.xlu0 %11096 }
0x5611   :  { %14080 = vpow2.f32 %v11094_v48  ;;  %13624 = vmatpush3.msra.mxu1 %v11097_v50  ;;  %v12399_v48 = vld [vmem:[%s15590_s8 + $0x14] ss:$0 sm:$0xff] }
0x5612   :  { %13633 = vmatprep.subr.mxu1 %v14156_v1 }
0x5614   :  { %v11326_v6 = vpop.permute.xlu0 %11325 }
0x5618   :  { %v11324_v49 = vpop.permute.xlu0 %11323 }
0x561b   :  { %v14081_v35 = vpop.eup %14080 }
0x561c   :  { %13626 = vmatmul.mubr.msk.f32.vlgmr.msra.gmra.mrb[120].mxu1 %vm99_vm3, %v14081_v35  ;;  %v11172_v52 = vsel %vm99_vm3, %v14081_v35, 0.0 }
0x561d   :  { %11173 = vadd.xlane.f32.xlu1 %v11172_v52  ;;  %13634 = vmatpush3.msra.mxu1 %v10843_v51 }
0x561e   :  { %13635 = vmatprep.mubr.msk.f32.mxu1 %vm14157_vm0, %v14156_v1  ;;  %13643 = vmatprep.subr.mxu1 %v14156_v1 }
0x562e   :  { %11408 = vrot.lane.b32.xlu1 %v15447_v20, %s14164_s14 }
0x5649   :  { %v11008_v53 = vpop.xlane.xlu0 %11007 }
0x564a   :  { %14082 = vrcp.f32 %v11008_v53 }
0x564d   :  { %v11564_v14 = vpop.permute.xlu0 %11563 }
0x5654   :  { %v14083_v54 = vpop.eup %14082 }
0x567c   :  { %v11002_v55 = vpop.f32.mrb[118].mxu1 }
0x567d   :  { %v11010_v45 = vmul.f32 %v14083_v54, %v11002_v55  ;;  %v13617_v56 = vpop.f32.mrb[119].mxu1 }
0x567e   :  { %v11836_v56 = vld [vmem:[#allocation2 + $0xc0] sm:$0xff] }
0x567f   :  { %13636 = vmatmul.mubr.msk.f32.vlgmr.msra.gmra.mrb[122].mxu1 %vm99_vm3, %v11010_v45  ;;  %v11835_v45 = vld [vmem:[#allocation2 + $0x58] sm:$0xff] }
0x5680   :  { %13645 = vmatprep.mubr.msk.f32.mxu1 %vm14157_vm0, %v14156_v1 }
0x56aa   :  { %v11174_v57 = vpop.xlane.xlu1 %11173 }
0x56ab   :  { %14084 = vrcp.f32 %v11174_v57  ;;  %v13866_v57 = vpack.c.bf16 %v11836_v56, %v11835_v45 }
0x56ae   :  { %v11409_v58 = vpop.permute.xlu1 %11408 }
0x56af   :  { %13644 = vmatpush3.msra.mxu1 %v11409_v58  ;;  %v11837_v58 = vld [vmem:[#allocation2 + $0x128] sm:$0xff] }
0x56b0   :  { %13653 = vmatprep.subr.mxu1 %v14156_v1 }
0x56b5   :  { %v14085_v44 = vpop.eup %14084 }
0x56ef   :  { %v11168_v15 = vpop.f32.mrb[120].mxu1 }
0x56f0   :  { %v11176_v59 = vmul.f32 %v14085_v44, %v11168_v15  ;;  %v13627_v60 = vpop.f32.mrb[121].mxu1  ;;  %v11838_v44 = vld [vmem:[#allocation2 + $0x190] sm:$0xff] }
0x56f1   :  { %v13869_v15 = vpack.c.bf16 %v11838_v44, %v11837_v58  ;;  %v11920_v60 = vld [vmem:[#allocation4 + $0x40] sm:$0xff] }
0x56f2   :  { %13631 = vmatmul.mubr.msk.f32.vlgmr.msra.gmra.mrb[120].mxu0 %vm99_vm3, %v11176_v59  ;;  %v11919_v59 = vld [vmem:[#allocation4 + $0x28] sm:$0xff] }
0x56f3   :  { %13639 = vmatpush3.xpose.msk.msra.mxu0 %vm99_vm3, %v11326_v6  ;;  %13640 = vmatprep.mubr.msk.f32.mxu0 %vm14157_vm0, %v14156_v1 }
0x56f4   :  { %13648 = vmatprep.subr.mxu0 %v14156_v1 }
0x56f6   :  { %13641 = vmatmul.mubr.msk.f32.vlgmr.msra.gmra.mrb[122].mxu0 %vm99_vm3, %v11324_v49 }
0x56f7   :  { %13650 = vmatprep.mubr.msk.f32.mxu0 %vm14157_vm0, %v14156_v1  ;;  %13649 = vmatpush3.msra.mxu0 %v10845_v18  ;;  %v11925_v18 = vld [vmem:[#allocation4 + $0xb8] sm:$0xff] }
0x56f8   :  { %13658 = vmatprep.subr.mxu0 %v14156_v1 }
0x5752   :  { %v11319_v61 = vpop.f32.mrb[122].mxu1 }
0x5753   :  { %v13637_v62 = vpop.f32.mrb[123].mxu1 }
0x5754   :  { %v11921_v62 = vld [vmem:[#allocation4 + $0x58] sm:$0xff] }
0x57c5   :  { %v11246_v63 = vpop.f32.mrb[120].mxu0 }
0x57c6   :  { %v11320_v0 = vadd.f32 %v11319_v61, %v11246_v63  ;;  %v13632_v2 = vpop.f32.mrb[121].mxu0  ;;  %v13875_v63 = vpack.c.bf16 %v11921_v62, %v11920_v60 }
0x57c7   :  { %v11923_v2 = vld [vmem:[#allocation4 + $0x88] sm:$0xff] }
0x57c9   :  { %v11397_v9 = vpop.f32.mrb[122].mxu0 }
0x57ca   :  { %v11401_v5 = vmul.f32 0.35355338, %v11397_v9  ;;  %v13642_v3 = vpop.f32.mrb[123].mxu0 }
0x57cc   :  { %v11402_v4 = vsel %vm99_vm3, %v11401_v5, -inf }
0x57cd   :  { %11403 = vmax.xlane.f32.xlu1 %v11402_v4 }
0x57de   :  { %11565 = vrot.lane.b32.xlu1 %v15447_v20, %s14152_s20 }
0x585a   :  { %v11404_v7 = vpop.xlane.xlu1 %11403 }
0x585b   :  { %v11405_v10 = vsub.f32 %v11401_v5, %v11404_v7 }
0x585d   :  { %v11406_v12 = vmul.f32 1.442695, %v11405_v10  ;;  %v12400_v10 = vld [vmem:[%s15590_s8 + $0x19] ss:$0 sm:$0xff] }
0x585e   :  { %v11566_v43 = vpop.permute.xlu1 %11565 }
0x585f   :  { %14086 = vpow2.f32 %v11406_v12 }
0x5869   :  { %v14087_v8 = vpop.eup %14086 }
0x586a   :  { %13646 = vmatmul.mubr.msk.f32.vlgmr.msra.gmra.mrb[124].mxu1 %vm99_vm3, %v14087_v8  ;;  %v11484_v37 = vsel %vm99_vm3, %v14087_v8, 0.0  ;;  %v12401_v8 = vld [vmem:[%s15590_s8 + $0x1a] ss:$0 sm:$0xff] }
0x586b   :  { %13654 = vmatpush3.xpose.msk.msra.mxu1 %vm99_vm3, %v11566_v43  ;;  %11485 = vadd.xlane.f32.xlu1 %v11484_v37 }
0x586c   :  { %13655 = vmatprep.mubr.msk.f32.mxu1 %vm14157_vm0, %v14156_v1  ;;  %13663 = vmatprep.subr.mxu1 %v14156_v1 }
0x586e   :  { %13656 = vmatmul.mubr.msk.f32.vlgmr.msra.gmra.mrb[126].mxu1 %vm99_vm3, %v11564_v14  ;;  %v11924_v14 = vld [vmem:[#allocation4 + $0xa0] sm:$0xff] }
0x586f   :  { %13665 = vmatprep.mubr.msk.f32.mxu1 %vm14157_vm0, %v14156_v1  ;;  %13664 = vmatpush3.msra.mxu1 %v10846_v34 }
0x5870   :  { %13871 = vmatprep.subr.bf16.mxu1 %v14158_v16 }
0x587c   :  { %11648 = vrot.lane.b32.xlu1 %v15447_v20, %s14167_s16 }
0x58f8   :  { %v11486_v19 = vpop.xlane.xlu1 %11485 }
0x58f9   :  { %14088 = vrcp.f32 %v11486_v19  ;;  %v13881_v19 = vpack.c.bf16 %v11925_v18, %v11924_v14 }
0x58fc   :  { %v11649_v23 = vpop.permute.xlu1 %11648 }
0x5903   :  { %v14089_v22 = vpop.eup %14088 }
0x593d   :  { %v11480_v13 = vpop.f32.mrb[124].mxu1 }
0x593e   :  { %v11488_v11 = vmul.f32 %v14089_v22, %v11480_v13  ;;  %v13647_v39 = vpop.f32.mrb[125].mxu1  ;;  %v12402_v22 = vld [vmem:[%s15590_s8 + $0x15] ss:$0 sm:$0xff] }
0x5940   :  { %13651 = vmatmul.mubr.msk.f32.vlgmr.msra.gmra.mrb[124].mxu0 %vm99_vm3, %v11488_v11 }
0x5941   :  { %13659 = vmatpush3.msra.mxu0 %v11649_v23  ;;  %v11637_v24 = vpop.f32.mrb[126].mxu1  ;;  %13660 = vmatprep.mubr.msk.f32.mxu0 %vm14157_vm0, %v14156_v1 }
0x5942   :  { %v11641_v17 = vmul.f32 0.35355338, %v11637_v24  ;;  %v13657_v20 = vpop.f32.mrb[127].mxu1  ;;  %13865 = vmatprep.subr.bf16.mxu0 %v14158_v16  ;;  %v12404_v24 = vld [vmem:[%s15590_s8 + $0x16] ss:$0 sm:$0xff] }
0x5944   :  { %v11642_v25 = vsel %vm99_vm3, %v11641_v17, -inf }
0x5945   :  { %11643 = vmax.xlane.f32.xlu0 %v11642_v25 }
0x59d2   :  { %v11644_v26 = vpop.xlane.xlu0 %11643 }
0x59d3   :  { %v11645_v27 = vsub.f32 %v11641_v17, %v11644_v26 }
0x59d5   :  { %v11646_v28 = vmul.f32 1.442695, %v11645_v27 }
0x59d7   :  { %14090 = vpow2.f32 %v11646_v28 }
0x59e1   :  { %v14091_v29 = vpop.eup %14090 }
0x59e2   :  { %13661 = vmatmul.mubr.msk.f32.vlgmr.msra.gmra.mrb[126].mxu0 %vm99_vm3, %v14091_v29  ;;  %v11724_v30 = vsel %vm99_vm3, %v14091_v29, 0.0 }
0x59e3   :  { %11725 = vadd.xlane.f32.xlu0 %v11724_v30  ;;  %13676 = vmatprep.mubr.msk.f32.mxu0 %vm14157_vm0, %v14156_v1 }
0x59e4   :  { %13867 = vmatpush3.bf16.msra.mxu0 %v13866_v57 }
0x59e5   :  { %13868 = vmatprep.subr.bf16.mxu0 %v14158_v16 }
0x59e8   :  { %13870 = vmatpush3.bf16.msra.mxu0 %v13869_v15  ;;  %v12408_v15 = vld [vmem:[%s15590_s8 + $0x1f] ss:$0 sm:$0xff] }
0x59e9   :  { %13883 = vmatprep.subr.bf16.mxu0 %v14158_v16 }
0x5a13   :  { %v11558_v32 = vpop.f32.mrb[124].mxu0 }
0x5a14   :  { %v11562_v21 = vadd.f32 %v11558_v32, %v11320_v0  ;;  %v13652_v33 = vpop.f32.mrb[125].mxu0  ;;  %v11922_v0 = vld [vmem:[#allocation4 + $0x70] sm:$0xff] }
0x5a15   :  { %v13878_v9 = vpack.c.bf16 %v11923_v2, %v11922_v0 }
0x5a70   :  { %v11726_v36 = vpop.xlane.xlu0 %11725 }
0x5a71   :  { %14092 = vrcp.f32 %v11726_v36 }
0x5a7b   :  { %v14093_v38 = vpop.eup %14092 }
0x5ab5   :  { %v11720_v40 = vpop.f32.mrb[126].mxu0 }
0x5ab6   :  { %v11728_v42 = vmul.f32 %v14093_v38, %v11720_v40  ;;  %v13662_v46 = vpop.f32.mrb[127].mxu0  ;;  %v12406_v38 = vld [vmem:[%s15590_s8 + $0x1b] ss:$0 sm:$0xff] }
0x5ab8   :  { %13666 = vmatmul.mubr.msk.f32.vlgmr.msra.gmra.mrb[128].mxu1 %vm99_vm3, %v11728_v42  ;;  %v12407_v42 = vld [vmem:[%s15590_s8 + $0x1c] ss:$0 sm:$0xff] }
0x5ab9   :  { %13695 = vmatprep.mubr.msk.f32.mxu1 %vm14157_vm0, %v14156_v1 }
0x5b8b   :  { %v11798_v47 = vpop.f32.mrb[128].mxu1 }
0x5b8c   :  { %v11802_v50 = vadd.f32 %v11798_v47, %v11562_v21  ;;  %v13667_v51 = vpop.f32.mrb[129].mxu1 }
0x5b8e   :  { %v11808_v35 = vadd.f32 %v12399_v48, %v11802_v50 }
0x5b90   :  { %v11809_v52 = vadd.f32 %v11808_v35, %v15438_v31  ;;  %v11918_v31 = vld [vmem:[#allocation4 + $0x10] sm:$0xff] }
0x5b91   :  { %v13872_v61 = vpack.c.bf16 %v11919_v59, %v11918_v31  ;;  %v12409_v59 = vld [vmem:[%s15590_s8 + $0x20] ss:$0 sm:$0xff] }
0x5b92   :  { %v11812_v41 = vsel %vm570_vm7, %v11809_v52, 0.0 }
0x5b93   :  { %11813 = vadd.xlane.f32.xlu1 %v11812_v41  ;;  %13873 = vmatpush3.bf16.msra.mxu1 %v13872_v61  ;;  %v12410_v61 = vld [vmem:[%s15590_s8 + $0x21] ss:$0 sm:$0xff] }
0x5b94   :  { %13874 = vmatprep.subr.bf16.mxu1 %v14158_v16 }
0x5b97   :  { %13876 = vmatpush3.bf16.msra.mxu1 %v13875_v63 }
0x5b98   :  { %13877 = vmatprep.subr.bf16.mxu1 %v14158_v16 }
0x5b9b   :  { %13879 = vmatpush3.bf16.msra.mxu1 %v13878_v9 }
0x5b9c   :  { %13880 = vmatprep.subr.bf16.mxu1 %v14158_v16 }
0x5b9f   :  { %13882 = vmatpush3.bf16.msra.mxu1 %v13881_v19 }
0x5c20   :  { %v11814_v6 = vpop.xlane.xlu1 %11813 }
0x5c21   :  { %v11815_v49 = vmul.f32 0.03125, %v11814_v6  ;;  %v12055_v6 = vld [vmem:[#allocation2 + $0x60] sm:$0xff] }
0x5c23   :  { %v11816_v53 = vsub.f32 %v11809_v52, %v11815_v49  ;;  %v12056_v49 = vld [vmem:[#allocation2 + $0xc8] sm:$0xff] }
0x5c25   :  { %v11817_v54 = vmul.f32 %v11816_v53, %v11816_v53 }
0x5c27   :  { %v11818_v55 = vsel %vm570_vm7, %v11817_v54, 0.0  ;;  %v12057_v54 = vld [vmem:[#allocation2 + $0x130] sm:$0xff] }
0x5c28   :  { %11819 = vadd.xlane.f32.xlu0 %v11818_v55  ;;  %v12058_v55 = vld [vmem:[#allocation2 + $0x198] sm:$0xff] }
0x5c29   :  { %v13887_v45 = vpack.c.bf16 %v12058_v55, %v12057_v54 }
0x5cb5   :  { %v11820_v5 = vpop.xlane.xlu0 %11819 }
0x5cb6   :  { %v11821_v3 = vmul.f32 0.03125, %v11820_v5 }
0x5cb8   :  { %v11822_v4 = vadd.f32 1e-05, %v11821_v3 }
0x5cba   :  { %14094 = vrsqrt.f32 %v11822_v4 }
0x5cc4   :  { %v14095_v7 = vpop.eup %14094 }
0x5cc5   :  { %v11824_v12 = vmul.f32 %v14095_v7, %v11816_v53  ;;  %v13884_v53 = vpack.c.bf16 %v12056_v49, %v12055_v6 }
0x5cc7   :  { %v11829_v43 = vmul.f32 %v12400_v10, %v11824_v12 }
0x5cc9   :  { %v11834_v37 = vadd.f32 %v12401_v8, %v11829_v43 }
0x5ccb   :  { %13677 = vmatmul.mubr.msk.f32.vlgmr.msra.gmra.mrb[128].mxu0 %vm570_vm7, %v11834_v37 }
0x5ccc   :  { %13706 = vmatprep.mubr.msk.f32.mxu0 %vm14157_vm0, %v14156_v1  ;;  %13885 = vmatpush3.bf16.msra.mxu0 %v13884_v53 }
0x5ccd   :  { %13886 = vmatprep.subr.bf16.mxu0 %v14158_v16 }
0x5cd0   :  { %13888 = vmatpush3.bf16.msra.mxu0 %v13887_v45 }
0x5d9e   :  { %v11913_v13 = vpop.f32.mrb[128].mxu0 }
0x5d9f   :  { %v11914_v11 = vadd.f32 %v12402_v22, %v11913_v13  ;;  %v13678_v39 = vpop.f32.mrb[129].mxu0 }
0x5da1   :  { %v11917_v23 = vmax.f32 %v11914_v11, 0.0 }
0x5da3   :  { %13696 = vmatmul.mubr.msk.f32.vlgmr.msra.gmra.mrb[130].mxu1 %vm1734_vm8, %v11917_v23 }
0x5e76   :  { %v12000_v17 = vpop.f32.mrb[130].mxu1 }
0x5e77   :  { %v12001_v1 = vadd.f32 %v12404_v24, %v12000_v17  ;;  %v13697_v20 = vpop.f32.mrb[131].mxu1 }
0x5e79   :  { %v12004_v25 = vadd.f32 %v12001_v1, %v11834_v37 }
0x5e7b   :  { %v12007_v26 = vsel %vm570_vm7, %v12004_v25, 0.0 }
0x5e7c   :  { %12008 = vadd.xlane.f32.xlu0 %v12007_v26 }
0x5f09   :  { %v12009_v27 = vpop.xlane.xlu0 %12008 }
0x5f0a   :  { %v12010_v28 = vmul.f32 0.03125, %v12009_v27 }
0x5f0c   :  { %v12011_v29 = vsub.f32 %v12004_v25, %v12010_v28 }
0x5f0e   :  { %v12012_v30 = vmul.f32 %v12011_v29, %v12011_v29 }
0x5f10   :  { %v12013_v32 = vsel %vm570_vm7, %v12012_v30, 0.0 }
0x5f11   :  { %12014 = vadd.xlane.f32.xlu0 %v12013_v32 }
0x5f9e   :  { %v12015_v21 = vpop.xlane.xlu0 %12014 }
0x5f9f   :  { %v12016_v33 = vmul.f32 0.03125, %v12015_v21 }
0x5fa1   :  { %v12017_v34 = vadd.f32 1e-05, %v12016_v33 }
0x5fa3   :  { %14096 = vrsqrt.f32 %v12017_v34 }
0x5fad   :  { %v14097_v36 = vpop.eup %14096 }
0x5fae   :  { %v12019_v40 = vmul.f32 %v14097_v36, %v12011_v29 }
0x5fb0   :  { %v12024_v46 = vmul.f32 %v12406_v38, %v12019_v40 }
0x5fb2   :  { %v12029_v47 = vadd.f32 %v12407_v42, %v12024_v46 }
0x5fb4   :  { %v12032_v48 = vsel %vm570_vm7, %v12029_v47, 0.0 }
0x5fb5   :  { %12033 = vadd.xlane.f32.xlu0 %v12032_v48 }
0x6042   :  { %v12034_v50 = vpop.xlane.xlu0 %12033 }
0x6043   :  { %v12035_v51 = vmul.f32 0.03125, %v12034_v50 }
0x6045   :  { %v12036_v35 = vsub.f32 %v12029_v47, %v12035_v51 }
0x6047   :  { %v12037_v52 = vmul.f32 %v12036_v35, %v12036_v35 }
0x6049   :  { %v12038_v41 = vsel %vm570_vm7, %v12037_v52, 0.0 }
0x604a   :  { %12039 = vadd.xlane.f32.xlu0 %v12038_v41 }
0x60d7   :  { %v12040_v56 = vpop.xlane.xlu0 %12039 }
0x60d8   :  { %v12041_v57 = vmul.f32 0.03125, %v12040_v56 }
0x60da   :  { %v12042_v58 = vadd.f32 1e-05, %v12041_v57 }
0x60dc   :  { %14098 = vrsqrt.f32 %v12042_v58 }
0x60e6   :  { %v14099_v44 = vpop.eup %14098 }
0x60e7   :  { %v12044_v31 = vmul.f32 %v14099_v44, %v12036_v35 }
0x60e9   :  { %v12049_v60 = vmul.f32 %v12408_v15, %v12044_v31 }
0x60eb   :  { %v12054_v16 = vadd.f32 %v12409_v59, %v12049_v60 }
0x60ed   :  { %13707 = vmatmul.mubr.msk.f32.vlgmr.msra.gmra.mrb[130].mxu0 %vm570_vm7, %v12054_v16 }
0x61c0   :  { %v12133_v62 = vpop.f32.mrb[130].mxu0 }
0x61c1   :  { %v12134_v63 = vadd.f32 %v12410_v61, %v12133_v62  ;;  %v13708_v0 = vpop.f32.mrb[131].mxu0 }
0x61c3   :  { %12412 = vst.msk [vmem:[%s15591_s9 + $0x8] sm:$0xff] %vm248_vm6, %v12134_v63 }
0x61c4   :  { %12143 = vsyncpa [#allocation3], 1 }
0x61c5   :  { %12144 = vsyncpa [#allocation5], 1 }

</bundles_post_ra>
